<compile_context>
chip_gen: v7x
topology: tpu7x:2x2x1
jax: 0.10.0
libtpu: 0.0.40
codegen_flags: <defaults>
</compile_context>

<pallas_src>
import numpy as np
import jax
import jax.numpy as jnp
from jax import lax
from jax.experimental import pallas as pl
from jax.experimental.pallas import tpu as pltpu

BN_EPS = 1e-5


def _round_up(x, m):
    return -(-x // m) * m


# ---------------------------------------------------------------------------
# Parameter folding: conv weight + bias + eval-mode BN -> banded matmul G, shift
# ---------------------------------------------------------------------------
def _fold_layer(p, w_in, ow, cin, cout):
    """For one conv+BN+ReLU layer build:
      G[t] (t = kd*3+kh): (w_in*cin, ow*cout) bf16 block-banded matrix so that
        (activation row in (w, c) lane order) @ G[t] applies the 3 kw taps and
        the W->OW shrinkage of the VALID k=3 conv for tap (kd, kh), with the
        BatchNorm scale folded in.
      shift: (1, ow*cout) f32 per-output-channel shift (conv bias + BN), tiled
        over ow so it adds directly onto the matmul output.
    """
    w = p["w"]                                             # (cout, cin, 3, 3, 3)
    scale = p["gamma"] / jnp.sqrt(p["var"] + BN_EPS)       # (cout,)
    shift_c = (p["b"] - p["mean"]) * scale + p["beta"]     # (cout,)

    wt = jnp.transpose(w, (2, 3, 4, 1, 0)) * scale         # (kd, kh, kw, cin, cout)
    wt = wt.reshape(9, 3, cin, cout)                       # t = kd*3 + kh

    # constant band selector: sel[kw, w, ow] = 1  iff  w == ow + kw
    kw_i = np.arange(3)[:, None, None]
    w_i = np.arange(w_in)[None, :, None]
    ow_i = np.arange(ow)[None, None, :]
    sel = jnp.asarray((w_i == ow_i + kw_i).astype(np.float32))   # (3, w_in, ow)

    g = jnp.einsum("kwo,tkic->twioc", sel, wt)             # (9, w_in, cin, ow, cout)
    g = g.reshape(9, w_in * cin, ow * cout).astype(jnp.bfloat16)
    shift = jnp.tile(shift_c, (ow,)).reshape(1, ow * cout).astype(jnp.float32)
    return g, shift


# ---------------------------------------------------------------------------
# Fused encoder kernel (conv+BN+ReLU x n_layers, then 2x2x2 max-pool)
# ---------------------------------------------------------------------------
def _make_encoder_kernel(layers, pool):
    n_layers = len(layers)

    def kernel(x_ref, *refs):
        g_refs = refs[:n_layers]
        s_refs = refs[n_layers:2 * n_layers]
        o_ref = refs[2 * n_layers]

        # Activation value in (1, D, Hpad, W*C) layout; stays in VMEM.
        a = x_ref[...]

        for l, lay in enumerate(layers):
            od, ohp, kdim, ndim = lay["OD"], lay["OHp"], lay["K"], lay["N"]
            m = od * ohp
            acc = jnp.zeros((m, ndim), jnp.float32)
            for kd in range(3):
                for kh in range(3):
                    t = kd * 3 + kh
                    # kd: free leading-dim slice; kh: cheap sublane-offset slice.
                    xs = a[:, kd:kd + od, kh:kh + ohp, :]
                    # Layout-preserving flatten (ohp is a multiple of 8, f32),
                    # bf16 operands -> native-rate MXU matmul, f32 accumulation.
                    xs2 = xs.reshape(m, kdim).astype(jnp.bfloat16)
                    acc = acc + jnp.dot(xs2, g_refs[l][t],
                                        preferred_element_type=jnp.float32)
            # Folded conv-bias / BatchNorm shift + ReLU epilogue (f32).
            y = jnp.maximum(acc + s_refs[l][...], 0.0)
            a = y.reshape(1, od, ohp, ndim)

        # Fused MaxPool3d(2, stride=2) over the valid region:
        #   d-pairs: leading-dim split;  h-pairs: sublane-offset slice;
        #   w-pairs: lane-offset slice (channels are the fast lane sub-index).
        # Even-index selection of h / w pairs is a tiny wrapper-side slice.
        pd, ph, pw, c = pool["PD"], pool["PH"], pool["PW"], pool["C"]
        od, ohp, ndim = layers[-1]["OD"], layers[-1]["OHp"], layers[-1]["N"]
        yr = a[:, 0:2 * pd, :, :].reshape(1, pd, 2, ohp, ndim)
        td = jnp.maximum(yr[:, :, 0], yr[:, :, 1])                   # (1,pd,ohp,N)
        hl = 2 * ph - 1
        zh = jnp.maximum(td[:, :, 0:hl, :], td[:, :, 1:hl + 1, :])   # (1,pd,hl,N)
        wl = (2 * pw - 1) * c
        zw = jnp.maximum(zh[..., 0:wl], zh[..., c:wl + c])           # (1,pd,hl,wl)
        o_ref[...] = zw

    return kernel


# ---------------------------------------------------------------------------
# Forward wrapper
# ---------------------------------------------------------------------------
def dcnnet_encoder_forward(x_ncdhw, params):
    """Full dCNNetEncoder forward.  x_ncdhw: (N, Cin, D, H, W), like PyTorch."""
    n, c0, d0, h0, w0 = x_ncdhw.shape
    n_layers = len(params)

    # ---- static shape plan --------------------------------------------------
    cfg = []
    cin, d, h, w = c0, d0, h0, w0
    for p in params:
        cout = p["w"].shape[0]
        cfg.append(dict(cin=cin, cout=cout, W=w, OD=d - 2, OH=h - 2, OW=w - 2))
        cin, d, h, w = cout, d - 2, h - 2, w - 2

    # Padded output-H per layer (backwards chain, multiples of 8) so every
    # in-kernel flatten is layout-preserving and every kh tap stays in bounds.
    ohp = [0] * n_layers
    ohp[-1] = _round_up(cfg[-1]["OH"], 8)
    for l in range(n_layers - 2, -1, -1):
        ohp[l] = _round_up(max(cfg[l]["OH"], ohp[l + 1] + 2), 8)
    hp0 = _round_up(ohp[0] + 2, 8)

    layers = [dict(OD=c["OD"], OHp=ohp[l], K=c["W"] * c["cin"],
                   N=c["OW"] * c["cout"]) for l, c in enumerate(cfg)]
    od_f, oh_f, ow_f, c_f = (cfg[-1]["OD"], cfg[-1]["OH"],
                             cfg[-1]["OW"], cfg[-1]["cout"])
    pool = dict(PD=od_f // 2, PH=oh_f // 2, PW=ow_f // 2, C=c_f)

    # ---- wrapper-side prep (tiny, constant-folded / single XLA fusions) -----
    # NCDHW -> (N, D, Hpad, W*C): channels become the fast lane sub-index.
    xw = jnp.transpose(x_ncdhw, (0, 2, 3, 4, 1)).reshape(n, d0, h0, w0 * c0)
    xw = jnp.pad(xw, ((0, 0), (0, 0), (0, hp0 - h0), (0, 0)))

    gs, ss = [], []
    for p, c in zip(params, cfg):
        g, s = _fold_layer(p, c["W"], c["OW"], c["cin"], c["cout"])
        gs.append(g)
        ss.append(s)

    pd, ph, pw = pool["PD"], pool["PH"], pool["PW"]
    out_shape = (n, pd, 2 * ph - 1, (2 * pw - 1) * c_f)

    in_specs = [pl.BlockSpec((1, d0, hp0, w0 * c0), lambda b: (b, 0, 0, 0))]
    in_specs += [pl.BlockSpec(g.shape, lambda b: (0, 0, 0)) for g in gs]
    in_specs += [pl.BlockSpec(s.shape, lambda b: (0, 0)) for s in ss]

    out = pl.pallas_call(
        _make_encoder_kernel(layers, pool),
        out_shape=jax.ShapeDtypeStruct(out_shape, jnp.float32),
        grid_spec=pltpu.PrefetchScalarGridSpec(
            num_scalar_prefetch=0,
            grid=(n,),                                   # one batch item / step
            in_specs=in_specs,
            out_specs=pl.BlockSpec((1,) + out_shape[1:],
                                   lambda b: (b, 0, 0, 0)),
        ),
        compiler_params=pltpu.CompilerParams(
            dimension_semantics=("parallel",)),          # v7x: 2 TCs over batch
    )(xw, *gs, *ss)

    # Tiny epilogue: keep even h rows / even w lane-groups, split lanes, NCDHW.
    o = out[:, :, 0:2 * ph - 1:2, :]
    o = o.reshape(n, pd, ph, 2 * pw - 1, c_f)[:, :, :, 0:2 * pw - 1:2, :]
    return jnp.transpose(o, (0, 4, 1, 2, 3))


# ---------------------------------------------------------------------------
# Deterministic parameter init (shapes implied by the module's __init__)
# ---------------------------------------------------------------------------
def init_params(key, in_channels, encoder_config):
    params = []
    cin = in_channels
    for cout in encoder_config:
        key, k1, k2, k3, k4, k5 = jax.random.split(key, 6)
        fan_in = cin * 27
        params.append(dict(
            w=jax.random.normal(k1, (cout, cin, 3, 3, 3), jnp.float32)
              * (1.0 / fan_in) ** 0.5,
            b=0.1 * jax.random.normal(k2, (cout,), jnp.float32),
            gamma=1.0 + 0.1 * jax.random.normal(k3, (cout,), jnp.float32),
            beta=0.1 * jax.random.normal(k4, (cout,), jnp.float32),
            mean=0.1 * jax.random.normal(k5, (cout,), jnp.float32),
            var=jnp.ones((cout,), jnp.float32),
        ))
        cin = cout
    return params


# ---------------------------------------------------------------------------
# Pure-JAX reference (for correctness check)
# ---------------------------------------------------------------------------
def reference_forward(x, params):
    for p in params:
        x = lax.conv_general_dilated(
            x, p["w"], window_strides=(1, 1, 1), padding="VALID",
            dimension_numbers=("NCDHW", "OIDHW", "NCDHW"),
            precision=lax.Precision.HIGHEST)
        bshape = (1, -1, 1, 1, 1)
        x = x + p["b"].reshape(bshape)
        x = ((x - p["mean"].reshape(bshape))
             / jnp.sqrt(p["var"].reshape(bshape) + BN_EPS)
             * p["gamma"].reshape(bshape) + p["beta"].reshape(bshape))
        x = jnp.maximum(x, 0.0)
    x = lax.reduce_window(x, -jnp.inf, lax.max,
                          (1, 1, 2, 2, 2), (1, 1, 2, 2, 2), "VALID")
    return x


if __name__ == "__main__":
    batch, in_channels, grid_size = 2, 4, 16
    encoder_config = [8, 16, 16]   # len >= 3 as asserted by the module
    assert len(encoder_config) >= 3

    key = jax.random.PRNGKey(0)
    key, kx, kp = jax.random.split(key, 3)
    x = jax.random.normal(
        kx, (batch, in_channels, grid_size, grid_size, grid_size), jnp.float32)
    params = init_params(kp, in_channels, encoder_config)

    fwd = jax.jit(lambda xx: dcnnet_encoder_forward(xx, params))
    out = jax.block_until_ready(fwd(x))

    # Expected: 16 -> 14 -> 12 -> 10 (three valid k=3 convs), then pool -> 5.
    assert out.shape == (batch, encoder_config[-1], 5, 5, 5), out.shape

    ref = jax.block_until_ready(reference_forward(x, params))
    # bf16 MXU operands (f32 accumulation / epilogue) vs the HIGHEST-precision
    # f32 reference -> 1e-2 tolerance.
    assert jnp.allclose(out, ref, rtol=1e-2, atol=1e-2), \
        float(jnp.max(jnp.abs(out - ref)))

    print("KERNEL_OK")
</pallas_src>

<mosaic_0001>
module attributes {stable_mosaic.version = 11 : i64} {
  func.func @kernel(%arg0: i32, %arg1: memref<1x16x40x64xf32, #tpu.memory_space<vmem>>, %arg2: memref<9x64x112xbf16, #tpu.memory_space<vmem>>, %arg3: memref<9x112x192xbf16, #tpu.memory_space<vmem>>, %arg4: memref<9x192x160xbf16, #tpu.memory_space<vmem>>, %arg5: memref<1x112xf32, #tpu.memory_space<vmem>>, %arg6: memref<1x192xf32, #tpu.memory_space<vmem>>, %arg7: memref<1x160xf32, #tpu.memory_space<vmem>>, %arg8: memref<1x5x9x144xf32, #tpu.memory_space<vmem>>) attributes {dimension_semantics = [#tpu.dimension_semantics<parallel>], iteration_bounds = array<i64: 2>, scalar_prefetch = 0 : i64, scratch_operands = 0 : i64, tpu.core_type = #tpu.core_type<tc>, window_params = [{transform_indices = @transform_0, window_bounds = array<i64: 1, 16, 40, 64>}, {pipeline_mode = #tpu.pipeline_mode<synchronous>, transform_indices = @transform_1, window_bounds = array<i64: 9, 64, 112>}, {pipeline_mode = #tpu.pipeline_mode<synchronous>, transform_indices = @transform_2, window_bounds = array<i64: 9, 112, 192>}, {pipeline_mode = #tpu.pipeline_mode<synchronous>, transform_indices = @transform_3, window_bounds = array<i64: 9, 192, 160>}, {pipeline_mode = #tpu.pipeline_mode<synchronous>, transform_indices = @transform_4, window_bounds = array<i64: 1, 112>}, {pipeline_mode = #tpu.pipeline_mode<synchronous>, transform_indices = @transform_5, window_bounds = array<i64: 1, 192>}, {pipeline_mode = #tpu.pipeline_mode<synchronous>, transform_indices = @transform_6, window_bounds = array<i64: 1, 160>}, {transform_indices = @transform_7, window_bounds = array<i64: 1, 5, 9, 144>}]} {
    %c0 = arith.constant 0 : index
    %c0_0 = arith.constant 0 : index
    %c0_1 = arith.constant 0 : index
    %c0_2 = arith.constant 0 : index
    %0 = vector.load %arg1[%c0, %c0_0, %c0_1, %c0_2] : memref<1x16x40x64xf32, #tpu.memory_space<vmem>>, vector<1x16x40x64xf32>
    %cst = arith.constant 0.000000e+00 : f32
    %1 = vector.broadcast %cst : f32 to vector<448x112xf32>
    %2 = vector.extract_strided_slice %0 {offsets = [0, 0, 0, 0], sizes = [1, 14, 32, 64], strides = [1, 1, 1, 1]} : vector<1x16x40x64xf32> to vector<1x14x32x64xf32>
    %3 = vector.shape_cast %2 : vector<1x14x32x64xf32> to vector<448x64xf32>
    %4 = arith.truncf %3 : vector<448x64xf32> to vector<448x64xbf16>
    %c0_3 = arith.constant 0 : index
    %c0_4 = arith.constant 0 : index
    %c0_5 = arith.constant 0 : index
    %5 = vector.load %arg2[%c0_3, %c0_4, %c0_5] : memref<9x64x112xbf16, #tpu.memory_space<vmem>>, vector<1x64x112xbf16>
    %6 = vector.shape_cast %5 : vector<1x64x112xbf16> to vector<64x112xbf16>
    %cst_6 = arith.constant dense<0.000000e+00> : vector<448x112xf32>
    %7 = tpu.matmul %4, %6, %cst_6 {dimension_numbers = #tpu.dot_dimension_numbers<[1], [0], [0], [1], [0, 0, 1, 1], [], []>} : vector<448x64xbf16>, vector<64x112xbf16>, vector<448x112xf32> -> vector<448x112xf32>
    %8 = arith.addf %1, %7 : vector<448x112xf32>
    %9 = vector.extract_strided_slice %0 {offsets = [0, 0, 1, 0], sizes = [1, 14, 32, 64], strides = [1, 1, 1, 1]} : vector<1x16x40x64xf32> to vector<1x14x32x64xf32>
    %10 = vector.shape_cast %9 : vector<1x14x32x64xf32> to vector<448x64xf32>
    %11 = arith.truncf %10 : vector<448x64xf32> to vector<448x64xbf16>
    %c1 = arith.constant 1 : index
    %c0_7 = arith.constant 0 : index
    %c0_8 = arith.constant 0 : index
    %12 = vector.load %arg2[%c1, %c0_7, %c0_8] : memref<9x64x112xbf16, #tpu.memory_space<vmem>>, vector<1x64x112xbf16>
    %13 = vector.shape_cast %12 : vector<1x64x112xbf16> to vector<64x112xbf16>
    %cst_9 = arith.constant dense<0.000000e+00> : vector<448x112xf32>
    %14 = tpu.matmul %11, %13, %cst_9 {dimension_numbers = #tpu.dot_dimension_numbers<[1], [0], [0], [1], [0, 0, 1, 1], [], []>} : vector<448x64xbf16>, vector<64x112xbf16>, vector<448x112xf32> -> vector<448x112xf32>
    %15 = arith.addf %8, %14 : vector<448x112xf32>
    %16 = vector.extract_strided_slice %0 {offsets = [0, 0, 2, 0], sizes = [1, 14, 32, 64], strides = [1, 1, 1, 1]} : vector<1x16x40x64xf32> to vector<1x14x32x64xf32>
    %17 = vector.shape_cast %16 : vector<1x14x32x64xf32> to vector<448x64xf32>
    %18 = arith.truncf %17 : vector<448x64xf32> to vector<448x64xbf16>
    %c2 = arith.constant 2 : index
    %c0_10 = arith.constant 0 : index
    %c0_11 = arith.constant 0 : index
    %19 = vector.load %arg2[%c2, %c0_10, %c0_11] : memref<9x64x112xbf16, #tpu.memory_space<vmem>>, vector<1x64x112xbf16>
    %20 = vector.shape_cast %19 : vector<1x64x112xbf16> to vector<64x112xbf16>
    %cst_12 = arith.constant dense<0.000000e+00> : vector<448x112xf32>
    %21 = tpu.matmul %18, %20, %cst_12 {dimension_numbers = #tpu.dot_dimension_numbers<[1], [0], [0], [1], [0, 0, 1, 1], [], []>} : vector<448x64xbf16>, vector<64x112xbf16>, vector<448x112xf32> -> vector<448x112xf32>
    %22 = arith.addf %15, %21 : vector<448x112xf32>
    %23 = vector.extract_strided_slice %0 {offsets = [0, 1, 0, 0], sizes = [1, 14, 32, 64], strides = [1, 1, 1, 1]} : vector<1x16x40x64xf32> to vector<1x14x32x64xf32>
    %24 = vector.shape_cast %23 : vector<1x14x32x64xf32> to vector<448x64xf32>
    %25 = arith.truncf %24 : vector<448x64xf32> to vector<448x64xbf16>
    %c3 = arith.constant 3 : index
    %c0_13 = arith.constant 0 : index
    %c0_14 = arith.constant 0 : index
    %26 = vector.load %arg2[%c3, %c0_13, %c0_14] : memref<9x64x112xbf16, #tpu.memory_space<vmem>>, vector<1x64x112xbf16>
    %27 = vector.shape_cast %26 : vector<1x64x112xbf16> to vector<64x112xbf16>
    %cst_15 = arith.constant dense<0.000000e+00> : vector<448x112xf32>
    %28 = tpu.matmul %25, %27, %cst_15 {dimension_numbers = #tpu.dot_dimension_numbers<[1], [0], [0], [1], [0, 0, 1, 1], [], []>} : vector<448x64xbf16>, vector<64x112xbf16>, vector<448x112xf32> -> vector<448x112xf32>
    %29 = arith.addf %22, %28 : vector<448x112xf32>
    %30 = vector.extract_strided_slice %0 {offsets = [0, 1, 1, 0], sizes = [1, 14, 32, 64], strides = [1, 1, 1, 1]} : vector<1x16x40x64xf32> to vector<1x14x32x64xf32>
    %31 = vector.shape_cast %30 : vector<1x14x32x64xf32> to vector<448x64xf32>
    %32 = arith.truncf %31 : vector<448x64xf32> to vector<448x64xbf16>
    %c4 = arith.constant 4 : index
    %c0_16 = arith.constant 0 : index
    %c0_17 = arith.constant 0 : index
    %33 = vector.load %arg2[%c4, %c0_16, %c0_17] : memref<9x64x112xbf16, #tpu.memory_space<vmem>>, vector<1x64x112xbf16>
    %34 = vector.shape_cast %33 : vector<1x64x112xbf16> to vector<64x112xbf16>
    %cst_18 = arith.constant dense<0.000000e+00> : vector<448x112xf32>
    %35 = tpu.matmul %32, %34, %cst_18 {dimension_numbers = #tpu.dot_dimension_numbers<[1], [0], [0], [1], [0, 0, 1, 1], [], []>} : vector<448x64xbf16>, vector<64x112xbf16>, vector<448x112xf32> -> vector<448x112xf32>
    %36 = arith.addf %29, %35 : vector<448x112xf32>
    %37 = vector.extract_strided_slice %0 {offsets = [0, 1, 2, 0], sizes = [1, 14, 32, 64], strides = [1, 1, 1, 1]} : vector<1x16x40x64xf32> to vector<1x14x32x64xf32>
    %38 = vector.shape_cast %37 : vector<1x14x32x64xf32> to vector<448x64xf32>
    %39 = arith.truncf %38 : vector<448x64xf32> to vector<448x64xbf16>
    %c5 = arith.constant 5 : index
    %c0_19 = arith.constant 0 : index
    %c0_20 = arith.constant 0 : index
    %40 = vector.load %arg2[%c5, %c0_19, %c0_20] : memref<9x64x112xbf16, #tpu.memory_space<vmem>>, vector<1x64x112xbf16>
    %41 = vector.shape_cast %40 : vector<1x64x112xbf16> to vector<64x112xbf16>
    %cst_21 = arith.constant dense<0.000000e+00> : vector<448x112xf32>
    %42 = tpu.matmul %39, %41, %cst_21 {dimension_numbers = #tpu.dot_dimension_numbers<[1], [0], [0], [1], [0, 0, 1, 1], [], []>} : vector<448x64xbf16>, vector<64x112xbf16>, vector<448x112xf32> -> vector<448x112xf32>
    %43 = arith.addf %36, %42 : vector<448x112xf32>
    %44 = vector.extract_strided_slice %0 {offsets = [0, 2, 0, 0], sizes = [1, 14, 32, 64], strides = [1, 1, 1, 1]} : vector<1x16x40x64xf32> to vector<1x14x32x64xf32>
    %45 = vector.shape_cast %44 : vector<1x14x32x64xf32> to vector<448x64xf32>
    %46 = arith.truncf %45 : vector<448x64xf32> to vector<448x64xbf16>
    %c6 = arith.constant 6 : index
    %c0_22 = arith.constant 0 : index
    %c0_23 = arith.constant 0 : index
    %47 = vector.load %arg2[%c6, %c0_22, %c0_23] : memref<9x64x112xbf16, #tpu.memory_space<vmem>>, vector<1x64x112xbf16>
    %48 = vector.shape_cast %47 : vector<1x64x112xbf16> to vector<64x112xbf16>
    %cst_24 = arith.constant dense<0.000000e+00> : vector<448x112xf32>
    %49 = tpu.matmul %46, %48, %cst_24 {dimension_numbers = #tpu.dot_dimension_numbers<[1], [0], [0], [1], [0, 0, 1, 1], [], []>} : vector<448x64xbf16>, vector<64x112xbf16>, vector<448x112xf32> -> vector<448x112xf32>
    %50 = arith.addf %43, %49 : vector<448x112xf32>
    %51 = vector.extract_strided_slice %0 {offsets = [0, 2, 1, 0], sizes = [1, 14, 32, 64], strides = [1, 1, 1, 1]} : vector<1x16x40x64xf32> to vector<1x14x32x64xf32>
    %52 = vector.shape_cast %51 : vector<1x14x32x64xf32> to vector<448x64xf32>
    %53 = arith.truncf %52 : vector<448x64xf32> to vector<448x64xbf16>
    %c7 = arith.constant 7 : index
    %c0_25 = arith.constant 0 : index
    %c0_26 = arith.constant 0 : index
    %54 = vector.load %arg2[%c7, %c0_25, %c0_26] : memref<9x64x112xbf16, #tpu.memory_space<vmem>>, vector<1x64x112xbf16>
    %55 = vector.shape_cast %54 : vector<1x64x112xbf16> to vector<64x112xbf16>
    %cst_27 = arith.constant dense<0.000000e+00> : vector<448x112xf32>
    %56 = tpu.matmul %53, %55, %cst_27 {dimension_numbers = #tpu.dot_dimension_numbers<[1], [0], [0], [1], [0, 0, 1, 1], [], []>} : vector<448x64xbf16>, vector<64x112xbf16>, vector<448x112xf32> -> vector<448x112xf32>
    %57 = arith.addf %50, %56 : vector<448x112xf32>
    %58 = vector.extract_strided_slice %0 {offsets = [0, 2, 2, 0], sizes = [1, 14, 32, 64], strides = [1, 1, 1, 1]} : vector<1x16x40x64xf32> to vector<1x14x32x64xf32>
    %59 = vector.shape_cast %58 : vector<1x14x32x64xf32> to vector<448x64xf32>
    %60 = arith.truncf %59 : vector<448x64xf32> to vector<448x64xbf16>
    %c8 = arith.constant 8 : index
    %c0_28 = arith.constant 0 : index
    %c0_29 = arith.constant 0 : index
    %61 = vector.load %arg2[%c8, %c0_28, %c0_29] : memref<9x64x112xbf16, #tpu.memory_space<vmem>>, vector<1x64x112xbf16>
    %62 = vector.shape_cast %61 : vector<1x64x112xbf16> to vector<64x112xbf16>
    %cst_30 = arith.constant dense<0.000000e+00> : vector<448x112xf32>
    %63 = tpu.matmul %60, %62, %cst_30 {dimension_numbers = #tpu.dot_dimension_numbers<[1], [0], [0], [1], [0, 0, 1, 1], [], []>} : vector<448x64xbf16>, vector<64x112xbf16>, vector<448x112xf32> -> vector<448x112xf32>
    %64 = arith.addf %57, %63 : vector<448x112xf32>
    %c0_31 = arith.constant 0 : index
    %c0_32 = arith.constant 0 : index
    %65 = vector.load %arg5[%c0_31, %c0_32] : memref<1x112xf32, #tpu.memory_space<vmem>>, vector<1x112xf32>
    %66 = vector.broadcast %65 : vector<1x112xf32> to vector<448x112xf32>
    %67 = arith.addf %64, %66 : vector<448x112xf32>
    %cst_33 = arith.constant 0.000000e+00 : f32
    %68 = vector.broadcast %cst_33 : f32 to vector<448x112xf32>
    %69 = arith.maximumf %67, %68 : vector<448x112xf32>
    %70 = vector.shape_cast %69 : vector<448x112xf32> to vector<1x14x32x112xf32>
    %cst_34 = arith.constant 0.000000e+00 : f32
    %71 = vector.broadcast %cst_34 : f32 to vector<288x192xf32>
    %72 = vector.extract_strided_slice %70 {offsets = [0, 0, 0, 0], sizes = [1, 12, 24, 112], strides = [1, 1, 1, 1]} : vector<1x14x32x112xf32> to vector<1x12x24x112xf32>
    %73 = vector.shape_cast %72 : vector<1x12x24x112xf32> to vector<288x112xf32>
    %74 = arith.truncf %73 : vector<288x112xf32> to vector<288x112xbf16>
    %c0_35 = arith.constant 0 : index
    %c0_36 = arith.constant 0 : index
    %c0_37 = arith.constant 0 : index
    %75 = vector.load %arg3[%c0_35, %c0_36, %c0_37] : memref<9x112x192xbf16, #tpu.memory_space<vmem>>, vector<1x112x192xbf16>
    %76 = vector.shape_cast %75 : vector<1x112x192xbf16> to vector<112x192xbf16>
    %cst_38 = arith.constant dense<0.000000e+00> : vector<288x192xf32>
    %77 = tpu.matmul %74, %76, %cst_38 {dimension_numbers = #tpu.dot_dimension_numbers<[1], [0], [0], [1], [0, 0, 1, 1], [], []>} : vector<288x112xbf16>, vector<112x192xbf16>, vector<288x192xf32> -> vector<288x192xf32>
    %78 = arith.addf %71, %77 : vector<288x192xf32>
    %79 = vector.extract_strided_slice %70 {offsets = [0, 0, 1, 0], sizes = [1, 12, 24, 112], strides = [1, 1, 1, 1]} : vector<1x14x32x112xf32> to vector<1x12x24x112xf32>
    %80 = vector.shape_cast %79 : vector<1x12x24x112xf32> to vector<288x112xf32>
    %81 = arith.truncf %80 : vector<288x112xf32> to vector<288x112xbf16>
    %c1_39 = arith.constant 1 : index
    %c0_40 = arith.constant 0 : index
    %c0_41 = arith.constant 0 : index
    %82 = vector.load %arg3[%c1_39, %c0_40, %c0_41] : memref<9x112x192xbf16, #tpu.memory_space<vmem>>, vector<1x112x192xbf16>
    %83 = vector.shape_cast %82 : vector<1x112x192xbf16> to vector<112x192xbf16>
    %cst_42 = arith.constant dense<0.000000e+00> : vector<288x192xf32>
    %84 = tpu.matmul %81, %83, %cst_42 {dimension_numbers = #tpu.dot_dimension_numbers<[1], [0], [0], [1], [0, 0, 1, 1], [], []>} : vector<288x112xbf16>, vector<112x192xbf16>, vector<288x192xf32> -> vector<288x192xf32>
    %85 = arith.addf %78, %84 : vector<288x192xf32>
    %86 = vector.extract_strided_slice %70 {offsets = [0, 0, 2, 0], sizes = [1, 12, 24, 112], strides = [1, 1, 1, 1]} : vector<1x14x32x112xf32> to vector<1x12x24x112xf32>
    %87 = vector.shape_cast %86 : vector<1x12x24x112xf32> to vector<288x112xf32>
    %88 = arith.truncf %87 : vector<288x112xf32> to vector<288x112xbf16>
    %c2_43 = arith.constant 2 : index
    %c0_44 = arith.constant 0 : index
    %c0_45 = arith.constant 0 : index
    %89 = vector.load %arg3[%c2_43, %c0_44, %c0_45] : memref<9x112x192xbf16, #tpu.memory_space<vmem>>, vector<1x112x192xbf16>
    %90 = vector.shape_cast %89 : vector<1x112x192xbf16> to vector<112x192xbf16>
    %cst_46 = arith.constant dense<0.000000e+00> : vector<288x192xf32>
    %91 = tpu.matmul %88, %90, %cst_46 {dimension_numbers = #tpu.dot_dimension_numbers<[1], [0], [0], [1], [0, 0, 1, 1], [], []>} : vector<288x112xbf16>, vector<112x192xbf16>, vector<288x192xf32> -> vector<288x192xf32>
    %92 = arith.addf %85, %91 : vector<288x192xf32>
    %93 = vector.extract_strided_slice %70 {offsets = [0, 1, 0, 0], sizes = [1, 12, 24, 112], strides = [1, 1, 1, 1]} : vector<1x14x32x112xf32> to vector<1x12x24x112xf32>
    %94 = vector.shape_cast %93 : vector<1x12x24x112xf32> to vector<288x112xf32>
    %95 = arith.truncf %94 : vector<288x112xf32> to vector<288x112xbf16>
    %c3_47 = arith.constant 3 : index
    %c0_48 = arith.constant 0 : index
    %c0_49 = arith.constant 0 : index
    %96 = vector.load %arg3[%c3_47, %c0_48, %c0_49] : memref<9x112x192xbf16, #tpu.memory_space<vmem>>, vector<1x112x192xbf16>
    %97 = vector.shape_cast %96 : vector<1x112x192xbf16> to vector<112x192xbf16>
    %cst_50 = arith.constant dense<0.000000e+00> : vector<288x192xf32>
    %98 = tpu.matmul %95, %97, %cst_50 {dimension_numbers = #tpu.dot_dimension_numbers<[1], [0], [0], [1], [0, 0, 1, 1], [], []>} : vector<288x112xbf16>, vector<112x192xbf16>, vector<288x192xf32> -> vector<288x192xf32>
    %99 = arith.addf %92, %98 : vector<288x192xf32>
    %100 = vector.extract_strided_slice %70 {offsets = [0, 1, 1, 0], sizes = [1, 12, 24, 112], strides = [1, 1, 1, 1]} : vector<1x14x32x112xf32> to vector<1x12x24x112xf32>
    %101 = vector.shape_cast %100 : vector<1x12x24x112xf32> to vector<288x112xf32>
    %102 = arith.truncf %101 : vector<288x112xf32> to vector<288x112xbf16>
    %c4_51 = arith.constant 4 : index
    %c0_52 = arith.constant 0 : index
    %c0_53 = arith.constant 0 : index
    %103 = vector.load %arg3[%c4_51, %c0_52, %c0_53] : memref<9x112x192xbf16, #tpu.memory_space<vmem>>, vector<1x112x192xbf16>
    %104 = vector.shape_cast %103 : vector<1x112x192xbf16> to vector<112x192xbf16>
    %cst_54 = arith.constant dense<0.000000e+00> : vector<288x192xf32>
    %105 = tpu.matmul %102, %104, %cst_54 {dimension_numbers = #tpu.dot_dimension_numbers<[1], [0], [0], [1], [0, 0, 1, 1], [], []>} : vector<288x112xbf16>, vector<112x192xbf16>, vector<288x192xf32> -> vector<288x192xf32>
    %106 = arith.addf %99, %105 : vector<288x192xf32>
    %107 = vector.extract_strided_slice %70 {offsets = [0, 1, 2, 0], sizes = [1, 12, 24, 112], strides = [1, 1, 1, 1]} : vector<1x14x32x112xf32> to vector<1x12x24x112xf32>
    %108 = vector.shape_cast %107 : vector<1x12x24x112xf32> to vector<288x112xf32>
    %109 = arith.truncf %108 : vector<288x112xf32> to vector<288x112xbf16>
    %c5_55 = arith.constant 5 : index
    %c0_56 = arith.constant 0 : index
    %c0_57 = arith.constant 0 : index
    %110 = vector.load %arg3[%c5_55, %c0_56, %c0_57] : memref<9x112x192xbf16, #tpu.memory_space<vmem>>, vector<1x112x192xbf16>
    %111 = vector.shape_cast %110 : vector<1x112x192xbf16> to vector<112x192xbf16>
    %cst_58 = arith.constant dense<0.000000e+00> : vector<288x192xf32>
    %112 = tpu.matmul %109, %111, %cst_58 {dimension_numbers = #tpu.dot_dimension_numbers<[1], [0], [0], [1], [0, 0, 1, 1], [], []>} : vector<288x112xbf16>, vector<112x192xbf16>, vector<288x192xf32> -> vector<288x192xf32>
    %113 = arith.addf %106, %112 : vector<288x192xf32>
    %114 = vector.extract_strided_slice %70 {offsets = [0, 2, 0, 0], sizes = [1, 12, 24, 112], strides = [1, 1, 1, 1]} : vector<1x14x32x112xf32> to vector<1x12x24x112xf32>
    %115 = vector.shape_cast %114 : vector<1x12x24x112xf32> to vector<288x112xf32>
    %116 = arith.truncf %115 : vector<288x112xf32> to vector<288x112xbf16>
    %c6_59 = arith.constant 6 : index
    %c0_60 = arith.constant 0 : index
    %c0_61 = arith.constant 0 : index
    %117 = vector.load %arg3[%c6_59, %c0_60, %c0_61] : memref<9x112x192xbf16, #tpu.memory_space<vmem>>, vector<1x112x192xbf16>
    %118 = vector.shape_cast %117 : vector<1x112x192xbf16> to vector<112x192xbf16>
    %cst_62 = arith.constant dense<0.000000e+00> : vector<288x192xf32>
    %119 = tpu.matmul %116, %118, %cst_62 {dimension_numbers = #tpu.dot_dimension_numbers<[1], [0], [0], [1], [0, 0, 1, 1], [], []>} : vector<288x112xbf16>, vector<112x192xbf16>, vector<288x192xf32> -> vector<288x192xf32>
    %120 = arith.addf %113, %119 : vector<288x192xf32>
    %121 = vector.extract_strided_slice %70 {offsets = [0, 2, 1, 0], sizes = [1, 12, 24, 112], strides = [1, 1, 1, 1]} : vector<1x14x32x112xf32> to vector<1x12x24x112xf32>
    %122 = vector.shape_cast %121 : vector<1x12x24x112xf32> to vector<288x112xf32>
    %123 = arith.truncf %122 : vector<288x112xf32> to vector<288x112xbf16>
    %c7_63 = arith.constant 7 : index
    %c0_64 = arith.constant 0 : index
    %c0_65 = arith.constant 0 : index
    %124 = vector.load %arg3[%c7_63, %c0_64, %c0_65] : memref<9x112x192xbf16, #tpu.memory_space<vmem>>, vector<1x112x192xbf16>
    %125 = vector.shape_cast %124 : vector<1x112x192xbf16> to vector<112x192xbf16>
    %cst_66 = arith.constant dense<0.000000e+00> : vector<288x192xf32>
    %126 = tpu.matmul %123, %125, %cst_66 {dimension_numbers = #tpu.dot_dimension_numbers<[1], [0], [0], [1], [0, 0, 1, 1], [], []>} : vector<288x112xbf16>, vector<112x192xbf16>, vector<288x192xf32> -> vector<288x192xf32>
    %127 = arith.addf %120, %126 : vector<288x192xf32>
    %128 = vector.extract_strided_slice %70 {offsets = [0, 2, 2, 0], sizes = [1, 12, 24, 112], strides = [1, 1, 1, 1]} : vector<1x14x32x112xf32> to vector<1x12x24x112xf32>
    %129 = vector.shape_cast %128 : vector<1x12x24x112xf32> to vector<288x112xf32>
    %130 = arith.truncf %129 : vector<288x112xf32> to vector<288x112xbf16>
    %c8_67 = arith.constant 8 : index
    %c0_68 = arith.constant 0 : index
    %c0_69 = arith.constant 0 : index
    %131 = vector.load %arg3[%c8_67, %c0_68, %c0_69] : memref<9x112x192xbf16, #tpu.memory_space<vmem>>, vector<1x112x192xbf16>
    %132 = vector.shape_cast %131 : vector<1x112x192xbf16> to vector<112x192xbf16>
    %cst_70 = arith.constant dense<0.000000e+00> : vector<288x192xf32>
    %133 = tpu.matmul %130, %132, %cst_70 {dimension_numbers = #tpu.dot_dimension_numbers<[1], [0], [0], [1], [0, 0, 1, 1], [], []>} : vector<288x112xbf16>, vector<112x192xbf16>, vector<288x192xf32> -> vector<288x192xf32>
    %134 = arith.addf %127, %133 : vector<288x192xf32>
    %c0_71 = arith.constant 0 : index
    %c0_72 = arith.constant 0 : index
    %135 = vector.load %arg6[%c0_71, %c0_72] : memref<1x192xf32, #tpu.memory_space<vmem>>, vector<1x192xf32>
    %136 = vector.broadcast %135 : vector<1x192xf32> to vector<288x192xf32>
    %137 = arith.addf %134, %136 : vector<288x192xf32>
    %cst_73 = arith.constant 0.000000e+00 : f32
    %138 = vector.broadcast %cst_73 : f32 to vector<288x192xf32>
    %139 = arith.maximumf %137, %138 : vector<288x192xf32>
    %140 = vector.shape_cast %139 : vector<288x192xf32> to vector<1x12x24x192xf32>
    %cst_74 = arith.constant 0.000000e+00 : f32
    %141 = vector.broadcast %cst_74 : f32 to vector<160x160xf32>
    %142 = vector.extract_strided_slice %140 {offsets = [0, 0, 0, 0], sizes = [1, 10, 16, 192], strides = [1, 1, 1, 1]} : vector<1x12x24x192xf32> to vector<1x10x16x192xf32>
    %143 = vector.shape_cast %142 : vector<1x10x16x192xf32> to vector<160x192xf32>
    %144 = arith.truncf %143 : vector<160x192xf32> to vector<160x192xbf16>
    %c0_75 = arith.constant 0 : index
    %c0_76 = arith.constant 0 : index
    %c0_77 = arith.constant 0 : index
    %145 = vector.load %arg4[%c0_75, %c0_76, %c0_77] : memref<9x192x160xbf16, #tpu.memory_space<vmem>>, vector<1x192x160xbf16>
    %146 = vector.shape_cast %145 : vector<1x192x160xbf16> to vector<192x160xbf16>
    %cst_78 = arith.constant dense<0.000000e+00> : vector<160x160xf32>
    %147 = tpu.matmul %144, %146, %cst_78 {dimension_numbers = #tpu.dot_dimension_numbers<[1], [0], [0], [1], [0, 0, 1, 1], [], []>} : vector<160x192xbf16>, vector<192x160xbf16>, vector<160x160xf32> -> vector<160x160xf32>
    %148 = arith.addf %141, %147 : vector<160x160xf32>
    %149 = vector.extract_strided_slice %140 {offsets = [0, 0, 1, 0], sizes = [1, 10, 16, 192], strides = [1, 1, 1, 1]} : vector<1x12x24x192xf32> to vector<1x10x16x192xf32>
    %150 = vector.shape_cast %149 : vector<1x10x16x192xf32> to vector<160x192xf32>
    %151 = arith.truncf %150 : vector<160x192xf32> to vector<160x192xbf16>
    %c1_79 = arith.constant 1 : index
    %c0_80 = arith.constant 0 : index
    %c0_81 = arith.constant 0 : index
    %152 = vector.load %arg4[%c1_79, %c0_80, %c0_81] : memref<9x192x160xbf16, #tpu.memory_space<vmem>>, vector<1x192x160xbf16>
    %153 = vector.shape_cast %152 : vector<1x192x160xbf16> to vector<192x160xbf16>
    %cst_82 = arith.constant dense<0.000000e+00> : vector<160x160xf32>
    %154 = tpu.matmul %151, %153, %cst_82 {dimension_numbers = #tpu.dot_dimension_numbers<[1], [0], [0], [1], [0, 0, 1, 1], [], []>} : vector<160x192xbf16>, vector<192x160xbf16>, vector<160x160xf32> -> vector<160x160xf32>
    %155 = arith.addf %148, %154 : vector<160x160xf32>
    %156 = vector.extract_strided_slice %140 {offsets = [0, 0, 2, 0], sizes = [1, 10, 16, 192], strides = [1, 1, 1, 1]} : vector<1x12x24x192xf32> to vector<1x10x16x192xf32>
    %157 = vector.shape_cast %156 : vector<1x10x16x192xf32> to vector<160x192xf32>
    %158 = arith.truncf %157 : vector<160x192xf32> to vector<160x192xbf16>
    %c2_83 = arith.constant 2 : index
    %c0_84 = arith.constant 0 : index
    %c0_85 = arith.constant 0 : index
    %159 = vector.load %arg4[%c2_83, %c0_84, %c0_85] : memref<9x192x160xbf16, #tpu.memory_space<vmem>>, vector<1x192x160xbf16>
    %160 = vector.shape_cast %159 : vector<1x192x160xbf16> to vector<192x160xbf16>
    %cst_86 = arith.constant dense<0.000000e+00> : vector<160x160xf32>
    %161 = tpu.matmul %158, %160, %cst_86 {dimension_numbers = #tpu.dot_dimension_numbers<[1], [0], [0], [1], [0, 0, 1, 1], [], []>} : vector<160x192xbf16>, vector<192x160xbf16>, vector<160x160xf32> -> vector<160x160xf32>
    %162 = arith.addf %155, %161 : vector<160x160xf32>
    %163 = vector.extract_strided_slice %140 {offsets = [0, 1, 0, 0], sizes = [1, 10, 16, 192], strides = [1, 1, 1, 1]} : vector<1x12x24x192xf32> to vector<1x10x16x192xf32>
    %164 = vector.shape_cast %163 : vector<1x10x16x192xf32> to vector<160x192xf32>
    %165 = arith.truncf %164 : vector<160x192xf32> to vector<160x192xbf16>
    %c3_87 = arith.constant 3 : index
    %c0_88 = arith.constant 0 : index
    %c0_89 = arith.constant 0 : index
    %166 = vector.load %arg4[%c3_87, %c0_88, %c0_89] : memref<9x192x160xbf16, #tpu.memory_space<vmem>>, vector<1x192x160xbf16>
    %167 = vector.shape_cast %166 : vector<1x192x160xbf16> to vector<192x160xbf16>
    %cst_90 = arith.constant dense<0.000000e+00> : vector<160x160xf32>
    %168 = tpu.matmul %165, %167, %cst_90 {dimension_numbers = #tpu.dot_dimension_numbers<[1], [0], [0], [1], [0, 0, 1, 1], [], []>} : vector<160x192xbf16>, vector<192x160xbf16>, vector<160x160xf32> -> vector<160x160xf32>
    %169 = arith.addf %162, %168 : vector<160x160xf32>
    %170 = vector.extract_strided_slice %140 {offsets = [0, 1, 1, 0], sizes = [1, 10, 16, 192], strides = [1, 1, 1, 1]} : vector<1x12x24x192xf32> to vector<1x10x16x192xf32>
    %171 = vector.shape_cast %170 : vector<1x10x16x192xf32> to vector<160x192xf32>
    %172 = arith.truncf %171 : vector<160x192xf32> to vector<160x192xbf16>
    %c4_91 = arith.constant 4 : index
    %c0_92 = arith.constant 0 : index
    %c0_93 = arith.constant 0 : index
    %173 = vector.load %arg4[%c4_91, %c0_92, %c0_93] : memref<9x192x160xbf16, #tpu.memory_space<vmem>>, vector<1x192x160xbf16>
    %174 = vector.shape_cast %173 : vector<1x192x160xbf16> to vector<192x160xbf16>
    %cst_94 = arith.constant dense<0.000000e+00> : vector<160x160xf32>
    %175 = tpu.matmul %172, %174, %cst_94 {dimension_numbers = #tpu.dot_dimension_numbers<[1], [0], [0], [1], [0, 0, 1, 1], [], []>} : vector<160x192xbf16>, vector<192x160xbf16>, vector<160x160xf32> -> vector<160x160xf32>
    %176 = arith.addf %169, %175 : vector<160x160xf32>
    %177 = vector.extract_strided_slice %140 {offsets = [0, 1, 2, 0], sizes = [1, 10, 16, 192], strides = [1, 1, 1, 1]} : vector<1x12x24x192xf32> to vector<1x10x16x192xf32>
    %178 = vector.shape_cast %177 : vector<1x10x16x192xf32> to vector<160x192xf32>
    %179 = arith.truncf %178 : vector<160x192xf32> to vector<160x192xbf16>
    %c5_95 = arith.constant 5 : index
    %c0_96 = arith.constant 0 : index
    %c0_97 = arith.constant 0 : index
    %180 = vector.load %arg4[%c5_95, %c0_96, %c0_97] : memref<9x192x160xbf16, #tpu.memory_space<vmem>>, vector<1x192x160xbf16>
    %181 = vector.shape_cast %180 : vector<1x192x160xbf16> to vector<192x160xbf16>
    %cst_98 = arith.constant dense<0.000000e+00> : vector<160x160xf32>
    %182 = tpu.matmul %179, %181, %cst_98 {dimension_numbers = #tpu.dot_dimension_numbers<[1], [0], [0], [1], [0, 0, 1, 1], [], []>} : vector<160x192xbf16>, vector<192x160xbf16>, vector<160x160xf32> -> vector<160x160xf32>
    %183 = arith.addf %176, %182 : vector<160x160xf32>
    %184 = vector.extract_strided_slice %140 {offsets = [0, 2, 0, 0], sizes = [1, 10, 16, 192], strides = [1, 1, 1, 1]} : vector<1x12x24x192xf32> to vector<1x10x16x192xf32>
    %185 = vector.shape_cast %184 : vector<1x10x16x192xf32> to vector<160x192xf32>
    %186 = arith.truncf %185 : vector<160x192xf32> to vector<160x192xbf16>
    %c6_99 = arith.constant 6 : index
    %c0_100 = arith.constant 0 : index
    %c0_101 = arith.constant 0 : index
    %187 = vector.load %arg4[%c6_99, %c0_100, %c0_101] : memref<9x192x160xbf16, #tpu.memory_space<vmem>>, vector<1x192x160xbf16>
    %188 = vector.shape_cast %187 : vector<1x192x160xbf16> to vector<192x160xbf16>
    %cst_102 = arith.constant dense<0.000000e+00> : vector<160x160xf32>
    %189 = tpu.matmul %186, %188, %cst_102 {dimension_numbers = #tpu.dot_dimension_numbers<[1], [0], [0], [1], [0, 0, 1, 1], [], []>} : vector<160x192xbf16>, vector<192x160xbf16>, vector<160x160xf32> -> vector<160x160xf32>
    %190 = arith.addf %183, %189 : vector<160x160xf32>
    %191 = vector.extract_strided_slice %140 {offsets = [0, 2, 1, 0], sizes = [1, 10, 16, 192], strides = [1, 1, 1, 1]} : vector<1x12x24x192xf32> to vector<1x10x16x192xf32>
    %192 = vector.shape_cast %191 : vector<1x10x16x192xf32> to vector<160x192xf32>
    %193 = arith.truncf %192 : vector<160x192xf32> to vector<160x192xbf16>
    %c7_103 = arith.constant 7 : index
    %c0_104 = arith.constant 0 : index
    %c0_105 = arith.constant 0 : index
    %194 = vector.load %arg4[%c7_103, %c0_104, %c0_105] : memref<9x192x160xbf16, #tpu.memory_space<vmem>>, vector<1x192x160xbf16>
    %195 = vector.shape_cast %194 : vector<1x192x160xbf16> to vector<192x160xbf16>
    %cst_106 = arith.constant dense<0.000000e+00> : vector<160x160xf32>
    %196 = tpu.matmul %193, %195, %cst_106 {dimension_numbers = #tpu.dot_dimension_numbers<[1], [0], [0], [1], [0, 0, 1, 1], [], []>} : vector<160x192xbf16>, vector<192x160xbf16>, vector<160x160xf32> -> vector<160x160xf32>
    %197 = arith.addf %190, %196 : vector<160x160xf32>
    %198 = vector.extract_strided_slice %140 {offsets = [0, 2, 2, 0], sizes = [1, 10, 16, 192], strides = [1, 1, 1, 1]} : vector<1x12x24x192xf32> to vector<1x10x16x192xf32>
    %199 = vector.shape_cast %198 : vector<1x10x16x192xf32> to vector<160x192xf32>
    %200 = arith.truncf %199 : vector<160x192xf32> to vector<160x192xbf16>
    %c8_107 = arith.constant 8 : index
    %c0_108 = arith.constant 0 : index
    %c0_109 = arith.constant 0 : index
    %201 = vector.load %arg4[%c8_107, %c0_108, %c0_109] : memref<9x192x160xbf16, #tpu.memory_space<vmem>>, vector<1x192x160xbf16>
    %202 = vector.shape_cast %201 : vector<1x192x160xbf16> to vector<192x160xbf16>
    %cst_110 = arith.constant dense<0.000000e+00> : vector<160x160xf32>
    %203 = tpu.matmul %200, %202, %cst_110 {dimension_numbers = #tpu.dot_dimension_numbers<[1], [0], [0], [1], [0, 0, 1, 1], [], []>} : vector<160x192xbf16>, vector<192x160xbf16>, vector<160x160xf32> -> vector<160x160xf32>
    %204 = arith.addf %197, %203 : vector<160x160xf32>
    %c0_111 = arith.constant 0 : index
    %c0_112 = arith.constant 0 : index
    %205 = vector.load %arg7[%c0_111, %c0_112] : memref<1x160xf32, #tpu.memory_space<vmem>>, vector<1x160xf32>
    %206 = vector.broadcast %205 : vector<1x160xf32> to vector<160x160xf32>
    %207 = arith.addf %204, %206 : vector<160x160xf32>
    %cst_113 = arith.constant 0.000000e+00 : f32
    %208 = vector.broadcast %cst_113 : f32 to vector<160x160xf32>
    %209 = arith.maximumf %207, %208 : vector<160x160xf32>
    %210 = vector.shape_cast %209 : vector<160x160xf32> to vector<1x10x16x160xf32>
    %211 = vector.shape_cast %210 : vector<1x10x16x160xf32> to vector<1x5x2x16x160xf32>
    %212 = vector.extract_strided_slice %211 {offsets = [0, 0, 0, 0, 0], sizes = [1, 5, 1, 16, 160], strides = [1, 1, 1, 1, 1]} : vector<1x5x2x16x160xf32> to vector<1x5x1x16x160xf32>
    %213 = vector.shape_cast %212 : vector<1x5x1x16x160xf32> to vector<1x5x16x160xf32>
    %214 = vector.extract_strided_slice %211 {offsets = [0, 0, 1, 0, 0], sizes = [1, 5, 1, 16, 160], strides = [1, 1, 1, 1, 1]} : vector<1x5x2x16x160xf32> to vector<1x5x1x16x160xf32>
    %215 = vector.shape_cast %214 : vector<1x5x1x16x160xf32> to vector<1x5x16x160xf32>
    %216 = arith.maximumf %213, %215 : vector<1x5x16x160xf32>
    %217 = vector.extract_strided_slice %216 {offsets = [0, 0, 0, 0], sizes = [1, 5, 9, 160], strides = [1, 1, 1, 1]} : vector<1x5x16x160xf32> to vector<1x5x9x160xf32>
    %218 = vector.extract_strided_slice %216 {offsets = [0, 0, 1, 0], sizes = [1, 5, 9, 160], strides = [1, 1, 1, 1]} : vector<1x5x16x160xf32> to vector<1x5x9x160xf32>
    %219 = arith.maximumf %217, %218 : vector<1x5x9x160xf32>
    %220 = vector.extract_strided_slice %219 {offsets = [0, 0, 0, 0], sizes = [1, 5, 9, 144], strides = [1, 1, 1, 1]} : vector<1x5x9x160xf32> to vector<1x5x9x144xf32>
    %221 = vector.extract_strided_slice %219 {offsets = [0, 0, 0, 16], sizes = [1, 5, 9, 144], strides = [1, 1, 1, 1]} : vector<1x5x9x160xf32> to vector<1x5x9x144xf32>
    %222 = arith.maximumf %220, %221 : vector<1x5x9x144xf32>
    %c0_114 = arith.constant 0 : index
    %c0_115 = arith.constant 0 : index
    %c0_116 = arith.constant 0 : index
    %c0_117 = arith.constant 0 : index
    %223 = vector.load %arg8[%c0_114, %c0_115, %c0_116, %c0_117] : memref<1x5x9x144xf32, #tpu.memory_space<vmem>>, vector<1x5x9x144xf32>
    tpu.vector_store %arg8[%c0_114, %c0_115, %c0_116, %c0_117], %222 {strides = array<i32>} : memref<1x5x9x144xf32, #tpu.memory_space<vmem>>, vector<1x5x9x144xf32>,
    return
  }
  func.func @transform_0(%arg0: i32) -> (i32, i32, i32, i32) {
    %c0_i32 = arith.constant 0 : i32
    %c0_i32_0 = arith.constant 0 : i32
    %c0_i32_1 = arith.constant 0 : i32
    %c0_i32_2 = arith.constant 0 : i32
    return %arg0, %c0_i32, %c0_i32_0, %c0_i32_1 : i32, i32, i32, i32
  }
  func.func @transform_1(%arg0: i32) -> (i32, i32, i32) {
    %c0_i32 = arith.constant 0 : i32
    %c0_i32_0 = arith.constant 0 : i32
    %c0_i32_1 = arith.constant 0 : i32
    %c0_i32_2 = arith.constant 0 : i32
    return %c0_i32, %c0_i32_0, %c0_i32_1 : i32, i32, i32
  }
  func.func @transform_2(%arg0: i32) -> (i32, i32, i32) {
    %c0_i32 = arith.constant 0 : i32
    %c0_i32_0 = arith.constant 0 : i32
    %c0_i32_1 = arith.constant 0 : i32
    %c0_i32_2 = arith.constant 0 : i32
    return %c0_i32, %c0_i32_0, %c0_i32_1 : i32, i32, i32
  }
  func.func @transform_3(%arg0: i32) -> (i32, i32, i32) {
    %c0_i32 = arith.constant 0 : i32
    %c0_i32_0 = arith.constant 0 : i32
    %c0_i32_1 = arith.constant 0 : i32
    %c0_i32_2 = arith.constant 0 : i32
    return %c0_i32, %c0_i32_0, %c0_i32_1 : i32, i32, i32
  }
  func.func @transform_4(%arg0: i32) -> (i32, i32) {
    %c0_i32 = arith.constant 0 : i32
    %c0_i32_0 = arith.constant 0 : i32
    %c0_i32_1 = arith.constant 0 : i32
    return %c0_i32, %c0_i32_0 : i32, i32
  }
  func.func @transform_5(%arg0: i32) -> (i32, i32) {
    %c0_i32 = arith.constant 0 : i32
    %c0_i32_0 = arith.constant 0 : i32
    %c0_i32_1 = arith.constant 0 : i32
    return %c0_i32, %c0_i32_0 : i32, i32
  }
  func.func @transform_6(%arg0: i32) -> (i32, i32) {
    %c0_i32 = arith.constant 0 : i32
    %c0_i32_0 = arith.constant 0 : i32
    %c0_i32_1 = arith.constant 0 : i32
    return %c0_i32, %c0_i32_0 : i32, i32
  }
  func.func @transform_7(%arg0: i32) -> (i32, i32, i32, i32) {
    %c0_i32 = arith.constant 0 : i32
    %c0_i32_0 = arith.constant 0 : i32
    %c0_i32_1 = arith.constant 0 : i32
    %c0_i32_2 = arith.constant 0 : i32
    return %arg0, %c0_i32, %c0_i32_0, %c0_i32_1 : i32, i32, i32, i32
  }
}

</mosaic_0001>

<bundles_post_ra>
// kernel: tile.18
= control target key start
LH: loop header
LB: loop body
LE: loop exit
PB: predicated region body
PF: predicated region fallthrough
CT: control target
= control target key end

     0   :  { %s28_s0 = inlined_call_operand.vmem [shape: f32[16], index: 0, kind: input, shape index: {}]   ;;  %s29_s1 = inlined_call_operand.vmem [shape: f32[12,16], index: 1, kind: output, shape index: {}]  }
   0x1   :  { %v4_v0 = vld [vmem:[%s28_s0] ss:$0 sm:$0xff] }
   0x2   :  { %5 = vst [vmem:[%s29_s1] sm:$0xff] %v4_v0  ;;  %8 = vst [vmem:[%s29_s1 + $0x8] sm:$0xff] %v4_v0 }

// kernel: tile.19
= control target key start
LH: loop header
LB: loop body
LE: loop exit
PB: predicated region body
PF: predicated region fallthrough
CT: control target
= control target key end

     0   :  { %s77_s10 = smov 112   ;;  %s78_s11 = smov 80   ;;  %vm4_vm0 = vcmask 130048   ;;  %vm10_vm1 = vcmask 1048448   ;;  %vm16_vm2 = vcmask 917248   ;;  %vm22_vm3 = vcmask 786048   ;;  %s124_s0 = inlined_call_operand.vmem [shape: f32[12,16], index: 0, kind: input, shape index: {}]   ;;  %s125_s1 = inlined_call_operand.vmem [shape: f32[1,192], index: 1, kind: output, shape index: {}]  }
   0x1   :  { %v62_v0 = vld [vmem:[%s124_s0 + $0x7] sm:$0x1]   ;;  %v64_v1 = vld [vmem:[%s124_s0 + $0x5] sm:$0x1]   ;;  %v63_v2 = vld [vmem:[%s124_s0 + $0x6] sm:$0x1]  }
   0x2   :  { %8 = vrot.lane.b32.xlu0 %v62_v0, %s77_s10  ;;  %20 = vrot.lane.b32.xlu1 %v64_v1, %s78_s11  ;;  %v65_v3 = vld [vmem:[%s124_s0 + $0x4] sm:$0x1]   ;;  %s31_s16 = smov 3  ;;  %s38_s17 = smov 3  ;;  %vm28_vm4 = vcmask 654848   ;;  %vm35_vm5 = vcmask 523648  }
   0x3   :  { %s79_s18 = smov 96   ;;  %s80_s19 = smov 64   ;;  %v66_v4 = vld [vmem:[%s124_s0 + $0x3] ss:$8 sm:%s31_s16]   ;;  %v67_v5 = vld [vmem:[%s124_s0 + $0x2] ss:$8 sm:%s38_s17]  }
   0x4   :  { %s2_s22 = smov 3  ;;  %s45_s27 = smov 3  ;;  %vm42_vm6 = vcmask 392448   ;;  %vm49_vm7 = vcmask 261248  }
   0x5   :  { %v3_v6 = vld [vmem:[%s124_s0] ss:$8 sm:%s2_s22]   ;;  %s81_s28 = smov 48   ;;  %s82_s29 = smov 32   ;;  %v68_v7 = vld [vmem:[%s124_s0 + $0x1] ss:$8 sm:%s45_s27]  }
   0x6   :  { %14 = vrot.lane.b32.xlu0 %v63_v2, %s79_s18  ;;  %26 = vrot.lane.b32.xlu1 %v65_v3, %s80_s19  ;;  %5 = vst.msk [vmem:[#allocation0] ss:$8 sm:$0x3] %vm4_vm0, %v3_v6   ;;  %s83_s0 = smov 16  }
   0xa   :  { %33 = vrot.lane.b32.xlu0 %v66_v4, %s81_s28  ;;  %40 = vrot.lane.b32.xlu1 %v67_v5, %s82_s29 }
   0xe   :  { %47 = vrot.lane.b32.xlu0 %v68_v7, %s83_s0 }
  0x74   :  { %v9_v8 = vpop.permute.xlu0 %8   ;;  %v21_v9 = vpop.permute.xlu1 %20  }
  0x75   :  { %11 = vst.msk [vmem:[#allocation0] sm:$0x1] %vm10_vm1, %v9_v8  }
  0x78   :  { %v15_v10 = vpop.permute.xlu0 %14   ;;  %v27_v11 = vpop.permute.xlu1 %26  }
  0x79   :  { %17 = vst.msk [vmem:[#allocation0] sm:$0x1] %vm16_vm2, %v15_v10  }
  0x7a   :  { %23 = vst.msk [vmem:[#allocation0] sm:$0x1] %vm22_vm3, %v21_v9  }
  0x7b   :  { %29 = vst.msk [vmem:[#allocation0] sm:$0x1] %vm28_vm4, %v27_v11  }
  0x7c   :  { %v34_v12 = vpop.permute.xlu0 %33   ;;  %v41_v13 = vpop.permute.xlu1 %40  }
  0x7d   :  { %36 = vst.msk [vmem:[#allocation0] ss:$8 sm:$0x3] %vm35_vm5, %v34_v12  }
  0x7e   :  { %43 = vst.msk [vmem:[#allocation0] ss:$8 sm:$0x3] %vm42_vm6, %v41_v13  }
  0x80   :  { %v48_v14 = vpop.permute.xlu0 %47  }
  0x81   :  { %50 = vst.msk [vmem:[#allocation0] ss:$8 sm:$0x3] %vm49_vm7, %v48_v14  }
  0x88   :  { %v54_v15 = vld [vmem:[#allocation0] sm:$0x1]  ;;  %v58_v16 = vld [vmem:[#allocation0 + $0x8] sm:$0x1] }
  0x89   :  { %56 = vst [vmem:[%s125_s1] sm:$0x1] %v54_v15  ;;  %69 = vst [vmem:[%s125_s1 + $0x1] sm:$0x1] %v58_v16 }

// kernel: tile.22
= control target key start
LH: loop header
LB: loop body
LE: loop exit
PB: predicated region body
PF: predicated region fallthrough
CT: control target
= control target key end

     0   :  { %s28_s0 = inlined_call_operand.vmem [shape: f32[16], index: 0, kind: input, shape index: {}]   ;;  %s29_s1 = inlined_call_operand.vmem [shape: f32[10,16], index: 1, kind: output, shape index: {}]  }
   0x1   :  { %v4_v0 = vld [vmem:[%s28_s0] ss:$0 sm:$0xff] }
   0x2   :  { %5 = vst [vmem:[%s29_s1] sm:$0xff] %v4_v0  ;;  %8 = vst [vmem:[%s29_s1 + $0x8] sm:$0xff] %v4_v0 }

// kernel: tile.23
= control target key start
LH: loop header
LB: loop body
LE: loop exit
PB: predicated region body
PF: predicated region fallthrough
CT: control target
= control target key end

     0   :  { %s75_s10 = smov 112   ;;  %s76_s11 = smov 80   ;;  %vm4_vm0 = vcmask 130048   ;;  %vm10_vm1 = vcmask 1048448   ;;  %vm16_vm2 = vcmask 917248   ;;  %vm22_vm3 = vcmask 786048   ;;  %s122_s0 = inlined_call_operand.vmem [shape: f32[10,16], index: 0, kind: input, shape index: {}]   ;;  %s123_s1 = inlined_call_operand.vmem [shape: f32[1,160], index: 1, kind: output, shape index: {}]  }
   0x1   :  { %v60_v0 = vld [vmem:[%s122_s0 + $0x7] sm:$0x1]   ;;  %v62_v1 = vld [vmem:[%s122_s0 + $0x5] sm:$0x1]   ;;  %v61_v2 = vld [vmem:[%s122_s0 + $0x6] sm:$0x1]  }
   0x2   :  { %8 = vrot.lane.b32.xlu0 %v60_v0, %s75_s10  ;;  %20 = vrot.lane.b32.xlu1 %v62_v1, %s76_s11  ;;  %v63_v3 = vld [vmem:[%s122_s0 + $0x4] sm:$0x1]   ;;  %s2_s16 = smov 3  ;;  %s77_s17 = smov 96   ;;  %v64_v5 = vld [vmem:[%s122_s0 + $0x3] sm:$0x1]  }
   0x3   :  { %s78_s18 = smov 64   ;;  %v3_v4 = vld [vmem:[%s122_s0] ss:$8 sm:%s2_s16]   ;;  %v65_v6 = vld [vmem:[%s122_s0 + $0x2] sm:$0x1]   ;;  %s43_s25 = smov 3 }
   0x4   :  { %5 = vst.msk [vmem:[#allocation0] ss:$8 sm:$0x3] %vm4_vm0, %v3_v4   ;;  %s79_s26 = smov 48   ;;  %s80_s27 = smov 32   ;;  %vm28_vm4 = vcmask 654848  }
   0x5   :  { %v66_v7 = vld [vmem:[%s122_s0 + $0x1] ss:$8 sm:%s43_s25]   ;;  %s81_s0 = smov 16   ;;  %vm34_vm5 = vcmask 523648   ;;  %vm40_vm6 = vcmask 392448   ;;  %vm47_vm7 = vcmask 261248  }
   0x6   :  { %14 = vrot.lane.b32.xlu0 %v61_v2, %s77_s17  ;;  %26 = vrot.lane.b32.xlu1 %v63_v3, %s78_s18 }
   0xa   :  { %32 = vrot.lane.b32.xlu0 %v64_v5, %s79_s26  ;;  %38 = vrot.lane.b32.xlu1 %v65_v6, %s80_s27 }
   0xe   :  { %45 = vrot.lane.b32.xlu0 %v66_v7, %s81_s0 }
  0x74   :  { %v9_v8 = vpop.permute.xlu0 %8   ;;  %v21_v9 = vpop.permute.xlu1 %20  }
  0x75   :  { %11 = vst.msk [vmem:[#allocation0] sm:$0x1] %vm10_vm1, %v9_v8  }
  0x78   :  { %v15_v10 = vpop.permute.xlu0 %14   ;;  %v27_v11 = vpop.permute.xlu1 %26  }
  0x79   :  { %17 = vst.msk [vmem:[#allocation0] sm:$0x1] %vm16_vm2, %v15_v10  }
  0x7a   :  { %23 = vst.msk [vmem:[#allocation0] sm:$0x1] %vm22_vm3, %v21_v9  }
  0x7b   :  { %29 = vst.msk [vmem:[#allocation0] sm:$0x1] %vm28_vm4, %v27_v11  }
  0x7c   :  { %v33_v12 = vpop.permute.xlu0 %32   ;;  %v39_v13 = vpop.permute.xlu1 %38  }
  0x7d   :  { %35 = vst.msk [vmem:[#allocation0] sm:$0x1] %vm34_vm5, %v33_v12  }
  0x7e   :  { %41 = vst.msk [vmem:[#allocation0] sm:$0x1] %vm40_vm6, %v39_v13  }
  0x80   :  { %v46_v14 = vpop.permute.xlu0 %45  }
  0x81   :  { %48 = vst.msk [vmem:[#allocation0] ss:$8 sm:$0x3] %vm47_vm7, %v46_v14  }
  0x88   :  { %v52_v15 = vld [vmem:[#allocation0] sm:$0x1]  ;;  %v56_v16 = vld [vmem:[#allocation0 + $0x8] sm:$0x1] }
  0x89   :  { %54 = vst [vmem:[%s123_s1] sm:$0x1] %v52_v15  ;;  %67 = vst [vmem:[%s123_s1 + $0x1] sm:$0x1] %v56_v16 }

// kernel: tile.14
= control target key start
LH: loop header
LB: loop body
LE: loop exit
PB: predicated region body
PF: predicated region fallthrough
CT: control target
= control target key end

     0   :  { %s28_s0 = inlined_call_operand.vmem [shape: f32[8], index: 0, kind: input, shape index: {}]   ;;  %s29_s1 = inlined_call_operand.vmem [shape: f32[14,8], index: 1, kind: output, shape index: {}]  }
   0x1   :  { %v4_v0 = vld [vmem:[%s28_s0] ss:$0 sm:$0xff] }
   0x2   :  { %5 = vst [vmem:[%s29_s1] sm:$0xff] %v4_v0  ;;  %8 = vst [vmem:[%s29_s1 + $0x8] sm:$0xff] %v4_v0 }

// kernel: tile.15
= control target key start
LH: loop header
LB: loop body
LE: loop exit
PB: predicated region body
PF: predicated region fallthrough
CT: control target
= control target key end

     0   :  { %s115_s10 = smov 104   ;;  %s116_s11 = smov 88   ;;  %vm3_vm0 = vcmask 64512   ;;  %vm9_vm1 = vcmask 917312   ;;  %vm15_vm2 = vcmask 851712   ;;  %vm21_vm3 = vcmask 786112   ;;  %s183_s0 = inlined_call_operand.vmem [shape: f32[14,8], index: 0, kind: input, shape index: {}]   ;;  %s184_s1 = inlined_call_operand.vmem [shape: f32[1,112], index: 1, kind: output, shape index: {}]  }
   0x1   :  { %v89_v0 = vld [vmem:[%s183_s0 + $0xd] sm:$0x1]   ;;  %v91_v1 = vld [vmem:[%s183_s0 + $0xb] sm:$0x1]   ;;  %v90_v2 = vld [vmem:[%s183_s0 + $0xc] sm:$0x1]  }
   0x2   :  { %7 = vrot.lane.b32.xlu0 %v89_v0, %s115_s10  ;;  %19 = vrot.lane.b32.xlu1 %v91_v1, %s116_s11  ;;  %v92_v3 = vld [vmem:[%s183_s0 + $0xa] sm:$0x1]   ;;  %s117_s16 = smov 96   ;;  %s118_s17 = smov 80   ;;  %v93_v4 = vld [vmem:[%s183_s0 + $0x9] sm:$0x1]  }
   0x3   :  { %v94_v5 = vld [vmem:[%s183_s0 + $0x8] sm:$0x1]   ;;  %v2_v6 = vld [vmem:[%s183_s0] sm:$0x1]   ;;  %s119_s24 = smov 72   ;;  %s120_s25 = smov 64  }
   0x4   :  { %4 = vst.msk [vmem:[#allocation0] sm:$0x1] %vm3_vm0, %v2_v6   ;;  %v95_v7 = vld [vmem:[%s183_s0 + $0x7] sm:$0x1]   ;;  %v96_v8 = vld [vmem:[%s183_s0 + $0x6] sm:$0x1]  }
   0x5   :  { %s121_s30 = smov 56   ;;  %s122_s2 = smov 48   ;;  %v97_v9 = vld [vmem:[%s183_s0 + $0x5] sm:$0x1]   ;;  %v98_v10 = vld [vmem:[%s183_s0 + $0x4] sm:$0x1]  }
   0x6   :  { %13 = vrot.lane.b32.xlu0 %v90_v2, %s117_s16  ;;  %25 = vrot.lane.b32.xlu1 %v92_v3, %s118_s17  ;;  %s123_s7 = smov 40   ;;  %s124_s8 = smov 32   ;;  %v99_v11 = vld [vmem:[%s183_s0 + $0x3] sm:$0x1]   ;;  %v100_v12 = vld [vmem:[%s183_s0 + $0x2] sm:$0x1]  }
   0x7   :  { %s125_s13 = smov 24   ;;  %s126_s14 = smov 16   ;;  %v101_v13 = vld [vmem:[%s183_s0 + $0x1] sm:$0x1]   ;;  %vm27_vm4 = vcmask 720512   ;;  %vm33_vm5 = vcmask 654912  }
   0x8   :  { %s127_s0 = smov 8   ;;  %vm39_vm6 = vcmask 589312   ;;  %vm45_vm7 = vcmask 523712   ;;  %vm51_vm8 = vcmask 458112   ;;  %vm57_vm9 = vcmask 392512  }
   0x9   :  { %vm63_vm10 = vcmask 326912   ;;  %vm69_vm11 = vcmask 261312   ;;  %vm75_vm12 = vcmask 195712   ;;  %vm81_vm13 = vcmask 130112  }
   0xa   :  { %31 = vrot.lane.b32.xlu0 %v93_v4, %s119_s24  ;;  %37 = vrot.lane.b32.xlu1 %v94_v5, %s120_s25 }
   0xe   :  { %43 = vrot.lane.b32.xlu0 %v95_v7, %s121_s30  ;;  %49 = vrot.lane.b32.xlu1 %v96_v8, %s122_s2 }
  0x12   :  { %55 = vrot.lane.b32.xlu0 %v97_v9, %s123_s7  ;;  %61 = vrot.lane.b32.xlu1 %v98_v10, %s124_s8 }
  0x16   :  { %67 = vrot.lane.b32.xlu0 %v99_v11, %s125_s13  ;;  %73 = vrot.lane.b32.xlu1 %v100_v12, %s126_s14 }
  0x1a   :  { %79 = vrot.lane.b32.xlu0 %v101_v13, %s127_s0 }
  0x74   :  { %v8_v14 = vpop.permute.xlu0 %7   ;;  %v20_v15 = vpop.permute.xlu1 %19  }
  0x75   :  { %10 = vst.msk [vmem:[#allocation0] sm:$0x1] %vm9_vm1, %v8_v14  }
  0x78   :  { %v14_v16 = vpop.permute.xlu0 %13   ;;  %v26_v17 = vpop.permute.xlu1 %25  }
  0x79   :  { %16 = vst.msk [vmem:[#allocation0] sm:$0x1] %vm15_vm2, %v14_v16  }
  0x7a   :  { %22 = vst.msk [vmem:[#allocation0] sm:$0x1] %vm21_vm3, %v20_v15  }
  0x7b   :  { %28 = vst.msk [vmem:[#allocation0] sm:$0x1] %vm27_vm4, %v26_v17  }
  0x7c   :  { %v32_v18 = vpop.permute.xlu0 %31   ;;  %v38_v19 = vpop.permute.xlu1 %37  }
  0x7d   :  { %34 = vst.msk [vmem:[#allocation0] sm:$0x1] %vm33_vm5, %v32_v18  }
  0x7e   :  { %40 = vst.msk [vmem:[#allocation0] sm:$0x1] %vm39_vm6, %v38_v19  }
  0x80   :  { %v44_v20 = vpop.permute.xlu0 %43   ;;  %v50_v21 = vpop.permute.xlu1 %49  }
  0x81   :  { %46 = vst.msk [vmem:[#allocation0] sm:$0x1] %vm45_vm7, %v44_v20  }
  0x82   :  { %52 = vst.msk [vmem:[#allocation0] sm:$0x1] %vm51_vm8, %v50_v21  }
  0x84   :  { %v56_v22 = vpop.permute.xlu0 %55   ;;  %v62_v23 = vpop.permute.xlu1 %61  }
  0x85   :  { %58 = vst.msk [vmem:[#allocation0] sm:$0x1] %vm57_vm9, %v56_v22  }
  0x86   :  { %64 = vst.msk [vmem:[#allocation0] sm:$0x1] %vm63_vm10, %v62_v23  }
  0x88   :  { %v68_v24 = vpop.permute.xlu0 %67   ;;  %v74_v25 = vpop.permute.xlu1 %73  }
  0x89   :  { %70 = vst.msk [vmem:[#allocation0] sm:$0x1] %vm69_vm11, %v68_v24  }
  0x8a   :  { %76 = vst.msk [vmem:[#allocation0] sm:$0x1] %vm75_vm12, %v74_v25  }
  0x8c   :  { %v80_v26 = vpop.permute.xlu0 %79  }
  0x8d   :  { %82 = vst.msk [vmem:[#allocation0] sm:$0x1] %vm81_vm13, %v80_v26  }
  0x94   :  { %v86_v27 = vld [vmem:[#allocation0] sm:$0x1] }
  0x95   :  { %88 = vst [vmem:[%s184_s1] sm:$0x1] %v86_v27 }

// kernel: _lambda_.1
= control target key start
LH: loop header
LB: loop body
LE: loop exit
PB: predicated region body
PF: predicated region fallthrough
CT: control target
= control target key end

     0   :  { %s16408_s24 = smov 0   ;;  %s21265_s0 = inlined_call_operand.vmem [shape: f32[2,16,40,64], index: 0, kind: input, shape index: {}]   ;;  %s21266_s1 = inlined_call_operand.vmem [shape: bf16[9,64,112], index: 1, kind: input, shape index: {}]   ;;  %s21267_s2 = inlined_call_operand.vmem [shape: bf16[9,112,192], index: 2, kind: input, shape index: {}]   ;;  %s21268_s3 = inlined_call_operand.vmem [shape: bf16[9,192,160], index: 3, kind: input, shape index: {}]   ;;  %s21269_s4 = inlined_call_operand.vmem [shape: f32[1,112], index: 4, kind: input, shape index: {}]   ;;  %s21270_s5 = inlined_call_operand.vmem [shape: f32[1,192], index: 5, kind: input, shape index: {}]   ;;  %s21271_s6 = inlined_call_operand.vmem [shape: f32[1,160], index: 6, kind: input, shape index: {}]   ;;  %s21272_s7 = inlined_call_operand.vmem [shape: f32[2,5,9,144], index: 7, kind: output, shape index: {}]  }
   0x1 LB: > { %s12267_s25 = sadd.s32 4294967295, %s16364_s24   ;;  %p12271_p0 = scmp.ge.s32.totalorder %s16364_s24, 1  ;;  %s16364_s24 = sphi %s16408_s24, %s17_s24  }
   0x2   : > { %p237_p1 = scmp.lt.s32.totalorder %s16364_s24, 3 }
   0x4   : > { %p238_p2 = pnand %p12271_p0, %p237_p1 }
   0x6   : > { %241 = sbr.rel (%p238_p2) target bundleno = 3409 (0xd51), region = 48 }
   0xd   : > { %v15747_v0 = vld [vmem:[%s21266_s1 + $0x40] sm:$0xff]   ;;  %p269_p3 = scmp.lt.s32.totalorder %s12267_s25, 1  ;;  %v15748_v1 = vld [vmem:[%s21266_s1 + $0x48] sm:$0xff]   ;;  %v15749_v2 = vld [vmem:[%s21266_s1 + $0x50] sm:$0xff]   ;;  %vm1417_vm0 = vcmask 1045504   ;;  %vm710_vm1 = vcmask 523264  }
   0xe   : > { %13943 = vmatprep.subr.bf16.mxu0 %v15747_v0  ;;  %v15750_v3 = vld [vmem:[%s21266_s1 + $0x58] sm:$0xff]   ;;  %v15751_v25 = vld [vmem:[%s21266_s1 + $0x60] sm:$0xff]   ;;  %v15752_v40 = vld [vmem:[%s21266_s1 + $0x68] sm:$0xff]   ;;  %vm466_vm2 = vcmask 1046528   ;;  %vm4666_vm3 = vcmask 916480   ;;  %s16367_s15 = smov 112  }
   0xf   : > { %s22151_s25 = smov (!%p269_p3, %s12267_s25), 1  ;;  %13944 = vmatpush3.bf16.msra.mxu0 %v15747_v0  ;;  %v15753_v47 = vld [vmem:[%s21266_s1 + $0x70] sm:$0xff]   ;;  %v15754_v58 = vld [vmem:[%s21266_s1 + $0x78] sm:$0xff]   ;;  %vm12194_vm4 = vcmask 122880   ;;  %vm12191_vm5 = vcmask 130048  }
  0x10   : > { %13945 = vmatprep.subr.bf16.mxu0 %v15748_v1  ;;  %s15735_s9 = smul.u32 640, %s22151_s25 }
  0x11   : > { %s15736_s16 = smul.u32 160, %s22151_s25 }
  0x12   : > { %s16434_s14 = scalar_lea.vmem %s21265_s0, %s15735_s9 }
  0x13   : > { %13946 = vmatpush3.bf16.msra.mxu0 %v15748_v1  ;;  %v280_v4 = vld [vmem:[%s16434_s14] sm:$0xff]  ;;  %v281_v5 = vld [vmem:[%s16434_s14 + $0x8] sm:$0xff]  ;;  %v282_v6 = vld [vmem:[%s16434_s14 + $0x10] sm:$0xff]  ;;  %s21200_s19 = scalar_lea.vmem %s21272_s7, %s15736_s16 }
  0x14   : > { %13947 = vmatprep.subr.bf16.mxu0 %v15749_v2  ;;  %v283_v7 = vld [vmem:[%s16434_s14 + $0x18] sm:$0xff]  ;;  %v1418_v8 = vrot.slane %v280_v4, 2  ;;  %v1419_v9 = vrot.slane %v281_v5, 2  ;;  %v1421_v10 = vrot.slane %v282_v6, 2  ;;  %v284_v11 = vld [vmem:[%s16434_s14 + $0x20] sm:$0xff]  ;;  %v16442_v12 = vld [vmem:[%s16434_s14 + $0x28] sm:$0xff] }
  0x15   : > { %v1423_v13 = vrot.slane %v283_v7, 2  ;;  %v1425_v14 = vrot.slane %v284_v11, 2  ;;  %v16445_v15 = vld [vmem:[%s16434_s14 + $0x30] sm:$0xff]  ;;  %v16448_v16 = vld [vmem:[%s16434_s14 + $0x38] sm:$0xff]  ;;  %v1427_v17 = vrot.slane %v16442_v12, 2  ;;  %v16463_v28 = vld [vmem:[%s16434_s14 + $0x40] sm:$0xff] }
  0x16   : > { %v1420_v18 = vsel %vm1417_vm0, %v1418_v8, %v1419_v9  ;;  %v1422_v19 = vsel %vm1417_vm0, %v1419_v9, %v1421_v10  ;;  %v1428_v20 = vrot.slane %v16445_v15, 2  ;;  %v1430_v21 = vrot.slane %v16448_v16, 2  ;;  %v16466_v29 = vld [vmem:[%s16434_s14 + $0x48] sm:$0xff]  ;;  %v290_v30 = vld [vmem:[%s16434_s14 + $0x50] sm:$0xff]  ;;  %v291_v31 = vld [vmem:[%s16434_s14 + $0x58] sm:$0xff] }
  0x17   : > { %13948 = vmatpush3.bf16.msra.mxu0 %v15749_v2  ;;  %v1600_v22 = vpack.c.bf16 %v1422_v19, %v1420_v18  ;;  %v1424_v23 = vsel %vm1417_vm0, %v1421_v10, %v1423_v13  ;;  %v1426_v24 = vsel %vm1417_vm0, %v1423_v13, %v1425_v14  ;;  %v292_v32 = vld [vmem:[%s16434_s14 + $0x60] sm:$0xff]  ;;  %v1432_v35 = vrot.slane %v16463_v28, 2  ;;  %v293_v45 = vld [vmem:[%s16434_s14 + $0x68] sm:$0xff]  ;;  %v294_v46 = vld [vmem:[%s16434_s14 + $0x70] sm:$0xff] }
  0x18   : > { %13949 = vmatprep.subr.bf16.mxu0 %v15750_v3  ;;  %v1429_v26 = vsel %vm1417_vm0, %v1427_v17, %v1428_v20  ;;  %v1431_v27 = vsel %vm1417_vm0, %v1428_v20, %v1430_v21  ;;  %v1601_v33 = vpack.c.bf16 %v1426_v24, %v1424_v23  ;;  %v1434_v36 = vrot.slane %v16466_v29, 2  ;;  %v295_v48 = vld [vmem:[%s16434_s14 + $0x78] sm:$0xff]  ;;  %v296_v49 = vld [vmem:[%s16434_s14 + $0x80] sm:$0xff]  ;;  %v297_v50 = vld [vmem:[%s16434_s14 + $0x88] sm:$0xff] }
  0x19   : > { %13951 = vmatprep.mubr.msk.bf16.mxu0 %vm710_vm1, %v1600_v22  ;;  %v16472_v34 = vpack.c.bf16 %v1431_v27, %v1429_v26  ;;  %v1436_v37 = vrot.slane %v290_v30, 2  ;;  %v1437_v38 = vrot.slane %v291_v31, 2  ;;  %v1439_v39 = vrot.slane %v292_v32, 2  ;;  %v298_v63 = vld [vmem:[%s16434_s14 + $0x90] sm:$0xff]  ;;  %v299_v0 = vld [vmem:[%s16434_s14 + $0x98] sm:$0xff]  ;;  %v300_v1 = vld [vmem:[%s16434_s14 + $0xa0] sm:$0xff] }
  0x1a   : > { %v1433_v41 = vsel %vm1417_vm0, %v1430_v21, %v1432_v35  ;;  %v1435_v42 = vsel %vm1417_vm0, %v1432_v35, %v1434_v36  ;;  %v1441_v53 = vrot.slane %v293_v45, 2  ;;  %v1443_v54 = vrot.slane %v294_v46, 2  ;;  %v301_v2 = vld [vmem:[%s16434_s14 + $0xa8] sm:$0xff]  ;;  %v303_v11 = vld [vmem:[%s16434_s14 + $0xb8] sm:$0xff]  ;;  %v304_v13 = vld [vmem:[%s16434_s14 + $0xc0] sm:$0xff] }
  0x1b   : > { %13950 = vmatpush3.bf16.msra.mxu0 %v15750_v3  ;;  %v1438_v43 = vsel %vm1417_vm0, %v1436_v37, %v1437_v38  ;;  %v1440_v44 = vsel %vm1417_vm0, %v1437_v38, %v1439_v39  ;;  %v16494_v51 = vpack.c.bf16 %v1435_v42, %v1433_v41  ;;  %v1445_v55 = vrot.slane %v295_v48, 2  ;;  %v302_v3 = vld [vmem:[%s16434_s14 + $0xb0] sm:$0xff]  ;;  %v305_v14 = vld [vmem:[%s16434_s14 + $0xc8] sm:$0xff]  ;;  %v16524_v17 = vld [vmem:[%s21266_s1 + $0x80] sm:$0xff]  }
  0x1c   : > { %14007 = vmatprep.subr.bf16.mxu0 %v15751_v25  ;;  %v16496_v52 = vpack.c.bf16 %v1440_v44, %v1438_v43  ;;  %v1446_v56 = vrot.slane %v296_v49, 2  ;;  %v1448_v57 = vrot.slane %v297_v50, 2  ;;  %v1442_v59 = vsel %vm1417_vm0, %v1439_v39, %v1441_v53  ;;  %v306_v18 = vld [vmem:[%s16434_s14 + $0xd0] sm:$0xff]  ;;  %v307_v21 = vld [vmem:[%s16434_s14 + $0xd8] sm:$0xff]  ;;  %v308_v24 = vld [vmem:[%s16434_s14 + $0xe0] sm:$0xff] }
  0x1d   : > { %v1444_v60 = vsel %vm1417_vm0, %v1441_v53, %v1443_v54  ;;  %v1450_v6 = vrot.slane %v298_v63, 2  ;;  %v1452_v7 = vrot.slane %v299_v0, 2  ;;  %v1454_v8 = vrot.slane %v300_v1, 2  ;;  %v309_v26 = vld [vmem:[%s16434_s14 + $0xe8] sm:$0xff]  ;;  %v310_v27 = vld [vmem:[%s16434_s14 + $0xf0] sm:$0xff]  ;;  %v311_v30 = vld [vmem:[%s16434_s14 + $0xf8] sm:$0xff] }
  0x1e   : > { %13952 = vmatmul.mubr.msk.bf16.vlgmr.msra.gmra.mrb[0].mxu0 %vm710_vm1, %v1601_v33  ;;  %v1447_v61 = vsel %vm1417_vm0, %v1445_v55, %v1446_v56  ;;  %v1449_v62 = vsel %vm1417_vm0, %v1446_v56, %v1448_v57  ;;  %v16514_v4 = vpack.c.bf16 %v1444_v60, %v1442_v59  ;;  %v1455_v9 = vrot.slane %v301_v2, 2  ;;  %v312_v35 = vld [vmem:[%s16434_s14 + $0x100] sm:$0xff]  ;;  %v313_v36 = vld [vmem:[%s16434_s14 + $0x108] sm:$0xff]  ;;  %v314_v39 = vld [vmem:[%s16434_s14 + $0x110] sm:$0xff] }
  0x1f   : > { %14008 = vmatpush3.bf16.msra.mxu0 %v15751_v25  ;;  %13955 = vmatprep.mubr.msk.bf16.mxu0 %vm710_vm1, %v16472_v34  ;;  %v16516_v5 = vpack.c.bf16 %v1449_v62, %v1447_v61  ;;  %v1457_v10 = vrot.slane %v302_v3, 2  ;;  %v1451_v19 = vsel %vm1417_vm0, %v1448_v57, %v1450_v6  ;;  %v1453_v20 = vsel %vm1417_vm0, %v1450_v6, %v1452_v7  ;;  %v315_v41 = vld [vmem:[%s16434_s14 + $0x118] sm:$0xff]  ;;  %v316_v43 = vld [vmem:[%s16434_s14 + $0x120] sm:$0xff]  ;;  %v317_v62 = vld [vmem:[%s16434_s14 + $0x128] sm:$0xff] }
  0x20   : > { %14009 = vmatprep.subr.bf16.mxu0 %v15752_v40  ;;  %v1456_v22 = vsel %vm1417_vm0, %v1454_v8, %v1455_v9  ;;  %v1459_v25 = vrot.slane %v303_v11, 2  ;;  %v16541_v31 = vpack.c.bf16 %v1453_v20, %v1451_v19  ;;  %v1461_v32 = vrot.slane %v304_v13, 2  ;;  %v16578_v6 = vld [vmem:[%s16434_s14 + $0x130] sm:$0xff]  ;;  %v319_v7 = vld [vmem:[%s16434_s14 + $0x138] sm:$0xff]  ;;  %v16589_v11 = vld [vmem:[%s16434_s14 + $0x148] sm:$0xff] }
  0x21   : > { %v1458_v23 = vsel %vm1417_vm0, %v1455_v9, %v1457_v10  ;;  %v1463_v33 = vrot.slane %v305_v14, 2  ;;  %v1464_v38 = vrot.slane %v306_v18, 2  ;;  %v1468_v42 = vrot.slane %v308_v24, 2  ;;  %v16592_v13 = vld [vmem:[%s16434_s14 + $0x150] sm:$0xff] }
  0x22   : > { %v16545_v37 = vpack.c.bf16 %v1458_v23, %v1456_v22  ;;  %v1470_v44 = vrot.slane %v309_v26, 2  ;;  %v1472_v45 = vrot.slane %v310_v27, 2  ;;  %v1473_v46 = vrot.slane %v311_v30, 2  ;;  %v16607_v26 = vld [vmem:[%s16434_s14 + $0x158] sm:$0xff]  ;;  %v324_v27 = vld [vmem:[%s16434_s14 + $0x160] sm:$0xff] }
  0x23   : > { %14010 = vmatpush3.bf16.msra.mxu0 %v15752_v40  ;;  %v1466_v40 = vrot.slane %v307_v21, 2  ;;  %v1462_v48 = vsel %vm1417_vm0, %v1459_v25, %v1461_v32  ;;  %v1475_v49 = vrot.slane %v312_v35, 2  ;;  %v1477_v50 = vrot.slane %v313_v36, 2  ;;  %v16618_v35 = vld [vmem:[%s16434_s14 + $0x170] sm:$0xff]  ;;  %v16621_v36 = vld [vmem:[%s16434_s14 + $0x178] sm:$0xff] }
  0x24   : > { %14011 = vmatprep.subr.bf16.mxu0 %v15753_v47  ;;  %v1465_v53 = vsel %vm1417_vm0, %v1463_v33, %v1464_v38  ;;  %v1479_v55 = vrot.slane %v314_v39, 2  ;;  %v1481_v56 = vrot.slane %v315_v41, 2  ;;  %v1471_v61 = vsel %vm1417_vm0, %v1468_v42, %v1470_v44  ;;  %v16615_v33 = vld [vmem:[%s16434_s14 + $0x168] sm:$0xff] }
  0x25   : > { %v1467_v54 = vsel %vm1417_vm0, %v1464_v38, %v1466_v40  ;;  %v1469_v60 = vsel %vm1417_vm0, %v1466_v40, %v1468_v42  ;;  %v1474_v63 = vsel %vm1417_vm0, %v1472_v45, %v1473_v46  ;;  %v1476_v0 = vsel %vm1417_vm0, %v1473_v46, %v1475_v49 }
  0x26   : > { %13956 = vmatmul.mubr.msk.bf16.gmra.mrb[4].mxu0 %vm710_vm1, %v16494_v51  ;;  %v16560_v59 = vpack.c.bf16 %v1467_v54, %v1465_v53  ;;  %v16571_v1 = vpack.c.bf16 %v1471_v61, %v1469_v60  ;;  %v16573_v2 = vpack.c.bf16 %v1476_v0, %v1474_v63  ;;  %v1484_v3 = vrot.slane %v317_v62, 2  ;;  %v16644_v53 = vld [vmem:[%s16434_s14 + $0x190] sm:$0xff]  ;;  %v16647_v54 = vld [vmem:[%s16434_s14 + $0x198] sm:$0xff] }
  0x27   : > { %13959 = vmatprep.mubr.msk.bf16.mxu0 %vm710_vm1, %v16496_v52  ;;  %14012 = vmatpush3.bf16.msra.mxu0 %v15753_v47  ;;  %v1460_v47 = vsel %vm1417_vm0, %v1457_v10, %v1459_v25  ;;  %v1478_v8 = vsel %vm1417_vm0, %v1475_v49, %v1477_v50  ;;  %v1480_v9 = vsel %vm1417_vm0, %v1477_v50, %v1479_v55  ;;  %v16586_v10 = vld [vmem:[%s16434_s14 + $0x140] sm:$0xff]  ;;  %v1486_v21 = vrot.slane %v16578_v6, 2 }
  0x28   : > { %14013 = vmatprep.subr.bf16.mxu0 %v15754_v58  ;;  %v16558_v57 = vpack.c.bf16 %v1462_v48, %v1460_v47  ;;  %21580 = vst [vmem:[#allocation3_spill] sm:$0xff] %v16560_v59  ;;  %21581 = vst [vmem:[#allocation4_spill] sm:$0xff] %v16571_v1  ;;  %v16596_v19 = vpack.c.bf16 %v1480_v9, %v1478_v8  ;;  %v1488_v22 = vrot.slane %v319_v7, 2  ;;  %v1490_v23 = vrot.slane %v16586_v10, 2  ;;  %v16636_v47 = vld [vmem:[%s16434_s14 + $0x180] sm:$0xff]  ;;  %v329_v48 = vld [vmem:[%s16434_s14 + $0x188] sm:$0xff] }
  0x29   : > { %21582 = vst [vmem:[#allocation5_spill] sm:$0xff] %v16573_v2  ;;  %v1491_v24 = vrot.slane %v16589_v11, 2  ;;  %v1493_v25 = vrot.slane %v16592_v13, 2  ;;  %v1487_v30 = vsel %vm1417_vm0, %v1484_v3, %v1486_v21  ;;  %v1495_v42 = vrot.slane %v16607_v26, 2  ;;  %v16650_v55 = vld [vmem:[%s16434_s14 + $0x1a0] sm:$0xff]  ;;  %v16665_v8 = vld [vmem:[%s16434_s14 + $0x1a8] sm:$0xff] }
  0x2a   : > { %21579 = vst [vmem:[#allocation2_spill] sm:$0xff] %v16558_v57  ;;  %21583 = vst [vmem:[#allocation6_spill] sm:$0xff] %v16596_v19  ;;  %v1489_v32 = vsel %vm1417_vm0, %v1486_v21, %v1488_v22  ;;  %v1499_v44 = vrot.slane %v16615_v33, 2  ;;  %v1500_v45 = vrot.slane %v16618_v35, 2  ;;  %v1502_v46 = vrot.slane %v16621_v36, 2  ;;  %v334_v9 = vld [vmem:[%s16434_s14 + $0x1b0] sm:$0xff] }
  0x2b   : > { %14014 = vmatpush3.bf16.msra.mxu0 %v15754_v58  ;;  %v1482_v58 = vrot.slane %v316_v43, 2  ;;  %v1492_v38 = vsel %vm1417_vm0, %v1490_v23, %v1491_v24  ;;  %v1494_v39 = vsel %vm1417_vm0, %v1491_v24, %v1493_v25  ;;  %v16625_v40 = vpack.c.bf16 %v1489_v32, %v1487_v30  ;;  %v16673_v21 = vld [vmem:[%s16434_s14 + $0x1b8] sm:$0xff]  ;;  %v16676_v22 = vld [vmem:[%s16434_s14 + $0x1c0] sm:$0xff]  ;;  %v16679_v23 = vld [vmem:[%s16434_s14 + $0x1c8] sm:$0xff] }
  0x2c   : > { %14071 = vmatprep.subr.bf16.mxu0 %v16524_v17  ;;  %v16627_v41 = vpack.c.bf16 %v1494_v39, %v1492_v38  ;;  %v1497_v43 = vrot.slane %v324_v27, 2  ;;  %v1496_v49 = vsel %vm1417_vm0, %v1493_v25, %v1495_v42  ;;  %v1504_v62 = vrot.slane %v16636_v47, 2 }
  0x2d   : > { %v1483_v14 = vsel %vm1417_vm0, %v1481_v56, %v1482_v58  ;;  %v1485_v18 = vsel %vm1417_vm0, %v1482_v58, %v1484_v3  ;;  %21585 = vst [vmem:[#allocation8_spill] sm:$0xff] %v16625_v40  ;;  %v1501_v56 = vsel %vm1417_vm0, %v1499_v44, %v1500_v45  ;;  %v1503_v58 = vsel %vm1417_vm0, %v1500_v45, %v1502_v46  ;;  %v16694_v44 = vld [vmem:[%s16434_s14 + $0x1d0] sm:$0xff]  ;;  %v339_v45 = vld [vmem:[%s16434_s14 + $0x1d8] sm:$0xff] }
  0x2e   : > { %13960 = vmatmul.mubr.msk.bf16.gmra.mrb[8].mxu0 %vm710_vm1, %v16514_v4  ;;  %v16598_v20 = vpack.c.bf16 %v1485_v18, %v1483_v14  ;;  %21586 = vst [vmem:[#allocation9_spill] sm:$0xff] %v16627_v41  ;;  %v1498_v50 = vsel %vm1417_vm0, %v1495_v42, %v1497_v43  ;;  %v16656_v61 = vpack.c.bf16 %v1503_v58, %v1501_v56  ;;  %v1506_v63 = vrot.slane %v329_v48, 2  ;;  %v16708_v56 = vld [vmem:[%s16434_s14 + $0x1f0] sm:$0xff] }
  0x2f   : > { %13963 = vmatprep.mubr.msk.bf16.mxu0 %vm710_vm1, %v16516_v5  ;;  %v16654_v60 = vpack.c.bf16 %v1498_v50, %v1496_v49  ;;  %v1508_v0 = vrot.slane %v16644_v53, 2  ;;  %v1509_v3 = vrot.slane %v16647_v54, 2  ;;  %v1511_v7 = vrot.slane %v16650_v55, 2  ;;  %v16702_v49 = vld [vmem:[%s16434_s14 + $0x1e0] sm:$0xff]  ;;  %v16705_v50 = vld [vmem:[%s16434_s14 + $0x1e8] sm:$0xff] }
  0x30   : > { %21584 = vst [vmem:[#allocation7_spill] sm:$0xff] %v16598_v20  ;;  %21588 = vst [vmem:[#allocation11_spill] sm:$0xff] %v16656_v61  ;;  %v1505_v14 = vsel %vm1417_vm0, %v1502_v46, %v1504_v62  ;;  %v1507_v18 = vsel %vm1417_vm0, %v1504_v62, %v1506_v63  ;;  %v1513_v32 = vrot.slane %v16665_v8, 2  ;;  %v1515_v38 = vrot.slane %v334_v9, 2 }
  0x31   : > { %21587 = vst [vmem:[#allocation10_spill] sm:$0xff] %v16654_v60  ;;  %v1510_v24 = vsel %vm1417_vm0, %v1508_v0, %v1509_v3  ;;  %v1512_v25 = vsel %vm1417_vm0, %v1509_v3, %v1511_v7  ;;  %v16683_v27 = vpack.c.bf16 %v1507_v18, %v1505_v14  ;;  %v1517_v39 = vrot.slane %v16673_v21, 2 }
  0x32   : > { %v16685_v30 = vpack.c.bf16 %v1512_v25, %v1510_v24  ;;  %v1518_v42 = vrot.slane %v16676_v22, 2  ;;  %v1520_v43 = vrot.slane %v16679_v23, 2  ;;  %v1514_v46 = vsel %vm1417_vm0, %v1511_v7, %v1513_v32  ;;  %v16723_v24 = vld [vmem:[%s16434_s14 + $0x1f8] sm:$0xff]  ;;  %v16726_v25 = vld [vmem:[%s16434_s14 + $0x200] sm:$0xff] }
  0x33   : > { %21589 = vst [vmem:[#allocation12_spill] sm:$0xff] %v16683_v27  ;;  %v1516_v48 = vsel %vm1417_vm0, %v1513_v32, %v1515_v38  ;;  %v1522_v3 = vrot.slane %v16694_v44, 2  ;;  %v1524_v7 = vrot.slane %v339_v45, 2  ;;  %v1526_v9 = vrot.slane %v16702_v49, 2  ;;  %v16739_v45 = vld [vmem:[%s16434_s14 + $0x218] sm:$0xff] }
  0x34   : > { %21590 = vst [vmem:[#allocation13_spill] sm:$0xff] %v16685_v30  ;;  %v1519_v58 = vsel %vm1417_vm0, %v1517_v39, %v1518_v42  ;;  %v1521_v62 = vsel %vm1417_vm0, %v1518_v42, %v1520_v43  ;;  %v16712_v63 = vpack.c.bf16 %v1516_v48, %v1514_v46  ;;  %v1527_v14 = vrot.slane %v16705_v50, 2  ;;  %v16733_v39 = vld [vmem:[%s16434_s14 + $0x208] sm:$0xff]  ;;  %v16736_v42 = vld [vmem:[%s16434_s14 + $0x210] sm:$0xff] }
  0x35   : > { %v16714_v0 = vpack.c.bf16 %v1521_v62, %v1519_v58  ;;  %v1529_v18 = vrot.slane %v16708_v56, 2  ;;  %v1523_v32 = vsel %vm1417_vm0, %v1520_v43, %v1522_v3  ;;  %v1525_v38 = vsel %vm1417_vm0, %v1522_v3, %v1524_v7 }
  0x36   : > { %13964 = vmatmul.mubr.msk.bf16.gmra.mrb[12].mxu0 %vm710_vm1, %v16541_v31  ;;  %21591 = vst [vmem:[#allocation14_spill] sm:$0xff] %v16712_v63  ;;  %v1528_v46 = vsel %vm1417_vm0, %v1526_v9, %v1527_v14  ;;  %v481_v58 = vrot.slane %v16463_v28, 1  ;;  %v16744_v62 = vpack.c.bf16 %v1525_v38, %v1523_v32  ;;  %v483_v43 = vrot.slane %v16466_v29, 1  ;;  %v16757_v28 = vld [vmem:[%s16434_s14 + $0x220] sm:$0xff]  ;;  %v16764_v32 = vld [vmem:[%s16434_s14 + $0x228] sm:$0xff] }
  0x37   : > { %13967 = vmatprep.mubr.msk.bf16.mxu0 %vm710_vm1, %v16545_v37  ;;  %21592 = vst [vmem:[#allocation15_spill] sm:$0xff] %v16714_v0  ;;  %v1530_v48 = vsel %vm1417_vm0, %v1527_v14, %v1529_v18  ;;  %v1531_v3 = vrot.slane %v16723_v24, 2  ;;  %v1533_v7 = vrot.slane %v16726_v25, 2  ;;  %v1538_v9 = vrot.slane %v16739_v45, 2 }
  0x38   : > { %21593 = vst [vmem:[#allocation16_spill] sm:$0xff] %v16744_v62  ;;  %v21283_v38 = vrot.slane %v16448_v16, 1 }
  0x39   : > { %v1532_v29 = vsel %vm1417_vm0, %v1529_v18, %v1531_v3  ;;  %v1534_v14 = vsel %vm1417_vm0, %v1531_v3, %v1533_v7 }
  0x3a   : > { %v16773_v18 = vpack.c.bf16 %v1534_v14, %v1532_v29  ;;  %v16296_v29 = vld [vmem:[%s16434_s14 + $0x38] sm:$0xff]  ;;  %v16297_v14 = vld [vmem:[%s16434_s14 + $0x40] sm:$0xff] }
  0x3c   : > { %21595 = vst [vmem:[#allocation18_spill] sm:$0xff] %v16773_v18 }
  0x3e   : > { %13968 = vmatmul.mubr.msk.bf16.gmra.mrb[16].mxu0 %vm710_vm1, %v16558_v57  ;;  %v16960_v57 = vpack.c.bf16 %v16589_v11, %v16586_v10  ;;  %v16980_v10 = vpack.c.bf16 %v16636_v47, %v16621_v36  ;;  %v16984_v11 = vpack.c.bf16 %v16647_v54, %v16644_v53  ;;  %v17009_v36 = vld [vmem:[%s16434_s14 + $0x240] sm:$0xff]  ;;  %v17013_v47 = vpack.c.bf16 %v16694_v44, %v16679_v23 }
  0x3f   : > { %13971 = vmatprep.mubr.msk.bf16.mxu0 %vm710_vm1, %v16560_v59 }
  0x40   : > { %21610 = vst [vmem:[#allocation33_spill] sm:$0xff] %v16960_v57  ;;  %21613 = vst [vmem:[#allocation36_spill] sm:$0xff] %v16980_v10 }
  0x41   : > { %21614 = vst [vmem:[#allocation37_spill] sm:$0xff] %v16984_v11  ;;  %21617 = vst [vmem:[#allocation40_spill] sm:$0xff] %v17013_v47 }
  0x46   : > { %13972 = vmatmul.mubr.msk.bf16.gmra.mrb[20].mxu0 %vm710_vm1, %v16571_v1  ;;  %v16941_v1 = vld [vmem:[%s16434_s14 + $0x120] sm:$0xff] }
  0x47   : > { %13975 = vmatprep.mubr.msk.bf16.mxu0 %vm710_vm1, %v16573_v2  ;;  %v16938_v2 = vld [vmem:[%s16434_s14 + $0x118] sm:$0xff] }
  0x48   : > { %v16945_v59 = vpack.c.bf16 %v16941_v1, %v16938_v2 }
  0x4a   : > { %21609 = vst [vmem:[#allocation32_spill] sm:$0xff] %v16945_v59 }
  0x4e   : > { %13976 = vmatmul.mubr.msk.bf16.gmra.mrb[24].mxu0 %vm710_vm1, %v16596_v19 }
  0x4f   : > { %13979 = vmatprep.mubr.msk.bf16.mxu0 %vm710_vm1, %v16598_v20 }
  0x56   : > { %13980 = vmatmul.mubr.msk.bf16.gmra.mrb[28].mxu0 %vm710_vm1, %v16625_v40  ;;  %v16917_v40 = vld [vmem:[%s16434_s14 + $0xf8] sm:$0xff] }
  0x57   : > { %13983 = vmatprep.mubr.msk.bf16.mxu0 %vm710_vm1, %v16627_v41  ;;  %v16914_v41 = vld [vmem:[%s16434_s14 + $0xf0] sm:$0xff] }
  0x58   : > { %v16921_v20 = vpack.c.bf16 %v16917_v40, %v16914_v41 }
  0x5a   : > { %21608 = vst [vmem:[#allocation31_spill] sm:$0xff] %v16921_v20 }
  0x5e   : > { %13984 = vmatmul.mubr.msk.bf16.gmra.mrb[32].mxu0 %vm710_vm1, %v16654_v60 }
  0x5f   : > { %13987 = vmatprep.mubr.msk.bf16.mxu0 %vm710_vm1, %v16656_v61  ;;  %v16907_v61 = vld [vmem:[%s16434_s14 + $0xe0] sm:$0xff] }
  0x66   : > { %13988 = vmatmul.mubr.msk.bf16.gmra.mrb[36].mxu0 %vm710_vm1, %v16683_v27  ;;  %v16893_v27 = vld [vmem:[%s16434_s14 + $0xd0] sm:$0xff] }
  0x67   : > { %13991 = vmatprep.mubr.msk.bf16.mxu0 %vm710_vm1, %v16685_v30  ;;  %v1536_v30 = vrot.slane %v16736_v42, 2 }
  0x6e   : > { %13992 = vmatmul.mubr.msk.bf16.gmra.mrb[40].mxu0 %vm710_vm1, %v16712_v63  ;;  %v1535_v63 = vrot.slane %v16733_v39, 2 }
  0x6f   : > { %13995 = vmatprep.mubr.msk.bf16.mxu0 %vm710_vm1, %v16714_v0  ;;  %v16747_v0 = vpack.c.bf16 %v1530_v48, %v1528_v46  ;;  %v1539_v48 = vsel %vm1417_vm0, %v1536_v30, %v1538_v9 }
  0x70   : > { %v1537_v46 = vsel %vm1417_vm0, %v1535_v63, %v1536_v30  ;;  %v1540_v63 = vrot.slane %v16757_v28, 2  ;;  %v1542_v30 = vrot.slane %v16764_v32, 2 }
  0x71   : > { %21594 = vst [vmem:[#allocation17_spill] sm:$0xff] %v16747_v0  ;;  %v16777_v7 = vpack.c.bf16 %v1539_v48, %v1537_v46  ;;  %v15756_v46 = vld [vmem:[%s21266_s1 + $0x88] sm:$0xff]   ;;  %v16805_v48 = vld [vmem:[%s16434_s14 + $0x50] sm:$0xff] }
  0x73   : > { %21596 = vst [vmem:[#allocation19_spill] sm:$0xff] %v16777_v7 }
  0x76   : > { %13996 = vmatmul.mubr.msk.bf16.gmra.mrb[44].mxu0 %vm710_vm1, %v16744_v62  ;;  %v484_v62 = vsel %vm466_vm2, %v481_v58, %v483_v43  ;;  %v1543_v43 = vsel %vm1417_vm0, %v1540_v63, %v1542_v30  ;;  %v16823_v30 = vld [vmem:[%s16434_s14 + $0x60] sm:$0xff] }
  0x77   : > { %13999 = vmatprep.mubr.msk.bf16.mxu0 %vm710_vm1, %v16747_v0  ;;  %v482_v0 = vsel %vm466_vm2, %v21283_v38, %v481_v58  ;;  %v1541_v58 = vsel %vm1417_vm0, %v1538_v9, %v1540_v63  ;;  %v16799_v9 = vpack.c.bf16 %v16297_v14, %v16296_v29  ;;  %v15757_v63 = vld [vmem:[%s21266_s1 + $0x90] sm:$0xff]   ;;  %v16836_v29 = vld [vmem:[%s16434_s14 + $0x78] sm:$0xff]  ;;  %v16839_v14 = vld [vmem:[%s16434_s14 + $0x80] sm:$0xff] }
  0x78   : > { %v16775_v3 = vpack.c.bf16 %v484_v62, %v482_v0  ;;  %v16787_v0 = vpack.c.bf16 %v1543_v43, %v1541_v58  ;;  %v16791_v62 = vpack.c.bf16 %v16445_v15, %v16442_v12  ;;  %v16808_v12 = vld [vmem:[%s16434_s14 + $0x58] sm:$0xff]  ;;  %v16826_v58 = vld [vmem:[%s16434_s14 + $0x68] sm:$0xff]  ;;  %v16843_v38 = vpack.c.bf16 %v16839_v14, %v16836_v29 }
  0x79   : > { %21599 = vst [vmem:[#allocation22_spill] sm:$0xff] %v16799_v9  ;;  %v16812_v15 = vpack.c.bf16 %v16808_v12, %v16805_v48  ;;  %v16830_v43 = vpack.c.bf16 %v16826_v58, %v16823_v30 }
  0x7a   : > { %21597 = vst [vmem:[#allocation20_spill] sm:$0xff] %v16787_v0  ;;  %21598 = vst [vmem:[#allocation21_spill] sm:$0xff] %v16791_v62 }
  0x7b   : > { %21600 = vst [vmem:[#allocation23_spill] sm:$0xff] %v16812_v15  ;;  %21601 = vst [vmem:[#allocation24_spill] sm:$0xff] %v16830_v43 }
  0x7c   : > { %21602 = vst [vmem:[#allocation25_spill] sm:$0xff] %v16843_v38 }
  0x7e   : > { %14000 = vmatmul.mubr.msk.bf16.gmra.mrb[48].mxu0 %vm710_vm1, %v16773_v18 }
  0x7f   : > { %14003 = vmatprep.mubr.msk.bf16.mxu0 %vm710_vm1, %v16777_v7  ;;  %v16883_v7 = vld [vmem:[%s16434_s14 + $0xb8] sm:$0xff] }
  0x86   : > { %14004 = vmatmul.mubr.msk.bf16.gmra.mrb[52].mxu0 %vm710_vm1, %v16787_v0  ;;  %v16865_v0 = vld [vmem:[%s16434_s14 + $0xa0] sm:$0xff] }
  0x87   : > { %14015 = vmatprep.mubr.msk.bf16.mxu0 %vm710_vm1, %v16791_v62  ;;  %v16868_v62 = vld [vmem:[%s16434_s14 + $0xa8] sm:$0xff] }
  0x8e   : > { %14016 = vmatmul.mubr.msk.bf16.vlgmr.msra.gmra.mrb[0].mxu0 %vm710_vm1, %v16799_v9  ;;  %v16855_v9 = vld [vmem:[%s16434_s14 + $0x88] sm:$0xff] }
  0x8f   : > { %14072 = vmatpush3.bf16.msra.mxu0 %v16524_v17  ;;  %14019 = vmatprep.mubr.msk.bf16.mxu0 %vm710_vm1, %v16812_v15  ;;  %v15758_v17 = vld [vmem:[%s21266_s1 + $0x98] sm:$0xff]   ;;  %v16850_v15 = vld [vmem:[%s21266_s1 + $0xa0] sm:$0xff]  }
  0x90   : > { %14073 = vmatprep.subr.bf16.mxu0 %v15756_v46 }
  0x93   : > { %14074 = vmatpush3.bf16.msra.mxu0 %v15756_v46  ;;  %v16858_v46 = vld [vmem:[%s16434_s14 + $0x90] sm:$0xff] }
  0x94   : > { %14075 = vmatprep.subr.bf16.mxu0 %v15757_v63 }
  0x96   : > { %14020 = vmatmul.mubr.msk.bf16.gmra.mrb[4].mxu0 %vm710_vm1, %v16830_v43  ;;  %v16862_v43 = vpack.c.bf16 %v16858_v46, %v16855_v9 }
  0x97   : > { %14023 = vmatprep.mubr.msk.bf16.mxu0 %vm710_vm1, %v16843_v38  ;;  %14076 = vmatpush3.bf16.msra.mxu0 %v15757_v63  ;;  %v16872_v38 = vpack.c.bf16 %v16868_v62, %v16865_v0  ;;  %v16880_v63 = vld [vmem:[%s16434_s14 + $0xb0] sm:$0xff] }
  0x98   : > { %14077 = vmatprep.subr.bf16.mxu0 %v15758_v17  ;;  %21603 = vst [vmem:[#allocation26_spill] sm:$0xff] %v16862_v43  ;;  %v16887_v18 = vpack.c.bf16 %v16883_v7, %v16880_v63 }
  0x99   : > { %21604 = vst [vmem:[#allocation27_spill] sm:$0xff] %v16872_v38 }
  0x9a   : > { %21605 = vst [vmem:[#allocation28_spill] sm:$0xff] %v16887_v18 }
  0x9b   : > { %14078 = vmatpush3.bf16.msra.mxu0 %v15758_v17  ;;  %v16890_v17 = vld [vmem:[%s16434_s14 + $0xc8] sm:$0xff] }
  0x9c   : > { %14135 = vmatprep.subr.bf16.mxu0 %v16850_v15 }
  0x9e   : > { %14024 = vmatmul.mubr.msk.bf16.gmra.mrb[8].mxu0 %vm710_vm1, %v16862_v43  ;;  %v16897_v43 = vpack.c.bf16 %v16893_v27, %v16890_v17 }
  0x9f   : > { %14027 = vmatprep.mubr.msk.bf16.mxu0 %vm710_vm1, %v16872_v38  ;;  %v16904_v38 = vld [vmem:[%s16434_s14 + $0xd8] sm:$0xff] }
  0xa0   : > { %21606 = vst [vmem:[#allocation29_spill] sm:$0xff] %v16897_v43  ;;  %v16911_v60 = vpack.c.bf16 %v16907_v61, %v16904_v38 }
  0xa2   : > { %21607 = vst [vmem:[#allocation30_spill] sm:$0xff] %v16911_v60 }
  0xa6   : > { %14028 = vmatmul.mubr.msk.bf16.gmra.mrb[12].mxu0 %vm710_vm1, %v16887_v18  ;;  %v16931_v18 = vld [vmem:[%s16434_s14 + $0x108] sm:$0xff] }
  0xa7   : > { %14031 = vmatprep.mubr.msk.bf16.mxu0 %vm710_vm1, %v16897_v43  ;;  %v16928_v43 = vld [vmem:[%s16434_s14 + $0x100] sm:$0xff] }
  0xa8   : > { %v16935_v19 = vpack.c.bf16 %v16931_v18, %v16928_v43 }
  0xae   : > { %14032 = vmatmul.mubr.msk.bf16.gmra.mrb[16].mxu0 %vm710_vm1, %v16911_v60 }
  0xaf   : > { %14035 = vmatprep.mubr.msk.bf16.mxu0 %vm710_vm1, %v16921_v20  ;;  %v16952_v20 = vld [vmem:[%s16434_s14 + $0x128] sm:$0xff] }
  0xb0   : > { %v16956_v60 = vpack.c.bf16 %v16578_v6, %v16952_v20  ;;  %v16972_v6 = vpack.c.bf16 %v16618_v35, %v16615_v33  ;;  %v17003_v33 = vld [vmem:[%s16434_s14 + $0x230] sm:$0xff]  ;;  %v17006_v35 = vld [vmem:[%s16434_s14 + $0x238] sm:$0xff] }
  0xb1   : > { %v2417_v53 = vrot.slane %v17003_v33, 1  ;;  %v2418_v54 = vrot.slane %v17006_v35, 1 }
  0xb2   : > { %21612 = vst [vmem:[#allocation35_spill] sm:$0xff] %v16972_v6 }
  0xb3   : > { %v2419_v23 = vsel %vm466_vm2, %v2417_v53, %v2418_v54 }
  0xb6   : > { %14036 = vmatmul.mubr.msk.bf16.gmra.mrb[20].mxu0 %vm710_vm1, %v16935_v19 }
  0xb7   : > { %14039 = vmatprep.mubr.msk.bf16.mxu0 %vm710_vm1, %v16945_v59  ;;  %v16968_v59 = vpack.c.bf16 %v16607_v26, %v16592_v13  ;;  %v16992_v13 = vpack.c.bf16 %v16665_v8, %v16650_v55  ;;  %v16996_v26 = vpack.c.bf16 %v16676_v22, %v16673_v21  ;;  %v17018_v55 = vld [vmem:[%s16434_s14 + $0x248] sm:$0xff]  ;;  %v2420_v8 = vrot.slane %v17009_v36, 1 }
  0xb8   : > { %v17023_v21 = vpack.c.bf16 %v16705_v50, %v16702_v49  ;;  %v2422_v22 = vrot.slane %v17018_v55, 1 }
  0xb9   : > { %21611 = vst [vmem:[#allocation34_spill] sm:$0xff] %v16968_v59  ;;  %21615 = vst [vmem:[#allocation38_spill] sm:$0xff] %v16992_v13  ;;  %v2421_v44 = vsel %vm466_vm2, %v2418_v54, %v2420_v8  ;;  %v17046_v54 = vpack.c.bf16 %v16736_v42, %v16733_v39 }
  0xba   : > { %21616 = vst [vmem:[#allocation39_spill] sm:$0xff] %v16996_v26  ;;  %21618 = vst [vmem:[#allocation41_spill] sm:$0xff] %v17023_v21  ;;  %v2423_v49 = vsel %vm466_vm2, %v2420_v8, %v2422_v22  ;;  %v17056_v8 = vpack.c.bf16 %v16757_v28, %v16739_v45 }
  0xbb   : > { %21620 = vst [vmem:[#allocation43_spill] sm:$0xff] %v17046_v54 }
  0xbc   : > { %21621 = vst [vmem:[#allocation44_spill] sm:$0xff] %v17056_v8 }
  0xbe   : > { %14040 = vmatmul.mubr.msk.bf16.gmra.mrb[24].mxu0 %vm710_vm1, %v16956_v60 }
  0xbf   : > { %14043 = vmatprep.mubr.msk.bf16.mxu0 %vm710_vm1, %v16960_v57  ;;  %v16352_v57 = vld [vmem:[%s16434_s14 + $0x1f0] sm:$0xff] }
  0xc6   : > { %14044 = vmatmul.mubr.msk.bf16.gmra.mrb[28].mxu0 %vm710_vm1, %v16968_v59 }
  0xc7   : > { %14047 = vmatprep.mubr.msk.bf16.mxu0 %vm710_vm1, %v16972_v6  ;;  %v16351_v6 = vld [vmem:[%s16434_s14 + $0x1e8] sm:$0xff] }
  0xc8   : > { %v576_v59 = vrot.slane %v16351_v6, 1 }
  0xce   : > { %14048 = vmatmul.mubr.msk.bf16.gmra.mrb[32].mxu0 %vm710_vm1, %v16980_v10 }
  0xcf   : > { %14051 = vmatprep.mubr.msk.bf16.mxu0 %vm710_vm1, %v16984_v11 }
  0xd6   : > { %14052 = vmatmul.mubr.msk.bf16.gmra.mrb[36].mxu0 %vm710_vm1, %v16992_v13  ;;  %v17035_v13 = vld [vmem:[%s16434_s14 + $0x250] sm:$0xff] }
  0xd7   : > { %14055 = vmatprep.mubr.msk.bf16.mxu0 %vm710_vm1, %v16996_v26  ;;  %v17032_v26 = vpack.c.bf16 %v2421_v44, %v2419_v23  ;;  %v2424_v50 = vrot.slane %v17035_v13, 1  ;;  %v16322_v44 = vld [vmem:[%s16434_s14 + $0x30] sm:$0xff] }
  0xd9   : > { %v2425_v53 = vsel %vm466_vm2, %v2422_v22, %v2424_v50  ;;  %v16321_v22 = vld [vmem:[%s16434_s14 + $0x28] sm:$0xff]  ;;  %v477_v50 = vrot.slane %v16322_v44, 1  ;;  %v485_v44 = vrot.slane %v16805_v48, 1 }
  0xda   : > { %v17048_v11 = vpack.c.bf16 %v2425_v53, %v2423_v49  ;;  %v476_v23 = vrot.slane %v16321_v22, 1  ;;  %v21623_v53 = vrot.slane %v16448_v16, 1 }
  0xdc   : > { %v478_v49 = vsel %vm466_vm2, %v476_v23, %v477_v50 }
  0xde   : > { %14056 = vmatmul.mubr.msk.bf16.gmra.mrb[40].mxu0 %vm710_vm1, %v17013_v47  ;;  %v17041_v47 = vpack.c.bf16 %v16723_v24, %v16708_v56  ;;  %v17060_v56 = vpack.c.bf16 %v17006_v35, %v17003_v33 }
  0xdf   : > { %14059 = vmatprep.mubr.msk.bf16.mxu0 %vm710_vm1, %v17023_v21  ;;  %v486_v21 = vrot.slane %v16808_v12, 1  ;;  %v494_v12 = vrot.slane %v16836_v29, 1 }
  0xe0   : > { %21619 = vst [vmem:[#allocation42_spill] sm:$0xff] %v17041_v47  ;;  %21622 = vst [vmem:[#allocation45_spill] sm:$0xff] %v17060_v56 }
  0xe1   : > { %v487_v16 = vsel %vm466_vm2, %v485_v44, %v486_v21 }
  0xe6   : > { %14060 = vmatmul.mubr.msk.bf16.gmra.mrb[44].mxu0 %vm710_vm1, %v17041_v47  ;;  %v17074_v47 = vpack.c.bf16 %v17018_v55, %v17009_v36 }
  0xe7   : > { %14063 = vmatprep.mubr.msk.bf16.mxu0 %vm710_vm1, %v17046_v54  ;;  %v480_v54 = vsel %vm466_vm2, %v477_v50, %v21623_v53  ;;  %v497_v53 = vrot.slane %v16855_v9, 1 }
  0xe8   : > { %21624 = vst [vmem:[#allocation46_spill] sm:$0xff] %v17074_v47  ;;  %v17076_v22 = vpack.c.bf16 %v480_v54, %v478_v49  ;;  %v490_v54 = vrot.slane %v16826_v58, 1  ;;  %v16323_v49 = vld [vmem:[%s16434_s14 + $0x70] sm:$0xff] }
  0xe9   : > { %v492_v48 = vrot.slane %v16323_v49, 1 }
  0xeb   : > { %v493_v29 = vsel %vm466_vm2, %v490_v54, %v492_v48  ;;  %v506_v48 = vrot.slane %v16880_v63, 1 }
  0xee   : > { %14064 = vmatmul.mubr.msk.bf16.gmra.mrb[48].mxu0 %vm710_vm1, %v17056_v8  ;;  %v488_v8 = vrot.slane %v16823_v30, 1  ;;  %v495_v30 = vrot.slane %v16839_v14, 1 }
  0xef   : > { %14067 = vmatprep.mubr.msk.bf16.mxu0 %vm710_vm1, %v17060_v56  ;;  %v16346_v56 = vld [vmem:[%s16434_s14 + $0x1c0] sm:$0xff] }
  0xf0   : > { %v489_v23 = vsel %vm466_vm2, %v486_v21, %v488_v8  ;;  %v491_v58 = vsel %vm466_vm2, %v488_v8, %v490_v54  ;;  %v496_v14 = vsel %vm466_vm2, %v494_v12, %v495_v30  ;;  %v498_v9 = vsel %vm466_vm2, %v495_v30, %v497_v53  ;;  %v15761_v21 = vld [vmem:[%s21266_s1 + $0xb0] sm:$0xff]   ;;  %v15762_v12 = vld [vmem:[%s21266_s1 + $0xb8] sm:$0xff]  }
  0xf1   : > { %v17087_v50 = vpack.c.bf16 %v489_v23, %v487_v16  ;;  %v17109_v44 = vpack.c.bf16 %v493_v29, %v491_v58  ;;  %v17111_v16 = vpack.c.bf16 %v498_v9, %v496_v14  ;;  %v16324_v23 = vld [vmem:[%s16434_s14 + $0x98] sm:$0xff]  ;;  %v503_v8 = vrot.slane %v16865_v0, 1 }
  0xf2   : > { %v501_v49 = vrot.slane %v16324_v23, 1  ;;  %v504_v54 = vrot.slane %v16868_v62, 1  ;;  %v508_v29 = vrot.slane %v16883_v7, 1  ;;  %v512_v9 = vrot.slane %v16890_v17, 1 }
  0xf4   : > { %v505_v62 = vsel %vm466_vm2, %v503_v8, %v504_v54  ;;  %v507_v63 = vsel %vm466_vm2, %v504_v54, %v506_v48  ;;  %v509_v7 = vsel %vm466_vm2, %v506_v48, %v508_v29  ;;  %v16326_v54 = vld [vmem:[%s16434_s14 + $0xe8] sm:$0xff]  ;;  %v524_v48 = vrot.slane %v16928_v43, 1  ;;  %v16327_v43 = vld [vmem:[%s16434_s14 + $0x110] sm:$0xff] }
  0xf5   : > { %v17136_v58 = vpack.c.bf16 %v507_v63, %v505_v62 }
  0xf6   : > { %14068 = vmatmul.mubr.msk.bf16.gmra.mrb[52].mxu0 %vm710_vm1, %v17074_v47  ;;  %v15760_v47 = vld [vmem:[%s21266_s1 + $0xa8] sm:$0xff]  }
  0xf7   : > { %14079 = vmatprep.mubr.msk.bf16.mxu0 %vm710_vm1, %v17076_v22 }
  0xfe   : > { %14080 = vmatmul.mubr.msk.bf16.vlgmr.msra.gmra.mrb[0].mxu0 %vm710_vm1, %v16775_v3 }
  0xff   : > { %14136 = vmatpush3.bf16.msra.mxu0 %v16850_v15  ;;  %14083 = vmatprep.mubr.msk.bf16.mxu0 %vm710_vm1, %v17087_v50  ;;  %v499_v15 = vrot.slane %v16858_v46, 1 }
 0x100   : > { %14137 = vmatprep.subr.bf16.mxu0 %v15760_v47 }
 0x101   : > { %v500_v46 = vsel %vm466_vm2, %v497_v53, %v499_v15  ;;  %v502_v0 = vsel %vm466_vm2, %v499_v15, %v501_v49  ;;  %v16325_v53 = vld [vmem:[%s16434_s14 + $0xc0] sm:$0xff]  ;;  %v515_v15 = vrot.slane %v16904_v38, 1  ;;  %v517_v38 = vrot.slane %v16907_v61, 1 }
 0x102   : > { %v17134_v30 = vpack.c.bf16 %v502_v0, %v500_v46  ;;  %v510_v14 = vrot.slane %v16325_v53, 1  ;;  %v521_v46 = vrot.slane %v16914_v41, 1  ;;  %v522_v0 = vrot.slane %v16917_v40, 1 }
 0x103   : > { %14138 = vmatpush3.bf16.msra.mxu0 %v15760_v47  ;;  %v17132_v47 = vld [vmem:[%s21266_s1 + $0xc0] sm:$0xff]   ;;  %v518_v62 = vsel %vm466_vm2, %v515_v15, %v517_v38  ;;  %v526_v41 = vrot.slane %v16931_v18, 1 }
 0x104   : > { %14139 = vmatprep.subr.bf16.mxu0 %v15761_v21  ;;  %v511_v23 = vsel %vm466_vm2, %v508_v29, %v510_v14  ;;  %v523_v61 = vsel %vm466_vm2, %v521_v46, %v522_v0  ;;  %v525_v29 = vsel %vm466_vm2, %v522_v0, %v524_v48  ;;  %v528_v14 = vrot.slane %v16327_v43, 1  ;;  %v16331_v0 = vld [vmem:[%s16434_s14 + $0x148] sm:$0xff] }
 0x105   : > { %v17152_v8 = vpack.c.bf16 %v511_v23, %v509_v7  ;;  %v17171_v40 = vpack.c.bf16 %v525_v29, %v523_v61  ;;  %v527_v18 = vsel %vm466_vm2, %v524_v48, %v526_v41  ;;  %v540_v48 = vrot.slane %v16331_v0, 1 }
 0x106   : > { %14084 = vmatmul.mubr.msk.bf16.gmra.mrb[4].mxu0 %vm710_vm1, %v17109_v44  ;;  %v529_v7 = vsel %vm466_vm2, %v526_v41, %v528_v14 }
 0x107   : > { %14087 = vmatprep.mubr.msk.bf16.mxu0 %vm710_vm1, %v17111_v16  ;;  %14140 = vmatpush3.bf16.msra.mxu0 %v15761_v21  ;;  %v513_v21 = vrot.slane %v16893_v27, 1 }
 0x108   : > { %14141 = vmatprep.subr.bf16.mxu0 %v15762_v12 }
 0x109   : > { %v514_v49 = vsel %vm466_vm2, %v512_v9, %v513_v21  ;;  %v516_v17 = vsel %vm466_vm2, %v513_v21, %v515_v15  ;;  %v530_v9 = vrot.slane %v16938_v2, 1  ;;  %v531_v21 = vrot.slane %v16941_v1, 1 }
 0x10a   : > { %v17154_v27 = vpack.c.bf16 %v516_v17, %v514_v49  ;;  %v533_v15 = vrot.slane %v16952_v20, 1  ;;  %v17186_v49 = vpack.c.bf16 %v529_v7, %v527_v18  ;;  %v16328_v20 = vld [vmem:[%s16434_s14 + $0x130] sm:$0xff]  ;;  %v16334_v7 = vld [vmem:[%s16434_s14 + $0x160] sm:$0xff] }
 0x10b   : > { %14142 = vmatpush3.bf16.msra.mxu0 %v15762_v12  ;;  %v519_v12 = vrot.slane %v16326_v54, 1  ;;  %v532_v23 = vsel %vm466_vm2, %v530_v9, %v531_v21  ;;  %v535_v17 = vrot.slane %v16328_v20, 1 }
 0x10c   : > { %14199 = vmatprep.subr.bf16.mxu0 %v17132_v47  ;;  %v534_v2 = vsel %vm466_vm2, %v531_v21, %v533_v15  ;;  %v16333_v21 = vld [vmem:[%s16434_s14 + $0x158] sm:$0xff] }
 0x10d   : > { %v520_v63 = vsel %vm466_vm2, %v517_v38, %v519_v12  ;;  %v17188_v1 = vpack.c.bf16 %v534_v2, %v532_v23  ;;  %v16329_v38 = vld [vmem:[%s16434_s14 + $0x138] sm:$0xff]  ;;  %v16330_v12 = vld [vmem:[%s16434_s14 + $0x140] sm:$0xff]  ;;  %v536_v61 = vsel %vm466_vm2, %v533_v15, %v535_v17  ;;  %v544_v18 = vrot.slane %v16333_v21, 1  ;;  %v16335_v2 = vld [vmem:[%s16434_s14 + $0x168] sm:$0xff] }
 0x10e   : > { %14088 = vmatmul.mubr.msk.bf16.gmra.mrb[8].mxu0 %vm710_vm1, %v17134_v30  ;;  %v17169_v53 = vpack.c.bf16 %v520_v63, %v518_v62  ;;  %v537_v54 = vrot.slane %v16329_v38, 1  ;;  %v539_v46 = vrot.slane %v16330_v12, 1  ;;  %v16332_v62 = vld [vmem:[%s16434_s14 + $0x150] sm:$0xff]  ;;  %v546_v23 = vrot.slane %v16334_v7, 1 }
 0x10f   : > { %14091 = vmatprep.mubr.msk.bf16.mxu0 %vm710_vm1, %v17136_v58  ;;  %v542_v63 = vrot.slane %v16332_v62, 1  ;;  %v548_v20 = vrot.slane %v16335_v2, 1  ;;  %v16336_v38 = vld [vmem:[%s16434_s14 + $0x170] sm:$0xff] }
 0x110   : > { %v538_v29 = vsel %vm466_vm2, %v535_v17, %v537_v54  ;;  %v541_v41 = vsel %vm466_vm2, %v539_v46, %v540_v48  ;;  %v549_v15 = vrot.slane %v16336_v38, 1  ;;  %v16337_v17 = vld [vmem:[%s16434_s14 + $0x178] sm:$0xff]  ;;  %v547_v46 = vsel %vm466_vm2, %v544_v18, %v546_v23  ;;  %v16340_v7 = vld [vmem:[%s16434_s14 + $0x190] sm:$0xff] }
 0x111   : > { %v543_v43 = vsel %vm466_vm2, %v540_v48, %v542_v63  ;;  %v17203_v14 = vpack.c.bf16 %v538_v29, %v536_v61  ;;  %v551_v54 = vrot.slane %v16337_v17, 1  ;;  %v545_v12 = vsel %vm466_vm2, %v542_v63, %v544_v18  ;;  %v16338_v29 = vld [vmem:[%s16434_s14 + $0x180] sm:$0xff]  ;;  %v16341_v38 = vld [vmem:[%s16434_s14 + $0x198] sm:$0xff] }
 0x112   : > { %v17205_v9 = vpack.c.bf16 %v543_v43, %v541_v41  ;;  %v550_v0 = vsel %vm466_vm2, %v548_v20, %v549_v15  ;;  %v17220_v62 = vpack.c.bf16 %v547_v46, %v545_v12  ;;  %v553_v41 = vrot.slane %v16338_v29, 1  ;;  %v16339_v43 = vld [vmem:[%s16434_s14 + $0x188] sm:$0xff]  ;;  %v16342_v18 = vld [vmem:[%s16434_s14 + $0x1a0] sm:$0xff] }
 0x113   : > { %v552_v48 = vsel %vm466_vm2, %v549_v15, %v551_v54  ;;  %v555_v21 = vrot.slane %v16339_v43, 1  ;;  %v557_v2 = vrot.slane %v16340_v7, 1  ;;  %v558_v63 = vrot.slane %v16341_v38, 1  ;;  %v16344_v43 = vld [vmem:[%s16434_s14 + $0x1b0] sm:$0xff]  ;;  %v16345_v38 = vld [vmem:[%s16434_s14 + $0x1b8] sm:$0xff] }
 0x114   : > { %v17222_v61 = vpack.c.bf16 %v552_v48, %v550_v0  ;;  %v560_v23 = vrot.slane %v16342_v18, 1  ;;  %v554_v20 = vsel %vm466_vm2, %v551_v54, %v553_v41  ;;  %v16343_v48 = vld [vmem:[%s16434_s14 + $0x1a8] sm:$0xff]  ;;  %v564_v7 = vrot.slane %v16344_v43, 1  ;;  %v16349_v43 = vld [vmem:[%s16434_s14 + $0x1d8] sm:$0xff] }
 0x115   : > { %v556_v15 = vsel %vm466_vm2, %v553_v41, %v555_v21  ;;  %v559_v17 = vsel %vm466_vm2, %v557_v2, %v558_v63  ;;  %v562_v29 = vrot.slane %v16343_v48, 1  ;;  %v566_v18 = vrot.slane %v16345_v38, 1  ;;  %v16347_v41 = vld [vmem:[%s16434_s14 + $0x1c8] sm:$0xff] }
 0x116   : > { %14092 = vmatmul.mubr.msk.bf16.gmra.mrb[12].mxu0 %vm710_vm1, %v17152_v8  ;;  %v561_v12 = vsel %vm466_vm2, %v558_v63, %v560_v23  ;;  %v17237_v46 = vpack.c.bf16 %v556_v15, %v554_v20  ;;  %v567_v54 = vrot.slane %v16346_v56, 1  ;;  %v569_v21 = vrot.slane %v16347_v41, 1  ;;  %v16350_v41 = vld [vmem:[%s16434_s14 + $0x1e0] sm:$0xff] }
 0x117   : > { %14095 = vmatprep.mubr.msk.bf16.mxu0 %vm710_vm1, %v17154_v27  ;;  %v17239_v0 = vpack.c.bf16 %v561_v12, %v559_v17  ;;  %v563_v2 = vsel %vm466_vm2, %v560_v23, %v562_v29  ;;  %v565_v63 = vsel %vm466_vm2, %v562_v29, %v564_v7  ;;  %v16348_v12 = vld [vmem:[%s16434_s14 + $0x1d0] sm:$0xff]  ;;  %v573_v38 = vrot.slane %v16349_v43, 1  ;;  %v15767_v29 = vld [vmem:[%s21266_s1 + $0x20] sm:$0xff]  }
 0x118   : > { %v568_v20 = vsel %vm466_vm2, %v566_v18, %v567_v54  ;;  %v570_v15 = vsel %vm466_vm2, %v567_v54, %v569_v21  ;;  %v17254_v17 = vpack.c.bf16 %v565_v63, %v563_v2  ;;  %v571_v48 = vrot.slane %v16348_v12, 1  ;;  %13815 = vmatprep.subr.bf16.mxu1 %v15767_v29 }
 0x119   : > { %v17256_v56 = vpack.c.bf16 %v570_v15, %v568_v20  ;;  %v575_v10 = vrot.slane %v16350_v41, 1  ;;  %v578_v23 = vrot.slane %v16352_v57, 1  ;;  %v2784_v57 = vrot.slane %v17003_v33, 2  ;;  %13816 = vmatpush3.bf16.msra.mxu1 %v15767_v29 }
 0x11a   : > { %v572_v7 = vsel %vm466_vm2, %v569_v21, %v571_v48  ;;  %v574_v18 = vsel %vm466_vm2, %v571_v48, %v573_v38  ;;  %v2785_v2 = vrot.slane %v17006_v35, 2  ;;  %v2787_v63 = vrot.slane %v17009_v36, 2  ;;  %v15768_v35 = vld [vmem:[%s21266_s1 + $0x28] sm:$0xff]   ;;  %v15769_v36 = vld [vmem:[%s21266_s1 + $0x30] sm:$0xff]  }
 0x11b   : > { %v577_v54 = vsel %vm466_vm2, %v575_v10, %v576_v59  ;;  %v579_v6 = vsel %vm466_vm2, %v576_v59, %v578_v23  ;;  %v17277_v20 = vpack.c.bf16 %v574_v18, %v572_v7  ;;  %v580_v15 = vrot.slane %v16723_v24, 1  ;;  %13817 = vmatprep.subr.bf16.mxu1 %v15768_v35 }
 0x11c   : > { %v2789_v21 = vrot.slane %v17018_v55, 2  ;;  %v17281_v12 = vpack.c.bf16 %v579_v6, %v577_v54  ;;  %v582_v10 = vrot.slane %v16726_v25, 1  ;;  %v584_v59 = vrot.slane %v16733_v39, 1  ;;  %v15770_v6 = vld [vmem:[%s21266_s1 + $0x38] sm:$0xff]  }
 0x11d   : > { %v585_v48 = vrot.slane %v16736_v42, 1  ;;  %v587_v33 = vrot.slane %v16739_v45, 1  ;;  %v581_v24 = vsel %vm466_vm2, %v578_v23, %v580_v15  ;;  %v2786_v25 = vsel %vm1417_vm0, %v2784_v57, %v2785_v2  ;;  %13818 = vmatpush3.bf16.msra.mxu1 %v15768_v35  ;;  %v17320_v57 = vld [vmem:[%s16434_s14] sm:$0xff] }
 0x11e   : > { %14096 = vmatmul.mubr.msk.bf16.gmra.mrb[16].mxu0 %vm710_vm1, %v17169_v53  ;;  %v2788_v39 = vsel %vm1417_vm0, %v2785_v2, %v2787_v63  ;;  %v583_v42 = vsel %vm466_vm2, %v580_v15, %v582_v10  ;;  %v2790_v55 = vsel %vm1417_vm0, %v2787_v63, %v2789_v21  ;;  %v2791_v43 = vrot.slane %v17035_v13, 2  ;;  %13819 = vmatprep.subr.bf16.mxu1 %v15769_v36  ;;  %v17324_v63 = vld [vmem:[%s16434_s14 + $0x8] sm:$0xff]  ;;  %v17328_v15 = vld [vmem:[%s16434_s14 + $0x10] sm:$0xff]  ;;  %v17335_v10 = vld [vmem:[%s16434_s14 + $0x18] sm:$0xff] }
 0x11f   : > { %14099 = vmatprep.mubr.msk.bf16.mxu0 %vm710_vm1, %v17171_v40  ;;  %v17301_v45 = vpack.c.bf16 %v2788_v39, %v2786_v25  ;;  %v586_v38 = vsel %vm466_vm2, %v584_v59, %v585_v48  ;;  %v588_v41 = vsel %vm466_vm2, %v585_v48, %v587_v33  ;;  %v17308_v29 = vpack.c.bf16 %v583_v42, %v581_v24  ;;  %v16357_v48 = vld [vmem:[%s16434_s14 + $0x20] sm:$0xff] }
 0x120   : > { %v2792_v23 = vsel %vm1417_vm0, %v2789_v21, %v2791_v43  ;;  %v589_v7 = vrot.slane %v16757_v28, 1  ;;  %v17313_v54 = vpack.c.bf16 %v588_v41, %v586_v38  ;;  %v591_v13 = vrot.slane %v16764_v32, 1  ;;  %v21628_v38 = vld [vmem:[#allocation3_spill] sm:$0xff]  ;;  %v21629_v41 = vld [vmem:[#allocation4_spill] sm:$0xff] }
 0x121   : > { %21625 = vst [vmem:[#allocation47_spill] sm:$0xff] %v17301_v45  ;;  %v17311_v18 = vpack.c.bf16 %v2792_v23, %v2790_v55  ;;  %13820 = vmatpush3.bf16.msra.mxu1 %v15769_v36  ;;  %v467_v2 = vrot.slane %v17320_v57, 1  ;;  %v468_v28 = vrot.slane %v17324_v63, 1  ;;  %v470_v21 = vrot.slane %v17328_v15, 1  ;;  %v21630_v23 = vld [vmem:[#allocation5_spill] sm:$0xff] }
 0x122   : > { %v590_v32 = vsel %vm466_vm2, %v587_v33, %v589_v7  ;;  %v472_v59 = vrot.slane %v17335_v10, 1  ;;  %v474_v35 = vrot.slane %v16357_v48, 1  ;;  %v592_v24 = vsel %vm466_vm2, %v589_v7, %v591_v13  ;;  %13821 = vmatprep.subr.bf16.mxu1 %v15770_v6  ;;  %v21631_v7 = vld [vmem:[#allocation6_spill] sm:$0xff]  ;;  %v21632_v13 = vld [vmem:[#allocation7_spill] sm:$0xff] }
 0x123   : > { %21626 = vst [vmem:[#allocation48_spill] sm:$0xff] %v17311_v18  ;;  %v469_v36 = vsel %vm466_vm2, %v467_v2, %v468_v28  ;;  %v471_v25 = vsel %vm466_vm2, %v468_v28, %v470_v21  ;;  %v17346_v43 = vpack.c.bf16 %v592_v24, %v590_v32  ;;  %v21634_v2 = vld [vmem:[#allocation9_spill] sm:$0xff]  ;;  %v21635_v28 = vld [vmem:[#allocation10_spill] sm:$0xff]  ;;  %v21637_v32 = vld [vmem:[#allocation12_spill] sm:$0xff] }
 0x124   : > { %v649_v39 = vpack.c.bf16 %v471_v25, %v469_v36  ;;  %v473_v33 = vsel %vm466_vm2, %v470_v21, %v472_v59  ;;  %v475_v42 = vsel %vm466_vm2, %v472_v59, %v474_v35  ;;  %v21636_v21 = vld [vmem:[#allocation11_spill] sm:$0xff]  ;;  %v21638_v59 = vld [vmem:[#allocation13_spill] sm:$0xff]  ;;  %v21639_v48 = vld [vmem:[#allocation14_spill] sm:$0xff] }
 0x125   : > { %13822 = vmatpush3.bf16.msra.mxu1 %v15770_v6  ;;  %v650_v55 = vpack.c.bf16 %v475_v42, %v473_v33  ;;  %v21633_v6 = vld [vmem:[#allocation8_spill] sm:$0xff]  ;;  %v15775_v35 = vld [vmem:[%s21266_s1] sm:$0xff]   ;;  %v21640_v24 = vld [vmem:[#allocation15_spill] sm:$0xff] }
 0x126   : > { %14100 = vmatmul.mubr.msk.bf16.gmra.mrb[20].mxu0 %vm710_vm1, %v17186_v49  ;;  %13823 = vmatprep.mubr.msk.bf16.mxu1 %vm710_vm1, %v649_v39  ;;  %v15776_v36 = vld [vmem:[%s21266_s1 + $0x8] sm:$0xff]   ;;  %v21641_v25 = vld [vmem:[#allocation16_spill] sm:$0xff]  ;;  %v21642_v33 = vld [vmem:[#allocation17_spill] sm:$0xff] }
 0x127   : > { %14103 = vmatprep.mubr.msk.bf16.mxu0 %vm710_vm1, %v17188_v1  ;;  %13879 = vmatprep.subr.bf16.mxu1 %v15775_v35  ;;  %v15777_v39 = vld [vmem:[%s21266_s1 + $0x10] sm:$0xff]   ;;  %v15778_v42 = vld [vmem:[%s21266_s1 + $0x18] sm:$0xff]  }
 0x128   : > { %13824 = vmatmul.mubr.msk.bf16.vlgmr.msra.gmra.mrb[0].mxu1 %vm710_vm1, %v650_v55  ;;  %v21643_v55 = vld [vmem:[#allocation18_spill] sm:$0xff] }
 0x129   : > { %13827 = vmatprep.mubr.msk.bf16.mxu1 %vm710_vm1, %v17076_v22  ;;  %v15764_v22 = vld [vmem:[%s21266_s1 + $0xc8] sm:$0xff]   ;;  %13880 = vmatpush3.bf16.msra.mxu1 %v15775_v35  ;;  %v21645_v35 = vld [vmem:[#allocation21_spill] sm:$0xff] }
 0x12a   : > { %13881 = vmatprep.subr.bf16.mxu1 %v15776_v36 }
 0x12d   : > { %13882 = vmatpush3.bf16.msra.mxu1 %v15776_v36  ;;  %v21646_v36 = vld [vmem:[#allocation20_spill] sm:$0xff] }
 0x12e   : > { %14104 = vmatmul.mubr.msk.bf16.gmra.mrb[24].mxu0 %vm710_vm1, %v17203_v14  ;;  %13883 = vmatprep.subr.bf16.mxu1 %v15777_v39 }
 0x12f   : > { %14107 = vmatprep.mubr.msk.bf16.mxu0 %vm710_vm1, %v17205_v9 }
 0x130   : > { %13828 = vmatmul.mubr.msk.bf16.gmra.mrb[4].mxu1 %vm710_vm1, %v16775_v3  ;;  %v15766_v3 = vld [vmem:[%s21266_s1 + $0xd8] sm:$0xff]  }
 0x131   : > { %13831 = vmatprep.mubr.msk.bf16.mxu1 %vm710_vm1, %v17087_v50  ;;  %13884 = vmatpush3.bf16.msra.mxu1 %v15777_v39  ;;  %v21650_v39 = vld [vmem:[#allocation25_spill] sm:$0xff] }
 0x132   : > { %13885 = vmatprep.subr.bf16.mxu1 %v15778_v42 }
 0x135   : > { %13886 = vmatpush3.bf16.msra.mxu1 %v15778_v42  ;;  %v15773_v42 = vld [vmem:[%s21266_s1 + $0xf0] sm:$0xff]  }
 0x136   : > { %14108 = vmatmul.mubr.msk.bf16.gmra.mrb[28].mxu0 %vm710_vm1, %v17220_v62 }
 0x137   : > { %14111 = vmatprep.mubr.msk.bf16.mxu0 %vm710_vm1, %v17222_v61 }
 0x138   : > { %13832 = vmatmul.mubr.msk.bf16.gmra.mrb[8].mxu1 %vm710_vm1, %v17109_v44 }
 0x139   : > { %13835 = vmatprep.mubr.msk.bf16.mxu1 %vm710_vm1, %v17111_v16 }
 0x13e   : > { %14112 = vmatmul.mubr.msk.bf16.gmra.mrb[32].mxu0 %vm710_vm1, %v17237_v46 }
 0x13f   : > { %14115 = vmatprep.mubr.msk.bf16.mxu0 %vm710_vm1, %v17239_v0 }
 0x140   : > { %13836 = vmatmul.mubr.msk.bf16.gmra.mrb[12].mxu1 %vm710_vm1, %v17134_v30 }
 0x141   : > { %13839 = vmatprep.mubr.msk.bf16.mxu1 %vm710_vm1, %v17136_v58 }
 0x146   : > { %14116 = vmatmul.mubr.msk.bf16.gmra.mrb[36].mxu0 %vm710_vm1, %v17254_v17 }
 0x147   : > { %14119 = vmatprep.mubr.msk.bf16.mxu0 %vm710_vm1, %v17256_v56 }
 0x148   : > { %13840 = vmatmul.mubr.msk.bf16.gmra.mrb[16].mxu1 %vm710_vm1, %v17152_v8 }
 0x149   : > { %13843 = vmatprep.mubr.msk.bf16.mxu1 %vm710_vm1, %v17154_v27 }
 0x14e   : > { %14120 = vmatmul.mubr.msk.bf16.gmra.mrb[40].mxu0 %vm710_vm1, %v17277_v20 }
 0x14f   : > { %14123 = vmatprep.mubr.msk.bf16.mxu0 %vm710_vm1, %v17281_v12 }
 0x150   : > { %13844 = vmatmul.mubr.msk.bf16.gmra.mrb[20].mxu1 %vm710_vm1, %v17169_v53 }
 0x151   : > { %13847 = vmatprep.mubr.msk.bf16.mxu1 %vm710_vm1, %v17171_v40 }
 0x156   : > { %14124 = vmatmul.mubr.msk.bf16.gmra.mrb[44].mxu0 %vm710_vm1, %v17308_v29 }
 0x157   : > { %14127 = vmatprep.mubr.msk.bf16.mxu0 %vm710_vm1, %v17313_v54 }
 0x158   : > { %13848 = vmatmul.mubr.msk.bf16.gmra.mrb[24].mxu1 %vm710_vm1, %v17186_v49 }
 0x159   : > { %13851 = vmatprep.mubr.msk.bf16.mxu1 %vm710_vm1, %v17188_v1 }
 0x15e   : > { %14128 = vmatmul.mubr.msk.bf16.gmra.mrb[48].mxu0 %vm710_vm1, %v17346_v43 }
 0x15f   : > { %14131 = vmatprep.mubr.msk.bf16.mxu0 %vm710_vm1, %v17032_v26 }
 0x160   : > { %13852 = vmatmul.mubr.msk.bf16.gmra.mrb[28].mxu1 %vm710_vm1, %v17203_v14 }
 0x161   : > { %13855 = vmatprep.mubr.msk.bf16.mxu1 %vm710_vm1, %v17205_v9 }
 0x166   : > { %14132 = vmatmul.mubr.msk.bf16.gmra.mrb[52].mxu0 %vm710_vm1, %v17048_v11 }
 0x167   : > { %14143 = vmatprep.mubr.msk.bf16.mxu0 %vm710_vm1, %v16472_v34  ;;  %v15765_v34 = vld [vmem:[%s21266_s1 + $0xd0] sm:$0xff]  }
 0x168   : > { %13856 = vmatmul.mubr.msk.bf16.gmra.mrb[32].mxu1 %vm710_vm1, %v17220_v62 }
 0x169   : > { %13859 = vmatprep.mubr.msk.bf16.mxu1 %vm710_vm1, %v17222_v61 }
 0x16e   : > { %14144 = vmatmul.mubr.msk.bf16.vlgmr.msra.gmra.mrb[0].mxu0 %vm710_vm1, %v16494_v51  ;;  %v17393_v51 = vld [vmem:[%s21266_s1 + $0xe0] sm:$0xff]  }
 0x16f   : > { %14200 = vmatpush3.bf16.msra.mxu0 %v17132_v47  ;;  %14147 = vmatprep.mubr.msk.bf16.mxu0 %vm710_vm1, %v16496_v52  ;;  %v21627_v47 = vld [vmem:[#allocation2_spill] sm:$0xff] }
 0x170   : > { %14201 = vmatprep.subr.bf16.mxu0 %v15764_v22  ;;  %13860 = vmatmul.mubr.msk.bf16.gmra.mrb[36].mxu1 %vm710_vm1, %v17237_v46 }
 0x171   : > { %13863 = vmatprep.mubr.msk.bf16.mxu1 %vm710_vm1, %v17239_v0 }
 0x173   : > { %14202 = vmatpush3.bf16.msra.mxu0 %v15764_v22  ;;  %v361_v22 = vpack.c.bf16 %v17335_v10, %v17328_v15  ;;  %v21647_v15 = vld [vmem:[#allocation22_spill] sm:$0xff]  ;;  %v21648_v10 = vld [vmem:[#allocation23_spill] sm:$0xff] }
 0x174   : > { %14203 = vmatprep.subr.bf16.mxu0 %v15765_v34 }
 0x176   : > { %14148 = vmatmul.mubr.msk.bf16.gmra.mrb[4].mxu0 %vm710_vm1, %v16514_v4 }
 0x177   : > { %14151 = vmatprep.mubr.msk.bf16.mxu0 %vm710_vm1, %v16516_v5  ;;  %14204 = vmatpush3.bf16.msra.mxu0 %v15765_v34  ;;  %v21644_v34 = vld [vmem:[#allocation19_spill] sm:$0xff] }
 0x178   : > { %14205 = vmatprep.subr.bf16.mxu0 %v15766_v3  ;;  %13864 = vmatmul.mubr.msk.bf16.gmra.mrb[40].mxu1 %vm710_vm1, %v17254_v17 }
 0x179   : > { %13867 = vmatprep.mubr.msk.bf16.mxu1 %vm710_vm1, %v17256_v56 }
 0x17b   : > { %14206 = vmatpush3.bf16.msra.mxu0 %v15766_v3  ;;  %v360_v3 = vpack.c.bf16 %v17324_v63, %v17320_v57  ;;  %v21649_v57 = vld [vmem:[#allocation24_spill] sm:$0xff]  ;;  %v15772_v63 = vld [vmem:[%s21266_s1 + $0xe8] sm:$0xff]  }
 0x17c   : > { %14263 = vmatprep.subr.bf16.mxu0 %v17393_v51 }
 0x17e   : > { %14152 = vmatmul.mubr.msk.bf16.gmra.mrb[8].mxu0 %vm710_vm1, %v16541_v31 }
 0x17f   : > { %14155 = vmatprep.mubr.msk.bf16.mxu0 %vm710_vm1, %v16545_v37 }
 0x180   : > { %13868 = vmatmul.mubr.msk.bf16.gmra.mrb[44].mxu1 %vm710_vm1, %v17277_v20 }
 0x181   : > { %13871 = vmatprep.mubr.msk.bf16.mxu1 %vm710_vm1, %v17281_v12 }
 0x186   : > { %14156 = vmatmul.mubr.msk.bf16.gmra.mrb[12].mxu0 %vm710_vm1, %v21627_v47 }
 0x187   : > { %14159 = vmatprep.mubr.msk.bf16.mxu0 %vm710_vm1, %v21628_v38 }
 0x188   : > { %13872 = vmatmul.mubr.msk.bf16.gmra.mrb[48].mxu1 %vm710_vm1, %v17308_v29 }
 0x189   : > { %13875 = vmatprep.mubr.msk.bf16.mxu1 %vm710_vm1, %v17313_v54 }
 0x18e   : > { %14160 = vmatmul.mubr.msk.bf16.gmra.mrb[16].mxu0 %vm710_vm1, %v21629_v41 }
 0x18f   : > { %14163 = vmatprep.mubr.msk.bf16.mxu0 %vm710_vm1, %v21630_v23 }
 0x190   : > { %13876 = vmatmul.mubr.msk.bf16.gmra.mrb[52].mxu1 %vm710_vm1, %v17346_v43 }
 0x191   : > { %13887 = vmatprep.mubr.msk.bf16.mxu1 %vm710_vm1, %v360_v3  ;;  %v15774_v3 = vld [vmem:[%s21266_s1 + $0xf8] sm:$0xff]  }
 0x196   : > { %14164 = vmatmul.mubr.msk.bf16.gmra.mrb[20].mxu0 %vm710_vm1, %v21631_v7 }
 0x197   : > { %14167 = vmatprep.mubr.msk.bf16.mxu0 %vm710_vm1, %v21632_v13 }
 0x198   : > { %13888 = vmatmul.mubr.msk.bf16.vlgmr.msra.gmra.mrb[0].mxu1 %vm710_vm1, %v361_v22  ;;  %v21651_v22 = vld [vmem:[#allocation26_spill] sm:$0xff] }
 0x199   : > { %13891 = vmatprep.mubr.msk.bf16.mxu1 %vm710_vm1, %v21645_v35  ;;  %v21652_v35 = vld [vmem:[#allocation27_spill] sm:$0xff] }
 0x19e   : > { %14168 = vmatmul.mubr.msk.bf16.gmra.mrb[24].mxu0 %vm710_vm1, %v21633_v6 }
 0x19f   : > { %14171 = vmatprep.mubr.msk.bf16.mxu0 %vm710_vm1, %v21634_v2 }
 0x1a0   : > { %13892 = vmatmul.mubr.msk.bf16.gmra.mrb[4].mxu1 %vm710_vm1, %v21647_v15  ;;  %v21653_v15 = vld [vmem:[#allocation28_spill] sm:$0xff] }
 0x1a1   : > { %13895 = vmatprep.mubr.msk.bf16.mxu1 %vm710_vm1, %v21648_v10 }
 0x1a6   : > { %14172 = vmatmul.mubr.msk.bf16.gmra.mrb[28].mxu0 %vm710_vm1, %v21635_v28 }
 0x1a7   : > { %14175 = vmatprep.mubr.msk.bf16.mxu0 %vm710_vm1, %v21636_v21 }
 0x1a8   : > { %13896 = vmatmul.mubr.msk.bf16.gmra.mrb[8].mxu1 %vm710_vm1, %v21649_v57 }
 0x1a9   : > { %13899 = vmatprep.mubr.msk.bf16.mxu1 %vm710_vm1, %v21650_v39 }
 0x1ae   : > { %14176 = vmatmul.mubr.msk.bf16.gmra.mrb[32].mxu0 %vm710_vm1, %v21637_v32 }
 0x1af   : > { %14179 = vmatprep.mubr.msk.bf16.mxu0 %vm710_vm1, %v21638_v59 }
 0x1b0   : > { %13900 = vmatmul.mubr.msk.bf16.gmra.mrb[12].mxu1 %vm710_vm1, %v21651_v22 }
 0x1b1   : > { %13903 = vmatprep.mubr.msk.bf16.mxu1 %vm710_vm1, %v21652_v35 }
 0x1b6   : > { %14180 = vmatmul.mubr.msk.bf16.gmra.mrb[36].mxu0 %vm710_vm1, %v21639_v48 }
 0x1b7   : > { %14183 = vmatprep.mubr.msk.bf16.mxu0 %vm710_vm1, %v21640_v24 }
 0x1b8   : > { %13904 = vmatmul.mubr.msk.bf16.gmra.mrb[16].mxu1 %vm710_vm1, %v21653_v15 }
 0x1be   : > { %14184 = vmatmul.mubr.msk.bf16.gmra.mrb[40].mxu0 %vm710_vm1, %v21641_v25 }
 0x1bf   : > { %14187 = vmatprep.mubr.msk.bf16.mxu0 %vm710_vm1, %v21642_v33 }
 0x1c6   : > { %14188 = vmatmul.mubr.msk.bf16.gmra.mrb[44].mxu0 %vm710_vm1, %v21643_v55 }
 0x1c7   : > { %14191 = vmatprep.mubr.msk.bf16.mxu0 %vm710_vm1, %v21644_v34 }
 0x1ce   : > { %14192 = vmatmul.mubr.msk.bf16.gmra.mrb[48].mxu0 %vm710_vm1, %v21646_v36  ;;  %v359_v36 = vld [vmem:[%s16434_s14 + $0x278] sm:$0xff] }
 0x1cf   : > { %14195 = vmatprep.mubr.msk.bf16.mxu0 %vm710_vm1, %v17301_v45  ;;  %v3517_v55 = vrot.slane %v359_v36, 1 }
 0x1d6   : > { %14196 = vmatmul.mubr.msk.bf16.gmra.mrb[52].mxu0 %vm710_vm1, %v17311_v18 }
 0x1d7   : > { %14207 = vmatprep.mubr.msk.bf16.mxu0 %vm710_vm1, %v21648_v10  ;;  %v21654_v10 = vld [vmem:[#allocation29_spill] sm:$0xff] }
 0x1d8   : > { %13907 = vmatprep.mubr.msk.bf16.mxu1 %vm710_vm1, %v21654_v10 }
 0x1de   : > { %14208 = vmatmul.mubr.msk.bf16.vlgmr.msra.gmra.mrb[0].mxu0 %vm710_vm1, %v21649_v57  ;;  %v21655_v57 = vld [vmem:[#allocation30_spill] sm:$0xff] }
 0x1df   : > { %14264 = vmatpush3.bf16.msra.mxu0 %v17393_v51  ;;  %14211 = vmatprep.mubr.msk.bf16.mxu0 %vm710_vm1, %v21650_v39  ;;  %v17535_v51 = vld [vmem:[%s21266_s1 + $0x100] sm:$0xff]   ;;  %v21657_v39 = vld [vmem:[#allocation32_spill] sm:$0xff] }
 0x1e0   : > { %14265 = vmatprep.subr.bf16.mxu0 %v15772_v63  ;;  %13908 = vmatmul.mubr.msk.bf16.gmra.mrb[20].mxu1 %vm710_vm1, %v21655_v57 }
 0x1e3   : > { %14266 = vmatpush3.bf16.msra.mxu0 %v15772_v63  ;;  %v21656_v63 = vld [vmem:[#allocation31_spill] sm:$0xff] }
 0x1e4   : > { %14267 = vmatprep.subr.bf16.mxu0 %v15773_v42  ;;  %13911 = vmatprep.mubr.msk.bf16.mxu1 %vm710_vm1, %v21656_v63 }
 0x1e6   : > { %14212 = vmatmul.mubr.msk.bf16.gmra.mrb[4].mxu0 %vm710_vm1, %v21651_v22  ;;  %v21659_v22 = vld [vmem:[#allocation34_spill] sm:$0xff] }
 0x1e7   : > { %14215 = vmatprep.mubr.msk.bf16.mxu0 %vm710_vm1, %v21652_v35  ;;  %14268 = vmatpush3.bf16.msra.mxu0 %v15773_v42  ;;  %v21658_v42 = vld [vmem:[#allocation33_spill] sm:$0xff]  ;;  %v21663_v35 = vld [vmem:[#allocation38_spill] sm:$0xff] }
 0x1e8   : > { %14269 = vmatprep.subr.bf16.mxu0 %v15774_v3  ;;  %13912 = vmatmul.mubr.msk.bf16.gmra.mrb[24].mxu1 %vm710_vm1, %v16935_v19 }
 0x1e9   : > { %13915 = vmatprep.mubr.msk.bf16.mxu1 %vm710_vm1, %v21657_v39 }
 0x1eb   : > { %14270 = vmatpush3.bf16.msra.mxu0 %v15774_v3  ;;  %v21660_v3 = vld [vmem:[#allocation35_spill] sm:$0xff] }
 0x1ec   : > { %14327 = vmatprep.subr.bf16.mxu0 %v17535_v51 }
 0x1ee   : > { %14216 = vmatmul.mubr.msk.bf16.gmra.mrb[8].mxu0 %vm710_vm1, %v21653_v15  ;;  %v21664_v15 = vld [vmem:[#allocation39_spill] sm:$0xff] }
 0x1ef   : > { %14219 = vmatprep.mubr.msk.bf16.mxu0 %vm710_vm1, %v21654_v10  ;;  %v21665_v10 = vld [vmem:[#allocation40_spill] sm:$0xff] }
 0x1f0   : > { %13916 = vmatmul.mubr.msk.bf16.gmra.mrb[28].mxu1 %vm710_vm1, %v16956_v60 }
 0x1f1   : > { %13919 = vmatprep.mubr.msk.bf16.mxu1 %vm710_vm1, %v21658_v42 }
 0x1f6   : > { %14220 = vmatmul.mubr.msk.bf16.gmra.mrb[12].mxu0 %vm710_vm1, %v21655_v57  ;;  %v21666_v57 = vld [vmem:[#allocation41_spill] sm:$0xff] }
 0x1f7   : > { %14223 = vmatprep.mubr.msk.bf16.mxu0 %vm710_vm1, %v21656_v63  ;;  %v17603_v63 = vld [vmem:[%s16434_s14 + $0x258] sm:$0xff] }
 0x1f8   : > { %13920 = vmatmul.mubr.msk.bf16.gmra.mrb[32].mxu1 %vm710_vm1, %v21659_v22 }
 0x1f9   : > { %13923 = vmatprep.mubr.msk.bf16.mxu1 %vm710_vm1, %v21660_v3 }
 0x1fe   : > { %14224 = vmatmul.mubr.msk.bf16.gmra.mrb[16].mxu0 %vm710_vm1, %v16935_v19  ;;  %v21661_v19 = vld [vmem:[#allocation36_spill] sm:$0xff] }
 0x1ff   : > { %14227 = vmatprep.mubr.msk.bf16.mxu0 %vm710_vm1, %v21657_v39  ;;  %v17606_v39 = vld [vmem:[%s16434_s14 + $0x260] sm:$0xff] }
 0x200   : > { %13924 = vmatmul.mubr.msk.bf16.gmra.mrb[36].mxu1 %vm710_vm1, %v21661_v19 }
 0x206   : > { %14228 = vmatmul.mubr.msk.bf16.gmra.mrb[20].mxu0 %vm710_vm1, %v16956_v60  ;;  %v21662_v60 = vld [vmem:[#allocation37_spill] sm:$0xff] }
 0x207   : > { %14231 = vmatprep.mubr.msk.bf16.mxu0 %vm710_vm1, %v21658_v42  ;;  %13927 = vmatprep.mubr.msk.bf16.mxu1 %vm710_vm1, %v21662_v60  ;;  %v17609_v42 = vld [vmem:[%s16434_s14 + $0x268] sm:$0xff] }
 0x208   : > { %13928 = vmatmul.mubr.msk.bf16.gmra.mrb[40].mxu1 %vm710_vm1, %v21663_v35 }
 0x209   : > { %13931 = vmatprep.mubr.msk.bf16.mxu1 %vm710_vm1, %v21664_v15 }
 0x20e   : > { %14232 = vmatmul.mubr.msk.bf16.gmra.mrb[24].mxu0 %vm710_vm1, %v21659_v22  ;;  %v3510_v22 = vrot.slane %v17603_v63, 1 }
 0x20f   : > { %14235 = vmatprep.mubr.msk.bf16.mxu0 %vm710_vm1, %v21660_v3  ;;  %v3511_v3 = vrot.slane %v17606_v39, 1 }
 0x210   : > { %13932 = vmatmul.mubr.msk.bf16.gmra.mrb[44].mxu1 %vm710_vm1, %v21665_v10 }
 0x211   : > { %13935 = vmatprep.mubr.msk.bf16.mxu1 %vm710_vm1, %v21666_v57 }
 0x216   : > { %14236 = vmatmul.mubr.msk.bf16.gmra.mrb[28].mxu0 %vm710_vm1, %v21661_v19  ;;  %v17614_v19 = vld [vmem:[%s16434_s14 + $0x270] sm:$0xff] }
 0x217   : > { %14239 = vmatprep.mubr.msk.bf16.mxu0 %vm710_vm1, %v21662_v60  ;;  %v3513_v60 = vrot.slane %v17609_v42, 1 }
 0x219   : > { %v17628_v18 = vsel %vm466_vm2, %v3511_v3, %v3513_v60 }
 0x21e   : > { %14240 = vmatmul.mubr.msk.bf16.gmra.mrb[32].mxu0 %vm710_vm1, %v21663_v35  ;;  %v3515_v35 = vrot.slane %v17614_v19, 1 }
 0x21f   : > { %14243 = vmatprep.mubr.msk.bf16.mxu0 %vm710_vm1, %v21664_v15  ;;  %v21667_v15 = vld [vmem:[#allocation42_spill] sm:$0xff] }
 0x220   : > { %13936 = vmatmul.mubr.msk.bf16.gmra.mrb[48].mxu1 %vm710_vm1, %v21667_v15  ;;  %v17636_v34 = vsel %vm466_vm2, %v3513_v60, %v3515_v35  ;;  %v17639_v33 = vsel %vm466_vm2, %v3515_v35, %v3517_v55  ;;  %v3151_v60 = vpack.c.bf16 %v17606_v39, %v17603_v63  ;;  %v3152_v55 = vpack.c.bf16 %v17614_v19, %v17609_v42  ;;  %v15780_v35 = vld [vmem:[%s21266_s1 + $0x108] sm:$0xff]  }
 0x226   : > { %14244 = vmatmul.mubr.msk.bf16.gmra.mrb[36].mxu0 %vm710_vm1, %v21665_v10  ;;  %v21668_v10 = vld [vmem:[#allocation43_spill] sm:$0xff] }
 0x227   : > { %14247 = vmatprep.mubr.msk.bf16.mxu0 %vm710_vm1, %v21666_v57  ;;  %13939 = vmatprep.mubr.msk.bf16.mxu1 %vm710_vm1, %v21668_v10  ;;  %v17625_v57 = vsel %vm466_vm2, %v3510_v22, %v3511_v3  ;;  %v3524_v22 = vpack.c.bf16 %v17639_v33, %v17636_v34  ;;  %v21670_v3 = vld [vmem:[#allocation45_spill] sm:$0xff]  ;;  %v15798_v33 = vld [vmem:[%s21267_s2 + $0xc0] ss:$8 sps:$4 sm:$0xff]  }
 0x228   : > { %v3523_v45 = vpack.c.bf16 %v17628_v18, %v17625_v57  ;;  %v15800_v57 = vld [vmem:[%s21267_s2 + $0xc4] ss:$8 sps:$4 sm:$0xff]   ;;  %v15803_v34 = vld [vmem:[%s21267_s2 + $0xd4] ss:$8 sps:$4 sm:$0xff]  }
 0x22e   : > { %14248 = vmatmul.mubr.msk.bf16.gmra.mrb[40].mxu0 %vm710_vm1, %v21667_v15  ;;  %v21669_v15 = vld [vmem:[#allocation44_spill] sm:$0xff] }
 0x22f   : > { %14251 = vmatprep.mubr.msk.bf16.mxu0 %vm710_vm1, %v21668_v10  ;;  %13940 = vmatmul.mubr.msk.bf16.gmra.mrb[52].mxu1 %vm710_vm1, %v21669_v15  ;;  %v21671_v10 = vld [vmem:[#allocation46_spill] sm:$0xff] }
 0x236   : > { %14252 = vmatmul.mubr.msk.bf16.gmra.mrb[44].mxu0 %vm710_vm1, %v21669_v15  ;;  %v15781_v15 = vld [vmem:[%s21266_s1 + $0x110] sm:$0xff]  }
 0x237   : > { %14255 = vmatprep.mubr.msk.bf16.mxu0 %vm710_vm1, %v21670_v3  ;;  %v15797_v3 = vld [vmem:[%s21267_s2 + $0xb4] ss:$8 sps:$4 sm:$0xff]  }
 0x23e   : > { %14256 = vmatmul.mubr.msk.bf16.gmra.mrb[48].mxu0 %vm710_vm1, %v21671_v10 }
 0x23f   : > { %14259 = vmatprep.mubr.msk.bf16.mxu0 %vm710_vm1, %v3151_v60 }
 0x246   : > { %14260 = vmatmul.mubr.msk.bf16.gmra.mrb[52].mxu0 %vm710_vm1, %v3152_v55 }
 0x247   : > { %14271 = vmatprep.mubr.msk.bf16.mxu0 %vm710_vm1, %v17087_v50  ;;  %v15782_v50 = vld [vmem:[%s21266_s1 + $0x118] sm:$0xff]  }
 0x24e   : > { %14272 = vmatmul.mubr.msk.bf16.vlgmr.msra.gmra.mrb[0].mxu0 %vm710_vm1, %v17109_v44  ;;  %v3877_v44 = vrot.slane %v17603_v63, 2  ;;  %v15794_v63 = vld [vmem:[%s21267_s2 + $0xa4] ss:$8 sps:$4 sm:$0xff]  }
 0x24f   : > { %14328 = vmatpush3.bf16.msra.mxu0 %v17535_v51  ;;  %14275 = vmatprep.mubr.msk.bf16.mxu0 %vm710_vm1, %v17111_v16  ;;  %v3878_v16 = vrot.slane %v17606_v39, 2 }
 0x250   : > { %14329 = vmatprep.subr.bf16.mxu0 %v15780_v35 }
 0x253   : > { %14330 = vmatpush3.bf16.msra.mxu0 %v15780_v35 }
 0x254   : > { %14331 = vmatprep.subr.bf16.mxu0 %v15781_v15 }
 0x256   : > { %14276 = vmatmul.mubr.msk.bf16.gmra.mrb[4].mxu0 %vm710_vm1, %v17134_v30  ;;  %v3880_v30 = vrot.slane %v17609_v42, 2 }
 0x257   : > { %14279 = vmatprep.mubr.msk.bf16.mxu0 %vm710_vm1, %v17136_v58  ;;  %14332 = vmatpush3.bf16.msra.mxu0 %v15781_v15  ;;  %v3882_v58 = vrot.slane %v17614_v19, 2 }
 0x258   : > { %14333 = vmatprep.subr.bf16.mxu0 %v15782_v50 }
 0x25b   : > { %14334 = vmatpush3.bf16.msra.mxu0 %v15782_v50 }
 0x25e   : > { %14280 = vmatmul.mubr.msk.bf16.gmra.mrb[8].mxu0 %vm710_vm1, %v17152_v8 }
 0x25f   : > { %14283 = vmatprep.mubr.msk.bf16.mxu0 %vm710_vm1, %v17154_v27  ;;  %v17718_v27 = vsel %vm1417_vm0, %v3877_v44, %v3878_v16 }
 0x266   : > { %14284 = vmatmul.mubr.msk.bf16.gmra.mrb[12].mxu0 %vm710_vm1, %v17169_v53  ;;  %v17721_v53 = vsel %vm1417_vm0, %v3878_v16, %v3880_v30 }
 0x267   : > { %14287 = vmatprep.mubr.msk.bf16.mxu0 %vm710_vm1, %v17171_v40 }
 0x26b   : > { %v17715_v8 = vpop.f32.mrb[0].mxu1 }
 0x26c   : > { %v17725_v40 = vpop.f32.mrb[1].mxu1 }
 0x26e   : > { %14288 = vmatmul.mubr.msk.bf16.gmra.mrb[16].mxu0 %vm710_vm1, %v17186_v49  ;;  %v21684_v49 = vld [vmem:[#allocation19_spill] sm:$0xff] }
 0x26f   : > { %14291 = vmatprep.mubr.msk.bf16.mxu0 %vm710_vm1, %v17188_v1  ;;  %v17730_v1 = vsel %vm1417_vm0, %v3880_v30, %v3882_v58 }
 0x276   : > { %14292 = vmatmul.mubr.msk.bf16.gmra.mrb[20].mxu0 %vm710_vm1, %v17203_v14  ;;  %v3884_v14 = vrot.slane %v359_v36, 2  ;;  %v15789_v36 = vld [vmem:[%s21267_s2 + $0x90] ss:$8 sps:$4 sm:$0xff]  }
 0x277   : > { %14295 = vmatprep.mubr.msk.bf16.mxu0 %vm710_vm1, %v17205_v9  ;;  %v17732_v9 = vpop.f32.mrb[2].mxu1 }
 0x27e   : > { %14296 = vmatmul.mubr.msk.bf16.gmra.mrb[24].mxu0 %vm710_vm1, %v17220_v62  ;;  %v17734_v62 = vpop.f32.mrb[3].mxu1 }
 0x27f   : > { %14299 = vmatprep.mubr.msk.bf16.mxu0 %vm710_vm1, %v17222_v61  ;;  %v17737_v61 = vsel %vm1417_vm0, %v3882_v58, %v3884_v14 }
 0x286   : > { %14300 = vmatmul.mubr.msk.bf16.gmra.mrb[28].mxu0 %vm710_vm1, %v17237_v46 }
 0x287   : > { %14303 = vmatprep.mubr.msk.bf16.mxu0 %vm710_vm1, %v17239_v0  ;;  %v17743_v0 = vpop.f32.mrb[4].mxu1 }
 0x28e   : > { %14304 = vmatmul.mubr.msk.bf16.gmra.mrb[32].mxu0 %vm710_vm1, %v17254_v17  ;;  %v15783_v17 = vld [vmem:[%s21267_s2 + $0x70] ss:$8 sps:$4 sm:$0xff]  }
 0x28f   : > { %14307 = vmatprep.mubr.msk.bf16.mxu0 %vm710_vm1, %v17256_v56  ;;  %v15785_v56 = vld [vmem:[%s21267_s2 + $0x74] ss:$8 sps:$4 sm:$0xff]  }
 0x290   : > { %4721 = vmatprep.subr.bf16.mxu1 %v15785_v56 }
 0x291   : > { %4722 = vmatpush1.bf16.msra.mxu1 %v15783_v17 }
 0x296   : > { %14308 = vmatmul.mubr.msk.bf16.gmra.mrb[36].mxu0 %vm710_vm1, %v17277_v20  ;;  %v17753_v20 = vpop.f32.mrb[5].mxu1 }
 0x297   : > { %14311 = vmatprep.mubr.msk.bf16.mxu0 %vm710_vm1, %v17281_v12  ;;  %v15788_v12 = vld [vmem:[%s21267_s2 + $0x84] ss:$8 sps:$4 sm:$0xff]  }
 0x298   : > { %4723 = vmatprep.subr.bf16.mxu1 %v15788_v12 }
 0x29e   : > { %14312 = vmatmul.mubr.msk.bf16.gmra.mrb[40].mxu0 %vm710_vm1, %v17308_v29  ;;  %v17758_v29 = vpop.f32.mrb[6].mxu1 }
 0x29f   : > { %14315 = vmatprep.mubr.msk.bf16.mxu0 %vm710_vm1, %v17313_v54  ;;  %v17760_v54 = vpop.f32.mrb[7].mxu1 }
 0x2a0   : > { %v17773_v51 = vpop.f32.mrb[8].mxu1 }
 0x2a1   : > { %v17782_v39 = vpop.f32.mrb[9].mxu1 }
 0x2a2   : > { %v17784_v42 = vpop.f32.mrb[10].mxu1 }
 0x2a3   : > { %v17786_v19 = vpop.f32.mrb[11].mxu1 }
 0x2a4   : > { %v17801_v18 = vpop.f32.mrb[12].mxu1 }
 0x2a5   : > { %v17808_v60 = vpop.f32.mrb[13].mxu1 }
 0x2a6   : > { %14316 = vmatmul.mubr.msk.bf16.gmra.mrb[44].mxu0 %vm710_vm1, %v17346_v43  ;;  %v15786_v43 = vld [vmem:[%s21267_s2 + $0x80] ss:$8 sps:$4 sm:$0xff]   ;;  %v17810_v10 = vpop.f32.mrb[14].mxu1 }
 0x2a7   : > { %14319 = vmatprep.mubr.msk.bf16.mxu0 %vm710_vm1, %v17032_v26  ;;  %v15791_v26 = vld [vmem:[%s21267_s2 + $0x94] ss:$8 sps:$4 sm:$0xff]   ;;  %4724 = vmatpush1.bf16.msra.mxu1 %v15786_v43  ;;  %v17812_v55 = vpop.f32.mrb[15].mxu1 }
 0x2a8   : > { %4725 = vmatprep.subr.bf16.mxu1 %v15791_v26 }
 0x2ab   : > { %4726 = vmatpush1.bf16.msra.mxu1 %v15789_v36 }
 0x2ac   : > { %4727 = vmatprep.subr.bf16.mxu1 %v15794_v63 }
 0x2ae   : > { %14320 = vmatmul.mubr.msk.bf16.gmra.mrb[48].mxu0 %vm710_vm1, %v17048_v11  ;;  %v15792_v11 = vld [vmem:[%s21267_s2 + $0xa0] ss:$8 sps:$4 sm:$0xff]  }
 0x2af   : > { %14323 = vmatprep.mubr.msk.bf16.mxu0 %vm710_vm1, %v3523_v45  ;;  %4728 = vmatpush1.bf16.msra.mxu1 %v15792_v11  ;;  %v15795_v45 = vld [vmem:[%s21267_s2 + $0xb0] ss:$8 sps:$4 sm:$0xff]  }
 0x2b0   : > { %4729 = vmatprep.subr.bf16.mxu1 %v15797_v3 }
 0x2b3   : > { %4730 = vmatpush1.bf16.msra.mxu1 %v15795_v45 }
 0x2b4   : > { %4731 = vmatprep.subr.bf16.mxu1 %v15800_v57 }
 0x2b6   : > { %14324 = vmatmul.mubr.msk.bf16.gmra.mrb[52].mxu0 %vm710_vm1, %v3524_v22  ;;  %v17825_v22 = vpop.f32.mrb[16].mxu1 }
 0x2b7   : > { %14335 = vmatprep.mubr.msk.bf16.mxu0 %vm710_vm1, %v16496_v52  ;;  %4732 = vmatpush1.bf16.msra.mxu1 %v15798_v33  ;;  %v15801_v52 = vld [vmem:[%s21267_s2 + $0xd0] ss:$8 sps:$4 sm:$0xff]   ;;  %v17829_v35 = vpop.f32.mrb[17].mxu1 }
 0x2b8   : > { %4733 = vmatprep.subr.bf16.mxu1 %v15803_v34  ;;  %v17831_v15 = vpop.f32.mrb[18].mxu1  ;;  %v21679_v34 = vld [vmem:[#allocation17_spill] sm:$0xff] }
 0x2b9   : > { %v17833_v50 = vpop.f32.mrb[19].mxu1 }
 0x2ba   : > { %v17837_v44 = vpop.f32.mrb[20].mxu1 }
 0x2bb   : > { %4734 = vmatpush1.bf16.msra.mxu1 %v15801_v52 }
 0x2be   : > { %14336 = vmatmul.mubr.msk.bf16.vlgmr.msra.gmra.mrb[0].mxu0 %vm710_vm1, %v16514_v4  ;;  %v17841_v4 = vpop.f32.mrb[21].mxu1 }
 0x2bf   : > { %14339 = vmatprep.mubr.msk.bf16.mxu0 %vm710_vm1, %v16516_v5  ;;  %v17843_v16 = vpop.f32.mrb[22].mxu1 }
 0x2c0   : > { %v17845_v5 = vpop.f32.mrb[23].mxu1 }
 0x2c1   : > { %v17849_v30 = vpop.f32.mrb[24].mxu1 }
 0x2c6   : > { %14340 = vmatmul.mubr.msk.bf16.gmra.mrb[4].mxu0 %vm710_vm1, %v16541_v31  ;;  %v17853_v31 = vpop.f32.mrb[25].mxu1 }
 0x2c7   : > { %14343 = vmatprep.mubr.msk.bf16.mxu0 %vm710_vm1, %v16545_v37  ;;  %v17855_v58 = vpop.f32.mrb[26].mxu1 }
 0x2c8   : > { %v17857_v14 = vpop.f32.mrb[27].mxu1 }
 0x2c9   : > { %v17861_v37 = vpop.f32.mrb[28].mxu1 }
 0x2ce   : > { %14344 = vmatmul.mubr.msk.bf16.gmra.mrb[8].mxu0 %vm710_vm1, %v21627_v47  ;;  %v17865_v47 = vpop.f32.mrb[29].mxu1 }
 0x2cf   : > { %14347 = vmatprep.mubr.msk.bf16.mxu0 %vm710_vm1, %v21628_v38  ;;  %v17867_v17 = vpop.f32.mrb[30].mxu1 }
 0x2d0   : > { %v17869_v56 = vpop.f32.mrb[31].mxu1 }
 0x2d1   : > { %v17873_v38 = vpop.f32.mrb[32].mxu1 }
 0x2d6   : > { %14348 = vmatmul.mubr.msk.bf16.gmra.mrb[12].mxu0 %vm710_vm1, %v21629_v41  ;;  %v17877_v41 = vpop.f32.mrb[33].mxu1 }
 0x2d7   : > { %14351 = vmatprep.mubr.msk.bf16.mxu0 %vm710_vm1, %v21630_v23  ;;  %v17879_v12 = vpop.f32.mrb[34].mxu1 }
 0x2d8   : > { %v17881_v43 = vpop.f32.mrb[35].mxu1 }
 0x2d9   : > { %v17885_v23 = vpop.f32.mrb[36].mxu1 }
 0x2de   : > { %14352 = vmatmul.mubr.msk.bf16.gmra.mrb[16].mxu0 %vm710_vm1, %v21631_v7  ;;  %v17889_v7 = vpop.f32.mrb[37].mxu1 }
 0x2df   : > { %14355 = vmatprep.mubr.msk.bf16.mxu0 %vm710_vm1, %v21632_v13  ;;  %v17891_v26 = vpop.f32.mrb[38].mxu1 }
 0x2e0   : > { %v17893_v36 = vpop.f32.mrb[39].mxu1 }
 0x2e1   : > { %v17897_v13 = vpop.f32.mrb[40].mxu1 }
 0x2e6   : > { %14356 = vmatmul.mubr.msk.bf16.gmra.mrb[20].mxu0 %vm710_vm1, %v21633_v6  ;;  %v17901_v6 = vpop.f32.mrb[41].mxu1 }
 0x2e7   : > { %14359 = vmatprep.mubr.msk.bf16.mxu0 %vm710_vm1, %v21634_v2  ;;  %v17903_v63 = vpop.f32.mrb[42].mxu1 }
 0x2e8   : > { %v17905_v11 = vpop.f32.mrb[43].mxu1 }
 0x2e9   : > { %v17909_v2 = vpop.f32.mrb[44].mxu1 }
 0x2ee   : > { %14360 = vmatmul.mubr.msk.bf16.gmra.mrb[24].mxu0 %vm710_vm1, %v21635_v28  ;;  %v17913_v28 = vpop.f32.mrb[45].mxu1 }
 0x2ef   : > { %14363 = vmatprep.mubr.msk.bf16.mxu0 %vm710_vm1, %v21636_v21  ;;  %v17915_v3 = vpop.f32.mrb[46].mxu1 }
 0x2f0   : > { %21672 = vst [vmem:[#allocation2_spill] sm:$0xff] %v17915_v3  ;;  %v17917_v45 = vpop.f32.mrb[47].mxu1 }
 0x2f1   : > { %21673 = vst [vmem:[#allocation3_spill] sm:$0xff] %v17917_v45 }
 0x2f3   : > { %v17921_v21 = vpop.f32.mrb[48].mxu1 }
 0x2f4   : > { %21674 = vst [vmem:[#allocation4_spill] sm:$0xff] %v17921_v21 }
 0x2f6   : > { %14364 = vmatmul.mubr.msk.bf16.gmra.mrb[28].mxu0 %vm710_vm1, %v21637_v32  ;;  %v17925_v32 = vpop.f32.mrb[49].mxu1 }
 0x2f7   : > { %14367 = vmatprep.mubr.msk.bf16.mxu0 %vm710_vm1, %v21638_v59  ;;  %21675 = vst [vmem:[#allocation5_spill] sm:$0xff] %v17925_v32  ;;  %v17927_v57 = vpop.f32.mrb[50].mxu1 }
 0x2f8   : > { %21676 = vst [vmem:[#allocation6_spill] sm:$0xff] %v17927_v57  ;;  %v17929_v33 = vpop.f32.mrb[51].mxu1 }
 0x2f9   : > { %21677 = vst [vmem:[#allocation7_spill] sm:$0xff] %v17929_v33  ;;  %v21685_v33 = vld [vmem:[#allocation20_spill] sm:$0xff] }
 0x2fe   : > { %14368 = vmatmul.mubr.msk.bf16.gmra.mrb[32].mxu0 %vm710_vm1, %v21639_v48 }
 0x2ff   : > { %14371 = vmatprep.mubr.msk.bf16.mxu0 %vm710_vm1, %v21640_v24  ;;  %v21683_v24 = vld [vmem:[#allocation18_spill] sm:$0xff] }
 0x302   : > { %v17933_v59 = vpop.f32.mrb[52].mxu1 }
 0x303   : > { %21678 = vst [vmem:[#allocation8_spill] sm:$0xff] %v17933_v59  ;;  %v17937_v48 = vpop.f32.mrb[53].mxu1  ;;  %v21687_v59 = vld [vmem:[#allocation48_spill] sm:$0xff] }
 0x304   : > { %21680 = vst [vmem:[#allocation9_spill] sm:$0xff] %v17937_v48  ;;  %v17939_v52 = vpop.f32.mrb[54].mxu1 }
 0x305   : > { %21681 = vst [vmem:[#allocation10_spill] sm:$0xff] %v17939_v52  ;;  %v17941_v46 = vpop.f32.mrb[55].mxu1 }
 0x306   : > { %14372 = vmatmul.mubr.msk.bf16.gmra.mrb[36].mxu0 %vm710_vm1, %v21641_v25  ;;  %21682 = vst [vmem:[#allocation11_spill] sm:$0xff] %v17941_v46  ;;  %v21686_v25 = vld [vmem:[#allocation47_spill] sm:$0xff]  ;;  %v21362_v46 = vmov 0  }
 0x307   : > { %14375 = vmatprep.mubr.msk.bf16.mxu0 %vm710_vm1, %v21679_v34  ;;  %v21688_v34 = vpack.c.bf16 %v17721_v53, %v17718_v27  ;;  %4753 = vmatprep.mubr.bf16.mxu1 %v21362_v46  ;;  %v17968_v27 = vld [vmem:[%s21269_s4] ss:$0 sm:$0xff] }
 0x30e   : > { %14376 = vmatmul.mubr.msk.bf16.gmra.mrb[40].mxu0 %vm710_vm1, %v21683_v24 }
 0x30f   : > { %14379 = vmatprep.mubr.msk.bf16.mxu0 %vm710_vm1, %v21684_v49  ;;  %v15806_v49 = vld [vmem:[%s21267_s2 + $0x4] ss:$8 sps:$4 sm:$0xff]  }
 0x310   : > { %5058 = vmatprep.subr.bf16.mxu1 %v15806_v49 }
 0x316   : > { %14380 = vmatmul.mubr.msk.bf16.gmra.mrb[44].mxu0 %vm710_vm1, %v21685_v33  ;;  %v21689_v33 = vpack.c.bf16 %v17737_v61, %v17730_v1 }
 0x317   : > { %14383 = vmatprep.mubr.msk.bf16.mxu0 %vm710_vm1, %v21686_v25 }
 0x31e   : > { %14384 = vmatmul.mubr.msk.bf16.gmra.mrb[48].mxu0 %vm710_vm1, %v21687_v59 }
 0x31f   : > { %14387 = vmatprep.mubr.msk.bf16.mxu0 %vm710_vm1, %v21688_v34 }
 0x326   : > { %14388 = vmatmul.mubr.msk.bf16.gmra.mrb[52].mxu0 %vm710_vm1, %v21689_v33 }
 0x391   : > { %v14337_v24 = vpop.f32.mrb[0].mxu0 }
 0x392   : > { %v14391_v53 = vadd.f32 %v14337_v24, %v17715_v8  ;;  %v3965_v59 = vpop.f32.mrb[1].mxu0 }
 0x393   : > { %v14392_v25 = vadd.f32 %v3965_v59, %v17725_v40  ;;  %v14338_v34 = vpop.f32.mrb[2].mxu0 }
 0x394   : > { %v4253_v46 = vadd.f32 %v14391_v53, %v17968_v27  ;;  %v14393_v52 = vadd.f32 %v14338_v34, %v17732_v9  ;;  %v3968_v1 = vpop.f32.mrb[3].mxu0 }
 0x395   : > { %v4251_v61 = vadd.f32 %v14392_v25, %v17968_v27  ;;  %v14394_v49 = vadd.f32 %v3968_v1, %v17734_v62 }
 0x396   : > { %v17976_v33 = vmax.f32 %v4253_v46, 0.0  ;;  %v4254_v48 = vadd.f32 %v14393_v52, %v17968_v27 }
 0x397   : > { %v17979_v57 = vmax.f32 %v4251_v61, 0.0  ;;  %v4252_v8 = vadd.f32 %v14394_v49, %v17968_v27 }
 0x398   : > { %21690 = vst [vmem:[#allocation12_spill] sm:$0xff] %v17976_v33  ;;  %v4310_v24 = vmax.f32 %v4254_v48, 0.0  ;;  %v4446_v40 = vrot.slane %v17976_v33, 1  ;;  %v5274_v53 = vrot.slane %v17976_v33, 2 }
 0x399   : > { %21691 = vst [vmem:[#allocation13_spill] sm:$0xff] %v17979_v57  ;;  %v4443_v9 = vrot.slane %v17979_v57, 1  ;;  %v17985_v59 = vmax.f32 %v4252_v8, 0.0  ;;  %v14341_v25 = vpop.f32.mrb[4].mxu0  ;;  %v5271_v62 = vrot.slane %v17979_v57, 2 }
 0x39a   : > { %v4448_v46 = vrot.slane %v4310_v24, 1  ;;  %v5276_v34 = vrot.slane %v4310_v24, 2  ;;  %v14395_v52 = vadd.f32 %v14341_v25, %v17743_v0  ;;  %v3981_v1 = vpop.f32.mrb[5].mxu0 }
 0x39b   : > { %21692 = vst [vmem:[#allocation14_spill] sm:$0xff] %v17985_v59  ;;  %v4444_v61 = vrot.slane %v17985_v59, 1  ;;  %v5272_v49 = vrot.slane %v17985_v59, 2  ;;  %v14396_v32 = vadd.f32 %v3981_v1, %v17753_v20  ;;  %v14342_v21 = vpop.f32.mrb[6].mxu0 }
 0x39c   : > { %v4257_v8 = vadd.f32 %v14395_v52, %v17968_v27  ;;  %v14397_v45 = vadd.f32 %v14342_v21, %v17758_v29  ;;  %v3984_v3 = vpop.f32.mrb[7].mxu0  ;;  %v17997_v24 = vsel %vm466_vm2, %v4446_v40, %v4448_v46  ;;  %v18000_v0 = vsel %vm1417_vm0, %v5274_v53, %v5276_v34  ;;  %v15804_v29 = vld [vmem:[%s21267_s2] ss:$8 sps:$4 sm:$0xff]  }
 0x39d   : > { %21693 = vst [vmem:[#allocation15_spill] sm:$0xff] %v18000_v0  ;;  %v4445_v25 = vsel %vm466_vm2, %v4443_v9, %v4444_v61  ;;  %v4447_v48 = vsel %vm466_vm2, %v4444_v61, %v4446_v40  ;;  %v18005_v57 = vsel %vm1417_vm0, %v5271_v62, %v5272_v49  ;;  %v18008_v20 = vsel %vm1417_vm0, %v5272_v49, %v5274_v53  ;;  %v15809_v40 = vld [vmem:[%s21267_s2 + $0x14] ss:$8 sps:$4 sm:$0xff]   ;;  %v15807_v49 = vld [vmem:[%s21267_s2 + $0x10] ss:$8 sps:$4 sm:$0xff]  }
 0x39e   : > { %21694 = vst [vmem:[#allocation16_spill] sm:$0xff] %v18005_v57  ;;  %21695 = vst [vmem:[#allocation21_spill] sm:$0xff] %v18008_v20  ;;  %v4563_v21 = vpack.c.bf16 %v4447_v48, %v4445_v25  ;;  %v4255_v34 = vadd.f32 %v14396_v32, %v17968_v27  ;;  %v4258_v9 = vadd.f32 %v14397_v45, %v17968_v27  ;;  %v18021_v53 = vmax.f32 %v4257_v8, 0.0  ;;  %v15815_v8 = vld [vmem:[%s21267_s2 + $0x34] ss:$8 sps:$4 sm:$0xff]  }
 0x39f   : > { %v14398_v62 = vadd.f32 %v3984_v3, %v17760_v54  ;;  %v21698_v32 = vmov 0   ;;  %v15812_v3 = vld [vmem:[%s21267_s2 + $0x24] ss:$8 sps:$4 sm:$0xff]  }
 0x3a0   : > { %21696 = vst [vmem:[#allocation22_spill] sm:$0xff] %v18021_v53  ;;  %v18023_v52 = vmax.f32 %v4255_v34, 0.0  ;;  %12655 = vmatmul.mubr.msk.bf16.vlgmr.msra.gmra.mrb[56].mxu1 %vm4666_vm3, %v4563_v21  ;;  %v4314_v1 = vmax.f32 %v4258_v9, 0.0  ;;  %v4453_v9 = vrot.slane %v18021_v53, 1 }
 0x3a1   : > { %v4256_v48 = vadd.f32 %v14398_v62, %v17968_v27  ;;  %v14345_v61 = vpop.f32.mrb[8].mxu0  ;;  %5059 = vmatpush1.bf16.msra.mxu1 %v15804_v29  ;;  %4763 = vmatprep.mubr.bf16.mxu1 %v21698_v32 }
 0x3a2   : > { %21697 = vst [vmem:[#allocation23_spill] sm:$0xff] %v18023_v52  ;;  %v14399_v45 = vadd.f32 %v14345_v61, %v17773_v51  ;;  %v3997_v54 = vpop.f32.mrb[9].mxu0  ;;  %5060 = vmatprep.subr.bf16.mxu1 %v15809_v40  ;;  %v4455_v25 = vrot.slane %v4314_v1, 1  ;;  %v4450_v61 = vrot.slane %v18023_v52, 1  ;;  %v5278_v57 = vrot.slane %v18023_v52, 2 }
 0x3a3   : > { %v18037_v21 = vmax.f32 %v4256_v48, 0.0  ;;  %v14400_v29 = vadd.f32 %v3997_v54, %v17782_v39  ;;  %v14346_v34 = vpop.f32.mrb[10].mxu0  ;;  %v15810_v39 = vld [vmem:[%s21267_s2 + $0x20] ss:$8 sps:$4 sm:$0xff]   ;;  %v5283_v20 = vrot.slane %v4314_v1, 2 }
 0x3a4   : > { %v4261_v62 = vadd.f32 %v14399_v45, %v17968_v27  ;;  %v14401_v51 = vadd.f32 %v14346_v34, %v17784_v42  ;;  %v4000_v40 = vpop.f32.mrb[11].mxu0  ;;  %v18056_v34 = vsel %vm466_vm2, %v4453_v9, %v4455_v25  ;;  %v15818_v1 = vld [vmem:[%s21267_s2 + $0x44] ss:$8 sps:$4 sm:$0xff]  }
 0x3a5   : > { %21699 = vst [vmem:[#allocation24_spill] sm:$0xff] %v18037_v21  ;;  %v4451_v46 = vrot.slane %v18037_v21, 1  ;;  %v4259_v48 = vadd.f32 %v14400_v29, %v17968_v27  ;;  %5061 = vmatpush1.bf16.msra.mxu1 %v15807_v49  ;;  %v14402_v42 = vadd.f32 %v4000_v40, %v17786_v19  ;;  %21701 = vst [vmem:[#allocation26_spill] sm:$0xff] %v18056_v34  ;;  %v5279_v49 = vrot.slane %v18037_v21, 2 }
 0x3a6   : > { %v18051_v54 = vmax.f32 %v4261_v62, 0.0  ;;  %v4262_v45 = vadd.f32 %v14401_v51, %v17968_v27  ;;  %5062 = vmatprep.subr.bf16.mxu1 %v15812_v3  ;;  %v5281_v40 = vrot.slane %v18021_v53, 2 }
 0x3a7   : > { %v18063_v29 = vsel %vm466_vm2, %v4450_v61, %v4451_v46  ;;  %v18066_v62 = vsel %vm466_vm2, %v4451_v46, %v4453_v9  ;;  %v18070_v19 = vmax.f32 %v4259_v48, 0.0  ;;  %v4260_v3 = vadd.f32 %v14402_v42, %v17968_v27  ;;  %v15813_v46 = vld [vmem:[%s21267_s2 + $0x30] ss:$8 sps:$4 sm:$0xff]  }
 0x3a8   : > { %21700 = vst [vmem:[#allocation25_spill] sm:$0xff] %v18051_v54  ;;  %21702 = vst [vmem:[#allocation27_spill] sm:$0xff] %v18063_v29  ;;  %v4318_v25 = vmax.f32 %v4262_v45, 0.0  ;;  %v4564_v61 = vpack.c.bf16 %v18063_v29, %v17997_v24  ;;  %v4460_v9 = vrot.slane %v18051_v54, 1  ;;  %v18092_v52 = vsel %vm1417_vm0, %v5278_v57, %v5279_v49 }
 0x3a9   : > { %21703 = vst [vmem:[#allocation28_spill] sm:$0xff] %v18066_v62  ;;  %21704 = vst [vmem:[#allocation29_spill] sm:$0xff] %v18070_v19  ;;  %v14349_v33 = vpop.f32.mrb[12].mxu0  ;;  %5063 = vmatpush1.bf16.msra.mxu1 %v15810_v39  ;;  %v18081_v45 = vmax.f32 %v4260_v3, 0.0  ;;  %v18095_v3 = vsel %vm1417_vm0, %v5279_v49, %v5281_v40  ;;  %v15816_v49 = vld [vmem:[%s21267_s2 + $0x40] ss:$8 sps:$4 sm:$0xff]  }
 0x3aa   : > { %v4462_v48 = vrot.slane %v4318_v25, 1  ;;  %v14403_v42 = vadd.f32 %v14349_v33, %v17801_v18  ;;  %v4013_v51 = vpop.f32.mrb[13].mxu0  ;;  %5064 = vmatprep.subr.bf16.mxu1 %v15815_v8  ;;  %12656 = vmatmul.mubr.msk.bf16.gmra.mrb[60].mxu1 %vm4666_vm3, %v4564_v61  ;;  %21706 = vst [vmem:[#allocation31_spill] sm:$0xff] %v18092_v52  ;;  %21707 = vst [vmem:[#allocation32_spill] sm:$0xff] %v18095_v3  ;;  %v4457_v18 = vrot.slane %v18070_v19, 1 }
 0x3ab   : > { %21705 = vst [vmem:[#allocation30_spill] sm:$0xff] %v18081_v45  ;;  %v14404_v24 = vadd.f32 %v4013_v51, %v17808_v60  ;;  %v14350_v39 = vpop.f32.mrb[14].mxu0  ;;  %v4458_v33 = vrot.slane %v18081_v45, 1  ;;  %4773 = vmatprep.mubr.bf16.mxu1 %v21698_v32  ;;  %v5286_v29 = vrot.slane %v18081_v45, 2 }
 0x3ac   : > { %v4265_v8 = vadd.f32 %v14403_v42, %v17968_v27  ;;  %v14405_v61 = vadd.f32 %v14350_v39, %v17810_v10  ;;  %v4016_v59 = vpop.f32.mrb[15].mxu0  ;;  %v18105_v57 = vsel %vm466_vm2, %v4460_v9, %v4462_v48  ;;  %v18112_v42 = vpack.c.bf16 %v18081_v45, %v18070_v19 }
 0x3ad   : > { %v4263_v60 = vadd.f32 %v14404_v24, %v17968_v27  ;;  %v14406_v51 = vadd.f32 %v4016_v59, %v17812_v55  ;;  %21708 = vst [vmem:[#allocation33_spill] sm:$0xff] %v18105_v57  ;;  %5065 = vmatpush1.bf16.msra.mxu1 %v15813_v46  ;;  %v18118_v24 = vsel %vm466_vm2, %v4457_v18, %v4458_v33  ;;  %v15821_v59 = vld [vmem:[%s21267_s2 + $0x54] ss:$8 sps:$4 sm:$0xff]   ;;  %v5288_v46 = vrot.slane %v18051_v54, 2 }
 0x3ae   : > { %21709 = vst [vmem:[#allocation34_spill] sm:$0xff] %v18112_v42  ;;  %v18114_v10 = vmax.f32 %v4265_v8, 0.0  ;;  %v4266_v39 = vadd.f32 %v14405_v61, %v17968_v27  ;;  %21711 = vst [vmem:[#allocation36_spill] sm:$0xff] %v18118_v24  ;;  %v18121_v55 = vsel %vm466_vm2, %v4458_v33, %v4460_v9  ;;  %5066 = vmatprep.subr.bf16.mxu1 %v15818_v1  ;;  %v5285_v18 = vrot.slane %v18070_v19, 2 }
 0x3af   : > { %21712 = vst [vmem:[#allocation37_spill] sm:$0xff] %v18121_v55  ;;  %v18127_v48 = vmax.f32 %v4263_v60, 0.0  ;;  %v4264_v8 = vadd.f32 %v14406_v51, %v17968_v27  ;;  %v4565_v9 = vpack.c.bf16 %v18056_v34, %v18066_v62  ;;  %v18136_v1 = vsel %vm1417_vm0, %v5281_v40, %v5283_v20  ;;  %v15819_v51 = vld [vmem:[%s21267_s2 + $0x50] ss:$8 sps:$4 sm:$0xff]  }
 0x3b0   : > { %21710 = vst [vmem:[#allocation35_spill] sm:$0xff] %v18114_v10  ;;  %v4322_v21 = vmax.f32 %v4266_v39, 0.0  ;;  %21714 = vst [vmem:[#allocation39_spill] sm:$0xff] %v18136_v1  ;;  %v5290_v33 = vrot.slane %v4318_v25, 2  ;;  %v4467_v61 = vrot.slane %v18114_v10, 1  ;;  %v18152_v40 = vpack.c.bf16 %v18121_v55, %v18118_v24 }
 0x3b1   : > { %21713 = vst [vmem:[#allocation38_spill] sm:$0xff] %v18127_v48  ;;  %v18139_v42 = vmax.f32 %v4264_v8, 0.0  ;;  %v14353_v60 = vpop.f32.mrb[16].mxu0  ;;  %5067 = vmatpush1.bf16.msra.mxu1 %v15816_v49  ;;  %v18146_v39 = vpack.c.bf16 %v18127_v48, %v18051_v54  ;;  %v15824_v49 = vld [vmem:[%s21267_s2 + $0x64] ss:$8 sps:$4 sm:$0xff]   ;;  %v4464_v8 = vrot.slane %v18127_v48, 1 }
 0x3b2   : > { %v4469_v34 = vrot.slane %v4322_v21, 1  ;;  %v14407_v20 = vadd.f32 %v14353_v60, %v17825_v22  ;;  %v4029_v25 = vpop.f32.mrb[17].mxu0  ;;  %21717 = vst [vmem:[#allocation42_spill] sm:$0xff] %v18152_v40  ;;  %5068 = vmatprep.subr.bf16.mxu1 %v15821_v59  ;;  %12657 = vmatmul.mubr.msk.bf16.gmra.mrb[64].mxu1 %vm4666_vm3, %v4565_v9 }
 0x3b3   : > { %21715 = vst [vmem:[#allocation40_spill] sm:$0xff] %v18139_v42  ;;  %21716 = vst [vmem:[#allocation41_spill] sm:$0xff] %v18146_v39  ;;  %v4465_v62 = vrot.slane %v18139_v42, 1  ;;  %v14408_v1 = vadd.f32 %v4029_v25, %v17829_v35  ;;  %v14354_v0 = vpop.f32.mrb[18].mxu0  ;;  %v18163_v22 = vpack.c.bf16 %v18114_v10, %v18139_v42  ;;  %4783 = vmatprep.mubr.bf16.mxu1 %v21698_v32 }
 0x3b4   : > { %v4269_v60 = vadd.f32 %v14407_v20, %v17968_v27  ;;  %v14409_v59 = vadd.f32 %v14354_v0, %v17831_v15  ;;  %v4032_v55 = vpop.f32.mrb[19].mxu0  ;;  %v18169_v24 = vsel %vm466_vm2, %v4467_v61, %v4469_v34  ;;  %v15822_v15 = vld [vmem:[%s21267_s2 + $0x60] ss:$8 sps:$4 sm:$0xff]   ;;  %v5295_v0 = vrot.slane %v18114_v10, 2 }
 0x3b5   : > { %21718 = vst [vmem:[#allocation43_spill] sm:$0xff] %v18163_v22  ;;  %21719 = vst [vmem:[#allocation44_spill] sm:$0xff] %v18169_v24  ;;  %v4267_v35 = vadd.f32 %v14408_v1, %v17968_v27  ;;  %v14410_v25 = vadd.f32 %v4032_v55, %v17833_v50  ;;  %v18176_v39 = vsel %vm466_vm2, %v4464_v8, %v4465_v62  ;;  %5069 = vmatpush1.bf16.msra.mxu1 %v15819_v51  ;;  %v15827_v50 = vld [vmem:[%s21267_s2 + $0xe4] ss:$8 sps:$4 sm:$0xff]  }
 0x3b6   : > { %21720 = vst [vmem:[#allocation45_spill] sm:$0xff] %v18176_v39  ;;  %v18179_v20 = vsel %vm466_vm2, %v4465_v62, %v4467_v61  ;;  %v5293_v34 = vrot.slane %v18139_v42, 2  ;;  %v18186_v9 = vmax.f32 %v4269_v60, 0.0  ;;  %v4270_v1 = vadd.f32 %v14409_v59, %v17968_v27  ;;  %5070 = vmatprep.subr.bf16.mxu1 %v15824_v49 }
 0x3b7   : > { %21721 = vst [vmem:[#allocation46_spill] sm:$0xff] %v18179_v20  ;;  %v18192_v62 = vmax.f32 %v4267_v35, 0.0  ;;  %v4268_v55 = vadd.f32 %v14410_v25, %v17968_v27  ;;  %v18196_v61 = vsel %vm1417_vm0, %v5285_v18, %v5286_v29  ;;  %v18199_v51 = vsel %vm1417_vm0, %v5286_v29, %v5288_v46 }
 0x3b8   : > { %21722 = vst [vmem:[#allocation17_spill] sm:$0xff] %v18186_v9  ;;  %21724 = vst [vmem:[#allocation19_spill] sm:$0xff] %v18196_v61  ;;  %v5292_v8 = vrot.slane %v18127_v48, 2  ;;  %v5297_v60 = vrot.slane %v4322_v21, 2  ;;  %v4326_v3 = vmax.f32 %v4270_v1, 0.0  ;;  %v18204_v49 = vpack.c.bf16 %v18176_v39, %v18105_v57 }
 0x3b9   : > { %21723 = vst [vmem:[#allocation18_spill] sm:$0xff] %v18192_v62  ;;  %21725 = vst [vmem:[#allocation20_spill] sm:$0xff] %v18199_v51  ;;  %v4474_v59 = vrot.slane %v18186_v9, 1  ;;  %v18207_v35 = vmax.f32 %v4268_v55, 0.0  ;;  %v14357_v52 = vpop.f32.mrb[20].mxu0  ;;  %v18211_v18 = vpack.c.bf16 %v18169_v24, %v18179_v20  ;;  %5071 = vmatpush1.bf16.msra.mxu1 %v15822_v15  ;;  %v18214_v29 = vsel %vm1417_vm0, %v5288_v46, %v5290_v33 }
 0x3ba   : > { %21726 = vst [vmem:[#allocation47_spill] sm:$0xff] %v18204_v49  ;;  %21729 = vst [vmem:[#allocation50_spill] sm:$0xff] %v18214_v29  ;;  %v4471_v21 = vrot.slane %v18192_v62, 1  ;;  %v4476_v25 = vrot.slane %v4326_v3, 1  ;;  %v14411_v1 = vadd.f32 %v14357_v52, %v17837_v44  ;;  %v4045_v39 = vpop.f32.mrb[21].mxu0  ;;  %5548 = vmatprep.subr.bf16.mxu1 %v15827_v50  ;;  %v18219_v57 = vsel %vm1417_vm0, %v5292_v8, %v5293_v34 }
 0x3bb   : > { %21727 = vst [vmem:[#allocation48_spill] sm:$0xff] %v18207_v35  ;;  %21728 = vst [vmem:[#allocation49_spill] sm:$0xff] %v18211_v18  ;;  %v4472_v55 = vrot.slane %v18207_v35, 1  ;;  %v5300_v51 = vrot.slane %v18207_v35, 2  ;;  %12658 = vmatmul.mubr.msk.bf16.gmra.mrb[68].mxu1 %vm4666_vm3, %v18152_v40  ;;  %v14412_v46 = vadd.f32 %v4045_v39, %v17841_v4  ;;  %v14358_v33 = vpop.f32.mrb[22].mxu0  ;;  %v18228_v15 = vpack.c.bf16 %v18207_v35, %v18192_v62 }
 0x3bc   : > { %21730 = vst [vmem:[#allocation51_spill] sm:$0xff] %v18219_v57  ;;  %v5299_v44 = vrot.slane %v18192_v62, 2  ;;  %v4273_v52 = vadd.f32 %v14411_v1, %v17968_v27  ;;  %v14413_v50 = vadd.f32 %v14358_v33, %v17843_v16  ;;  %v4048_v8 = vpop.f32.mrb[23].mxu0  ;;  %4793 = vmatprep.mubr.bf16.mxu1 %v21698_v32  ;;  %v18235_v24 = vsel %vm466_vm2, %v4474_v59, %v4476_v25 }
 0x3bd   : > { %21731 = vst [vmem:[#allocation52_spill] sm:$0xff] %v18228_v15  ;;  %21732 = vst [vmem:[#allocation53_spill] sm:$0xff] %v18235_v24  ;;  %v4271_v40 = vadd.f32 %v14412_v46, %v17968_v27  ;;  %v14414_v4 = vadd.f32 %v4048_v8, %v17845_v5  ;;  %v18240_v39 = vsel %vm466_vm2, %v4471_v21, %v4472_v55  ;;  %v5302_v1 = vrot.slane %v18186_v9, 2 }
 0x3be   : > { %21733 = vst [vmem:[#allocation54_spill] sm:$0xff] %v18240_v39  ;;  %v18243_v20 = vsel %vm466_vm2, %v4472_v55, %v4474_v59  ;;  %v18246_v57 = vmax.f32 %v4273_v52, 0.0  ;;  %v4274_v16 = vadd.f32 %v14413_v50, %v17968_v27  ;;  %v18250_v33 = vsel %vm1417_vm0, %v5293_v34, %v5295_v0 }
 0x3bf   : > { %21734 = vst [vmem:[#allocation55_spill] sm:$0xff] %v18243_v20  ;;  %21736 = vst [vmem:[#allocation57_spill] sm:$0xff] %v18250_v33  ;;  %v18252_v25 = vmax.f32 %v4271_v40, 0.0  ;;  %v4272_v46 = vadd.f32 %v14414_v4, %v17968_v27  ;;  %v18256_v5 = vsel %vm1417_vm0, %v5295_v0, %v5297_v60  ;;  %v18259_v21 = vsel %vm1417_vm0, %v5299_v44, %v5300_v51 }
 0x3c0   : > { %21735 = vst [vmem:[#allocation56_spill] sm:$0xff] %v18246_v57  ;;  %21738 = vst [vmem:[#allocation59_spill] sm:$0xff] %v18256_v5  ;;  %v5304_v59 = vrot.slane %v4326_v3, 2  ;;  %v4481_v55 = vrot.slane %v18246_v57, 1  ;;  %v4330_v52 = vmax.f32 %v4274_v16, 0.0  ;;  %v18264_v50 = vpack.c.bf16 %v18243_v20, %v18240_v39 }
 0x3c1   : > { %21737 = vst [vmem:[#allocation58_spill] sm:$0xff] %v18252_v25  ;;  %21739 = vst [vmem:[#allocation60_spill] sm:$0xff] %v18259_v21  ;;  %v5309_v34 = vrot.slane %v18246_v57, 2  ;;  %v4478_v40 = vrot.slane %v18252_v25, 1  ;;  %v18268_v8 = vmax.f32 %v4272_v46, 0.0  ;;  %v14361_v4 = vpop.f32.mrb[24].mxu0  ;;  %v18272_v0 = vpack.c.bf16 %v18252_v25, %v18186_v9 }
 0x3c2   : > { %21740 = vst [vmem:[#allocation61_spill] sm:$0xff] %v18264_v50  ;;  %v5306_v3 = vrot.slane %v18252_v25, 2  ;;  %v4483_v60 = vrot.slane %v4330_v52, 1  ;;  %v14415_v44 = vadd.f32 %v14361_v4, %v17849_v30  ;;  %v4061_v16 = vpop.f32.mrb[25].mxu0  ;;  %v18277_v20 = vsel %vm1417_vm0, %v5300_v51, %v5302_v1  ;;  %v21806_v25 = vld [vmem:[#allocation4_spill] sm:$0xff] }
 0x3c3   : > { %21741 = vst [vmem:[#allocation62_spill] sm:$0xff] %v18268_v8  ;;  %21742 = vst [vmem:[#allocation63_spill] sm:$0xff] %v18272_v0  ;;  %v4479_v39 = vrot.slane %v18268_v8, 1  ;;  %v5307_v21 = vrot.slane %v18268_v8, 2  ;;  %12659 = vmatmul.mubr.msk.bf16.gmra.mrb[72].mxu1 %vm4666_vm3, %v18204_v49  ;;  %v14416_v46 = vadd.f32 %v4061_v16, %v17853_v31  ;;  %v14362_v5 = vpop.f32.mrb[26].mxu0  ;;  %v18286_v33 = vpack.c.bf16 %v18246_v57, %v18268_v8 }
 0x3c4   : > { %21743 = vst [vmem:[#allocation64_spill] sm:$0xff] %v18277_v20  ;;  %v5311_v29 = vrot.slane %v4330_v52, 2  ;;  %v4277_v30 = vadd.f32 %v14415_v44, %v17968_v27  ;;  %v14417_v51 = vadd.f32 %v14362_v5, %v17855_v58  ;;  %v4064_v4 = vpop.f32.mrb[27].mxu0  ;;  %4803 = vmatprep.mubr.bf16.mxu1 %v21698_v32  ;;  %v18292_v20 = vsel %vm466_vm2, %v4481_v55, %v4483_v60 }
 0x3c5   : > { %21744 = vst [vmem:[#allocation65_spill] sm:$0xff] %v18286_v33  ;;  %v4275_v49 = vadd.f32 %v14416_v46, %v17968_v27  ;;  %v14418_v31 = vadd.f32 %v4064_v4, %v17857_v14  ;;  %v18297_v16 = vsel %vm466_vm2, %v4478_v40, %v4479_v39  ;;  %v18300_v61 = vsel %vm466_vm2, %v4479_v39, %v4481_v55 }
 0x3c6   : > { %v18302_v52 = vmax.f32 %v4277_v30, 0.0  ;;  %v4278_v58 = vadd.f32 %v14417_v51, %v17968_v27  ;;  %v18307_v5 = vpack.c.bf16 %v18297_v16, %v18235_v24  ;;  %v18311_v60 = vpack.c.bf16 %v18292_v20, %v18300_v61 }
 0x3c7   : > { %v18313_v44 = vmax.f32 %v4275_v49, 0.0  ;;  %v4276_v14 = vadd.f32 %v14418_v31, %v17968_v27  ;;  %v18317_v40 = vsel %vm1417_vm0, %v5302_v1, %v5304_v59  ;;  %v18320_v39 = vsel %vm1417_vm0, %v5306_v3, %v5307_v21 }
 0x3c8   : > { %21745 = vst [vmem:[#allocation66_spill] sm:$0xff] %v18307_v5  ;;  %21746 = vst [vmem:[#allocation67_spill] sm:$0xff] %v18311_v60  ;;  %v4488_v55 = vrot.slane %v18302_v52, 1  ;;  %v5316_v46 = vrot.slane %v18302_v52, 2  ;;  %v4334_v30 = vmax.f32 %v4278_v58, 0.0  ;;  %v18326_v51 = vpack.c.bf16 %v18320_v39, %v18317_v40 }
 0x3c9   : > { %21747 = vst [vmem:[#allocation68_spill] sm:$0xff] %v18313_v44  ;;  %21748 = vst [vmem:[#allocation69_spill] sm:$0xff] %v18317_v40  ;;  %v4485_v49 = vrot.slane %v18313_v44, 1  ;;  %v5313_v4 = vrot.slane %v18313_v44, 2  ;;  %v18330_v31 = vmax.f32 %v4276_v14, 0.0  ;;  %v14365_v1 = vpop.f32.mrb[28].mxu0  ;;  %v18333_v59 = vsel %vm1417_vm0, %v5307_v21, %v5309_v34 }
 0x3ca   : > { %21749 = vst [vmem:[#allocation70_spill] sm:$0xff] %v18320_v39  ;;  %21750 = vst [vmem:[#allocation71_spill] sm:$0xff] %v18326_v51  ;;  %v4490_v3 = vrot.slane %v4334_v30, 1  ;;  %v5318_v24 = vrot.slane %v4334_v30, 2  ;;  %v14419_v33 = vadd.f32 %v14365_v1, %v17861_v37  ;;  %v4077_v0 = vpop.f32.mrb[29].mxu0  ;;  %v18337_v58 = vsel %vm1417_vm0, %v5309_v34, %v5311_v29 }
 0x3cb   : > { %21751 = vst [vmem:[#allocation72_spill] sm:$0xff] %v18333_v59  ;;  %21752 = vst [vmem:[#allocation73_spill] sm:$0xff] %v18337_v58  ;;  %v4486_v40 = vrot.slane %v18330_v31, 1  ;;  %v5314_v51 = vrot.slane %v18330_v31, 2  ;;  %12660 = vmatmul.mubr.msk.bf16.gmra.mrb[76].mxu1 %vm4666_vm3, %v18211_v18  ;;  %v14420_v14 = vadd.f32 %v4077_v0, %v17865_v47  ;;  %v14366_v15 = vpop.f32.mrb[30].mxu0  ;;  %v18346_v21 = vpack.c.bf16 %v18330_v31, %v18313_v44  ;;  %v21812_v44 = vld [vmem:[#allocation7_spill] sm:$0xff] }
 0x3cc   : > { %v4281_v37 = vadd.f32 %v14419_v33, %v17968_v27  ;;  %v14421_v30 = vadd.f32 %v14366_v15, %v17867_v17  ;;  %v4080_v29 = vpop.f32.mrb[31].mxu0  ;;  %4813 = vmatprep.mubr.bf16.mxu1 %v21698_v32  ;;  %v18352_v34 = vsel %vm466_vm2, %v4488_v55, %v4490_v3  ;;  %v18356_v1 = vpack.c.bf16 %v18337_v58, %v18333_v59 }
 0x3cd   : > { %21753 = vst [vmem:[#allocation74_spill] sm:$0xff] %v18346_v21  ;;  %v4279_v47 = vadd.f32 %v14420_v14, %v17968_v27  ;;  %v14422_v0 = vadd.f32 %v4080_v29, %v17869_v56  ;;  %v18361_v18 = vsel %vm466_vm2, %v4485_v49, %v4486_v40  ;;  %v18364_v33 = vsel %vm466_vm2, %v4486_v40, %v4488_v55 }
 0x3ce   : > { %21754 = vst [vmem:[#allocation75_spill] sm:$0xff] %v18356_v1  ;;  %v18366_v17 = vmax.f32 %v4281_v37, 0.0  ;;  %v4282_v15 = vadd.f32 %v14421_v30, %v17968_v27  ;;  %v18371_v3 = vpack.c.bf16 %v18364_v33, %v18361_v18  ;;  %v18374_v1 = vsel %vm1417_vm0, %v5313_v4, %v5314_v51 }
 0x3cf   : > { %21756 = vst [vmem:[#allocation77_spill] sm:$0xff] %v18374_v1  ;;  %v18376_v14 = vmax.f32 %v4279_v47, 0.0  ;;  %v4280_v56 = vadd.f32 %v14422_v0, %v17968_v27  ;;  %v18380_v49 = vsel %vm1417_vm0, %v5314_v51, %v5316_v46  ;;  %v18383_v40 = vsel %vm1417_vm0, %v5316_v46, %v5318_v24 }
 0x3d0   : > { %21755 = vst [vmem:[#allocation76_spill] sm:$0xff] %v18371_v3  ;;  %21757 = vst [vmem:[#allocation78_spill] sm:$0xff] %v18380_v49  ;;  %v4495_v55 = vrot.slane %v18366_v17, 1  ;;  %v5323_v37 = vrot.slane %v18366_v17, 2  ;;  %v4338_v30 = vmax.f32 %v4282_v15, 0.0  ;;  %v18389_v29 = vpack.c.bf16 %v18380_v49, %v18374_v1 }
 0x3d1   : > { %21758 = vst [vmem:[#allocation79_spill] sm:$0xff] %v18383_v40  ;;  %v4492_v4 = vrot.slane %v18376_v14, 1  ;;  %v5320_v47 = vrot.slane %v18376_v14, 2  ;;  %v18393_v0 = vmax.f32 %v4280_v56, 0.0  ;;  %v14369_v51 = vpop.f32.mrb[32].mxu0  ;;  %v18397_v24 = vpack.c.bf16 %v18376_v14, %v18302_v52 }
 0x3d2   : > { %21759 = vst [vmem:[#allocation80_spill] sm:$0xff] %v18389_v29  ;;  %v4497_v46 = vrot.slane %v4338_v30, 1  ;;  %v5325_v21 = vrot.slane %v4338_v30, 2  ;;  %v14423_v22 = vadd.f32 %v14369_v51, %v17873_v38  ;;  %v4093_v15 = vpop.f32.mrb[33].mxu0 }
 0x3d3   : > { %21760 = vst [vmem:[#allocation81_spill] sm:$0xff] %v18397_v24  ;;  %v4493_v29 = vrot.slane %v18393_v0, 1  ;;  %v5321_v1 = vrot.slane %v18393_v0, 2  ;;  %12661 = vmatmul.mubr.msk.bf16.gmra.mrb[80].mxu1 %vm4666_vm3, %v18264_v50  ;;  %v14424_v56 = vadd.f32 %v4093_v15, %v17877_v41  ;;  %v14370_v58 = vpop.f32.mrb[34].mxu0  ;;  %v18409_v24 = vpack.c.bf16 %v18366_v17, %v18393_v0 }
 0x3d4   : > { %v4285_v38 = vadd.f32 %v14423_v22, %v17968_v27  ;;  %v14425_v30 = vadd.f32 %v14370_v58, %v17879_v12  ;;  %v4096_v51 = vpop.f32.mrb[35].mxu0  ;;  %4823 = vmatprep.mubr.bf16.mxu1 %v21698_v32  ;;  %v18415_v49 = vsel %vm466_vm2, %v4495_v55, %v4497_v46  ;;  %v18418_v19 = vsel %vm1417_vm0, %v5323_v37, %v5325_v21 }
 0x3d5   : > { %21761 = vst [vmem:[#allocation82_spill] sm:$0xff] %v18409_v24  ;;  %21762 = vst [vmem:[#allocation83_spill] sm:$0xff] %v18415_v49  ;;  %v4283_v41 = vadd.f32 %v14424_v56, %v17968_v27  ;;  %v14426_v15 = vadd.f32 %v4096_v51, %v17881_v43  ;;  %v18423_v50 = vsel %vm466_vm2, %v4492_v4, %v4493_v29 }
 0x3d6   : > { %21763 = vst [vmem:[#allocation84_spill] sm:$0xff] %v18423_v50  ;;  %v18426_v22 = vsel %vm466_vm2, %v4493_v29, %v4495_v55  ;;  %v18428_v12 = vmax.f32 %v4285_v38, 0.0  ;;  %v4286_v58 = vadd.f32 %v14425_v30, %v17968_v27  ;;  %v18433_v46 = vpack.c.bf16 %v18423_v50, %v18352_v34 }
 0x3d7   : > { %21764 = vst [vmem:[#allocation85_spill] sm:$0xff] %v18426_v22  ;;  %v18437_v21 = vpack.c.bf16 %v18415_v49, %v18426_v22  ;;  %v18439_v56 = vmax.f32 %v4283_v41, 0.0  ;;  %v4284_v43 = vadd.f32 %v14426_v15, %v17968_v27  ;;  %v18443_v4 = vsel %vm1417_vm0, %v5320_v47, %v5321_v1 }
 0x3d8   : > { %21765 = vst [vmem:[#allocation86_spill] sm:$0xff] %v18433_v46  ;;  %21767 = vst [vmem:[#allocation88_spill] sm:$0xff] %v18443_v4  ;;  %v18446_v55 = vsel %vm1417_vm0, %v5321_v1, %v5323_v37  ;;  %v4502_v29 = vrot.slane %v18428_v12, 1  ;;  %v5330_v38 = vrot.slane %v18428_v12, 2  ;;  %v4342_v30 = vmax.f32 %v4286_v58, 0.0 }
 0x3d9   : > { %21766 = vst [vmem:[#allocation87_spill] sm:$0xff] %v18437_v21  ;;  %v18452_v51 = vpack.c.bf16 %v18443_v4, %v18383_v40  ;;  %v4499_v41 = vrot.slane %v18439_v56, 1  ;;  %v5327_v24 = vrot.slane %v18439_v56, 2  ;;  %v18456_v15 = vmax.f32 %v4284_v43, 0.0  ;;  %v14373_v47 = vpop.f32.mrb[36].mxu0 }
 0x3da   : > { %v18460_v1 = vpack.c.bf16 %v18418_v19, %v18446_v55  ;;  %v4504_v37 = vrot.slane %v4342_v30, 1  ;;  %v5332_v53 = vrot.slane %v4342_v30, 2  ;;  %v14427_v59 = vadd.f32 %v14373_v47, %v17885_v23  ;;  %v4109_v58 = vpop.f32.mrb[37].mxu0 }
 0x3db   : > { %21768 = vst [vmem:[#allocation89_spill] sm:$0xff] %v18452_v51  ;;  %v4500_v51 = vrot.slane %v18456_v15, 1  ;;  %v5328_v40 = vrot.slane %v18456_v15, 2  ;;  %12662 = vmatmul.mubr.msk.bf16.gmra.mrb[84].mxu1 %vm4666_vm3, %v18307_v5  ;;  %v14428_v43 = vadd.f32 %v4109_v58, %v17889_v7  ;;  %v14374_v39 = vpop.f32.mrb[38].mxu0 }
 0x3dc   : > { %21769 = vst [vmem:[#allocation90_spill] sm:$0xff] %v18460_v1  ;;  %v18472_v1 = vpack.c.bf16 %v18456_v15, %v18439_v56  ;;  %v4289_v23 = vadd.f32 %v14427_v59, %v17968_v27  ;;  %v14429_v30 = vadd.f32 %v14374_v39, %v17891_v26  ;;  %v4112_v47 = vpop.f32.mrb[39].mxu0  ;;  %4833 = vmatprep.mubr.bf16.mxu1 %v21698_v32 }
 0x3dd   : > { %v18478_v4 = vsel %vm466_vm2, %v4502_v29, %v4504_v37  ;;  %v18481_v45 = vsel %vm1417_vm0, %v5330_v38, %v5332_v53  ;;  %v4287_v7 = vadd.f32 %v14428_v43, %v17968_v27  ;;  %v14430_v58 = vadd.f32 %v4112_v47, %v17893_v36 }
 0x3de   : > { %21770 = vst [vmem:[#allocation91_spill] sm:$0xff] %v18472_v1  ;;  %21771 = vst [vmem:[#allocation92_spill] sm:$0xff] %v18478_v4  ;;  %v18486_v5 = vsel %vm466_vm2, %v4499_v41, %v4500_v51  ;;  %v18489_v59 = vsel %vm466_vm2, %v4500_v51, %v4502_v29  ;;  %v18491_v26 = vmax.f32 %v4289_v23, 0.0  ;;  %v4290_v39 = vadd.f32 %v14429_v30, %v17968_v27 }
 0x3df   : > { %21772 = vst [vmem:[#allocation93_spill] sm:$0xff] %v18481_v45  ;;  %21773 = vst [vmem:[#allocation94_spill] sm:$0xff] %v18486_v5  ;;  %v18496_v37 = vpack.c.bf16 %v18489_v59, %v18486_v5  ;;  %v18499_v53 = vsel %vm1417_vm0, %v5327_v24, %v5328_v40  ;;  %v18501_v43 = vmax.f32 %v4287_v7, 0.0  ;;  %v4288_v36 = vadd.f32 %v14430_v58, %v17968_v27 }
 0x3e0   : > { %21774 = vst [vmem:[#allocation95_spill] sm:$0xff] %v18489_v59  ;;  %v18505_v41 = vsel %vm1417_vm0, %v5328_v40, %v5330_v38  ;;  %v4509_v51 = vrot.slane %v18491_v26, 1  ;;  %v5337_v23 = vrot.slane %v18491_v26, 2  ;;  %v4346_v30 = vmax.f32 %v4290_v39, 0.0  ;;  %v21833_v59 = vld [vmem:[#allocation88_spill] sm:$0xff] }
 0x3e1   : > { %21775 = vst [vmem:[#allocation96_spill] sm:$0xff] %v18496_v37  ;;  %21776 = vst [vmem:[#allocation97_spill] sm:$0xff] %v18505_v41  ;;  %v18513_v47 = vpack.c.bf16 %v18505_v41, %v18499_v53  ;;  %v4506_v24 = vrot.slane %v18501_v43, 1  ;;  %v5334_v7 = vrot.slane %v18501_v43, 2  ;;  %v18517_v58 = vmax.f32 %v4288_v36, 0.0  ;;  %v14377_v40 = vpop.f32.mrb[40].mxu0 }
 0x3e2   : > { %v18521_v38 = vpack.c.bf16 %v18501_v43, %v18428_v12  ;;  %v4511_v29 = vrot.slane %v4346_v30, 1  ;;  %v5339_v48 = vrot.slane %v4346_v30, 2  ;;  %v14431_v42 = vadd.f32 %v14377_v40, %v17897_v13  ;;  %v4125_v39 = vpop.f32.mrb[41].mxu0 }
 0x3e3   : > { %21777 = vst [vmem:[#allocation98_spill] sm:$0xff] %v18513_v47  ;;  %v4507_v47 = vrot.slane %v18517_v58, 1  ;;  %v5335_v1 = vrot.slane %v18517_v58, 2  ;;  %12663 = vmatmul.mubr.msk.bf16.gmra.mrb[88].mxu1 %vm4666_vm3, %v18311_v60  ;;  %v14432_v36 = vadd.f32 %v4125_v39, %v17901_v6  ;;  %v14378_v41 = vpop.f32.mrb[42].mxu0 }
 0x3e4   : > { %21778 = vst [vmem:[#allocation99_spill] sm:$0xff] %v18521_v38  ;;  %v18533_v38 = vpack.c.bf16 %v18491_v26, %v18517_v58  ;;  %v4293_v13 = vadd.f32 %v14431_v42, %v17968_v27  ;;  %v14433_v30 = vadd.f32 %v14378_v41, %v17903_v63  ;;  %v4128_v40 = vpop.f32.mrb[43].mxu0  ;;  %4843 = vmatprep.mubr.bf16.mxu1 %v21698_v32 }
 0x3e5   : > { %v18539_v54 = vsel %vm466_vm2, %v4509_v51, %v4511_v29  ;;  %v18542_v10 = vsel %vm1417_vm0, %v5337_v23, %v5339_v48  ;;  %v4291_v6 = vadd.f32 %v14432_v36, %v17968_v27  ;;  %v14434_v39 = vadd.f32 %v4128_v40, %v17905_v11 }
 0x3e6   : > { %21779 = vst [vmem:[#allocation100_spill] sm:$0xff] %v18533_v38  ;;  %21780 = vst [vmem:[#allocation101_spill] sm:$0xff] %v18539_v54  ;;  %v18547_v60 = vsel %vm466_vm2, %v4506_v24, %v4507_v47  ;;  %v18550_v42 = vsel %vm466_vm2, %v4507_v47, %v4509_v51  ;;  %v18552_v63 = vmax.f32 %v4293_v13, 0.0  ;;  %v4294_v41 = vadd.f32 %v14433_v30, %v17968_v27 }
 0x3e7   : > { %21781 = vst [vmem:[#allocation102_spill] sm:$0xff] %v18542_v10  ;;  %21782 = vst [vmem:[#allocation103_spill] sm:$0xff] %v18547_v60  ;;  %v18557_v29 = vpack.c.bf16 %v18547_v60, %v18478_v4  ;;  %v18561_v48 = vpack.c.bf16 %v18539_v54, %v18550_v42  ;;  %v18563_v36 = vmax.f32 %v4291_v6, 0.0  ;;  %v4292_v11 = vadd.f32 %v14434_v39, %v17968_v27  ;;  %v21831_v54 = vld [vmem:[#allocation78_spill] sm:$0xff] }
 0x3e8   : > { %21783 = vst [vmem:[#allocation104_spill] sm:$0xff] %v18550_v42  ;;  %21784 = vst [vmem:[#allocation105_spill] sm:$0xff] %v18552_v63  ;;  %v18567_v24 = vsel %vm1417_vm0, %v5334_v7, %v5335_v1  ;;  %v18570_v51 = vsel %vm1417_vm0, %v5335_v1, %v5337_v23  ;;  %v4516_v47 = vrot.slane %v18552_v63, 1  ;;  %v5344_v13 = vrot.slane %v18552_v63, 2 }
 0x3e9   : > { %21785 = vst [vmem:[#allocation106_spill] sm:$0xff] %v18557_v29  ;;  %21786 = vst [vmem:[#allocation107_spill] sm:$0xff] %v18561_v48  ;;  %v4350_v30 = vmax.f32 %v4294_v41, 0.0  ;;  %v18576_v40 = vpack.c.bf16 %v18567_v24, %v18481_v45  ;;  %v4513_v6 = vrot.slane %v18563_v36, 1  ;;  %v5341_v62 = vrot.slane %v18563_v36, 2  ;;  %v14381_v7 = vpop.f32.mrb[44].mxu0 }
 0x3ea   : > { %21787 = vst [vmem:[#allocation108_spill] sm:$0xff] %v18567_v24  ;;  %21788 = vst [vmem:[#allocation109_spill] sm:$0xff] %v18570_v51  ;;  %v18580_v39 = vmax.f32 %v4292_v11, 0.0  ;;  %v18584_v1 = vpack.c.bf16 %v18542_v10, %v18570_v51  ;;  %v14435_v48 = vadd.f32 %v14381_v7, %v17909_v2  ;;  %v4141_v41 = vpop.f32.mrb[45].mxu0 }
 0x3eb   : > { %21789 = vst [vmem:[#allocation110_spill] sm:$0xff] %v18576_v40  ;;  %v4518_v23 = vrot.slane %v4350_v30, 1  ;;  %v5346_v38 = vrot.slane %v4350_v30, 2  ;;  %12664 = vmatmul.mubr.msk.bf16.gmra.mrb[92].mxu1 %vm4666_vm3, %v18371_v3  ;;  %v14436_v11 = vadd.f32 %v4141_v41, %v17913_v28  ;;  %v14382_v45 = vpop.f32.mrb[46].mxu0  ;;  %v21793_v30 = vld [vmem:[#allocation2_spill] sm:$0xff]  ;;  %v21795_v41 = vld [vmem:[#allocation3_spill] sm:$0xff] }
 0x3ec   : > { %21790 = vst [vmem:[#allocation111_spill] sm:$0xff] %v18580_v39  ;;  %21791 = vst [vmem:[#allocation112_spill] sm:$0xff] %v18584_v1  ;;  %v4514_v40 = vrot.slane %v18580_v39, 1  ;;  %v5342_v24 = vrot.slane %v18580_v39, 2  ;;  %v18596_v1 = vpack.c.bf16 %v18580_v39, %v18563_v36  ;;  %v4297_v2 = vadd.f32 %v14435_v48, %v17968_v27  ;;  %v4144_v10 = vpop.f32.mrb[47].mxu0  ;;  %4853 = vmatprep.mubr.bf16.mxu1 %v21698_v32 }
 0x3ed   : > { %v14437_v7 = vadd.f32 %v14382_v45, %v21793_v30  ;;  %v18602_v29 = vsel %vm466_vm2, %v4516_v47, %v4518_v23  ;;  %v18605_v35 = vsel %vm1417_vm0, %v5344_v13, %v5346_v38  ;;  %v4295_v28 = vadd.f32 %v14436_v11, %v17968_v27 }
 0x3ee   : > { %21792 = vst [vmem:[#allocation113_spill] sm:$0xff] %v18596_v1  ;;  %21794 = vst [vmem:[#allocation2_spill] sm:$0xff] %v18602_v29  ;;  %v14438_v3 = vadd.f32 %v4144_v10, %v21795_v41  ;;  %v18610_v9 = vsel %vm466_vm2, %v4513_v6, %v4514_v40  ;;  %v18613_v48 = vsel %vm466_vm2, %v4514_v40, %v4516_v47  ;;  %v18615_v45 = vmax.f32 %v4297_v2, 0.0  ;;  %v21838_v22 = vld [vmem:[#allocation102_spill] sm:$0xff] }
 0x3ef   : > { %21796 = vst [vmem:[#allocation3_spill] sm:$0xff] %v18610_v9  ;;  %21797 = vst [vmem:[#allocation114_spill] sm:$0xff] %v18613_v48  ;;  %v4298_v30 = vadd.f32 %v14437_v7, %v17968_v27  ;;  %v18620_v23 = vpack.c.bf16 %v18613_v48, %v18610_v9  ;;  %v18623_v38 = vsel %vm1417_vm0, %v5341_v62, %v5342_v24  ;;  %v18625_v11 = vmax.f32 %v4295_v28, 0.0  ;;  %v21832_v9 = vld [vmem:[#allocation79_spill] sm:$0xff] }
 0x3f0   : > { %21798 = vst [vmem:[#allocation115_spill] sm:$0xff] %v18615_v45  ;;  %21800 = vst [vmem:[#allocation117_spill] sm:$0xff] %v18623_v38  ;;  %v4296_v10 = vadd.f32 %v14438_v3, %v17968_v27  ;;  %v18629_v6 = vsel %vm1417_vm0, %v5342_v24, %v5344_v13  ;;  %v4523_v40 = vrot.slane %v18615_v45, 1  ;;  %v5351_v62 = vrot.slane %v18615_v45, 2 }
 0x3f1   : > { %21799 = vst [vmem:[#allocation116_spill] sm:$0xff] %v18620_v23  ;;  %21801 = vst [vmem:[#allocation118_spill] sm:$0xff] %v18625_v11  ;;  %v4354_v2 = vmax.f32 %v4298_v30, 0.0  ;;  %v18636_v7 = vpack.c.bf16 %v18629_v6, %v18623_v38  ;;  %v4520_v28 = vrot.slane %v18625_v11, 1  ;;  %v14385_v3 = vpop.f32.mrb[48].mxu0  ;;  %v18644_v24 = vpack.c.bf16 %v18625_v11, %v18552_v63  ;;  %v21836_v49 = vld [vmem:[#allocation108_spill] sm:$0xff] }
 0x3f2   : > { %21802 = vst [vmem:[#allocation119_spill] sm:$0xff] %v18629_v6  ;;  %v18640_v41 = vmax.f32 %v4296_v10, 0.0  ;;  %v14439_v8 = vadd.f32 %v14385_v3, %v21806_v25  ;;  %v4157_v30 = vpop.f32.mrb[49].mxu0  ;;  %v21807_v10 = vld [vmem:[#allocation5_spill] sm:$0xff] }
 0x3f3   : > { %21803 = vst [vmem:[#allocation120_spill] sm:$0xff] %v18636_v7  ;;  %21805 = vst [vmem:[#allocation122_spill] sm:$0xff] %v18644_v24  ;;  %v4525_v13 = vrot.slane %v4354_v2, 1  ;;  %v5353_v47 = vrot.slane %v4354_v2, 2  ;;  %12665 = vmatmul.mubr.msk.bf16.gmra.mrb[96].mxu1 %vm4666_vm3, %v18433_v46  ;;  %v14440_v6 = vadd.f32 %v4157_v30, %v21807_v10  ;;  %v14386_v38 = vpop.f32.mrb[50].mxu0  ;;  %v21809_v2 = vld [vmem:[#allocation6_spill] sm:$0xff] }
 0x3f4   : > { %21804 = vst [vmem:[#allocation121_spill] sm:$0xff] %v18640_v41  ;;  %v4521_v7 = vrot.slane %v18640_v41, 1  ;;  %v5349_v23 = vrot.slane %v18640_v41, 2  ;;  %v18656_v24 = vpack.c.bf16 %v18615_v45, %v18640_v41  ;;  %v14441_v25 = vadd.f32 %v14386_v38, %v21809_v2  ;;  %v4160_v3 = vpop.f32.mrb[51].mxu0  ;;  %4863 = vmatprep.mubr.bf16.mxu1 %v21698_v32  ;;  %v21837_v5 = vld [vmem:[#allocation109_spill] sm:$0xff] }
 0x3f5   : > { %v18661_v1 = vsel %vm466_vm2, %v4523_v40, %v4525_v13  ;;  %v18664_v57 = vsel %vm1417_vm0, %v5351_v62, %v5353_v47  ;;  %v5348_v46 = vrot.slane %v18625_v11, 2  ;;  %v14442_v30 = vadd.f32 %v4160_v3, %v21812_v44 }
 0x3f6   : > { %21808 = vst [vmem:[#allocation4_spill] sm:$0xff] %v18656_v24  ;;  %21810 = vst [vmem:[#allocation5_spill] sm:$0xff] %v18661_v1  ;;  %v18669_v10 = vsel %vm466_vm2, %v4520_v28, %v4521_v7  ;;  %v18672_v24 = vsel %vm466_vm2, %v4521_v7, %v4523_v40  ;;  %v4301_v38 = vadd.f32 %v14439_v8, %v17968_v27 }
 0x3f7   : > { %21811 = vst [vmem:[#allocation6_spill] sm:$0xff] %v18664_v57  ;;  %21813 = vst [vmem:[#allocation7_spill] sm:$0xff] %v18669_v10  ;;  %v4299_v2 = vadd.f32 %v14440_v6, %v17968_v27  ;;  %v18678_v13 = vpack.c.bf16 %v18669_v10, %v18602_v29  ;;  %v18682_v47 = vpack.c.bf16 %v18661_v1, %v18672_v24  ;;  %v21835_v1 = vld [vmem:[#allocation93_spill] sm:$0xff]  ;;  %v21841_v29 = vld [vmem:[#allocation106_spill] sm:$0xff] }
 0x3f8   : > { %21814 = vst [vmem:[#allocation123_spill] sm:$0xff] %v18672_v24  ;;  %v4302_v44 = vadd.f32 %v14441_v25, %v17968_v27  ;;  %v4300_v28 = vadd.f32 %v14442_v30, %v17968_v27  ;;  %v18687_v3 = vsel %vm1417_vm0, %v5348_v46, %v5349_v23  ;;  %v18690_v40 = vsel %vm1417_vm0, %v5349_v23, %v5351_v62  ;;  %v21820_v30 = vld [vmem:[#allocation8_spill] sm:$0xff]  ;;  %v21839_v24 = vld [vmem:[#allocation117_spill] sm:$0xff] }
 0x3f9   : > { %21815 = vst [vmem:[#allocation124_spill] sm:$0xff] %v18678_v13  ;;  %21816 = vst [vmem:[#allocation125_spill] sm:$0xff] %v18682_v47  ;;  %v18694_v8 = vpack.c.bf16 %v18687_v3, %v18605_v35  ;;  %v14389_v6 = vpop.f32.mrb[52].mxu0  ;;  %v18698_v7 = vpack.c.bf16 %v18664_v57, %v18690_v40  ;;  %v18700_v47 = vmax.f32 %v4301_v38, 0.0  ;;  %v18702_v25 = vmax.f32 %v4299_v2, 0.0  ;;  %v21925_v10 = vld [vmem:[#allocation48_spill] sm:$0xff] }
 0x3fa   : > { %21817 = vst [vmem:[#allocation126_spill] sm:$0xff] %v18687_v3  ;;  %v14443_v13 = vadd.f32 %v14389_v6, %v21820_v30  ;;  %v4173_v46 = vpop.f32.mrb[53].mxu0  ;;  %v4358_v62 = vmax.f32 %v4302_v44, 0.0  ;;  %v18707_v51 = vmax.f32 %v4300_v28, 0.0 }
 0x3fb   : > { %21818 = vst [vmem:[#allocation127_spill] sm:$0xff] %v18694_v8  ;;  %21819 = vst [vmem:[#allocation128_spill] sm:$0xff] %v18698_v7  ;;  %12666 = vmatmul.mubr.msk.bf16.gmra.mrb[100].mxu1 %vm4666_vm3, %v18437_v21  ;;  %v21821_v8 = vld [vmem:[#allocation9_spill] sm:$0xff]  ;;  %v14390_v57 = vpop.f32.mrb[54].mxu0  ;;  %v21822_v7 = vld [vmem:[#allocation10_spill] sm:$0xff]  ;;  %v6731_v44 = vrot.slane %v18702_v25, 2 }
 0x3fc   : > { %v14444_v3 = vadd.f32 %v4173_v46, %v21821_v8  ;;  %v4305_v2 = vadd.f32 %v14443_v13, %v17968_v27  ;;  %v14445_v6 = vadd.f32 %v14390_v57, %v21822_v7  ;;  %v4176_v30 = vpop.f32.mrb[55].mxu0  ;;  %4873 = vmatprep.mubr.bf16.mxu1 %v21698_v32  ;;  %v21823_v8 = vld [vmem:[#allocation11_spill] sm:$0xff]  ;;  %v6279_v13 = vrot.slane %v18702_v25, 1 }
 0x3fd   : > { %v14446_v46 = vadd.f32 %v4176_v30, %v21823_v8  ;;  %v6284_v38 = vrot.slane %v4358_v62, 1  ;;  %v6736_v28 = vrot.slane %v4358_v62, 2 }
 0x3fe   : > { %v4303_v23 = vadd.f32 %v14444_v3, %v17968_v27  ;;  %v18727_v57 = vmax.f32 %v4305_v2, 0.0  ;;  %v4306_v7 = vadd.f32 %v14445_v6, %v17968_v27  ;;  %v6282_v2 = vrot.slane %v18700_v47, 1 }
 0x3ff   : > { %v4304_v3 = vadd.f32 %v14446_v46, %v17968_v27  ;;  %v6734_v6 = vrot.slane %v18700_v47, 2  ;;  %v6732_v27 = vrot.slane %v18707_v51, 2 }
 0x400   : > { %21824 = vst [vmem:[#allocation8_spill] sm:$0xff] %v18727_v57  ;;  %v18734_v21 = vmax.f32 %v4303_v23, 0.0  ;;  %v6280_v23 = vrot.slane %v18707_v51, 1  ;;  %v7572_v46 = vrot.slane %v18727_v57, 1  ;;  %v7964_v30 = vrot.slane %v18727_v57, 2  ;;  %v21879_v57 = vld [vmem:[#allocation122_spill] sm:$0xff] }
 0x401   : > { %v4362_v45 = vmax.f32 %v4306_v7, 0.0  ;;  %v18750_v11 = vmax.f32 %v4304_v3, 0.0  ;;  %v18782_v3 = vsel %vm466_vm2, %v6282_v2, %v6284_v38  ;;  %v21830_v38 = vld [vmem:[#allocation77_spill] sm:$0xff]  ;;  %v21842_v42 = vld [vmem:[#allocation126_spill] sm:$0xff]  ;;  %v18814_v62 = vsel %vm1417_vm0, %v6731_v44, %v6732_v27 }
 0x402   : > { %21825 = vst [vmem:[#allocation9_spill] sm:$0xff] %v18734_v21  ;;  %v7569_v8 = vrot.slane %v18734_v21, 1  ;;  %v18776_v63 = vsel %vm466_vm2, %v6279_v13, %v6280_v23  ;;  %v18779_v7 = vsel %vm466_vm2, %v6280_v23, %v6282_v2  ;;  %v7961_v41 = vrot.slane %v18734_v21, 2  ;;  %v21840_v23 = vld [vmem:[#allocation119_spill] sm:$0xff]  ;;  %21843 = vst [vmem:[#allocation11_spill] sm:$0xff] %v18814_v62  ;;  %v21858_v44 = vld [vmem:[#allocation13_spill] sm:$0xff] }
 0x403   : > { %21826 = vst [vmem:[#allocation10_spill] sm:$0xff] %v18750_v11  ;;  %12667 = vmatmul.mubr.msk.bf16.gmra.mrb[104].mxu1 %vm4666_vm3, %v18496_v37  ;;  %v7574_v60 = vrot.slane %v4362_v45, 1  ;;  %v7966_v48 = vrot.slane %v4362_v45, 2  ;;  %v7570_v39 = vrot.slane %v18750_v11, 1  ;;  %v7962_v13 = vrot.slane %v18750_v11, 2  ;;  %v21834_v45 = vld [vmem:[#allocation97_spill] sm:$0xff] }
 0x404   : > { %4883 = vmatprep.mubr.bf16.mxu1 %v21698_v32  ;;  %v18817_v4 = vsel %vm1417_vm0, %v6732_v27, %v6734_v6  ;;  %v18820_v50 = vsel %vm1417_vm0, %v6734_v6, %v6736_v28  ;;  %v21878_v11 = vld [vmem:[#allocation113_spill] sm:$0xff]  ;;  %v21880_v21 = vld [vmem:[#allocation4_spill] sm:$0xff] }
 0x405   : > { %21844 = vst [vmem:[#allocation77_spill] sm:$0xff] %v18817_v4  ;;  %21845 = vst [vmem:[#allocation78_spill] sm:$0xff] %v18820_v50  ;;  %v18836_v6 = vsel %vm466_vm2, %v7569_v8, %v7570_v39  ;;  %v18839_v2 = vsel %vm466_vm2, %v7570_v39, %v7572_v46  ;;  %v18844_v37 = vsel %vm466_vm2, %v7572_v46, %v7574_v60  ;;  %v21853_v46 = vld [vmem:[#allocation107_spill] sm:$0xff]  ;;  %v21855_v8 = vld [vmem:[#allocation124_spill] sm:$0xff] }
 0x406   : > { %21847 = vst [vmem:[#allocation79_spill] sm:$0xff] %v18836_v6  ;;  %21848 = vst [vmem:[#allocation88_spill] sm:$0xff] %v18839_v2  ;;  %v18849_v27 = vsel %vm1417_vm0, %v7961_v41, %v7962_v13  ;;  %v18856_v39 = vsel %vm1417_vm0, %v7962_v13, %v7964_v30  ;;  %v21854_v41 = vld [vmem:[#allocation116_spill] sm:$0xff]  ;;  %v21857_v60 = vld [vmem:[#allocation14_spill] sm:$0xff] }
 0x407   : > { %21849 = vst [vmem:[#allocation97_spill] sm:$0xff] %v18844_v37  ;;  %21850 = vst [vmem:[#allocation93_spill] sm:$0xff] %v18849_v27  ;;  %v15830_v13 = vld [vmem:[%s21267_s2 + $0xf4] ss:$8 sps:$4 sm:$0xff]   ;;  %v21859_v28 = vpack.c.bf16 %v21857_v60, %v21858_v44  ;;  %v15831_v27 = vld [vmem:[%s21267_s2 + $0x100] ss:$8 sps:$4 sm:$0xff]  }
 0x408   : > { %21851 = vst [vmem:[#allocation108_spill] sm:$0xff] %v18856_v39  ;;  %v15828_v39 = vld [vmem:[%s21267_s2 + $0xf0] ss:$8 sps:$4 sm:$0xff]   ;;  %v15836_v44 = vld [vmem:[%s21267_s2 + $0x114] ss:$8 sps:$4 sm:$0xff]   ;;  %v21870_v37 = vld [vmem:[#allocation63_spill] sm:$0xff] }
 0x409   : > { %v21861_v60 = vld [vmem:[#allocation12_spill] sm:$0xff]  ;;  %v21873_v6 = vld [vmem:[#allocation81_spill] sm:$0xff]  ;;  %v15873_v50 = vld [vmem:[%s21267_s2 + $0x1e0] ss:$8 sps:$4 sm:$0xff]  }
 0x40a   : > { %v21904_v4 = vld [vmem:[#allocation89_spill] sm:$0xff] }
 0x40b   : > { %12668 = vmatmul.mubr.msk.bf16.gmra.mrb[108].mxu1 %vm4666_vm3, %v21841_v29  ;;  %v18859_v29 = vsel %vm1417_vm0, %v7964_v30, %v7966_v48  ;;  %v21856_v48 = vld [vmem:[#allocation125_spill] sm:$0xff]  ;;  %v15825_v30 = vld [vmem:[%s21267_s2 + $0xe0] ss:$8 sps:$4 sm:$0xff]  }
 0x40c   : > { %4893 = vmatprep.mubr.bf16.mxu1 %v21698_v32  ;;  %21852 = vst [vmem:[#allocation109_spill] sm:$0xff] %v18859_v29  ;;  %v15833_v29 = vld [vmem:[%s21267_s2 + $0x104] ss:$8 sps:$4 sm:$0xff]  }
 0x413   : > { %12669 = vmatmul.mubr.msk.bf16.gmra.mrb[112].mxu1 %vm4666_vm3, %v21853_v46  ;;  %v21877_v46 = vld [vmem:[#allocation100_spill] sm:$0xff] }
 0x414   : > { %4903 = vmatprep.mubr.bf16.mxu1 %v21698_v32 }
 0x41b   : > { %12670 = vmatmul.mubr.msk.bf16.gmra.mrb[116].mxu1 %vm4666_vm3, %v21854_v41  ;;  %v21876_v41 = vld [vmem:[#allocation99_spill] sm:$0xff] }
 0x41c   : > { %4913 = vmatprep.mubr.bf16.mxu1 %v21698_v32 }
 0x423   : > { %12671 = vmatmul.mubr.msk.bf16.gmra.mrb[120].mxu1 %vm4666_vm3, %v21855_v8  ;;  %v21875_v8 = vld [vmem:[#allocation91_spill] sm:$0xff] }
 0x424   : > { %4923 = vmatprep.mubr.bf16.mxu1 %v21698_v32 }
 0x42b   : > { %12672 = vmatmul.mubr.msk.bf16.gmra.mrb[124].mxu1 %vm4666_vm3, %v21856_v48  ;;  %v21874_v48 = vld [vmem:[#allocation82_spill] sm:$0xff] }
 0x42c   : > { %5090 = vmatprep.mubr.bf16.mxu1 %v21698_v32 }
 0x433   : > { %12687 = vmatmul.mubr.msk.bf16.vlgmr.msra.gmra.mrb[56].mxu1 %vm4666_vm3, %v21859_v28  ;;  %v21860_v28 = vld [vmem:[#allocation23_spill] sm:$0xff] }
 0x434   : > { %5549 = vmatpush1.bf16.msra.mxu1 %v15825_v30  ;;  %5100 = vmatprep.mubr.bf16.mxu1 %v21698_v32  ;;  %v21862_v30 = vpack.c.bf16 %v21860_v28, %v21861_v60  ;;  %v15842_v60 = vld [vmem:[%s21267_s2 + $0x134] ss:$8 sps:$4 sm:$0xff]  }
 0x435   : > { %5550 = vmatprep.subr.bf16.mxu1 %v15830_v13  ;;  %v15837_v13 = vld [vmem:[%s21267_s2 + $0x120] ss:$8 sps:$4 sm:$0xff]  }
 0x438   : > { %5551 = vmatpush1.bf16.msra.mxu1 %v15828_v39  ;;  %v15834_v39 = vld [vmem:[%s21267_s2 + $0x110] ss:$8 sps:$4 sm:$0xff]  }
 0x439   : > { %5552 = vmatprep.subr.bf16.mxu1 %v15833_v29  ;;  %v15839_v29 = vld [vmem:[%s21267_s2 + $0x124] ss:$8 sps:$4 sm:$0xff]  }
 0x43b   : > { %12688 = vmatmul.mubr.msk.bf16.gmra.mrb[60].mxu1 %vm4666_vm3, %v21862_v30  ;;  %v21864_v30 = vld [vmem:[#allocation24_spill] sm:$0xff] }
 0x43c   : > { %5110 = vmatprep.mubr.bf16.mxu1 %v21698_v32  ;;  %5553 = vmatpush1.bf16.msra.mxu1 %v15831_v27  ;;  %v21863_v27 = vld [vmem:[#allocation22_spill] sm:$0xff] }
 0x43d   : > { %5554 = vmatprep.subr.bf16.mxu1 %v15836_v44  ;;  %v21865_v2 = vpack.c.bf16 %v21863_v27, %v21864_v30  ;;  %v15840_v44 = vld [vmem:[%s21267_s2 + $0x130] ss:$8 sps:$4 sm:$0xff]  }
 0x440   : > { %5555 = vmatpush1.bf16.msra.mxu1 %v15834_v39  ;;  %v15845_v39 = vld [vmem:[%s21267_s2 + $0x144] ss:$8 sps:$4 sm:$0xff]  }
 0x441   : > { %5556 = vmatprep.subr.bf16.mxu1 %v15839_v29  ;;  %v15843_v29 = vld [vmem:[%s21267_s2 + $0x140] ss:$8 sps:$4 sm:$0xff]  }
 0x443   : > { %12689 = vmatmul.mubr.msk.bf16.gmra.mrb[64].mxu1 %vm4666_vm3, %v21865_v2  ;;  %v15848_v2 = vld [vmem:[%s21267_s2 + $0x154] ss:$8 sps:$4 sm:$0xff]  }
 0x444   : > { %5120 = vmatprep.mubr.bf16.mxu1 %v21698_v32  ;;  %5557 = vmatpush1.bf16.msra.mxu1 %v15837_v13  ;;  %v21866_v13 = vld [vmem:[#allocation34_spill] sm:$0xff] }
 0x445   : > { %5558 = vmatprep.subr.bf16.mxu1 %v15842_v60  ;;  %v21867_v60 = vld [vmem:[#allocation41_spill] sm:$0xff] }
 0x448   : > { %5559 = vmatpush1.bf16.msra.mxu1 %v15840_v44  ;;  %v21868_v44 = vld [vmem:[#allocation43_spill] sm:$0xff] }
 0x449   : > { %5560 = vmatprep.subr.bf16.mxu1 %v15845_v39  ;;  %v21869_v39 = vld [vmem:[#allocation52_spill] sm:$0xff] }
 0x44b   : > { %12690 = vmatmul.mubr.msk.bf16.gmra.mrb[68].mxu1 %vm4666_vm3, %v21866_v13  ;;  %v21902_v13 = vld [vmem:[#allocation75_spill] sm:$0xff] }
 0x44c   : > { %5130 = vmatprep.mubr.bf16.mxu1 %v21698_v32  ;;  %5561 = vmatpush1.bf16.msra.mxu1 %v15843_v29  ;;  %v21871_v29 = vld [vmem:[#allocation65_spill] sm:$0xff] }
 0x44d   : > { %5990 = vmatprep.subr.bf16.mxu1 %v15848_v2  ;;  %v21872_v2 = vld [vmem:[#allocation74_spill] sm:$0xff] }
 0x453   : > { %12691 = vmatmul.mubr.msk.bf16.gmra.mrb[72].mxu1 %vm4666_vm3, %v21867_v60 }
 0x454   : > { %5140 = vmatprep.mubr.bf16.mxu1 %v21698_v32 }
 0x45b   : > { %12692 = vmatmul.mubr.msk.bf16.gmra.mrb[76].mxu1 %vm4666_vm3, %v21868_v44  ;;  %v21896_v44 = vld [vmem:[#allocation59_spill] sm:$0xff] }
 0x45c   : > { %5150 = vmatprep.mubr.bf16.mxu1 %v21698_v32 }
 0x463   : > { %12693 = vmatmul.mubr.msk.bf16.gmra.mrb[80].mxu1 %vm4666_vm3, %v21869_v39 }
 0x464   : > { %5160 = vmatprep.mubr.bf16.mxu1 %v21698_v32 }
 0x46b   : > { %12694 = vmatmul.mubr.msk.bf16.gmra.mrb[84].mxu1 %vm4666_vm3, %v21870_v37  ;;  %v21890_v37 = vld [vmem:[#allocation20_spill] sm:$0xff] }
 0x46c   : > { %5170 = vmatprep.mubr.bf16.mxu1 %v21698_v32 }
 0x473   : > { %12695 = vmatmul.mubr.msk.bf16.gmra.mrb[88].mxu1 %vm4666_vm3, %v21871_v29  ;;  %v21889_v29 = vld [vmem:[#allocation19_spill] sm:$0xff] }
 0x474   : > { %5180 = vmatprep.mubr.bf16.mxu1 %v21698_v32 }
 0x47b   : > { %12696 = vmatmul.mubr.msk.bf16.gmra.mrb[92].mxu1 %vm4666_vm3, %v21872_v2  ;;  %v21888_v2 = vld [vmem:[#allocation39_spill] sm:$0xff] }
 0x47c   : > { %5190 = vmatprep.mubr.bf16.mxu1 %v21698_v32 }
 0x483   : > { %12697 = vmatmul.mubr.msk.bf16.gmra.mrb[96].mxu1 %vm4666_vm3, %v21873_v6  ;;  %v15852_v6 = vld [vmem:[%s21267_s2 + $0x170] ss:$8 sps:$4 sm:$0xff]  }
 0x484   : > { %5200 = vmatprep.mubr.bf16.mxu1 %v21698_v32 }
 0x48b   : > { %12698 = vmatmul.mubr.msk.bf16.gmra.mrb[100].mxu1 %vm4666_vm3, %v21874_v48 }
 0x48c   : > { %5210 = vmatprep.mubr.bf16.mxu1 %v21698_v32 }
 0x493   : > { %12699 = vmatmul.mubr.msk.bf16.gmra.mrb[104].mxu1 %vm4666_vm3, %v21875_v8  ;;  %v21882_v8 = vld [vmem:[#allocation16_spill] sm:$0xff] }
 0x494   : > { %5220 = vmatprep.mubr.bf16.mxu1 %v21698_v32 }
 0x49b   : > { %12700 = vmatmul.mubr.msk.bf16.gmra.mrb[108].mxu1 %vm4666_vm3, %v21876_v41  ;;  %v21881_v41 = vld [vmem:[#allocation21_spill] sm:$0xff] }
 0x49c   : > { %5230 = vmatprep.mubr.bf16.mxu1 %v21698_v32  ;;  %v21883_v48 = vpack.c.bf16 %v21881_v41, %v21882_v8  ;;  %v15857_v8 = vld [vmem:[%s21267_s2 + $0x184] ss:$8 sps:$4 sm:$0xff]  }
 0x49d   : > { %v21885_v41 = vld [vmem:[#allocation15_spill] sm:$0xff] }
 0x4a3   : > { %12701 = vmatmul.mubr.msk.bf16.gmra.mrb[112].mxu1 %vm4666_vm3, %v21877_v46  ;;  %v15846_v46 = vld [vmem:[%s21267_s2 + $0x150] ss:$8 sps:$4 sm:$0xff]  }
 0x4a4   : > { %5240 = vmatprep.mubr.bf16.mxu1 %v21698_v32 }
 0x4ab   : > { %12702 = vmatmul.mubr.msk.bf16.gmra.mrb[116].mxu1 %vm4666_vm3, %v21878_v11  ;;  %v15851_v11 = vld [vmem:[%s21267_s2 + $0x164] ss:$8 sps:$4 sm:$0xff]  }
 0x4ac   : > { %5250 = vmatprep.mubr.bf16.mxu1 %v21698_v32 }
 0x4b3   : > { %12703 = vmatmul.mubr.msk.bf16.gmra.mrb[120].mxu1 %vm4666_vm3, %v21879_v57  ;;  %v15854_v57 = vld [vmem:[%s21267_s2 + $0x174] ss:$8 sps:$4 sm:$0xff]  }
 0x4b4   : > { %5260 = vmatprep.mubr.bf16.mxu1 %v21698_v32 }
 0x4bb   : > { %12704 = vmatmul.mubr.msk.bf16.gmra.mrb[124].mxu1 %vm4666_vm3, %v21880_v21  ;;  %v15849_v21 = vld [vmem:[%s21267_s2 + $0x160] ss:$8 sps:$4 sm:$0xff]  }
 0x4bc   : > { %5580 = vmatprep.mubr.bf16.mxu1 %v21698_v32 }
 0x4c3   : > { %12733 = vmatmul.mubr.msk.bf16.vlgmr.msra.gmra.mrb[56].mxu1 %vm4666_vm3, %v21883_v48 }
 0x4c4   : > { %5991 = vmatpush1.bf16.msra.mxu1 %v15846_v46  ;;  %5590 = vmatprep.mubr.bf16.mxu1 %v21698_v32  ;;  %v21884_v46 = vld [vmem:[#allocation31_spill] sm:$0xff] }
 0x4c5   : > { %5992 = vmatprep.subr.bf16.mxu1 %v15851_v11  ;;  %v21886_v48 = vpack.c.bf16 %v21884_v46, %v21885_v41  ;;  %v15860_v11 = vld [vmem:[%s21267_s2 + $0x194] ss:$8 sps:$4 sm:$0xff]  }
 0x4c6   : > { %v21887_v41 = vld [vmem:[#allocation32_spill] sm:$0xff] }
 0x4c8   : > { %5993 = vmatpush1.bf16.msra.mxu1 %v15849_v21  ;;  %v15855_v21 = vld [vmem:[%s21267_s2 + $0x180] ss:$8 sps:$4 sm:$0xff]  }
 0x4c9   : > { %5994 = vmatprep.subr.bf16.mxu1 %v15854_v57  ;;  %v15858_v57 = vld [vmem:[%s21267_s2 + $0x190] ss:$8 sps:$4 sm:$0xff]  }
 0x4cb   : > { %12734 = vmatmul.mubr.msk.bf16.gmra.mrb[60].mxu1 %vm4666_vm3, %v21886_v48  ;;  %v5393_v48 = vpack.c.bf16 %v21888_v2, %v21887_v41 }
 0x4cc   : > { %5600 = vmatprep.mubr.bf16.mxu1 %v21698_v32  ;;  %5995 = vmatpush1.bf16.msra.mxu1 %v15852_v6  ;;  %v15863_v6 = vld [vmem:[%s21267_s2 + $0x1a4] ss:$8 sps:$4 sm:$0xff]  }
 0x4cd   : > { %5996 = vmatprep.subr.bf16.mxu1 %v15857_v8  ;;  %v15861_v8 = vld [vmem:[%s21267_s2 + $0x1a0] ss:$8 sps:$4 sm:$0xff]  }
 0x4d0   : > { %5997 = vmatpush1.bf16.msra.mxu1 %v15855_v21  ;;  %v15866_v21 = vld [vmem:[%s21267_s2 + $0x1b4] ss:$8 sps:$4 sm:$0xff]  }
 0x4d1   : > { %5998 = vmatprep.subr.bf16.mxu1 %v15860_v11  ;;  %v15864_v11 = vld [vmem:[%s21267_s2 + $0x1b0] ss:$8 sps:$4 sm:$0xff]  }
 0x4d3   : > { %12735 = vmatmul.mubr.msk.bf16.gmra.mrb[64].mxu1 %vm4666_vm3, %v5393_v48  ;;  %v19032_v48 = vpack.c.bf16 %v21890_v37, %v21889_v29 }
 0x4d4   : > { %5610 = vmatprep.mubr.bf16.mxu1 %v21698_v32  ;;  %5999 = vmatpush1.bf16.msra.mxu1 %v15858_v57  ;;  %v15869_v57 = vld [vmem:[%s21267_s2 + $0x1c4] ss:$8 sps:$4 sm:$0xff]  }
 0x4d5   : > { %6000 = vmatprep.subr.bf16.mxu1 %v15863_v6  ;;  %21891 = vst [vmem:[#allocation102_spill] sm:$0xff] %v19032_v48  ;;  %v21892_v6 = vld [vmem:[#allocation50_spill] sm:$0xff] }
 0x4d8   : > { %6001 = vmatpush1.bf16.msra.mxu1 %v15861_v8  ;;  %v21893_v8 = vld [vmem:[#allocation51_spill] sm:$0xff] }
 0x4d9   : > { %6002 = vmatprep.subr.bf16.mxu1 %v15866_v21  ;;  %v19042_v39 = vpack.c.bf16 %v21893_v8, %v21892_v6  ;;  %v21895_v21 = vld [vmem:[#allocation57_spill] sm:$0xff] }
 0x4da   : > { %v19049_v60 = vpack.c.bf16 %v21896_v44, %v21895_v21 }
 0x4db   : > { %12736 = vmatmul.mubr.msk.bf16.gmra.mrb[68].mxu1 %vm4666_vm3, %v19032_v48  ;;  %21894 = vst [vmem:[#allocation117_spill] sm:$0xff] %v19042_v39 }
 0x4dc   : > { %5620 = vmatprep.mubr.bf16.mxu1 %v21698_v32  ;;  %6003 = vmatpush1.bf16.msra.mxu1 %v15864_v11  ;;  %21897 = vst [vmem:[#allocation119_spill] sm:$0xff] %v19049_v60  ;;  %v21898_v11 = vld [vmem:[#allocation60_spill] sm:$0xff] }
 0x4dd   : > { %6446 = vmatprep.subr.bf16.mxu1 %v15869_v57  ;;  %v21899_v57 = vld [vmem:[#allocation64_spill] sm:$0xff] }
 0x4de   : > { %v19056_v48 = vpack.c.bf16 %v21899_v57, %v21898_v11 }
 0x4e0   : > { %21900 = vst [vmem:[#allocation126_spill] sm:$0xff] %v19056_v48 }
 0x4e3   : > { %12737 = vmatmul.mubr.msk.bf16.gmra.mrb[72].mxu1 %vm4666_vm3, %v19042_v39  ;;  %v21901_v39 = vld [vmem:[#allocation71_spill] sm:$0xff] }
 0x4e4   : > { %5630 = vmatprep.mubr.bf16.mxu1 %v21698_v32 }
 0x4eb   : > { %12738 = vmatmul.mubr.msk.bf16.gmra.mrb[76].mxu1 %vm4666_vm3, %v19049_v60  ;;  %v21903_v60 = vld [vmem:[#allocation80_spill] sm:$0xff] }
 0x4ec   : > { %5640 = vmatprep.mubr.bf16.mxu1 %v21698_v32 }
 0x4f3   : > { %12739 = vmatmul.mubr.msk.bf16.gmra.mrb[80].mxu1 %vm4666_vm3, %v19056_v48  ;;  %v21905_v48 = vld [vmem:[#allocation90_spill] sm:$0xff] }
 0x4f4   : > { %5650 = vmatprep.mubr.bf16.mxu1 %v21698_v32 }
 0x4fb   : > { %12740 = vmatmul.mubr.msk.bf16.gmra.mrb[84].mxu1 %vm4666_vm3, %v21901_v39  ;;  %v21906_v39 = vld [vmem:[#allocation98_spill] sm:$0xff] }
 0x4fc   : > { %5660 = vmatprep.mubr.bf16.mxu1 %v21698_v32 }
 0x503   : > { %12741 = vmatmul.mubr.msk.bf16.gmra.mrb[88].mxu1 %vm4666_vm3, %v21902_v13  ;;  %v21907_v13 = vld [vmem:[#allocation110_spill] sm:$0xff] }
 0x504   : > { %5670 = vmatprep.mubr.bf16.mxu1 %v21698_v32 }
 0x50b   : > { %12742 = vmatmul.mubr.msk.bf16.gmra.mrb[92].mxu1 %vm4666_vm3, %v21903_v60  ;;  %v21908_v60 = vld [vmem:[#allocation112_spill] sm:$0xff] }
 0x50c   : > { %5680 = vmatprep.mubr.bf16.mxu1 %v21698_v32 }
 0x513   : > { %12743 = vmatmul.mubr.msk.bf16.gmra.mrb[96].mxu1 %vm4666_vm3, %v21904_v4  ;;  %v21909_v4 = vld [vmem:[#allocation120_spill] sm:$0xff] }
 0x514   : > { %5690 = vmatprep.mubr.bf16.mxu1 %v21698_v32 }
 0x51b   : > { %12744 = vmatmul.mubr.msk.bf16.gmra.mrb[100].mxu1 %vm4666_vm3, %v21905_v48  ;;  %v21910_v48 = vld [vmem:[#allocation127_spill] sm:$0xff] }
 0x51c   : > { %5700 = vmatprep.mubr.bf16.mxu1 %v21698_v32 }
 0x523   : > { %12745 = vmatmul.mubr.msk.bf16.gmra.mrb[104].mxu1 %vm4666_vm3, %v21906_v39  ;;  %v21911_v39 = vld [vmem:[#allocation128_spill] sm:$0xff] }
 0x524   : > { %5710 = vmatprep.mubr.bf16.mxu1 %v21698_v32 }
 0x52b   : > { %12746 = vmatmul.mubr.msk.bf16.gmra.mrb[108].mxu1 %vm4666_vm3, %v21907_v13  ;;  %v21912_v13 = vpack.c.bf16 %v21864_v30, %v21860_v28  ;;  %v15878_v28 = vld [vmem:[%s21267_s2 + $0x1f4] ss:$8 sps:$4 sm:$0xff]  }
 0x52c   : > { %5720 = vmatprep.mubr.bf16.mxu1 %v21698_v32  ;;  %v21913_v30 = vld [vmem:[#allocation29_spill] sm:$0xff] }
 0x533   : > { %12747 = vmatmul.mubr.msk.bf16.gmra.mrb[112].mxu1 %vm4666_vm3, %v21908_v60  ;;  %v15867_v60 = vld [vmem:[%s21267_s2 + $0x1c0] ss:$8 sps:$4 sm:$0xff]  }
 0x534   : > { %5730 = vmatprep.mubr.bf16.mxu1 %v21698_v32 }
 0x53b   : > { %12748 = vmatmul.mubr.msk.bf16.gmra.mrb[116].mxu1 %vm4666_vm3, %v21909_v4  ;;  %v15872_v4 = vld [vmem:[%s21267_s2 + $0x1d4] ss:$8 sps:$4 sm:$0xff]  }
 0x53c   : > { %5740 = vmatprep.mubr.bf16.mxu1 %v21698_v32 }
 0x543   : > { %12749 = vmatmul.mubr.msk.bf16.gmra.mrb[120].mxu1 %vm4666_vm3, %v21910_v48  ;;  %v15875_v48 = vld [vmem:[%s21267_s2 + $0x1e4] ss:$8 sps:$4 sm:$0xff]  }
 0x544   : > { %5750 = vmatprep.mubr.bf16.mxu1 %v21698_v32 }
 0x54b   : > { %12750 = vmatmul.mubr.msk.bf16.gmra.mrb[124].mxu1 %vm4666_vm3, %v21911_v39  ;;  %v15870_v39 = vld [vmem:[%s21267_s2 + $0x1d0] ss:$8 sps:$4 sm:$0xff]  }
 0x54c   : > { %6022 = vmatprep.mubr.bf16.mxu1 %v21698_v32 }
 0x553   : > { %12779 = vmatmul.mubr.msk.bf16.vlgmr.msra.gmra.mrb[56].mxu1 %vm4666_vm3, %v21912_v13  ;;  %v21914_v13 = vpack.c.bf16 %v21913_v30, %v21863_v27  ;;  %v15884_v27 = vld [vmem:[%s21267_s2 + $0x214] ss:$8 sps:$4 sm:$0xff]  }
 0x554   : > { %6447 = vmatpush1.bf16.msra.mxu1 %v15867_v60  ;;  %6032 = vmatprep.mubr.bf16.mxu1 %v21698_v32  ;;  %v15881_v60 = vld [vmem:[%s21267_s2 + $0x204] ss:$8 sps:$4 sm:$0xff]  }
 0x555   : > { %6448 = vmatprep.subr.bf16.mxu1 %v15872_v4  ;;  %v15876_v4 = vld [vmem:[%s21267_s2 + $0x1f0] ss:$8 sps:$4 sm:$0xff]  }
 0x558   : > { %6449 = vmatpush1.bf16.msra.mxu1 %v15870_v39  ;;  %v15879_v39 = vld [vmem:[%s21267_s2 + $0x200] ss:$8 sps:$4 sm:$0xff]  }
 0x559   : > { %6450 = vmatprep.subr.bf16.mxu1 %v15875_v48  ;;  %v21916_v48 = vld [vmem:[#allocation30_spill] sm:$0xff] }
 0x55b   : > { %12780 = vmatmul.mubr.msk.bf16.gmra.mrb[60].mxu1 %vm4666_vm3, %v21914_v13  ;;  %v15887_v13 = vld [vmem:[%s21267_s2 + $0x224] ss:$8 sps:$4 sm:$0xff]  }
 0x55c   : > { %6042 = vmatprep.mubr.bf16.mxu1 %v21698_v32  ;;  %6451 = vmatpush1.bf16.msra.mxu1 %v15873_v50  ;;  %v21915_v50 = vld [vmem:[#allocation25_spill] sm:$0xff] }
 0x55d   : > { %6452 = vmatprep.subr.bf16.mxu1 %v15878_v28  ;;  %v21917_v30 = vpack.c.bf16 %v21915_v50, %v21916_v48  ;;  %v15882_v28 = vld [vmem:[%s21267_s2 + $0x210] ss:$8 sps:$4 sm:$0xff]   ;;  %v21919_v50 = vld [vmem:[#allocation38_spill] sm:$0xff] }
 0x560   : > { %6453 = vmatpush1.bf16.msra.mxu1 %v15876_v4  ;;  %v15885_v4 = vld [vmem:[%s21267_s2 + $0x220] ss:$8 sps:$4 sm:$0xff]  }
 0x561   : > { %6454 = vmatprep.subr.bf16.mxu1 %v15881_v60  ;;  %v15890_v60 = vld [vmem:[%s21267_s2 + $0x234] ss:$8 sps:$4 sm:$0xff]  }
 0x563   : > { %12781 = vmatmul.mubr.msk.bf16.gmra.mrb[64].mxu1 %vm4666_vm3, %v21917_v30  ;;  %v21922_v30 = vld [vmem:[#allocation35_spill] sm:$0xff] }
 0x564   : > { %6052 = vmatprep.mubr.bf16.mxu1 %v21698_v32  ;;  %6455 = vmatpush1.bf16.msra.mxu1 %v15879_v39  ;;  %v21918_v39 = vld [vmem:[#allocation40_spill] sm:$0xff] }
 0x565   : > { %6456 = vmatprep.subr.bf16.mxu1 %v15884_v27  ;;  %v21920_v48 = vpack.c.bf16 %v21918_v39, %v21919_v50  ;;  %v21921_v27 = vld [vmem:[#allocation18_spill] sm:$0xff] }
 0x566   : > { %v21927_v39 = vld [vmem:[#allocation62_spill] sm:$0xff] }
 0x567   : > { %v21928_v50 = vld [vmem:[#allocation58_spill] sm:$0xff] }
 0x568   : > { %6457 = vmatpush1.bf16.msra.mxu1 %v15882_v28  ;;  %v21923_v28 = vpack.c.bf16 %v21921_v27, %v21922_v30  ;;  %v21935_v30 = vpack.c.bf16 %v18439_v56, %v18366_v17  ;;  %v21938_v17 = vpack.c.bf16 %v18563_v36, %v18491_v26  ;;  %v21942_v56 = vld [vmem:[#allocation121_spill] sm:$0xff]  ;;  %v21945_v26 = vld [vmem:[#allocation115_spill] sm:$0xff]  ;;  %v21947_v36 = vpack.c.bf16 %v18700_v47, %v18707_v51 }
 0x569   : > { %6458 = vmatprep.subr.bf16.mxu1 %v15887_v13  ;;  %v21924_v13 = vld [vmem:[#allocation17_spill] sm:$0xff] }
 0x56a   : > { %v21926_v62 = vpack.c.bf16 %v21924_v13, %v21925_v10  ;;  %v21933_v10 = vpack.c.bf16 %v18302_v52, %v18330_v31  ;;  %v21936_v52 = vpack.c.bf16 %v18428_v12, %v18456_v15  ;;  %v21937_v31 = vpack.c.bf16 %v18517_v58, %v18501_v43  ;;  %v21943_v15 = vld [vmem:[#allocation118_spill] sm:$0xff] }
 0x56b   : > { %12782 = vmatmul.mubr.msk.bf16.gmra.mrb[68].mxu1 %vm4666_vm3, %v21920_v48  ;;  %v21929_v48 = vpack.c.bf16 %v21927_v39, %v21928_v50  ;;  %v21944_v43 = vpack.c.bf16 %v21942_v56, %v21943_v15  ;;  %v21946_v58 = vpack.c.bf16 %v18702_v25, %v21945_v26  ;;  %v15893_v13 = vld [vmem:[%s21267_s2 + $0x244] ss:$8 sps:$4 sm:$0xff]   ;;  %v21948_v39 = vld [vmem:[#allocation28_spill] sm:$0xff] }
 0x56c   : > { %6062 = vmatprep.mubr.bf16.mxu1 %v21698_v32  ;;  %6459 = vmatpush1.bf16.msra.mxu1 %v15885_v4  ;;  %v21930_v4 = vld [vmem:[#allocation68_spill] sm:$0xff]  ;;  %v21949_v50 = vld [vmem:[#allocation27_spill] sm:$0xff] }
 0x56d   : > { %6898 = vmatprep.subr.bf16.mxu1 %v15890_v60  ;;  %v21931_v60 = vld [vmem:[#allocation56_spill] sm:$0xff]  ;;  %v15905_v15 = vld [vmem:[%s21267_s2 + $0x284] ss:$8 sps:$4 sm:$0xff]  }
 0x56e   : > { %v21932_v27 = vpack.c.bf16 %v21930_v4, %v21931_v60  ;;  %v15891_v4 = vld [vmem:[%s21267_s2 + $0x240] ss:$8 sps:$4 sm:$0xff]   ;;  %v15896_v60 = vld [vmem:[%s21267_s2 + $0x254] ss:$8 sps:$4 sm:$0xff]  }
 0x56f   : > { %v15908_v26 = vld [vmem:[%s21267_s2 + $0x294] ss:$8 sps:$4 sm:$0xff]  }
 0x573   : > { %12783 = vmatmul.mubr.msk.bf16.gmra.mrb[72].mxu1 %vm4666_vm3, %v21923_v28  ;;  %v15888_v28 = vld [vmem:[%s21267_s2 + $0x230] ss:$8 sps:$4 sm:$0xff]  }
 0x574   : > { %6072 = vmatprep.mubr.bf16.mxu1 %v21698_v32 }
 0x57b   : > { %12784 = vmatmul.mubr.msk.bf16.gmra.mrb[76].mxu1 %vm4666_vm3, %v21926_v62  ;;  %v21934_v62 = vpack.c.bf16 %v18393_v0, %v18376_v14  ;;  %v21939_v14 = vld [vmem:[#allocation105_spill] sm:$0xff]  ;;  %v21940_v0 = vld [vmem:[#allocation111_spill] sm:$0xff] }
 0x57c   : > { %6082 = vmatprep.mubr.bf16.mxu1 %v21698_v32  ;;  %v21941_v12 = vpack.c.bf16 %v21939_v14, %v21940_v0  ;;  %v15900_v14 = vld [vmem:[%s21267_s2 + $0x270] ss:$8 sps:$4 sm:$0xff]  }
 0x57d   : > { %v21953_v0 = vld [vmem:[#allocation37_spill] sm:$0xff] }
 0x583   : > { %12785 = vmatmul.mubr.msk.bf16.gmra.mrb[80].mxu1 %vm4666_vm3, %v21929_v48  ;;  %v21950_v48 = vpack.c.bf16 %v21948_v39, %v21949_v50  ;;  %v15911_v39 = vld [vmem:[%s21267_s2 + $0x2a4] ss:$8 sps:$4 sm:$0xff]   ;;  %v21957_v50 = vld [vmem:[#allocation44_spill] sm:$0xff] }
 0x584   : > { %6092 = vmatprep.mubr.bf16.mxu1 %v21698_v32 }
 0x58b   : > { %12786 = vmatmul.mubr.msk.bf16.gmra.mrb[84].mxu1 %vm4666_vm3, %v21932_v27  ;;  %v15894_v27 = vld [vmem:[%s21267_s2 + $0x250] ss:$8 sps:$4 sm:$0xff]  }
 0x58c   : > { %6102 = vmatprep.mubr.bf16.mxu1 %v21698_v32 }
 0x593   : > { %12787 = vmatmul.mubr.msk.bf16.gmra.mrb[88].mxu1 %vm4666_vm3, %v21933_v10  ;;  %v21951_v10 = vld [vmem:[#allocation26_spill] sm:$0xff] }
 0x594   : > { %6112 = vmatprep.mubr.bf16.mxu1 %v21698_v32 }
 0x59b   : > { %12788 = vmatmul.mubr.msk.bf16.gmra.mrb[92].mxu1 %vm4666_vm3, %v21934_v62  ;;  %v21952_v62 = vld [vmem:[#allocation36_spill] sm:$0xff] }
 0x59c   : > { %6122 = vmatprep.mubr.bf16.mxu1 %v21698_v32 }
 0x5a3   : > { %12789 = vmatmul.mubr.msk.bf16.gmra.mrb[96].mxu1 %vm4666_vm3, %v21935_v30  ;;  %v6290_v30 = vpack.c.bf16 %v21952_v62, %v21951_v10  ;;  %v21961_v62 = vpack.c.bf16 %v18300_v61, %v18297_v16  ;;  %v21965_v61 = vld [vmem:[#allocation84_spill] sm:$0xff] }
 0x5a4   : > { %6132 = vmatprep.mubr.bf16.mxu1 %v21698_v32 }
 0x5ab   : > { %12790 = vmatmul.mubr.msk.bf16.gmra.mrb[100].mxu1 %vm4666_vm3, %v21936_v52  ;;  %v15899_v52 = vld [vmem:[%s21267_s2 + $0x264] ss:$8 sps:$4 sm:$0xff]  }
 0x5ac   : > { %6142 = vmatprep.mubr.bf16.mxu1 %v21698_v32 }
 0x5b3   : > { %12791 = vmatmul.mubr.msk.bf16.gmra.mrb[104].mxu1 %vm4666_vm3, %v21937_v31  ;;  %v15897_v31 = vld [vmem:[%s21267_s2 + $0x260] ss:$8 sps:$4 sm:$0xff]  }
 0x5b4   : > { %6152 = vmatprep.mubr.bf16.mxu1 %v21698_v32 }
 0x5bb   : > { %12792 = vmatmul.mubr.msk.bf16.gmra.mrb[108].mxu1 %vm4666_vm3, %v21938_v17  ;;  %v15902_v17 = vld [vmem:[%s21267_s2 + $0x274] ss:$8 sps:$4 sm:$0xff]  }
 0x5bc   : > { %6162 = vmatprep.mubr.bf16.mxu1 %v21698_v32 }
 0x5c3   : > { %12793 = vmatmul.mubr.msk.bf16.gmra.mrb[112].mxu1 %vm4666_vm3, %v21941_v12  ;;  %v21954_v12 = vld [vmem:[#allocation33_spill] sm:$0xff] }
 0x5c4   : > { %6172 = vmatprep.mubr.bf16.mxu1 %v21698_v32  ;;  %v6291_v56 = vpack.c.bf16 %v21954_v12, %v21953_v0  ;;  %v21973_v0 = vld [vmem:[#allocation104_spill] sm:$0xff]  ;;  %v21974_v12 = vld [vmem:[#allocation103_spill] sm:$0xff] }
 0x5cb   : > { %12794 = vmatmul.mubr.msk.bf16.gmra.mrb[116].mxu1 %vm4666_vm3, %v21944_v43  ;;  %v15903_v43 = vld [vmem:[%s21267_s2 + $0x280] ss:$8 sps:$4 sm:$0xff]  }
 0x5cc   : > { %6182 = vmatprep.mubr.bf16.mxu1 %v21698_v32 }
 0x5d3   : > { %12795 = vmatmul.mubr.msk.bf16.gmra.mrb[120].mxu1 %vm4666_vm3, %v21946_v58  ;;  %v15906_v58 = vld [vmem:[%s21267_s2 + $0x290] ss:$8 sps:$4 sm:$0xff]  }
 0x5d4   : > { %6192 = vmatprep.mubr.bf16.mxu1 %v21698_v32 }
 0x5db   : > { %12796 = vmatmul.mubr.msk.bf16.gmra.mrb[124].mxu1 %vm4666_vm3, %v21947_v36  ;;  %v21955_v36 = vld [vmem:[#allocation45_spill] sm:$0xff] }
 0x5dc   : > { %6478 = vmatprep.mubr.bf16.mxu1 %v21698_v32 }
 0x5e3   : > { %12825 = vmatmul.mubr.msk.bf16.vlgmr.msra.gmra.mrb[56].mxu1 %vm4666_vm3, %v21950_v48  ;;  %v21958_v48 = vld [vmem:[#allocation54_spill] sm:$0xff] }
 0x5e4   : > { %6899 = vmatpush1.bf16.msra.mxu1 %v15888_v28  ;;  %6488 = vmatprep.mubr.bf16.mxu1 %v21698_v32  ;;  %v21956_v28 = vld [vmem:[#allocation46_spill] sm:$0xff] }
 0x5e5   : > { %6900 = vmatprep.subr.bf16.mxu1 %v15893_v13  ;;  %v6292_v13 = vpack.c.bf16 %v21956_v28, %v21955_v36  ;;  %v21980_v36 = vld [vmem:[#allocation114_spill] sm:$0xff] }
 0x5e8   : > { %6901 = vmatpush1.bf16.msra.mxu1 %v15891_v4  ;;  %v6293_v4 = vpack.c.bf16 %v21958_v48, %v21957_v50  ;;  %v21985_v48 = vld [vmem:[#allocation5_spill] sm:$0xff] }
 0x5e9   : > { %6902 = vmatprep.subr.bf16.mxu1 %v15896_v60  ;;  %v21959_v60 = vld [vmem:[#allocation55_spill] sm:$0xff] }
 0x5eb   : > { %12826 = vmatmul.mubr.msk.bf16.gmra.mrb[60].mxu1 %vm4666_vm3, %v6290_v30  ;;  %v21962_v30 = vpack.c.bf16 %v18361_v18, %v18292_v20  ;;  %v21968_v20 = vld [vmem:[#allocation83_spill] sm:$0xff] }
 0x5ec   : > { %6498 = vmatprep.mubr.bf16.mxu1 %v21698_v32  ;;  %6903 = vmatpush1.bf16.msra.mxu1 %v15894_v27  ;;  %v21960_v27 = vld [vmem:[#allocation53_spill] sm:$0xff] }
 0x5ed   : > { %6904 = vmatprep.subr.bf16.mxu1 %v15899_v52  ;;  %v6294_v10 = vpack.c.bf16 %v21960_v27, %v21959_v60  ;;  %v21963_v52 = vpack.c.bf16 %v18352_v34, %v18364_v33  ;;  %v21971_v34 = vld [vmem:[#allocation95_spill] sm:$0xff]  ;;  %v21987_v60 = vpack.c.bf16 %v18782_v3, %v18779_v7 }
 0x5ee   : > { %v15909_v27 = vld [vmem:[%s21267_s2 + $0x2a0] ss:$8 sps:$4 sm:$0xff]  }
 0x5f0   : > { %6905 = vmatpush1.bf16.msra.mxu1 %v15897_v31  ;;  %v21964_v31 = vld [vmem:[#allocation85_spill] sm:$0xff] }
 0x5f1   : > { %6906 = vmatprep.subr.bf16.mxu1 %v15902_v17  ;;  %v21966_v16 = vpack.c.bf16 %v21964_v31, %v21965_v61  ;;  %v21967_v17 = vld [vmem:[#allocation94_spill] sm:$0xff]  ;;  %v15918_v61 = vld [vmem:[%s21267_s2 + $0x2d0] ss:$8 sps:$4 sm:$0xff]  }
 0x5f2   : > { %v21969_v18 = vpack.c.bf16 %v21967_v17, %v21968_v20  ;;  %v15915_v31 = vld [vmem:[%s21267_s2 + $0x2c0] ss:$8 sps:$4 sm:$0xff]   ;;  %v15926_v17 = vld [vmem:[%s21267_s2 + $0x2f4] ss:$8 sps:$4 sm:$0xff]   ;;  %v15924_v20 = vld [vmem:[%s21267_s2 + $0x2f0] ss:$8 sps:$4 sm:$0xff]  }
 0x5f3   : > { %12827 = vmatmul.mubr.msk.bf16.gmra.mrb[64].mxu1 %vm4666_vm3, %v6291_v56  ;;  %v21975_v56 = vpack.c.bf16 %v21973_v0, %v21974_v12  ;;  %v21991_v0 = vld [vmem:[#allocation70_spill] sm:$0xff] }
 0x5f4   : > { %6508 = vmatprep.mubr.bf16.mxu1 %v21698_v32  ;;  %6907 = vmatpush1.bf16.msra.mxu1 %v15900_v14  ;;  %v21970_v14 = vld [vmem:[#allocation92_spill] sm:$0xff] }
 0x5f5   : > { %6908 = vmatprep.subr.bf16.mxu1 %v15905_v15  ;;  %v21972_v33 = vpack.c.bf16 %v21970_v14, %v21971_v34  ;;  %v21976_v15 = vld [vmem:[#allocation3_spill] sm:$0xff]  ;;  %v15932_v14 = vld [vmem:[%s21267_s2 + $0x314] ss:$8 sps:$4 sm:$0xff]   ;;  %v6745_v34 = vpack.c.bf16 %v21898_v11, %v21896_v44 }
 0x5f6   : > { %v21993_v44 = vld [vmem:[#allocation73_spill] sm:$0xff] }
 0x5f7   : > { %v21994_v11 = vpack.c.bf16 %v21830_v38, %v21993_v44  ;;  %v21997_v38 = vpack.c.bf16 %v18499_v53, %v18418_v19  ;;  %v22000_v19 = vpack.c.bf16 %v21839_v24, %v21838_v22  ;;  %v22004_v22 = vld [vmem:[#allocation6_spill] sm:$0xff] }
 0x5f8   : > { %6909 = vmatpush1.bf16.msra.mxu1 %v15903_v43  ;;  %v21977_v43 = vld [vmem:[#allocation101_spill] sm:$0xff]  ;;  %v22006_v53 = vld [vmem:[#allocation78_spill] sm:$0xff] }
 0x5f9   : > { %6910 = vmatprep.subr.bf16.mxu1 %v15908_v26  ;;  %v21978_v26 = vpack.c.bf16 %v21976_v15, %v21977_v43  ;;  %v15935_v24 = vld [vmem:[%s21267_s2 + $0x324] ss:$8 sps:$4 sm:$0xff]   ;;  %v15936_v15 = vld [vmem:[%s21267_s2 + $0x330] ss:$8 sps:$4 sm:$0xff]  }
 0x5fa   : > { %v15941_v43 = vld [vmem:[%s21267_s2 + $0x344] ss:$8 sps:$4 sm:$0xff]  }
 0x5fb   : > { %12828 = vmatmul.mubr.msk.bf16.gmra.mrb[68].mxu1 %vm4666_vm3, %v6292_v13  ;;  %v21982_v13 = vld [vmem:[#allocation123_spill] sm:$0xff] }
 0x5fc   : > { %6518 = vmatprep.mubr.bf16.mxu1 %v21698_v32  ;;  %6911 = vmatpush1.bf16.msra.mxu1 %v15906_v58  ;;  %v21979_v58 = vld [vmem:[#allocation2_spill] sm:$0xff] }
 0x5fd   : > { %7280 = vmatprep.subr.bf16.mxu1 %v15911_v39  ;;  %v21981_v28 = vpack.c.bf16 %v21979_v58, %v21980_v36  ;;  %v21983_v39 = vld [vmem:[#allocation7_spill] sm:$0xff]  ;;  %v15944_v36 = vld [vmem:[%s21267_s2 + $0x354] ss:$8 sps:$4 sm:$0xff]  }
 0x5fe   : > { %v21984_v50 = vpack.c.bf16 %v21982_v13, %v21983_v39  ;;  %v15939_v58 = vld [vmem:[%s21267_s2 + $0x340] ss:$8 sps:$4 sm:$0xff]   ;;  %v15947_v13 = vld [vmem:[%s21267_s2 + $0x364] ss:$8 sps:$4 sm:$0xff]  }
 0x5ff   : > { %v22011_v39 = vld [vmem:[#allocation43_spill] sm:$0xff] }
 0x600   : > { %v15965_v44 = vld [vmem:[%s21267_s2 + $0x3c4] ss:$8 sps:$4 sm:$0xff]  }
 0x603   : > { %12829 = vmatmul.mubr.msk.bf16.gmra.mrb[72].mxu1 %vm4666_vm3, %v6293_v4  ;;  %v21986_v4 = vpack.c.bf16 %v18776_v63, %v21985_v48  ;;  %v15950_v48 = vld [vmem:[%s21267_s2 + $0x374] ss:$8 sps:$4 sm:$0xff]  }
 0x604   : > { %6528 = vmatprep.mubr.bf16.mxu1 %v21698_v32 }
 0x60b   : > { %12830 = vmatmul.mubr.msk.bf16.gmra.mrb[76].mxu1 %vm4666_vm3, %v6294_v10  ;;  %v15914_v10 = vld [vmem:[%s21267_s2 + $0x2b4] ss:$8 sps:$4 sm:$0xff]  }
 0x60c   : > { %6538 = vmatprep.mubr.bf16.mxu1 %v21698_v32 }
 0x613   : > { %12831 = vmatmul.mubr.msk.bf16.gmra.mrb[80].mxu1 %vm4666_vm3, %v21961_v62  ;;  %v21988_v62 = vpack.c.bf16 %v21887_v41, %v21884_v46  ;;  %v6742_v46 = vpack.c.bf16 %v21889_v29, %v21888_v2  ;;  %v15920_v41 = vld [vmem:[%s21267_s2 + $0x2d4] ss:$8 sps:$4 sm:$0xff]   ;;  %v15921_v29 = vld [vmem:[%s21267_s2 + $0x2e0] ss:$8 sps:$4 sm:$0xff]   ;;  %v6743_v2 = vpack.c.bf16 %v21892_v6, %v21890_v37  ;;  %v6744_v6 = vpack.c.bf16 %v21895_v21, %v21893_v8 }
 0x614   : > { %6548 = vmatprep.mubr.bf16.mxu1 %v21698_v32  ;;  %v15927_v37 = vld [vmem:[%s21267_s2 + $0x300] ss:$8 sps:$4 sm:$0xff]   ;;  %v21989_v8 = vld [vmem:[#allocation69_spill] sm:$0xff] }
 0x615   : > { %v6746_v21 = vpack.c.bf16 %v21989_v8, %v21899_v57  ;;  %v21995_v57 = vpack.c.bf16 %v21832_v9, %v21831_v54  ;;  %v21998_v54 = vpack.c.bf16 %v21835_v1, %v21834_v45  ;;  %v21999_v9 = vpack.c.bf16 %v21837_v5, %v21836_v49  ;;  %v22003_v49 = vld [vmem:[#allocation11_spill] sm:$0xff]  ;;  %v15938_v45 = vld [vmem:[%s21267_s2 + $0x334] ss:$8 sps:$4 sm:$0xff]  }
 0x616   : > { %v22002_v5 = vpack.c.bf16 %v18690_v40, %v21842_v42  ;;  %v15930_v42 = vld [vmem:[%s21267_s2 + $0x310] ss:$8 sps:$4 sm:$0xff]   ;;  %v22009_v40 = vld [vmem:[#allocation34_spill] sm:$0xff] }
 0x617   : > { %v15959_v8 = vld [vmem:[%s21267_s2 + $0x3a4] ss:$8 sps:$4 sm:$0xff]  }
 0x61b   : > { %12832 = vmatmul.mubr.msk.bf16.gmra.mrb[84].mxu1 %vm4666_vm3, %v21962_v30  ;;  %v15912_v30 = vld [vmem:[%s21267_s2 + $0x2b0] ss:$8 sps:$4 sm:$0xff]  }
 0x61c   : > { %6558 = vmatprep.mubr.bf16.mxu1 %v21698_v32 }
 0x623   : > { %12833 = vmatmul.mubr.msk.bf16.gmra.mrb[88].mxu1 %vm4666_vm3, %v21963_v52  ;;  %v15917_v52 = vld [vmem:[%s21267_s2 + $0x2c4] ss:$8 sps:$4 sm:$0xff]  }
 0x624   : > { %6568 = vmatprep.mubr.bf16.mxu1 %v21698_v32 }
 0x62b   : > { %12834 = vmatmul.mubr.msk.bf16.gmra.mrb[92].mxu1 %vm4666_vm3, %v21966_v16  ;;  %v15923_v16 = vld [vmem:[%s21267_s2 + $0x2e4] ss:$8 sps:$4 sm:$0xff]  }
 0x62c   : > { %6578 = vmatprep.mubr.bf16.mxu1 %v21698_v32 }
 0x633   : > { %12835 = vmatmul.mubr.msk.bf16.gmra.mrb[96].mxu1 %vm4666_vm3, %v21969_v18  ;;  %v15929_v18 = vld [vmem:[%s21267_s2 + $0x304] ss:$8 sps:$4 sm:$0xff]  }
 0x634   : > { %6588 = vmatprep.mubr.bf16.mxu1 %v21698_v32 }
 0x63b   : > { %12836 = vmatmul.mubr.msk.bf16.gmra.mrb[100].mxu1 %vm4666_vm3, %v21972_v33  ;;  %v21990_v33 = vld [vmem:[#allocation72_spill] sm:$0xff] }
 0x63c   : > { %6598 = vmatprep.mubr.bf16.mxu1 %v21698_v32  ;;  %v21992_v12 = vpack.c.bf16 %v21990_v33, %v21991_v0  ;;  %v15962_v33 = vld [vmem:[%s21267_s2 + $0x3b4] ss:$8 sps:$4 sm:$0xff]   ;;  %v22031_v0 = vld [vmem:[#allocation47_spill] sm:$0xff] }
 0x643   : > { %12837 = vmatmul.mubr.msk.bf16.gmra.mrb[104].mxu1 %vm4666_vm3, %v21975_v56  ;;  %v21996_v56 = vpack.c.bf16 %v18446_v55, %v21833_v59  ;;  %v22001_v55 = vpack.c.bf16 %v18605_v35, %v21840_v23  ;;  %v22005_v59 = vpack.c.bf16 %v22003_v49, %v22004_v22  ;;  %v22007_v35 = vld [vmem:[#allocation77_spill] sm:$0xff]  ;;  %v15933_v23 = vld [vmem:[%s21267_s2 + $0x320] ss:$8 sps:$4 sm:$0xff]   ;;  %v22036_v22 = vld [vmem:[#allocation76_spill] sm:$0xff] }
 0x644   : > { %6608 = vmatprep.mubr.bf16.mxu1 %v21698_v32  ;;  %v22008_v1 = vpack.c.bf16 %v22006_v53, %v22007_v35 }
 0x64b   : > { %12838 = vmatmul.mubr.msk.bf16.gmra.mrb[108].mxu1 %vm4666_vm3, %v21978_v26  ;;  %v22010_v26 = vld [vmem:[#allocation41_spill] sm:$0xff] }
 0x64c   : > { %6618 = vmatprep.mubr.bf16.mxu1 %v21698_v32 }
 0x653   : > { %12839 = vmatmul.mubr.msk.bf16.gmra.mrb[112].mxu1 %vm4666_vm3, %v21981_v28  ;;  %v15942_v28 = vld [vmem:[%s21267_s2 + $0x350] ss:$8 sps:$4 sm:$0xff]  }
 0x654   : > { %6628 = vmatprep.mubr.bf16.mxu1 %v21698_v32 }
 0x65b   : > { %12840 = vmatmul.mubr.msk.bf16.gmra.mrb[116].mxu1 %vm4666_vm3, %v21984_v50  ;;  %v15945_v50 = vld [vmem:[%s21267_s2 + $0x360] ss:$8 sps:$4 sm:$0xff]  }
 0x65c   : > { %6638 = vmatprep.mubr.bf16.mxu1 %v21698_v32 }
 0x663   : > { %12841 = vmatmul.mubr.msk.bf16.gmra.mrb[120].mxu1 %vm4666_vm3, %v21986_v4  ;;  %v15948_v4 = vld [vmem:[%s21267_s2 + $0x370] ss:$8 sps:$4 sm:$0xff]  }
 0x664   : > { %6648 = vmatprep.mubr.bf16.mxu1 %v21698_v32 }
 0x66b   : > { %12842 = vmatmul.mubr.msk.bf16.gmra.mrb[124].mxu1 %vm4666_vm3, %v21987_v60  ;;  %v15953_v60 = vld [vmem:[%s21267_s2 + $0x384] ss:$8 sps:$4 sm:$0xff]  }
 0x66c   : > { %6930 = vmatprep.mubr.bf16.mxu1 %v21698_v32 }
 0x673   : > { %12871 = vmatmul.mubr.msk.bf16.vlgmr.msra.gmra.mrb[56].mxu1 %vm4666_vm3, %v21988_v62  ;;  %v22014_v62 = vld [vmem:[#allocation65_spill] sm:$0xff] }
 0x674   : > { %7281 = vmatpush1.bf16.msra.mxu1 %v15909_v27  ;;  %6940 = vmatprep.mubr.bf16.mxu1 %v21698_v32  ;;  %v22012_v27 = vld [vmem:[#allocation52_spill] sm:$0xff] }
 0x675   : > { %7282 = vmatprep.subr.bf16.mxu1 %v15914_v10  ;;  %v22013_v10 = vld [vmem:[#allocation63_spill] sm:$0xff] }
 0x678   : > { %7283 = vmatpush1.bf16.msra.mxu1 %v15912_v30  ;;  %v22015_v30 = vld [vmem:[#allocation74_spill] sm:$0xff] }
 0x679   : > { %7284 = vmatprep.subr.bf16.mxu1 %v15917_v52  ;;  %v22016_v52 = vld [vmem:[#allocation81_spill] sm:$0xff] }
 0x67b   : > { %12872 = vmatmul.mubr.msk.bf16.gmra.mrb[60].mxu1 %vm4666_vm3, %v6742_v46  ;;  %v22018_v46 = vld [vmem:[#allocation91_spill] sm:$0xff] }
 0x67c   : > { %6950 = vmatprep.mubr.bf16.mxu1 %v21698_v32  ;;  %7285 = vmatpush1.bf16.msra.mxu1 %v15915_v31  ;;  %v22017_v31 = vld [vmem:[#allocation82_spill] sm:$0xff] }
 0x67d   : > { %7286 = vmatprep.subr.bf16.mxu1 %v15920_v41  ;;  %v22019_v41 = vld [vmem:[#allocation99_spill] sm:$0xff] }
 0x680   : > { %7287 = vmatpush1.bf16.msra.mxu1 %v15918_v61  ;;  %v22020_v61 = vld [vmem:[#allocation100_spill] sm:$0xff] }
 0x681   : > { %7288 = vmatprep.subr.bf16.mxu1 %v15923_v16  ;;  %v22021_v16 = vld [vmem:[#allocation113_spill] sm:$0xff] }
 0x683   : > { %12873 = vmatmul.mubr.msk.bf16.gmra.mrb[64].mxu1 %vm4666_vm3, %v6743_v2  ;;  %v22023_v2 = vld [vmem:[#allocation4_spill] sm:$0xff] }
 0x684   : > { %6960 = vmatprep.mubr.bf16.mxu1 %v21698_v32  ;;  %7289 = vmatpush1.bf16.msra.mxu1 %v15921_v29  ;;  %v22022_v29 = vld [vmem:[#allocation122_spill] sm:$0xff] }
 0x685   : > { %7290 = vmatprep.subr.bf16.mxu1 %v15926_v17  ;;  %v22024_v17 = vpack.c.bf16 %v18707_v51, %v18702_v25  ;;  %v15951_v51 = vld [vmem:[%s21267_s2 + $0x380] ss:$8 sps:$4 sm:$0xff]   ;;  %v15956_v25 = vld [vmem:[%s21267_s2 + $0x394] ss:$8 sps:$4 sm:$0xff]  }
 0x688   : > { %7291 = vmatpush1.bf16.msra.mxu1 %v15924_v20  ;;  %v22025_v20 = vld [vmem:[#allocation9_spill] sm:$0xff] }
 0x689   : > { %7292 = vmatprep.subr.bf16.mxu1 %v15929_v18  ;;  %v22026_v18 = vpack.c.bf16 %v22025_v20, %v18700_v47  ;;  %v22030_v47 = vld [vmem:[#allocation42_spill] sm:$0xff]  ;;  %v22058_v20 = vld [vmem:[#allocation89_spill] sm:$0xff] }
 0x68b   : > { %12874 = vmatmul.mubr.msk.bf16.gmra.mrb[68].mxu1 %vm4666_vm3, %v6744_v6  ;;  %v22028_v6 = vld [vmem:[#allocation10_spill] sm:$0xff] }
 0x68c   : > { %6970 = vmatprep.mubr.bf16.mxu1 %v21698_v32  ;;  %7293 = vmatpush1.bf16.msra.mxu1 %v15927_v37  ;;  %v22027_v37 = vld [vmem:[#allocation8_spill] sm:$0xff] }
 0x68d   : > { %7676 = vmatprep.subr.bf16.mxu1 %v15932_v14  ;;  %v22029_v14 = vpack.c.bf16 %v22027_v37, %v22028_v6  ;;  %v22060_v37 = vld [vmem:[#allocation98_spill] sm:$0xff] }
 0x68e   : > { %v22061_v6 = vld [vmem:[#allocation110_spill] sm:$0xff] }
 0x693   : > { %12875 = vmatmul.mubr.msk.bf16.gmra.mrb[72].mxu1 %vm4666_vm3, %v6745_v34  ;;  %v15954_v34 = vld [vmem:[%s21267_s2 + $0x390] ss:$8 sps:$4 sm:$0xff]  }
 0x694   : > { %6980 = vmatprep.mubr.bf16.mxu1 %v21698_v32 }
 0x69b   : > { %12876 = vmatmul.mubr.msk.bf16.gmra.mrb[76].mxu1 %vm4666_vm3, %v6746_v21  ;;  %v15957_v21 = vld [vmem:[%s21267_s2 + $0x3a0] ss:$8 sps:$4 sm:$0xff]  }
 0x69c   : > { %6990 = vmatprep.mubr.bf16.mxu1 %v21698_v32 }
 0x6a3   : > { %12877 = vmatmul.mubr.msk.bf16.gmra.mrb[80].mxu1 %vm4666_vm3, %v21992_v12  ;;  %v15960_v12 = vld [vmem:[%s21267_s2 + $0x3b0] ss:$8 sps:$4 sm:$0xff]  }
 0x6a4   : > { %7000 = vmatprep.mubr.bf16.mxu1 %v21698_v32 }
 0x6ab   : > { %12878 = vmatmul.mubr.msk.bf16.gmra.mrb[84].mxu1 %vm4666_vm3, %v21994_v11  ;;  %v15963_v11 = vld [vmem:[%s21267_s2 + $0x3c0] ss:$8 sps:$4 sm:$0xff]  }
 0x6ac   : > { %7010 = vmatprep.mubr.bf16.mxu1 %v21698_v32 }
 0x6b3   : > { %12879 = vmatmul.mubr.msk.bf16.gmra.mrb[88].mxu1 %vm4666_vm3, %v21995_v57  ;;  %v15968_v57 = vld [vmem:[%s21267_s2 + $0x3d4] ss:$8 sps:$4 sm:$0xff]  }
 0x6b4   : > { %7020 = vmatprep.mubr.bf16.mxu1 %v21698_v32 }
 0x6bb   : > { %12880 = vmatmul.mubr.msk.bf16.gmra.mrb[92].mxu1 %vm4666_vm3, %v21996_v56  ;;  %v22032_v56 = vld [vmem:[#allocation49_spill] sm:$0xff] }
 0x6bc   : > { %7030 = vmatprep.mubr.bf16.mxu1 %v21698_v32 }
 0x6c3   : > { %12881 = vmatmul.mubr.msk.bf16.gmra.mrb[96].mxu1 %vm4666_vm3, %v21997_v38  ;;  %v15966_v38 = vld [vmem:[%s21267_s2 + $0x3d0] ss:$8 sps:$4 sm:$0xff]  }
 0x6c4   : > { %7040 = vmatprep.mubr.bf16.mxu1 %v21698_v32 }
 0x6cb   : > { %12882 = vmatmul.mubr.msk.bf16.gmra.mrb[100].mxu1 %vm4666_vm3, %v21998_v54  ;;  %v15971_v54 = vld [vmem:[%s21267_s2 + $0x3e4] ss:$8 sps:$4 sm:$0xff]  }
 0x6cc   : > { %7050 = vmatprep.mubr.bf16.mxu1 %v21698_v32 }
 0x6d3   : > { %12883 = vmatmul.mubr.msk.bf16.gmra.mrb[104].mxu1 %vm4666_vm3, %v21999_v9  ;;  %v15969_v9 = vld [vmem:[%s21267_s2 + $0x3e0] ss:$8 sps:$4 sm:$0xff]  }
 0x6d4   : > { %7060 = vmatprep.mubr.bf16.mxu1 %v21698_v32 }
 0x6db   : > { %12884 = vmatmul.mubr.msk.bf16.gmra.mrb[108].mxu1 %vm4666_vm3, %v22000_v19  ;;  %v22033_v19 = vld [vmem:[#allocation61_spill] sm:$0xff] }
 0x6dc   : > { %7070 = vmatprep.mubr.bf16.mxu1 %v21698_v32 }
 0x6e3   : > { %12885 = vmatmul.mubr.msk.bf16.gmra.mrb[112].mxu1 %vm4666_vm3, %v22001_v55  ;;  %v22034_v55 = vld [vmem:[#allocation66_spill] sm:$0xff] }
 0x6e4   : > { %7080 = vmatprep.mubr.bf16.mxu1 %v21698_v32 }
 0x6eb   : > { %12886 = vmatmul.mubr.msk.bf16.gmra.mrb[116].mxu1 %vm4666_vm3, %v22002_v5  ;;  %v22035_v5 = vld [vmem:[#allocation67_spill] sm:$0xff] }
 0x6ec   : > { %7090 = vmatprep.mubr.bf16.mxu1 %v21698_v32 }
 0x6f3   : > { %12887 = vmatmul.mubr.msk.bf16.gmra.mrb[120].mxu1 %vm4666_vm3, %v22005_v59  ;;  %v22037_v59 = vld [vmem:[#allocation86_spill] sm:$0xff] }
 0x6f4   : > { %7100 = vmatprep.mubr.bf16.mxu1 %v21698_v32 }
 0x6fb   : > { %12888 = vmatmul.mubr.msk.bf16.gmra.mrb[124].mxu1 %vm4666_vm3, %v22008_v1  ;;  %v22038_v1 = vld [vmem:[#allocation87_spill] sm:$0xff] }
 0x6fc   : > { %7312 = vmatprep.mubr.bf16.mxu1 %v21698_v32 }
 0x703   : > { %12917 = vmatmul.mubr.msk.bf16.vlgmr.msra.gmra.mrb[56].mxu1 %vm4666_vm3, %v22009_v40  ;;  %v22041_v40 = vld [vmem:[#allocation107_spill] sm:$0xff] }
 0x704   : > { %7677 = vmatpush1.bf16.msra.mxu1 %v15930_v42  ;;  %7322 = vmatprep.mubr.bf16.mxu1 %v21698_v32  ;;  %v22039_v42 = vld [vmem:[#allocation96_spill] sm:$0xff] }
 0x705   : > { %7678 = vmatprep.subr.bf16.mxu1 %v15935_v24  ;;  %v22040_v24 = vld [vmem:[#allocation106_spill] sm:$0xff] }
 0x708   : > { %7679 = vmatpush1.bf16.msra.mxu1 %v15933_v23  ;;  %v22042_v23 = vld [vmem:[#allocation116_spill] sm:$0xff] }
 0x709   : > { %7680 = vmatprep.subr.bf16.mxu1 %v15938_v45  ;;  %v22043_v45 = vld [vmem:[#allocation124_spill] sm:$0xff] }
 0x70b   : > { %12918 = vmatmul.mubr.msk.bf16.gmra.mrb[60].mxu1 %vm4666_vm3, %v22010_v26  ;;  %v22046_v26 = vld [vmem:[#allocation79_spill] sm:$0xff] }
 0x70c   : > { %7332 = vmatprep.mubr.bf16.mxu1 %v21698_v32  ;;  %7681 = vmatpush1.bf16.msra.mxu1 %v15936_v15  ;;  %v22044_v15 = vld [vmem:[#allocation125_spill] sm:$0xff] }
 0x70d   : > { %7682 = vmatprep.subr.bf16.mxu1 %v15941_v43  ;;  %v22045_v43 = vpack.c.bf16 %v18779_v7, %v18776_v63  ;;  %v22052_v63 = vld [vmem:[#allocation117_spill] sm:$0xff]  ;;  %v15972_v7 = vld [vmem:[%s21268_s3 + $0xc0] ss:$8 sps:$4 sm:$0xff]  }
 0x710   : > { %7683 = vmatpush1.bf16.msra.mxu1 %v15939_v58  ;;  %v22047_v58 = vpack.c.bf16 %v22046_v26, %v18782_v3  ;;  %v15974_v3 = vld [vmem:[%s21268_s3 + $0xc4] ss:$8 sps:$4 sm:$0xff]  }
 0x711   : > { %7684 = vmatprep.subr.bf16.mxu1 %v15944_v36  ;;  %v22048_v36 = vld [vmem:[#allocation97_spill] sm:$0xff]  ;;  %8948 = vmatprep.subr.bf16.mxu0 %v15974_v3 }
 0x712   : > { %8949 = vmatpush1.bf16.msra.mxu0 %v15972_v7 }
 0x713   : > { %12919 = vmatmul.mubr.msk.bf16.gmra.mrb[64].mxu1 %vm4666_vm3, %v22011_v39  ;;  %v22051_v39 = vld [vmem:[#allocation102_spill] sm:$0xff] }
 0x714   : > { %7342 = vmatprep.mubr.bf16.mxu1 %v21698_v32  ;;  %7685 = vmatpush1.bf16.msra.mxu1 %v15942_v28  ;;  %v22049_v28 = vld [vmem:[#allocation88_spill] sm:$0xff] }
 0x715   : > { %7686 = vmatprep.subr.bf16.mxu1 %v15947_v13  ;;  %v22050_v13 = vpack.c.bf16 %v22048_v36, %v22049_v28 }
 0x718   : > { %7687 = vmatpush1.bf16.msra.mxu1 %v15945_v50  ;;  %v15977_v50 = vld [vmem:[%s21268_s3 + $0xd4] ss:$8 sps:$4 sm:$0xff]  }
 0x719   : > { %7688 = vmatprep.subr.bf16.mxu1 %v15950_v48  ;;  %v15975_v48 = vld [vmem:[%s21268_s3 + $0xd0] ss:$8 sps:$4 sm:$0xff]   ;;  %8950 = vmatprep.subr.bf16.mxu0 %v15977_v50 }
 0x71a   : > { %8951 = vmatpush1.bf16.msra.mxu0 %v15975_v48 }
 0x71b   : > { %12920 = vmatmul.mubr.msk.bf16.gmra.mrb[68].mxu1 %vm4666_vm3, %v22012_v27  ;;  %v22053_v27 = vld [vmem:[#allocation119_spill] sm:$0xff] }
 0x71c   : > { %7352 = vmatprep.mubr.bf16.mxu1 %v21698_v32  ;;  %7689 = vmatpush1.bf16.msra.mxu1 %v15948_v4  ;;  %v15980_v4 = vld [vmem:[%s21268_s3 + $0xe4] ss:$8 sps:$4 sm:$0xff]  }
 0x71d   : > { %8068 = vmatprep.subr.bf16.mxu1 %v15953_v60  ;;  %v15978_v60 = vld [vmem:[%s21268_s3 + $0xe0] ss:$8 sps:$4 sm:$0xff]   ;;  %8952 = vmatprep.subr.bf16.mxu0 %v15980_v4 }
 0x71e   : > { %8953 = vmatpush1.bf16.msra.mxu0 %v15978_v60 }
 0x723   : > { %12921 = vmatmul.mubr.msk.bf16.gmra.mrb[72].mxu1 %vm4666_vm3, %v22013_v10  ;;  %v15983_v10 = vld [vmem:[%s21268_s3 + $0xf4] ss:$8 sps:$4 sm:$0xff]  }
 0x724   : > { %7362 = vmatprep.mubr.bf16.mxu1 %v21698_v32  ;;  %8954 = vmatprep.subr.bf16.mxu0 %v15983_v10 }
 0x72b   : > { %12922 = vmatmul.mubr.msk.bf16.gmra.mrb[76].mxu1 %vm4666_vm3, %v22014_v62  ;;  %v15981_v62 = vld [vmem:[%s21268_s3 + $0xf0] ss:$8 sps:$4 sm:$0xff]  }
 0x72c   : > { %7372 = vmatprep.mubr.bf16.mxu1 %v21698_v32  ;;  %8955 = vmatpush1.bf16.msra.mxu0 %v15981_v62 }
 0x733   : > { %12923 = vmatmul.mubr.msk.bf16.gmra.mrb[80].mxu1 %vm4666_vm3, %v22015_v30  ;;  %v15986_v30 = vld [vmem:[%s21268_s3 + $0x104] ss:$8 sps:$4 sm:$0xff]  }
 0x734   : > { %7382 = vmatprep.mubr.bf16.mxu1 %v21698_v32  ;;  %8956 = vmatprep.subr.bf16.mxu0 %v15986_v30 }
 0x73b   : > { %12924 = vmatmul.mubr.msk.bf16.gmra.mrb[84].mxu1 %vm4666_vm3, %v22016_v52  ;;  %v15984_v52 = vld [vmem:[%s21268_s3 + $0x100] ss:$8 sps:$4 sm:$0xff]  }
 0x73c   : > { %7392 = vmatprep.mubr.bf16.mxu1 %v21698_v32  ;;  %8957 = vmatpush1.bf16.msra.mxu0 %v15984_v52 }
 0x743   : > { %12925 = vmatmul.mubr.msk.bf16.gmra.mrb[88].mxu1 %vm4666_vm3, %v22017_v31  ;;  %v22054_v31 = vld [vmem:[#allocation126_spill] sm:$0xff] }
 0x744   : > { %7402 = vmatprep.mubr.bf16.mxu1 %v21698_v32 }
 0x74b   : > { %12926 = vmatmul.mubr.msk.bf16.gmra.mrb[92].mxu1 %vm4666_vm3, %v22018_v46  ;;  %v15989_v46 = vld [vmem:[%s21268_s3 + $0x114] ss:$8 sps:$4 sm:$0xff]  }
 0x74c   : > { %7412 = vmatprep.mubr.bf16.mxu1 %v21698_v32  ;;  %8958 = vmatprep.subr.bf16.mxu0 %v15989_v46 }
 0x753   : > { %12927 = vmatmul.mubr.msk.bf16.gmra.mrb[96].mxu1 %vm4666_vm3, %v22019_v41  ;;  %v15987_v41 = vld [vmem:[%s21268_s3 + $0x110] ss:$8 sps:$4 sm:$0xff]  }
 0x754   : > { %7422 = vmatprep.mubr.bf16.mxu1 %v21698_v32  ;;  %8959 = vmatpush1.bf16.msra.mxu0 %v15987_v41 }
 0x75b   : > { %12928 = vmatmul.mubr.msk.bf16.gmra.mrb[100].mxu1 %vm4666_vm3, %v22020_v61  ;;  %v15992_v61 = vld [vmem:[%s21268_s3 + $0x124] ss:$8 sps:$4 sm:$0xff]  }
 0x75c   : > { %7432 = vmatprep.mubr.bf16.mxu1 %v21698_v32  ;;  %8960 = vmatprep.subr.bf16.mxu0 %v15992_v61 }
 0x763   : > { %12929 = vmatmul.mubr.msk.bf16.gmra.mrb[104].mxu1 %vm4666_vm3, %v22021_v16  ;;  %v15990_v16 = vld [vmem:[%s21268_s3 + $0x120] ss:$8 sps:$4 sm:$0xff]  }
 0x764   : > { %7442 = vmatprep.mubr.bf16.mxu1 %v21698_v32  ;;  %8961 = vmatpush1.bf16.msra.mxu0 %v15990_v16 }
 0x76b   : > { %12930 = vmatmul.mubr.msk.bf16.gmra.mrb[108].mxu1 %vm4666_vm3, %v22022_v29  ;;  %v22055_v29 = vld [vmem:[#allocation71_spill] sm:$0xff] }
 0x76c   : > { %7452 = vmatprep.mubr.bf16.mxu1 %v21698_v32 }
 0x773   : > { %12931 = vmatmul.mubr.msk.bf16.gmra.mrb[112].mxu1 %vm4666_vm3, %v22023_v2  ;;  %v22056_v2 = vld [vmem:[#allocation75_spill] sm:$0xff] }
 0x774   : > { %7462 = vmatprep.mubr.bf16.mxu1 %v21698_v32 }
 0x77b   : > { %12932 = vmatmul.mubr.msk.bf16.gmra.mrb[116].mxu1 %vm4666_vm3, %v22024_v17  ;;  %v22057_v17 = vld [vmem:[#allocation80_spill] sm:$0xff] }
 0x77c   : > { %7472 = vmatprep.mubr.bf16.mxu1 %v21698_v32 }
 0x783   : > { %12933 = vmatmul.mubr.msk.bf16.gmra.mrb[120].mxu1 %vm4666_vm3, %v22026_v18  ;;  %v22059_v18 = vld [vmem:[#allocation90_spill] sm:$0xff] }
 0x784   : > { %7482 = vmatprep.mubr.bf16.mxu1 %v21698_v32 }
 0x78b   : > { %12934 = vmatmul.mubr.msk.bf16.gmra.mrb[124].mxu1 %vm4666_vm3, %v22029_v14  ;;  %v22062_v14 = vld [vmem:[#allocation112_spill] sm:$0xff] }
 0x78c   : > { %7708 = vmatprep.mubr.bf16.mxu1 %v21698_v32 }
 0x793   : > { %12963 = vmatmul.mubr.msk.bf16.vlgmr.msra.gmra.mrb[56].mxu1 %vm4666_vm3, %v22030_v47  ;;  %v15996_v47 = vld [vmem:[%s21268_s3 + $0x140] ss:$8 sps:$4 sm:$0xff]  }
 0x794   : > { %8069 = vmatpush1.bf16.msra.mxu1 %v15951_v51  ;;  %7718 = vmatprep.mubr.bf16.mxu1 %v21698_v32  ;;  %v15993_v51 = vld [vmem:[%s21268_s3 + $0x130] ss:$8 sps:$4 sm:$0xff]  }
 0x795   : > { %8070 = vmatprep.subr.bf16.mxu1 %v15956_v25  ;;  %v15995_v25 = vld [vmem:[%s21268_s3 + $0x134] ss:$8 sps:$4 sm:$0xff]  }
 0x796   : > { %8962 = vmatprep.subr.bf16.mxu0 %v15995_v25 }
 0x797   : > { %8963 = vmatpush1.bf16.msra.mxu0 %v15993_v51 }
 0x798   : > { %8071 = vmatpush1.bf16.msra.mxu1 %v15954_v34  ;;  %v15998_v34 = vld [vmem:[%s21268_s3 + $0x144] ss:$8 sps:$4 sm:$0xff]  }
 0x799   : > { %8072 = vmatprep.subr.bf16.mxu1 %v15959_v8  ;;  %8964 = vmatprep.subr.bf16.mxu0 %v15998_v34  ;;  %v22063_v8 = vld [vmem:[#allocation120_spill] sm:$0xff] }
 0x79b   : > { %12964 = vmatmul.mubr.msk.bf16.gmra.mrb[60].mxu1 %vm4666_vm3, %v22031_v0  ;;  %8965 = vmatpush1.bf16.msra.mxu0 %v15996_v47  ;;  %v16004_v0 = vld [vmem:[%s21268_s3 + $0x164] ss:$8 sps:$4 sm:$0xff]  }
 0x79c   : > { %7728 = vmatprep.mubr.bf16.mxu1 %v21698_v32  ;;  %8073 = vmatpush1.bf16.msra.mxu1 %v15957_v21  ;;  %v15999_v21 = vld [vmem:[%s21268_s3 + $0x150] ss:$8 sps:$4 sm:$0xff]  }
 0x79d   : > { %8074 = vmatprep.subr.bf16.mxu1 %v15962_v33  ;;  %v16001_v33 = vld [vmem:[%s21268_s3 + $0x154] ss:$8 sps:$4 sm:$0xff]  }
 0x79e   : > { %8966 = vmatprep.subr.bf16.mxu0 %v16001_v33 }
 0x79f   : > { %8967 = vmatpush1.bf16.msra.mxu0 %v15999_v21 }
 0x7a0   : > { %8075 = vmatpush1.bf16.msra.mxu1 %v15960_v12  ;;  %v16002_v12 = vld [vmem:[%s21268_s3 + $0x160] ss:$8 sps:$4 sm:$0xff]   ;;  %8968 = vmatprep.subr.bf16.mxu0 %v16004_v0 }
 0x7a1   : > { %8076 = vmatprep.subr.bf16.mxu1 %v15965_v44  ;;  %v22064_v44 = vld [vmem:[#allocation127_spill] sm:$0xff] }
 0x7a3   : > { %12965 = vmatmul.mubr.msk.bf16.gmra.mrb[64].mxu1 %vm4666_vm3, %v22032_v56  ;;  %8969 = vmatpush1.bf16.msra.mxu0 %v16002_v12  ;;  %v22065_v56 = vld [vmem:[#allocation128_spill] sm:$0xff] }
 0x7a4   : > { %7738 = vmatprep.mubr.bf16.mxu1 %v21698_v32  ;;  %8077 = vmatpush1.bf16.msra.mxu1 %v15963_v11  ;;  %v16007_v11 = vld [vmem:[%s21268_s3 + $0x174] ss:$8 sps:$4 sm:$0xff]  }
 0x7a5   : > { %8078 = vmatprep.subr.bf16.mxu1 %v15968_v57  ;;  %v16005_v57 = vld [vmem:[%s21268_s3 + $0x170] ss:$8 sps:$4 sm:$0xff]   ;;  %8970 = vmatprep.subr.bf16.mxu0 %v16007_v11 }
 0x7a7   : > { %8971 = vmatpush1.bf16.msra.mxu0 %v16005_v57 }
 0x7a8   : > { %8079 = vmatpush1.bf16.msra.mxu1 %v15966_v38  ;;  %v22066_v38 = vpack.c.bf16 %v22007_v35, %v22003_v49  ;;  %v16010_v49 = vld [vmem:[%s21268_s3 + $0x4] ss:$8 sps:$4 sm:$0xff]   ;;  %v8355_v35 = vlaneseq }
 0x7a9   : > { %8080 = vmatprep.subr.bf16.mxu1 %v15971_v54  ;;  %v22067_v54 = vld [vmem:[#allocation93_spill] sm:$0xff]  ;;  %9231 = vmatprep.subr.bf16.mxu0 %v16010_v49 }
 0x7ab   : > { %12966 = vmatmul.mubr.msk.bf16.gmra.mrb[68].mxu1 %vm4666_vm3, %v22033_v19  ;;  %v22069_v19 = vld [vmem:[#allocation109_spill] sm:$0xff] }
 0x7ac   : > { %7748 = vmatprep.mubr.bf16.mxu1 %v21698_v32  ;;  %8081 = vmatpush1.bf16.msra.mxu1 %v15969_v9  ;;  %v22068_v9 = vpack.c.bf16 %v22067_v54, %v22006_v53  ;;  %v8353_v53 = vld [vmem:[%s21270_s5] sm:$0x3] }
 0x7b3   : > { %12967 = vmatmul.mubr.msk.bf16.gmra.mrb[72].mxu1 %vm4666_vm3, %v22034_v55  ;;  %v22070_v55 = vld [vmem:[#allocation108_spill] sm:$0xff] }
 0x7b4   : > { %7758 = vmatprep.mubr.bf16.mxu1 %v21698_v32 }
 0x7bb   : > { %12968 = vmatmul.mubr.msk.bf16.gmra.mrb[76].mxu1 %vm4666_vm3, %v22035_v5  ;;  %v22071_v5 = vpack.c.bf16 %v22069_v19, %v22070_v55 }
 0x7bc   : > { %7768 = vmatprep.mubr.bf16.mxu1 %v21698_v32 }
 0x7c3   : > { %12969 = vmatmul.mubr.msk.bf16.gmra.mrb[80].mxu1 %vm4666_vm3, %v22036_v22  ;;  %v19815_v22 = vshrl.u32 %v8355_v35, 7 }
 0x7c4   : > { %7778 = vmatprep.mubr.bf16.mxu1 %v21698_v32 }
 0x7c5   : > { %22072 = vst [vmem:[#allocation14_spill] sm:$0xff] %v19815_v22 }
 0x7cb   : > { %12970 = vmatmul.mubr.msk.bf16.gmra.mrb[84].mxu1 %vm4666_vm3, %v22037_v59  ;;  %v21528_v59 = vsub.s32 0, %v19815_v22 }
 0x7cc   : > { %7788 = vmatprep.mubr.bf16.mxu1 %v21698_v32 }
 0x7d3   : > { %12971 = vmatmul.mubr.msk.bf16.gmra.mrb[88].mxu1 %vm4666_vm3, %v22038_v1  ;;  %v19824_v1 = vrot.slane %v8353_v53, %v21528_v59 }
 0x7d4   : > { %7798 = vmatprep.mubr.bf16.mxu1 %v21698_v32 }
 0x7db   : > { %12972 = vmatmul.mubr.msk.bf16.gmra.mrb[92].mxu1 %vm4666_vm3, %v22039_v42 }
 0x7dc   : > { %7808 = vmatprep.mubr.bf16.mxu1 %v21698_v32 }
 0x7e3   : > { %12973 = vmatmul.mubr.msk.bf16.gmra.mrb[96].mxu1 %vm4666_vm3, %v22040_v24 }
 0x7e4   : > { %7818 = vmatprep.mubr.bf16.mxu1 %v21698_v32 }
 0x7eb   : > { %12974 = vmatmul.mubr.msk.bf16.gmra.mrb[100].mxu1 %vm4666_vm3, %v22041_v40 }
 0x7ec   : > { %7828 = vmatprep.mubr.bf16.mxu1 %v21698_v32 }
 0x7f3   : > { %12975 = vmatmul.mubr.msk.bf16.gmra.mrb[104].mxu1 %vm4666_vm3, %v22042_v23 }
 0x7f4   : > { %7838 = vmatprep.mubr.bf16.mxu1 %v21698_v32 }
 0x7fb   : > { %12976 = vmatmul.mubr.msk.bf16.gmra.mrb[108].mxu1 %vm4666_vm3, %v22043_v45 }
 0x7fc   : > { %7848 = vmatprep.mubr.bf16.mxu1 %v21698_v32 }
 0x803   : > { %12977 = vmatmul.mubr.msk.bf16.gmra.mrb[112].mxu1 %vm4666_vm3, %v22044_v15 }
 0x804   : > { %7858 = vmatprep.mubr.bf16.mxu1 %v21698_v32 }
 0x80b   : > { %12978 = vmatmul.mubr.msk.bf16.gmra.mrb[116].mxu1 %vm4666_vm3, %v22045_v43 }
 0x80c   : > { %7868 = vmatprep.mubr.bf16.mxu1 %v21698_v32 }
 0x813   : > { %12979 = vmatmul.mubr.msk.bf16.gmra.mrb[120].mxu1 %vm4666_vm3, %v22047_v58 }
 0x814   : > { %7878 = vmatprep.mubr.bf16.mxu1 %v21698_v32 }
 0x81b   : > { %12980 = vmatmul.mubr.msk.bf16.gmra.mrb[124].mxu1 %vm4666_vm3, %v22050_v13 }
 0x81c   : > { %8100 = vmatprep.mubr.bf16.mxu1 %v21698_v32 }
 0x823   : > { %13009 = vmatmul.mubr.msk.bf16.vlgmr.msra.gmra.mrb[56].mxu1 %vm4666_vm3, %v22051_v39 }
 0x824   : > { %8110 = vmatprep.mubr.bf16.mxu1 %v21698_v32 }
 0x82b   : > { %13010 = vmatmul.mubr.msk.bf16.gmra.mrb[60].mxu1 %vm4666_vm3, %v22052_v63 }
 0x82c   : > { %8120 = vmatprep.mubr.bf16.mxu1 %v21698_v32 }
 0x833   : > { %13011 = vmatmul.mubr.msk.bf16.gmra.mrb[64].mxu1 %vm4666_vm3, %v22053_v27 }
 0x834   : > { %8130 = vmatprep.mubr.bf16.mxu1 %v21698_v32 }
 0x83b   : > { %13012 = vmatmul.mubr.msk.bf16.gmra.mrb[68].mxu1 %vm4666_vm3, %v22054_v31 }
 0x83c   : > { %8140 = vmatprep.mubr.bf16.mxu1 %v21698_v32 }
 0x843   : > { %13013 = vmatmul.mubr.msk.bf16.gmra.mrb[72].mxu1 %vm4666_vm3, %v22055_v29 }
 0x844   : > { %8150 = vmatprep.mubr.bf16.mxu1 %v21698_v32 }
 0x84b   : > { %13014 = vmatmul.mubr.msk.bf16.gmra.mrb[76].mxu1 %vm4666_vm3, %v22056_v2 }
 0x84c   : > { %8160 = vmatprep.mubr.bf16.mxu1 %v21698_v32 }
 0x853   : > { %13015 = vmatmul.mubr.msk.bf16.gmra.mrb[80].mxu1 %vm4666_vm3, %v22057_v17 }
 0x854   : > { %8170 = vmatprep.mubr.bf16.mxu1 %v21698_v32 }
 0x85b   : > { %13016 = vmatmul.mubr.msk.bf16.gmra.mrb[84].mxu1 %vm4666_vm3, %v22058_v20 }
 0x85c   : > { %8180 = vmatprep.mubr.bf16.mxu1 %v21698_v32 }
 0x863   : > { %13017 = vmatmul.mubr.msk.bf16.gmra.mrb[88].mxu1 %vm4666_vm3, %v22059_v18 }
 0x864   : > { %8190 = vmatprep.mubr.bf16.mxu1 %v21698_v32 }
 0x86b   : > { %13018 = vmatmul.mubr.msk.bf16.gmra.mrb[92].mxu1 %vm4666_vm3, %v22060_v37 }
 0x86c   : > { %8200 = vmatprep.mubr.bf16.mxu1 %v21698_v32 }
 0x873   : > { %13019 = vmatmul.mubr.msk.bf16.gmra.mrb[96].mxu1 %vm4666_vm3, %v22061_v6 }
 0x874   : > { %8210 = vmatprep.mubr.bf16.mxu1 %v21698_v32 }
 0x87b   : > { %13020 = vmatmul.mubr.msk.bf16.gmra.mrb[100].mxu1 %vm4666_vm3, %v22062_v14 }
 0x87c   : > { %8220 = vmatprep.mubr.bf16.mxu1 %v21698_v32 }
 0x883   : > { %13021 = vmatmul.mubr.msk.bf16.gmra.mrb[104].mxu1 %vm4666_vm3, %v22063_v8 }
 0x884   : > { %8230 = vmatprep.mubr.bf16.mxu1 %v21698_v32 }
 0x88b   : > { %13022 = vmatmul.mubr.msk.bf16.gmra.mrb[108].mxu1 %vm4666_vm3, %v22064_v44 }
 0x88c   : > { %8240 = vmatprep.mubr.bf16.mxu1 %v21698_v32 }
 0x893   : > { %13023 = vmatmul.mubr.msk.bf16.gmra.mrb[112].mxu1 %vm4666_vm3, %v22065_v56 }
 0x894   : > { %8250 = vmatprep.mubr.bf16.mxu1 %v21698_v32 }
 0x89b   : > { %13024 = vmatmul.mubr.msk.bf16.gmra.mrb[116].mxu1 %vm4666_vm3, %v22066_v38 }
 0x89c   : > { %8260 = vmatprep.mubr.bf16.mxu1 %v21698_v32 }
 0x8a3   : > { %13025 = vmatmul.mubr.msk.bf16.gmra.mrb[120].mxu1 %vm4666_vm3, %v22068_v9  ;;  %v16008_v9 = vld [vmem:[%s21268_s3] ss:$8 sps:$4 sm:$0xff]  }
 0x8a4   : > { %8270 = vmatprep.mubr.bf16.mxu1 %v21698_v32  ;;  %v21527_v32 = vsub.s32 1, %v19815_v22 }
 0x8a6   : > { %v19828_v42 = vrot.slane %v8353_v53, %v21527_v32 }
 0x8ab   : > { %13026 = vmatmul.mubr.msk.bf16.gmra.mrb[124].mxu1 %vm4666_vm3, %v22071_v5  ;;  %v16013_v5 = vld [vmem:[%s21268_s3 + $0x14] ss:$8 sps:$4 sm:$0xff]  }
 0x8f6   : > { %v8102_v24 = vpop.f32.mrb[56].mxu1 }
 0x8f7   : > { %v8365_v40 = vadd.f32 %v19824_v1, %v8102_v24  ;;  %v8104_v23 = vpop.f32.mrb[57].mxu1 }
 0x8f8   : > { %v8366_v45 = vadd.f32 %v19828_v42, %v8104_v23  ;;  %v8106_v15 = vpop.f32.mrb[58].mxu1 }
 0x8f9   : > { %v19832_v43 = vmax.f32 %v8365_v40, 0.0  ;;  %v8367_v26 = vadd.f32 %v19824_v1, %v8106_v15  ;;  %v8108_v58 = vpop.f32.mrb[59].mxu1 }
 0x8fa   : > { %v19835_v36 = vmax.f32 %v8366_v45, 0.0  ;;  %v8368_v28 = vadd.f32 %v19828_v42, %v8108_v58 }
 0x8fb   : > { %v19838_v13 = vmax.f32 %v8367_v26, 0.0  ;;  %v8613_v39 = vrot.slane %v19832_v43, 1  ;;  %v9364_v63 = vrot.slane %v19832_v43, 2 }
 0x8fc   : > { %v19842_v7 = vmax.f32 %v8368_v28, 0.0  ;;  %v8616_v3 = vrot.slane %v19835_v36, 1  ;;  %v9367_v60 = vrot.slane %v19835_v36, 2 }
 0x8fd   : > { %v8614_v48 = vrot.slane %v19838_v13, 1  ;;  %v9365_v4 = vrot.slane %v19838_v13, 2 }
 0x8fe   : > { %v8617_v10 = vrot.slane %v19842_v7, 1  ;;  %v9368_v62 = vrot.slane %v19842_v7, 2  ;;  %v8112_v30 = vpop.f32.mrb[60].mxu1 }
 0x8ff   : > { %v8369_v52 = vadd.f32 %v19824_v1, %v8112_v30  ;;  %v8615_v31 = vsel %vm466_vm2, %v8613_v39, %v8614_v48  ;;  %v19857_v46 = vsel %vm1417_vm0, %v9364_v63, %v9365_v4  ;;  %v8114_v41 = vpop.f32.mrb[61].mxu1  ;;  %v16016_v30 = vld [vmem:[%s21268_s3 + $0x24] ss:$8 sps:$4 sm:$0xff]  }
 0x900   : > { %v8370_v61 = vadd.f32 %v19828_v42, %v8114_v41  ;;  %v8116_v16 = vpop.f32.mrb[62].mxu1  ;;  %v8618_v29 = vsel %vm466_vm2, %v8616_v3, %v8617_v10  ;;  %v19862_v2 = vsel %vm1417_vm0, %v9367_v60, %v9368_v62  ;;  %v16011_v3 = vld [vmem:[%s21268_s3 + $0x10] ss:$8 sps:$4 sm:$0xff]  }
 0x901   : > { %v8441_v17 = vmax.f32 %v8369_v52, 0.0  ;;  %v8371_v20 = vadd.f32 %v19824_v1, %v8116_v16  ;;  %v8118_v18 = vpop.f32.mrb[63].mxu1 }
 0x902   : > { %v8442_v37 = vmax.f32 %v8370_v61, 0.0  ;;  %v8372_v6 = vadd.f32 %v19828_v42, %v8118_v18 }
 0x903   : > { %v8619_v14 = vrot.slane %v8441_v17, 1  ;;  %v9370_v51 = vrot.slane %v8441_v17, 2  ;;  %v8443_v21 = vmax.f32 %v8371_v20, 0.0 }
 0x904   : > { %v8621_v25 = vrot.slane %v8442_v37, 1  ;;  %v9372_v47 = vrot.slane %v8442_v37, 2  ;;  %v8444_v33 = vmax.f32 %v8372_v6, 0.0 }
 0x905   : > { %v8620_v34 = vsel %vm466_vm2, %v8614_v48, %v8619_v14  ;;  %v19868_v8 = vsel %vm1417_vm0, %v9365_v4, %v9370_v51  ;;  %v8623_v35 = vrot.slane %v8443_v21, 1  ;;  %v9374_v53 = vrot.slane %v8443_v21, 2  ;;  %v16014_v51 = vld [vmem:[%s21268_s3 + $0x20] ss:$8 sps:$4 sm:$0xff]  }
 0x906   : > { %v8753_v0 = vpack.c.bf16 %v8620_v34, %v8615_v31  ;;  %v8622_v44 = vsel %vm466_vm2, %v8617_v10, %v8621_v25  ;;  %v19874_v11 = vsel %vm1417_vm0, %v9368_v62, %v9372_v47  ;;  %v8122_v57 = vpop.f32.mrb[64].mxu1  ;;  %v8626_v45 = vrot.slane %v8444_v33, 1 }
 0x907   : > { %v8373_v56 = vadd.f32 %v19824_v1, %v8122_v57  ;;  %v8124_v38 = vpop.f32.mrb[65].mxu1  ;;  %v8754_v54 = vpack.c.bf16 %v8622_v44, %v8618_v29  ;;  %v9377_v15 = vrot.slane %v8444_v33, 2  ;;  %v16019_v44 = vld [vmem:[%s21268_s3 + $0x34] ss:$8 sps:$4 sm:$0xff]  }
 0x908   : > { %v8374_v19 = vadd.f32 %v19828_v42, %v8124_v38  ;;  %v8126_v55 = vpop.f32.mrb[66].mxu1 }
 0x909   : > { %v8445_v24 = vmax.f32 %v8373_v56, 0.0  ;;  %v8375_v40 = vadd.f32 %v19824_v1, %v8126_v55  ;;  %v8128_v23 = vpop.f32.mrb[67].mxu1  ;;  %13075 = vmatprep.mubr.msk.bf16.mxu0 %vm710_vm1, %v8754_v54 }
 0x90a   : > { %v8446_v26 = vmax.f32 %v8374_v19, 0.0  ;;  %v8376_v58 = vadd.f32 %v19828_v42, %v8128_v23  ;;  %8981 = vmatmul.mubr.bf16.vlgmr.msra.gmra.mrb[56].mxu0 %v8753_v0 }
 0x90b   : > { %v8624_v28 = vrot.slane %v8445_v24, 1  ;;  %v9375_v39 = vrot.slane %v8445_v24, 2  ;;  %v8447_v63 = vmax.f32 %v8375_v40, 0.0  ;;  %9232 = vmatpush1.bf16.msra.mxu0 %v16008_v9  ;;  %v19892_v48 = vpack.c.bf16 %v8445_v24, %v8443_v21 }
 0x90c   : > { %v19894_v4 = vpack.c.bf16 %v8446_v26, %v8444_v33  ;;  %v8627_v60 = vrot.slane %v8446_v26, 1  ;;  %v9378_v10 = vrot.slane %v8446_v26, 2  ;;  %v8448_v62 = vmax.f32 %v8376_v58, 0.0  ;;  %9233 = vmatprep.subr.bf16.mxu0 %v16013_v5 }
 0x90d   : > { %v8629_v52 = vrot.slane %v8447_v63, 1  ;;  %v9380_v31 = vrot.slane %v8447_v63, 2  ;;  %v8625_v41 = vsel %vm466_vm2, %v8623_v35, %v8624_v28  ;;  %v9376_v61 = vsel %vm1417_vm0, %v9374_v53, %v9375_v39  ;;  %v16017_v53 = vld [vmem:[%s21268_s3 + $0x30] ss:$8 sps:$4 sm:$0xff]  }
 0x90e   : > { %v8631_v16 = vrot.slane %v8448_v62, 1  ;;  %v9382_v29 = vrot.slane %v8448_v62, 2  ;;  %v8132_v17 = vpop.f32.mrb[68].mxu1  ;;  %v8628_v20 = vsel %vm466_vm2, %v8626_v45, %v8627_v60  ;;  %v9379_v18 = vsel %vm1417_vm0, %v9377_v15, %v9378_v10  ;;  %v16022_v45 = vld [vmem:[%s21268_s3 + $0x44] ss:$8 sps:$4 sm:$0xff]  }
 0x90f   : > { %v8377_v37 = vadd.f32 %v19824_v1, %v8132_v17  ;;  %v8134_v6 = vpop.f32.mrb[69].mxu1  ;;  %v8630_v14 = vsel %vm466_vm2, %v8624_v28, %v8629_v52  ;;  %9234 = vmatpush1.bf16.msra.mxu0 %v16011_v3  ;;  %v9381_v25 = vsel %vm1417_vm0, %v9375_v39, %v9380_v31  ;;  %v16020_v31 = vld [vmem:[%s21268_s3 + $0x40] ss:$8 sps:$4 sm:$0xff]   ;;  %v16025_v17 = vld [vmem:[%s21268_s3 + $0x54] ss:$8 sps:$4 sm:$0xff]  }
 0x910   : > { %v8632_v47 = vsel %vm466_vm2, %v8627_v60, %v8631_v16  ;;  %v9383_v34 = vsel %vm1417_vm0, %v9378_v10, %v9382_v29  ;;  %v8378_v21 = vadd.f32 %v19828_v42, %v8134_v6  ;;  %v8136_v33 = vpop.f32.mrb[70].mxu1  ;;  %v19912_v0 = vpack.c.bf16 %v8630_v14, %v8625_v41  ;;  %9235 = vmatprep.subr.bf16.mxu0 %v16016_v30 }
 0x911   : > { %v8449_v57 = vmax.f32 %v8377_v37, 0.0  ;;  %v8379_v56 = vadd.f32 %v19824_v1, %v8136_v33  ;;  %v8138_v38 = vpop.f32.mrb[71].mxu1  ;;  %v19918_v54 = vpack.c.bf16 %v8632_v47, %v8628_v20  ;;  %v19920_v9 = vpack.c.bf16 %v9383_v34, %v9379_v18  ;;  %v16023_v34 = vld [vmem:[%s21268_s3 + $0x50] ss:$8 sps:$4 sm:$0xff]  }
 0x912   : > { %22073 = vst [vmem:[#allocation13_spill] sm:$0xff] %v19912_v0  ;;  %v8450_v19 = vmax.f32 %v8378_v21, 0.0  ;;  %v8380_v55 = vadd.f32 %v19828_v42, %v8138_v38  ;;  %v19923_v5 = vpack.c.bf16 %v9381_v25, %v9376_v61 }
 0x913   : > { %22074 = vst [vmem:[#allocation23_spill] sm:$0xff] %v19918_v54  ;;  %v8451_v35 = vmax.f32 %v8379_v56, 0.0  ;;  %13076 = vmatprep.mubr.msk.bf16.mxu0 %vm710_vm1, %v19918_v54  ;;  %9236 = vmatpush1.bf16.msra.mxu0 %v16014_v51  ;;  %v8633_v24 = vrot.slane %v8449_v57, 1  ;;  %v9384_v40 = vrot.slane %v8449_v57, 2 }
 0x914   : > { %v8452_v23 = vmax.f32 %v8380_v55, 0.0  ;;  %8991 = vmatmul.mubr.bf16.gmra.mrb[60].mxu0 %v19912_v0  ;;  %9237 = vmatprep.subr.bf16.mxu0 %v16019_v44  ;;  %v8636_v15 = vrot.slane %v8450_v19, 1  ;;  %v9387_v39 = vrot.slane %v8450_v19, 2  ;;  %v16028_v44 = vld [vmem:[%s21268_s3 + $0x64] ss:$8 sps:$4 sm:$0xff]  }
 0x915   : > { %v8634_v26 = vrot.slane %v8451_v35, 1  ;;  %v9385_v58 = vrot.slane %v8451_v35, 2  ;;  %v19934_v28 = vpack.c.bf16 %v8451_v35, %v8449_v57 }
 0x916   : > { %v19936_v63 = vpack.c.bf16 %v8452_v23, %v8450_v19  ;;  %v8637_v3 = vrot.slane %v8452_v23, 1  ;;  %v9388_v60 = vrot.slane %v8452_v23, 2  ;;  %v8142_v10 = vpop.f32.mrb[72].mxu1 }
 0x917   : > { %v8381_v62 = vadd.f32 %v19824_v1, %v8142_v10  ;;  %v8144_v30 = vpop.f32.mrb[73].mxu1  ;;  %v8635_v52 = vsel %vm466_vm2, %v8633_v24, %v8634_v26  ;;  %9238 = vmatpush1.bf16.msra.mxu0 %v16017_v53  ;;  %v9386_v41 = vsel %vm1417_vm0, %v9384_v40, %v9385_v58 }
 0x918   : > { %v8382_v61 = vadd.f32 %v19828_v42, %v8144_v30  ;;  %v8146_v16 = vpop.f32.mrb[74].mxu1  ;;  %v8638_v29 = vsel %vm466_vm2, %v8636_v15, %v8637_v3  ;;  %9239 = vmatprep.subr.bf16.mxu0 %v16022_v45  ;;  %v9389_v20 = vsel %vm1417_vm0, %v9387_v39, %v9388_v60  ;;  %v16026_v15 = vld [vmem:[%s21268_s3 + $0x60] ss:$8 sps:$4 sm:$0xff]  }
 0x919   : > { %v8453_v18 = vmax.f32 %v8381_v62, 0.0  ;;  %v8383_v37 = vadd.f32 %v19824_v1, %v8146_v16  ;;  %v8148_v6 = vpop.f32.mrb[75].mxu1 }
 0x91a   : > { %v8454_v14 = vmax.f32 %v8382_v61, 0.0  ;;  %v8384_v51 = vadd.f32 %v19828_v42, %v8148_v6 }
 0x91b   : > { %v8639_v25 = vrot.slane %v8453_v18, 1  ;;  %v9390_v47 = vrot.slane %v8453_v18, 2  ;;  %9240 = vmatpush1.bf16.msra.mxu0 %v16020_v31  ;;  %v8455_v57 = vmax.f32 %v8383_v37, 0.0  ;;  %v16029_v37 = vld [vmem:[%s21268_s3 + $0x70] ss:$8 sps:$4 sm:$0xff]  }
 0x91c   : > { %v8641_v21 = vrot.slane %v8454_v14, 1  ;;  %v9392_v33 = vrot.slane %v8454_v14, 2  ;;  %9241 = vmatprep.subr.bf16.mxu0 %v16025_v17  ;;  %v8456_v35 = vmax.f32 %v8384_v51, 0.0 }
 0x91d   : > { %v8640_v56 = vsel %vm466_vm2, %v8634_v26, %v8639_v25  ;;  %v9391_v38 = vsel %vm1417_vm0, %v9385_v58, %v9390_v47  ;;  %v8643_v10 = vrot.slane %v8455_v57, 1  ;;  %v9394_v62 = vrot.slane %v8455_v57, 2 }
 0x91e   : > { %v8642_v19 = vsel %vm466_vm2, %v8637_v3, %v8641_v21  ;;  %v9393_v55 = vsel %vm1417_vm0, %v9388_v60, %v9392_v33  ;;  %v8152_v53 = vpop.f32.mrb[76].mxu1  ;;  %v19965_v45 = vpack.c.bf16 %v8640_v56, %v8635_v52  ;;  %v16031_v3 = vld [vmem:[%s21268_s3 + $0x74] ss:$8 sps:$4 sm:$0xff]   ;;  %v19976_v60 = vpack.c.bf16 %v9391_v38, %v9386_v41 }
 0x91f   : > { %v8385_v24 = vadd.f32 %v19824_v1, %v8152_v53  ;;  %v8154_v40 = vpop.f32.mrb[77].mxu1  ;;  %v19963_v23 = vpack.c.bf16 %v8642_v19, %v8638_v29  ;;  %9242 = vmatpush1.bf16.msra.mxu0 %v16023_v34  ;;  %v19970_v26 = vpack.c.bf16 %v9393_v55, %v9389_v20  ;;  %v8646_v61 = vrot.slane %v8456_v35, 1  ;;  %v16034_v34 = vld [vmem:[%s21268_s3 + $0x84] ss:$8 sps:$4 sm:$0xff]  }
 0x920   : > { %22076 = vst [vmem:[#allocation22_spill] sm:$0xff] %v19965_v45  ;;  %v8386_v58 = vadd.f32 %v19828_v42, %v8154_v40  ;;  %v8156_v39 = vpop.f32.mrb[78].mxu1  ;;  %9243 = vmatprep.subr.bf16.mxu0 %v16028_v44  ;;  %v9397_v16 = vrot.slane %v8456_v35, 2 }
 0x921   : > { %22075 = vst [vmem:[#allocation12_spill] sm:$0xff] %v19963_v23  ;;  %v8457_v30 = vmax.f32 %v8385_v24, 0.0  ;;  %v8387_v52 = vadd.f32 %v19824_v1, %v8156_v39  ;;  %v8158_v31 = vpop.f32.mrb[79].mxu1  ;;  %13077 = vmatprep.mubr.msk.bf16.mxu0 %vm710_vm1, %v19963_v23 }
 0x922   : > { %v8458_v29 = vmax.f32 %v8386_v58, 0.0  ;;  %v8388_v17 = vadd.f32 %v19828_v42, %v8158_v31  ;;  %9001 = vmatmul.mubr.bf16.gmra.mrb[64].mxu0 %v19965_v45 }
 0x923   : > { %v8644_v20 = vrot.slane %v8457_v30, 1  ;;  %v9395_v18 = vrot.slane %v8457_v30, 2  ;;  %v8459_v41 = vmax.f32 %v8387_v52, 0.0  ;;  %9244 = vmatpush1.bf16.msra.mxu0 %v16026_v15  ;;  %v19986_v6 = vpack.c.bf16 %v8457_v30, %v8455_v57  ;;  %v16032_v15 = vld [vmem:[%s21268_s3 + $0x80] ss:$8 sps:$4 sm:$0xff]  }
 0x924   : > { %v19988_v14 = vpack.c.bf16 %v8458_v29, %v8456_v35  ;;  %v8647_v51 = vrot.slane %v8458_v29, 1  ;;  %v9398_v25 = vrot.slane %v8458_v29, 2  ;;  %v8460_v47 = vmax.f32 %v8388_v17, 0.0  ;;  %9245 = vmatprep.subr.bf16.mxu0 %v16031_v3  ;;  %v16037_v52 = vld [vmem:[%s21268_s3 + $0x94] ss:$8 sps:$4 sm:$0xff]  }
 0x925   : > { %v8649_v21 = vrot.slane %v8459_v41, 1  ;;  %v9400_v33 = vrot.slane %v8459_v41, 2  ;;  %v8645_v44 = vsel %vm466_vm2, %v8643_v10, %v8644_v20  ;;  %v9396_v56 = vsel %vm1417_vm0, %v9394_v62, %v9395_v18 }
 0x926   : > { %v8651_v38 = vrot.slane %v8460_v47, 1  ;;  %v9402_v19 = vrot.slane %v8460_v47, 2  ;;  %v8162_v57 = vpop.f32.mrb[80].mxu1  ;;  %v8648_v55 = vsel %vm466_vm2, %v8646_v61, %v8647_v51  ;;  %v9399_v35 = vsel %vm1417_vm0, %v9397_v16, %v9398_v25 }
 0x927   : > { %v8389_v53 = vadd.f32 %v19824_v1, %v8162_v57  ;;  %v8164_v24 = vpop.f32.mrb[81].mxu1  ;;  %v8650_v40 = vsel %vm466_vm2, %v8644_v20, %v8649_v21  ;;  %9246 = vmatpush1.bf16.msra.mxu0 %v16029_v37  ;;  %v9401_v58 = vsel %vm1417_vm0, %v9395_v18, %v9400_v33  ;;  %v16040_v21 = vld [vmem:[%s21268_s3 + $0xa4] ss:$8 sps:$4 sm:$0xff]  }
 0x928   : > { %v8652_v39 = vsel %vm466_vm2, %v8647_v51, %v8651_v38  ;;  %v9403_v3 = vsel %vm1417_vm0, %v9398_v25, %v9402_v19  ;;  %v8390_v10 = vadd.f32 %v19828_v42, %v8164_v24  ;;  %v8166_v62 = vpop.f32.mrb[82].mxu1  ;;  %v20006_v30 = vpack.c.bf16 %v8650_v40, %v8645_v44  ;;  %9247 = vmatprep.subr.bf16.mxu0 %v16034_v34  ;;  %v16035_v51 = vld [vmem:[%s21268_s3 + $0x90] ss:$8 sps:$4 sm:$0xff]  }
 0x929   : > { %v8461_v31 = vmax.f32 %v8389_v53, 0.0  ;;  %v8391_v61 = vadd.f32 %v19824_v1, %v8166_v62  ;;  %v8168_v16 = vpop.f32.mrb[83].mxu1  ;;  %v20012_v29 = vpack.c.bf16 %v8652_v39, %v8648_v55  ;;  %v20014_v17 = vpack.c.bf16 %v9403_v3, %v9399_v35 }
 0x92a   : > { %22077 = vst [vmem:[#allocation24_spill] sm:$0xff] %v20006_v30  ;;  %v8462_v20 = vmax.f32 %v8390_v10, 0.0  ;;  %v8392_v18 = vadd.f32 %v19828_v42, %v8168_v16  ;;  %v20017_v41 = vpack.c.bf16 %v9401_v58, %v9396_v56  ;;  %v16038_v58 = vld [vmem:[%s21268_s3 + $0xa0] ss:$8 sps:$4 sm:$0xff]  }
 0x92b   : > { %22078 = vst [vmem:[#allocation21_spill] sm:$0xff] %v20012_v29  ;;  %v8463_v37 = vmax.f32 %v8391_v61, 0.0  ;;  %13078 = vmatprep.mubr.msk.bf16.mxu0 %vm710_vm1, %v20012_v29  ;;  %9248 = vmatpush1.bf16.msra.mxu0 %v16032_v15  ;;  %v8653_v25 = vrot.slane %v8461_v31, 1  ;;  %v9404_v47 = vrot.slane %v8461_v31, 2 }
 0x92c   : > { %v8464_v34 = vmax.f32 %v8392_v18, 0.0  ;;  %9011 = vmatmul.mubr.bf16.gmra.mrb[68].mxu0 %v20006_v30  ;;  %9249 = vmatprep.subr.bf16.mxu0 %v16037_v52  ;;  %v8656_v33 = vrot.slane %v8462_v20, 1  ;;  %v9407_v19 = vrot.slane %v8462_v20, 2  ;;  %v16043_v52 = vld [vmem:[%s21268_s3 + $0xb4] ss:$8 sps:$4 sm:$0xff]  }
 0x92d   : > { %v8654_v44 = vrot.slane %v8463_v37, 1  ;;  %v9405_v56 = vrot.slane %v8463_v37, 2  ;;  %v20028_v38 = vpack.c.bf16 %v8463_v37, %v8461_v31 }
 0x92e   : > { %v20030_v57 = vpack.c.bf16 %v8464_v34, %v8462_v20  ;;  %v8657_v55 = vrot.slane %v8464_v34, 1  ;;  %v9408_v35 = vrot.slane %v8464_v34, 2  ;;  %v8172_v53 = vpop.f32.mrb[84].mxu1 }
 0x92f   : > { %v8393_v24 = vadd.f32 %v19824_v1, %v8172_v53  ;;  %v8174_v40 = vpop.f32.mrb[85].mxu1  ;;  %v8655_v15 = vsel %vm466_vm2, %v8653_v25, %v8654_v44  ;;  %9250 = vmatpush1.bf16.msra.mxu0 %v16035_v51  ;;  %v9406_v39 = vsel %vm1417_vm0, %v9404_v47, %v9405_v56  ;;  %v16041_v47 = vld [vmem:[%s21268_s3 + $0xb0] ss:$8 sps:$4 sm:$0xff]  }
 0x930   : > { %v8394_v3 = vadd.f32 %v19828_v42, %v8174_v40  ;;  %v8176_v10 = vpop.f32.mrb[86].mxu1  ;;  %v8658_v62 = vsel %vm466_vm2, %v8656_v33, %v8657_v55  ;;  %9251 = vmatprep.subr.bf16.mxu0 %v16040_v21  ;;  %v9409_v31 = vsel %vm1417_vm0, %v9407_v19, %v9408_v35  ;;  %v16046_v33 = vld [vmem:[%s21268_s3 + $0x184] ss:$8 sps:$4 sm:$0xff]  }
 0x931   : > { %v8465_v61 = vmax.f32 %v8393_v24, 0.0  ;;  %v8395_v16 = vadd.f32 %v19824_v1, %v8176_v10  ;;  %v8178_v20 = vpop.f32.mrb[87].mxu1 }
 0x932   : > { %v8466_v18 = vmax.f32 %v8394_v3, 0.0  ;;  %v8396_v37 = vadd.f32 %v19828_v42, %v8178_v20 }
 0x933   : > { %v8659_v51 = vrot.slane %v8465_v61, 1  ;;  %v9410_v25 = vrot.slane %v8465_v61, 2  ;;  %9252 = vmatpush1.bf16.msra.mxu0 %v16038_v58  ;;  %v8467_v19 = vmax.f32 %v8395_v16, 0.0 }
 0x934   : > { %v8661_v34 = vrot.slane %v8466_v18, 1  ;;  %v9412_v21 = vrot.slane %v8466_v18, 2  ;;  %9253 = vmatprep.subr.bf16.mxu0 %v16043_v52  ;;  %v8468_v3 = vmax.f32 %v8396_v37, 0.0 }
 0x935   : > { %v8660_v53 = vsel %vm466_vm2, %v8654_v44, %v8659_v51  ;;  %v9411_v24 = vsel %vm1417_vm0, %v9405_v56, %v9410_v25 }
 0x936   : > { %v8662_v40 = vsel %vm466_vm2, %v8657_v55, %v8661_v34  ;;  %v9413_v58 = vsel %vm1417_vm0, %v9408_v35, %v9412_v21  ;;  %v8182_v10 = vpop.f32.mrb[88].mxu1  ;;  %v20059_v52 = vpack.c.bf16 %v8660_v53, %v8655_v15  ;;  %v20064_v56 = vpack.c.bf16 %v9411_v24, %v9406_v39 }
 0x937   : > { %v8397_v61 = vadd.f32 %v19824_v1, %v8182_v10  ;;  %v8184_v20 = vpop.f32.mrb[89].mxu1  ;;  %v20057_v18 = vpack.c.bf16 %v8662_v40, %v8658_v62  ;;  %9254 = vmatpush1.bf16.msra.mxu0 %v16041_v47  ;;  %v20061_v32 = vpack.c.bf16 %v9413_v58, %v9409_v31  ;;  %v8663_v55 = vrot.slane %v8467_v19, 1 }
 0x938   : > { %22080 = vst [vmem:[#allocation31_spill] sm:$0xff] %v20059_v52  ;;  %v8398_v44 = vadd.f32 %v19828_v42, %v8184_v20  ;;  %v8186_v16 = vpop.f32.mrb[90].mxu1  ;;  %9699 = vmatprep.subr.bf16.mxu0 %v16046_v33  ;;  %v9414_v35 = vrot.slane %v8467_v19, 2  ;;  %v8666_v15 = vrot.slane %v8468_v3, 1  ;;  %v9417_v62 = vrot.slane %v8468_v3, 2 }
 0x939   : > { %22079 = vst [vmem:[#allocation16_spill] sm:$0xff] %v20057_v18  ;;  %v8469_v37 = vmax.f32 %v8397_v61, 0.0  ;;  %v8399_v51 = vadd.f32 %v19824_v1, %v8186_v16  ;;  %v8188_v25 = vpop.f32.mrb[91].mxu1  ;;  %13079 = vmatprep.mubr.msk.bf16.mxu0 %vm710_vm1, %v20057_v18 }
 0x93a   : > { %v8470_v47 = vmax.f32 %v8398_v44, 0.0  ;;  %v8400_v31 = vadd.f32 %v19828_v42, %v8188_v25  ;;  %9021 = vmatmul.mubr.bf16.gmra.mrb[72].mxu0 %v20059_v52 }
 0x93b   : > { %v8664_v34 = vrot.slane %v8469_v37, 1  ;;  %v9415_v21 = vrot.slane %v8469_v37, 2  ;;  %v8471_v39 = vmax.f32 %v8399_v51, 0.0  ;;  %v20071_v33 = vpack.c.bf16 %v8469_v37, %v8467_v19 }
 0x93c   : > { %v20073_v53 = vpack.c.bf16 %v8470_v47, %v8468_v3  ;;  %v8667_v24 = vrot.slane %v8470_v47, 1  ;;  %v9418_v40 = vrot.slane %v8470_v47, 2  ;;  %v8472_v58 = vmax.f32 %v8400_v31, 0.0 }
 0x93d   : > { %v8669_v10 = vrot.slane %v8471_v39, 1  ;;  %v9420_v61 = vrot.slane %v8471_v39, 2  ;;  %v8665_v20 = vsel %vm466_vm2, %v8663_v55, %v8664_v34  ;;  %v9416_v44 = vsel %vm1417_vm0, %v9414_v35, %v9415_v21 }
 0x93e   : > { %v8671_v16 = vrot.slane %v8472_v58, 1  ;;  %v9422_v25 = vrot.slane %v8472_v58, 2  ;;  %v8192_v59 = vpop.f32.mrb[92].mxu1  ;;  %v8668_v12 = vsel %vm466_vm2, %v8666_v15, %v8667_v24  ;;  %v9419_v51 = vsel %vm1417_vm0, %v9417_v62, %v9418_v40 }
 0x93f   : > { %v8401_v19 = vadd.f32 %v19824_v1, %v8192_v59  ;;  %v8194_v3 = vpop.f32.mrb[93].mxu1  ;;  %v8670_v37 = vsel %vm466_vm2, %v8664_v34, %v8669_v10  ;;  %v9421_v47 = vsel %vm1417_vm0, %v9415_v21, %v9420_v61 }
 0x940   : > { %v8672_v31 = vsel %vm466_vm2, %v8667_v24, %v8671_v16  ;;  %v9423_v55 = vsel %vm1417_vm0, %v9418_v40, %v9422_v25  ;;  %v8402_v35 = vadd.f32 %v19828_v42, %v8194_v3  ;;  %v8196_v39 = vpop.f32.mrb[94].mxu1  ;;  %v20085_v58 = vpack.c.bf16 %v8670_v37, %v8665_v20 }
 0x941   : > { %v8473_v49 = vmax.f32 %v8401_v19, 0.0  ;;  %v8403_v15 = vadd.f32 %v19824_v1, %v8196_v39  ;;  %v8198_v62 = vpop.f32.mrb[95].mxu1  ;;  %v20088_v50 = vpack.c.bf16 %v8672_v31, %v8668_v12  ;;  %v20090_v59 = vpack.c.bf16 %v9423_v55, %v9419_v51 }
 0x942   : > { %22081 = vst [vmem:[#allocation15_spill] sm:$0xff] %v20085_v58  ;;  %v8474_v34 = vmax.f32 %v8402_v35, 0.0  ;;  %v8404_v21 = vadd.f32 %v19828_v42, %v8198_v62  ;;  %v20093_v10 = vpack.c.bf16 %v9421_v47, %v9416_v44 }
 0x943   : > { %22082 = vst [vmem:[#allocation32_spill] sm:$0xff] %v20088_v50  ;;  %v8475_v24 = vmax.f32 %v8403_v15, 0.0  ;;  %13080 = vmatprep.mubr.msk.bf16.mxu0 %vm710_vm1, %v20088_v50  ;;  %v8673_v40 = vrot.slane %v8473_v49, 1  ;;  %v9424_v61 = vrot.slane %v8473_v49, 2 }
 0x944   : > { %v8476_v20 = vmax.f32 %v8404_v21, 0.0  ;;  %9031 = vmatmul.mubr.bf16.gmra.mrb[76].mxu0 %v20085_v58  ;;  %v8676_v16 = vrot.slane %v8474_v34, 1  ;;  %v9427_v51 = vrot.slane %v8474_v34, 2 }
 0x945   : > { %v8674_v25 = vrot.slane %v8475_v24, 1  ;;  %v9425_v12 = vrot.slane %v8475_v24, 2  ;;  %v20098_v19 = vpack.c.bf16 %v8475_v24, %v8473_v49 }
 0x946   : > { %v20100_v3 = vpack.c.bf16 %v8476_v20, %v8474_v34  ;;  %v8677_v37 = vrot.slane %v8476_v20, 1  ;;  %v9428_v44 = vrot.slane %v8476_v20, 2  ;;  %v8202_v47 = vpop.f32.mrb[96].mxu1 }
 0x947   : > { %v8405_v31 = vadd.f32 %v19824_v1, %v8202_v47  ;;  %v8204_v55 = vpop.f32.mrb[97].mxu1  ;;  %v8675_v35 = vsel %vm466_vm2, %v8673_v40, %v8674_v25  ;;  %v9426_v39 = vsel %vm1417_vm0, %v9424_v61, %v9425_v12 }
 0x948   : > { %v8406_v15 = vadd.f32 %v19828_v42, %v8204_v55  ;;  %v8206_v62 = vpop.f32.mrb[98].mxu1  ;;  %v8678_v21 = vsel %vm466_vm2, %v8676_v16, %v8677_v37  ;;  %v9429_v49 = vsel %vm1417_vm0, %v9427_v51, %v9428_v44 }
 0x949   : > { %v8477_v24 = vmax.f32 %v8405_v31, 0.0  ;;  %v8407_v34 = vadd.f32 %v19824_v1, %v8206_v62  ;;  %v8208_v27 = vpop.f32.mrb[99].mxu1 }
 0x94a   : > { %v8478_v20 = vmax.f32 %v8406_v15, 0.0  ;;  %v8408_v22 = vadd.f32 %v19828_v42, %v8208_v27 }
 0x94b   : > { %v8679_v47 = vrot.slane %v8477_v24, 1  ;;  %v9430_v58 = vrot.slane %v8477_v24, 2  ;;  %v8479_v52 = vmax.f32 %v8407_v34, 0.0 }
 0x94c   : > { %v8681_v50 = vrot.slane %v8478_v20, 1  ;;  %v9432_v40 = vrot.slane %v8478_v20, 2  ;;  %v8480_v31 = vmax.f32 %v8408_v22, 0.0 }
 0x94d   : > { %v8680_v61 = vsel %vm466_vm2, %v8674_v25, %v8679_v47  ;;  %v9431_v55 = vsel %vm1417_vm0, %v9425_v12, %v9430_v58  ;;  %v8683_v58 = vrot.slane %v8479_v52, 1 }
 0x94e   : > { %v8682_v16 = vsel %vm466_vm2, %v8677_v37, %v8681_v50  ;;  %v9433_v51 = vsel %vm1417_vm0, %v9428_v44, %v9432_v40  ;;  %v8212_v18 = vpop.f32.mrb[100].mxu1  ;;  %v20117_v27 = vpack.c.bf16 %v8680_v61, %v8675_v35  ;;  %v20122_v20 = vpack.c.bf16 %v9431_v55, %v9426_v39 }
 0x94f   : > { %v8409_v62 = vadd.f32 %v19824_v1, %v8212_v18  ;;  %v8214_v15 = vpop.f32.mrb[101].mxu1  ;;  %v20115_v30 = vpack.c.bf16 %v8682_v16, %v8678_v21  ;;  %v20119_v24 = vpack.c.bf16 %v9433_v51, %v9429_v49  ;;  %v9434_v50 = vrot.slane %v8479_v52, 2 }
 0x950   : > { %22084 = vst [vmem:[#allocation19_spill] sm:$0xff] %v20117_v27  ;;  %v8410_v34 = vadd.f32 %v19828_v42, %v8214_v15  ;;  %v8216_v25 = vpop.f32.mrb[102].mxu1  ;;  %22086 = vst [vmem:[#allocation50_spill] sm:$0xff] %v20122_v20  ;;  %v8686_v18 = vrot.slane %v8480_v31, 1  ;;  %v9437_v44 = vrot.slane %v8480_v31, 2 }
 0x951   : > { %22083 = vst [vmem:[#allocation39_spill] sm:$0xff] %v20115_v30  ;;  %22085 = vst [vmem:[#allocation20_spill] sm:$0xff] %v20119_v24  ;;  %v8481_v12 = vmax.f32 %v8409_v62, 0.0  ;;  %v8411_v22 = vadd.f32 %v19824_v1, %v8216_v25  ;;  %v8218_v37 = vpop.f32.mrb[103].mxu1  ;;  %13081 = vmatprep.mubr.msk.bf16.mxu0 %vm710_vm1, %v20115_v30 }
 0x952   : > { %v8482_v35 = vmax.f32 %v8410_v34, 0.0  ;;  %v8412_v21 = vadd.f32 %v19828_v42, %v8218_v37  ;;  %9041 = vmatmul.mubr.bf16.gmra.mrb[80].mxu0 %v20117_v27 }
 0x953   : > { %v8684_v49 = vrot.slane %v8481_v12, 1  ;;  %v9435_v47 = vrot.slane %v8481_v12, 2  ;;  %v8483_v39 = vmax.f32 %v8411_v22, 0.0  ;;  %v20129_v40 = vpack.c.bf16 %v8481_v12, %v8479_v52 }
 0x954   : > { %v20131_v61 = vpack.c.bf16 %v8482_v35, %v8480_v31  ;;  %v8687_v55 = vrot.slane %v8482_v35, 1  ;;  %v9438_v16 = vrot.slane %v8482_v35, 2  ;;  %v8484_v51 = vmax.f32 %v8412_v21, 0.0 }
 0x955   : > { %v8689_v62 = vrot.slane %v8483_v39, 1  ;;  %v9440_v15 = vrot.slane %v8483_v39, 2  ;;  %v8685_v25 = vsel %vm466_vm2, %v8683_v58, %v8684_v49  ;;  %v9436_v34 = vsel %vm1417_vm0, %v9434_v50, %v9435_v47 }
 0x956   : > { %v8691_v30 = vrot.slane %v8484_v51, 1  ;;  %v9442_v37 = vrot.slane %v8484_v51, 2  ;;  %v8222_v29 = vpop.f32.mrb[104].mxu1  ;;  %v8688_v27 = vsel %vm466_vm2, %v8686_v18, %v8687_v55  ;;  %v9439_v22 = vsel %vm1417_vm0, %v9437_v44, %v9438_v16 }
 0x957   : > { %v8413_v52 = vadd.f32 %v19824_v1, %v8222_v29  ;;  %v8224_v31 = vpop.f32.mrb[105].mxu1  ;;  %v8690_v12 = vsel %vm466_vm2, %v8684_v49, %v8689_v62  ;;  %v9441_v35 = vsel %vm1417_vm0, %v9435_v47, %v9440_v15 }
 0x958   : > { %v8692_v21 = vsel %vm466_vm2, %v8687_v55, %v8691_v30  ;;  %v9443_v58 = vsel %vm1417_vm0, %v9438_v16, %v9442_v37  ;;  %v8414_v50 = vadd.f32 %v19828_v42, %v8224_v31  ;;  %v8226_v39 = vpop.f32.mrb[106].mxu1  ;;  %v20143_v51 = vpack.c.bf16 %v8690_v12, %v8685_v25 }
 0x959   : > { %v8485_v45 = vmax.f32 %v8413_v52, 0.0  ;;  %v8415_v18 = vadd.f32 %v19824_v1, %v8226_v39  ;;  %v8228_v44 = vpop.f32.mrb[107].mxu1  ;;  %v20146_v23 = vpack.c.bf16 %v8692_v21, %v8688_v27  ;;  %v20148_v29 = vpack.c.bf16 %v9443_v58, %v9439_v22 }
 0x95a   : > { %22087 = vst [vmem:[#allocation51_spill] sm:$0xff] %v20143_v51  ;;  %v8486_v49 = vmax.f32 %v8414_v50, 0.0  ;;  %v8416_v47 = vadd.f32 %v19828_v42, %v8228_v44  ;;  %v20151_v62 = vpack.c.bf16 %v9441_v35, %v9436_v34 }
 0x95b   : > { %22088 = vst [vmem:[#allocation57_spill] sm:$0xff] %v20146_v23  ;;  %22089 = vst [vmem:[#allocation59_spill] sm:$0xff] %v20148_v29  ;;  %v8487_v30 = vmax.f32 %v8415_v18, 0.0  ;;  %13082 = vmatprep.mubr.msk.bf16.mxu0 %vm710_vm1, %v20146_v23  ;;  %v8693_v55 = vrot.slane %v8485_v45, 1  ;;  %v9444_v16 = vrot.slane %v8485_v45, 2 }
 0x95c   : > { %22090 = vst [vmem:[#allocation60_spill] sm:$0xff] %v20151_v62  ;;  %v8488_v15 = vmax.f32 %v8416_v47, 0.0  ;;  %9051 = vmatmul.mubr.bf16.gmra.mrb[84].mxu0 %v20143_v51  ;;  %v8696_v25 = vrot.slane %v8486_v49, 1  ;;  %v9447_v22 = vrot.slane %v8486_v49, 2 }
 0x95d   : > { %v8694_v37 = vrot.slane %v8487_v30, 1  ;;  %v9445_v27 = vrot.slane %v8487_v30, 2  ;;  %v20156_v52 = vpack.c.bf16 %v8487_v30, %v8485_v45 }
 0x95e   : > { %v20158_v31 = vpack.c.bf16 %v8488_v15, %v8486_v49  ;;  %v8697_v12 = vrot.slane %v8488_v15, 1  ;;  %v9448_v34 = vrot.slane %v8488_v15, 2  ;;  %v8232_v35 = vpop.f32.mrb[108].mxu1 }
 0x95f   : > { %v8417_v21 = vadd.f32 %v19824_v1, %v8232_v35  ;;  %v8234_v58 = vpop.f32.mrb[109].mxu1  ;;  %v8695_v50 = vsel %vm466_vm2, %v8693_v55, %v8694_v37  ;;  %v9446_v39 = vsel %vm1417_vm0, %v9444_v16, %v9445_v27 }
 0x960   : > { %v8418_v18 = vadd.f32 %v19828_v42, %v8234_v58  ;;  %v8236_v44 = vpop.f32.mrb[110].mxu1  ;;  %v8698_v47 = vsel %vm466_vm2, %v8696_v25, %v8697_v12  ;;  %v9449_v45 = vsel %vm1417_vm0, %v9447_v22, %v9448_v34 }
 0x961   : > { %v8489_v30 = vmax.f32 %v8417_v21, 0.0  ;;  %v8419_v49 = vadd.f32 %v19824_v1, %v8236_v44  ;;  %v8238_v51 = vpop.f32.mrb[111].mxu1 }
 0x962   : > { %v8490_v15 = vmax.f32 %v8418_v18, 0.0  ;;  %v8420_v23 = vadd.f32 %v19828_v42, %v8238_v51 }
 0x963   : > { %v8699_v35 = vrot.slane %v8489_v30, 1  ;;  %v9450_v0 = vrot.slane %v8489_v30, 2  ;;  %v8491_v62 = vmax.f32 %v8419_v49, 0.0 }
 0x964   : > { %v8701_v54 = vrot.slane %v8490_v15, 1  ;;  %v9452_v55 = vrot.slane %v8490_v15, 2  ;;  %v8492_v21 = vmax.f32 %v8420_v23, 0.0 }
 0x965   : > { %v8700_v16 = vsel %vm466_vm2, %v8694_v37, %v8699_v35  ;;  %v9451_v58 = vsel %vm1417_vm0, %v9445_v27, %v9450_v0  ;;  %v8703_v0 = vrot.slane %v8491_v62, 1 }
 0x966   : > { %v8702_v25 = vsel %vm466_vm2, %v8697_v12, %v8701_v54  ;;  %v9453_v22 = vsel %vm1417_vm0, %v9448_v34, %v9452_v55  ;;  %v8242_v29 = vpop.f32.mrb[112].mxu1  ;;  %v20175_v51 = vpack.c.bf16 %v8700_v16, %v8695_v50  ;;  %v20180_v15 = vpack.c.bf16 %v9451_v58, %v9446_v39 }
 0x967   : > { %v8421_v44 = vadd.f32 %v19824_v1, %v8242_v29  ;;  %v8244_v18 = vpop.f32.mrb[113].mxu1  ;;  %v20173_v20 = vpack.c.bf16 %v8702_v25, %v8698_v47  ;;  %v20177_v30 = vpack.c.bf16 %v9453_v22, %v9449_v45  ;;  %v9454_v54 = vrot.slane %v8491_v62, 2 }
 0x968   : > { %22092 = vst [vmem:[#allocation29_spill] sm:$0xff] %v20175_v51  ;;  %v8422_v49 = vadd.f32 %v19828_v42, %v8244_v18  ;;  %v8246_v37 = vpop.f32.mrb[114].mxu1  ;;  %22094 = vst [vmem:[#allocation30_spill] sm:$0xff] %v20180_v15  ;;  %v8706_v29 = vrot.slane %v8492_v21, 1  ;;  %v9457_v34 = vrot.slane %v8492_v21, 2 }
 0x969   : > { %22091 = vst [vmem:[#allocation64_spill] sm:$0xff] %v20173_v20  ;;  %22093 = vst [vmem:[#allocation25_spill] sm:$0xff] %v20177_v30  ;;  %v8493_v27 = vmax.f32 %v8421_v44, 0.0  ;;  %v8423_v23 = vadd.f32 %v19824_v1, %v8246_v37  ;;  %v8248_v12 = vpop.f32.mrb[115].mxu1  ;;  %13083 = vmatprep.mubr.msk.bf16.mxu0 %vm710_vm1, %v20173_v20 }
 0x96a   : > { %v8494_v50 = vmax.f32 %v8422_v49, 0.0  ;;  %v8424_v47 = vadd.f32 %v19828_v42, %v8248_v12  ;;  %9061 = vmatmul.mubr.bf16.gmra.mrb[88].mxu0 %v20175_v51 }
 0x96b   : > { %v8704_v45 = vrot.slane %v8493_v27, 1  ;;  %v9455_v35 = vrot.slane %v8493_v27, 2  ;;  %v8495_v39 = vmax.f32 %v8423_v23, 0.0  ;;  %v20187_v55 = vpack.c.bf16 %v8493_v27, %v8491_v62 }
 0x96c   : > { %v20189_v16 = vpack.c.bf16 %v8494_v50, %v8492_v21  ;;  %v8707_v58 = vrot.slane %v8494_v50, 1  ;;  %v9458_v25 = vrot.slane %v8494_v50, 2  ;;  %v8496_v22 = vmax.f32 %v8424_v47, 0.0 }
 0x96d   : > { %v8709_v44 = vrot.slane %v8495_v39, 1  ;;  %v9460_v18 = vrot.slane %v8495_v39, 2  ;;  %v8705_v37 = vsel %vm466_vm2, %v8703_v0, %v8704_v45  ;;  %v9456_v49 = vsel %vm1417_vm0, %v9454_v54, %v9455_v35 }
 0x96e   : > { %v8711_v20 = vrot.slane %v8496_v22, 1  ;;  %v9462_v12 = vrot.slane %v8496_v22, 2  ;;  %v8252_v15 = vpop.f32.mrb[116].mxu1  ;;  %v8708_v51 = vsel %vm466_vm2, %v8706_v29, %v8707_v58  ;;  %v9459_v23 = vsel %vm1417_vm0, %v9457_v34, %v9458_v25 }
 0x96f   : > { %v8425_v62 = vadd.f32 %v19824_v1, %v8252_v15  ;;  %v8254_v21 = vpop.f32.mrb[117].mxu1  ;;  %v8710_v27 = vsel %vm466_vm2, %v8704_v45, %v8709_v44  ;;  %v9461_v50 = vsel %vm1417_vm0, %v9455_v35, %v9460_v18 }
 0x970   : > { %v8712_v47 = vsel %vm466_vm2, %v8707_v58, %v8711_v20  ;;  %v9463_v0 = vsel %vm1417_vm0, %v9458_v25, %v9462_v12  ;;  %v8426_v54 = vadd.f32 %v19828_v42, %v8254_v21  ;;  %v8256_v39 = vpop.f32.mrb[118].mxu1  ;;  %v20201_v22 = vpack.c.bf16 %v8710_v27, %v8705_v37 }
 0x971   : > { %v8497_v30 = vmax.f32 %v8425_v62, 0.0  ;;  %v8427_v29 = vadd.f32 %v19824_v1, %v8256_v39  ;;  %v8258_v34 = vpop.f32.mrb[119].mxu1  ;;  %v20204_v24 = vpack.c.bf16 %v8712_v47, %v8708_v51  ;;  %v20206_v15 = vpack.c.bf16 %v9463_v0, %v9459_v23 }
 0x972   : > { %22095 = vst [vmem:[#allocation40_spill] sm:$0xff] %v20201_v22  ;;  %v8498_v45 = vmax.f32 %v8426_v54, 0.0  ;;  %v8428_v35 = vadd.f32 %v19828_v42, %v8258_v34  ;;  %v20209_v44 = vpack.c.bf16 %v9461_v50, %v9456_v49  ;;  %v22097_v23 = vpack.c.bf16 %v19842_v7, %v19835_v36 }
 0x973   : > { %22096 = vst [vmem:[#allocation38_spill] sm:$0xff] %v20204_v24  ;;  %v8499_v20 = vmax.f32 %v8427_v29, 0.0  ;;  %13084 = vmatprep.mubr.msk.bf16.mxu0 %vm710_vm1, %v20204_v24  ;;  %v10201_v58 = vrot.slane %v8497_v30, 1  ;;  %v10538_v25 = vrot.slane %v8497_v30, 2 }
 0x974   : > { %v8500_v18 = vmax.f32 %v8428_v35, 0.0  ;;  %9071 = vmatmul.mubr.bf16.gmra.mrb[92].mxu0 %v20201_v22  ;;  %v10204_v37 = vrot.slane %v8498_v45, 1  ;;  %v10541_v49 = vrot.slane %v8498_v45, 2 }
 0x975   : > { %v10202_v12 = vrot.slane %v8499_v20, 1  ;;  %v10539_v51 = vrot.slane %v8499_v20, 2  ;;  %13109 = vmatprep.mubr.msk.bf16.mxu0 %vm710_vm1, %v22097_v23  ;;  %v20218_v62 = vpack.c.bf16 %v8499_v20, %v8497_v30 }
 0x976   : > { %v20220_v21 = vpack.c.bf16 %v8500_v18, %v8498_v45  ;;  %v10205_v27 = vrot.slane %v8500_v18, 1  ;;  %v10542_v50 = vrot.slane %v8500_v18, 2  ;;  %v8262_v47 = vpop.f32.mrb[120].mxu1  ;;  %v16044_v18 = vld [vmem:[%s21268_s3 + $0x180] ss:$8 sps:$4 sm:$0xff]  }
 0x977   : > { %v8429_v0 = vadd.f32 %v19824_v1, %v8262_v47  ;;  %v8264_v54 = vpop.f32.mrb[121].mxu1  ;;  %v10203_v39 = vsel %vm466_vm2, %v10201_v58, %v10202_v12  ;;  %v10540_v29 = vsel %vm1417_vm0, %v10538_v25, %v10539_v51  ;;  %v16049_v25 = vld [vmem:[%s21268_s3 + $0x194] ss:$8 sps:$4 sm:$0xff]  }
 0x978   : > { %v8430_v34 = vadd.f32 %v19828_v42, %v8264_v54  ;;  %v8266_v36 = vpop.f32.mrb[122].mxu1  ;;  %v10206_v7 = vsel %vm466_vm2, %v10204_v37, %v10205_v27  ;;  %v10543_v30 = vsel %vm1417_vm0, %v10541_v49, %v10542_v50  ;;  %v22098_v49 = vpack.c.bf16 %v19838_v13, %v19832_v43 }
 0x979   : > { %v8501_v35 = vmax.f32 %v8429_v0, 0.0  ;;  %v8431_v45 = vadd.f32 %v19824_v1, %v8266_v36  ;;  %v8268_v20 = vpop.f32.mrb[123].mxu1 }
 0x97a   : > { %v8502_v23 = vmax.f32 %v8430_v34, 0.0  ;;  %v8432_v58 = vadd.f32 %v19828_v42, %v8268_v20  ;;  %v16047_v34 = vld [vmem:[%s21268_s3 + $0x190] ss:$8 sps:$4 sm:$0xff]  }
 0x97b   : > { %v10207_v47 = vrot.slane %v8501_v35, 1  ;;  %v10544_v54 = vrot.slane %v8501_v35, 2  ;;  %v20239_v0 = vmax.f32 %v8431_v45, 0.0  ;;  %v16052_v45 = vld [vmem:[%s21268_s3 + $0x1a4] ss:$8 sps:$4 sm:$0xff]  }
 0x97c   : > { %v10209_v37 = vrot.slane %v8502_v23, 1  ;;  %v10546_v22 = vrot.slane %v8502_v23, 2  ;;  %9264 = vmatmul.mubr.bf16.vlgmr.msra.gmra.mrb[56].mxu0 %v22098_v49  ;;  %v20250_v43 = vmax.f32 %v8432_v58, 0.0 }
 0x97d   : > { %22099 = vst [vmem:[#allocation18_spill] sm:$0xff] %v20239_v0  ;;  %13110 = vmatprep.mubr.msk.bf16.mxu0 %vm710_vm1, %v19894_v4  ;;  %9700 = vmatpush1.bf16.msra.mxu0 %v16044_v18  ;;  %v10208_v36 = vsel %vm466_vm2, %v10202_v12, %v10207_v47  ;;  %v10545_v35 = vsel %vm1417_vm0, %v10539_v51, %v10544_v54  ;;  %v11204_v58 = vrot.slane %v20239_v0, 1 }
 0x97e   : > { %v10210_v20 = vsel %vm466_vm2, %v10205_v27, %v10209_v37  ;;  %v10547_v23 = vsel %vm1417_vm0, %v10542_v50, %v10546_v22  ;;  %v8272_v13 = vpop.f32.mrb[124].mxu1  ;;  %9701 = vmatprep.subr.bf16.mxu0 %v16049_v25  ;;  %v20258_v12 = vpack.c.bf16 %v10208_v36, %v10203_v39  ;;  %v20263_v50 = vpack.c.bf16 %v10545_v35, %v10540_v29  ;;  %v16050_v39 = vld [vmem:[%s21268_s3 + $0x1a0] ss:$8 sps:$4 sm:$0xff]   ;;  %v16055_v35 = vld [vmem:[%s21268_s3 + $0x1b4] ss:$8 sps:$4 sm:$0xff]  }
 0x97f   : > { %v8433_v18 = vadd.f32 %v19824_v1, %v8272_v13  ;;  %v8274_v49 = vpop.f32.mrb[125].mxu1  ;;  %v20256_v24 = vpack.c.bf16 %v10210_v20, %v10206_v7  ;;  %v20260_v51 = vpack.c.bf16 %v10547_v23, %v10543_v30  ;;  %v11541_v25 = vrot.slane %v20239_v0, 2 }
 0x980   : > { %v8434_v27 = vadd.f32 %v19828_v42, %v8274_v49  ;;  %v8276_v22 = vpop.f32.mrb[126].mxu1  ;;  %v11207_v7 = vrot.slane %v20250_v43, 1  ;;  %v11544_v30 = vrot.slane %v20250_v43, 2 }
 0x981   : > { %v20267_v47 = vmax.f32 %v8433_v18, 0.0  ;;  %v8435_v54 = vadd.f32 %v19824_v1, %v8276_v22  ;;  %v8278_v37 = vpop.f32.mrb[127].mxu1  ;;  %9702 = vmatpush1.bf16.msra.mxu0 %v16047_v34  ;;  %v16053_v22 = vld [vmem:[%s21268_s3 + $0x1b0] ss:$8 sps:$4 sm:$0xff]  }
 0x982   : > { %v20275_v29 = vmax.f32 %v8434_v27, 0.0  ;;  %v8436_v36 = vadd.f32 %v19828_v42, %v8278_v37  ;;  %9703 = vmatprep.subr.bf16.mxu0 %v16052_v45 }
 0x983   : > { %v11205_v1 = vrot.slane %v20267_v47, 1  ;;  %v11542_v34 = vrot.slane %v20267_v47, 2  ;;  %v8507_v20 = vmax.f32 %v8435_v54, 0.0 }
 0x984   : > { %v11208_v18 = vrot.slane %v20275_v29, 1  ;;  %v11545_v42 = vrot.slane %v20275_v29, 2  ;;  %v8508_v45 = vmax.f32 %v8436_v36, 0.0  ;;  %9274 = vmatmul.mubr.bf16.gmra.mrb[60].mxu0 %v19892_v48 }
 0x985   : > { %v11210_v49 = vrot.slane %v8507_v20, 1  ;;  %v11547_v27 = vrot.slane %v8507_v20, 2  ;;  %13111 = vmatprep.mubr.msk.bf16.mxu0 %vm710_vm1, %v19936_v63  ;;  %9704 = vmatpush1.bf16.msra.mxu0 %v16050_v39  ;;  %v20296_v54 = vsel %vm466_vm2, %v11204_v58, %v11205_v1  ;;  %v20299_v37 = vsel %vm1417_vm0, %v11541_v25, %v11542_v34  ;;  %v16058_v20 = vld [vmem:[%s21268_s3 + $0x1c4] ss:$8 sps:$4 sm:$0xff]  }
 0x986   : > { %22100 = vst [vmem:[#allocation35_spill] sm:$0xff] %v20296_v54  ;;  %22101 = vst [vmem:[#allocation17_spill] sm:$0xff] %v20299_v37  ;;  %v11212_v23 = vrot.slane %v8508_v45, 1  ;;  %v11549_v36 = vrot.slane %v8508_v45, 2  ;;  %9705 = vmatprep.subr.bf16.mxu0 %v16055_v35  ;;  %v20305_v13 = vsel %vm466_vm2, %v11207_v7, %v11208_v18  ;;  %v20308_v39 = vsel %vm1417_vm0, %v11544_v30, %v11545_v42  ;;  %v16056_v30 = vld [vmem:[%s21268_s3 + $0x1c0] ss:$8 sps:$4 sm:$0xff]  }
 0x987   : > { %22102 = vst [vmem:[#allocation48_spill] sm:$0xff] %v20305_v13  ;;  %22103 = vst [vmem:[#allocation62_spill] sm:$0xff] %v20308_v39  ;;  %v20311_v0 = vsel %vm466_vm2, %v11205_v1, %v11210_v49  ;;  %v20314_v58 = vsel %vm1417_vm0, %v11542_v34, %v11547_v27  ;;  %v16062_v49 = vld [vmem:[%s21268_s3 + $0x1e0] ss:$8 sps:$4 sm:$0xff]   ;;  %v16067_v27 = vld [vmem:[%s21268_s3 + $0x1f4] ss:$8 sps:$4 sm:$0xff]  }
 0x988   : > { %22104 = vst [vmem:[#allocation58_spill] sm:$0xff] %v20311_v0  ;;  %22105 = vst [vmem:[#allocation68_spill] sm:$0xff] %v20314_v58  ;;  %v20317_v25 = vsel %vm466_vm2, %v11208_v18, %v11212_v23  ;;  %v20320_v35 = vsel %vm1417_vm0, %v11545_v42, %v11549_v36  ;;  %v16061_v23 = vld [vmem:[%s21268_s3 + $0x1d4] ss:$8 sps:$4 sm:$0xff]   ;;  %v16059_v18 = vld [vmem:[%s21268_s3 + $0x1d0] ss:$8 sps:$4 sm:$0xff]  }
 0x989   : > { %22106 = vst [vmem:[#allocation56_spill] sm:$0xff] %v20320_v35  ;;  %9706 = vmatpush1.bf16.msra.mxu0 %v16053_v22  ;;  %v16064_v42 = vld [vmem:[%s21268_s3 + $0x1e4] ss:$8 sps:$4 sm:$0xff]   ;;  %v16065_v22 = vld [vmem:[%s21268_s3 + $0x1f0] ss:$8 sps:$4 sm:$0xff]  }
 0x98a   : > { %9707 = vmatprep.subr.bf16.mxu0 %v16058_v20  ;;  %v16070_v36 = vld [vmem:[%s21268_s3 + $0x204] ss:$8 sps:$4 sm:$0xff]   ;;  %v16068_v20 = vld [vmem:[%s21268_s3 + $0x200] ss:$8 sps:$4 sm:$0xff]   ;;  %v22121_v7 = vld [vmem:[#allocation16_spill] sm:$0xff] }
 0x98b   : > { %v16175_v34 = vld [vmem:[%s21268_s3 + $0x434] ss:$8 sps:$4 sm:$0xff]   ;;  %v22125_v37 = vld [vmem:[#allocation39_spill] sm:$0xff]  ;;  %v22131_v0 = vld [vmem:[#allocation38_spill] sm:$0xff] }
 0x98c   : > { %9284 = vmatmul.mubr.bf16.gmra.mrb[64].mxu0 %v19934_v28  ;;  %v22123_v45 = vld [vmem:[#allocation32_spill] sm:$0xff]  ;;  %v22127_v39 = vld [vmem:[#allocation57_spill] sm:$0xff]  ;;  %v16194_v13 = vld [vmem:[%s21268_s3 + $0x4a0] ss:$8 sps:$4 sm:$0xff]  }
 0x98d   : > { %13112 = vmatprep.mubr.msk.bf16.mxu0 %vm710_vm1, %v19988_v14  ;;  %9708 = vmatpush1.bf16.msra.mxu0 %v16056_v30  ;;  %v16073_v30 = vld [vmem:[%s21268_s3 + $0x214] ss:$8 sps:$4 sm:$0xff]  }
 0x98e   : > { %9709 = vmatprep.subr.bf16.mxu0 %v16061_v23  ;;  %v16071_v23 = vld [vmem:[%s21268_s3 + $0x210] ss:$8 sps:$4 sm:$0xff]   ;;  %v16181_v1 = vld [vmem:[%s21268_s3 + $0x454] ss:$8 sps:$4 sm:$0xff]  }
 0x98f   : > { %v16187_v58 = vld [vmem:[%s21268_s3 + $0x474] ss:$8 sps:$4 sm:$0xff]  }
 0x990   : > { %v22129_v35 = vld [vmem:[#allocation64_spill] sm:$0xff]  ;;  %v22130_v54 = vld [vmem:[#allocation29_spill] sm:$0xff] }
 0x991   : > { %9710 = vmatpush1.bf16.msra.mxu0 %v16059_v18  ;;  %v16076_v18 = vld [vmem:[%s21268_s3 + $0x224] ss:$8 sps:$4 sm:$0xff]  }
 0x992   : > { %9711 = vmatprep.subr.bf16.mxu0 %v16064_v42  ;;  %v16074_v42 = vld [vmem:[%s21268_s3 + $0x220] ss:$8 sps:$4 sm:$0xff]  }
 0x994   : > { %9294 = vmatmul.mubr.bf16.gmra.mrb[68].mxu0 %v19986_v6 }
 0x995   : > { %13113 = vmatprep.mubr.msk.bf16.mxu0 %vm710_vm1, %v20030_v57  ;;  %9712 = vmatpush1.bf16.msra.mxu0 %v16062_v49  ;;  %v16079_v49 = vld [vmem:[%s21268_s3 + $0x234] ss:$8 sps:$4 sm:$0xff]  }
 0x996   : > { %9713 = vmatprep.subr.bf16.mxu0 %v16067_v27  ;;  %v16077_v27 = vld [vmem:[%s21268_s3 + $0x230] ss:$8 sps:$4 sm:$0xff]  }
 0x999   : > { %9714 = vmatpush1.bf16.msra.mxu0 %v16065_v22  ;;  %v16082_v22 = vld [vmem:[%s21268_s3 + $0x244] ss:$8 sps:$4 sm:$0xff]  }
 0x99a   : > { %9715 = vmatprep.subr.bf16.mxu0 %v16070_v36  ;;  %v22107_v36 = vpack.c.bf16 %v19874_v11, %v19862_v2  ;;  %v16083_v2 = vld [vmem:[%s21268_s3 + $0x250] ss:$8 sps:$4 sm:$0xff]   ;;  %v16088_v11 = vld [vmem:[%s21268_s3 + $0x264] ss:$8 sps:$4 sm:$0xff]  }
 0x99c   : > { %9304 = vmatmul.mubr.bf16.gmra.mrb[72].mxu0 %v20028_v38 }
 0x99d   : > { %13114 = vmatprep.mubr.msk.bf16.mxu0 %vm710_vm1, %v20073_v53  ;;  %9716 = vmatpush1.bf16.msra.mxu0 %v16068_v20  ;;  %v16080_v20 = vld [vmem:[%s21268_s3 + $0x240] ss:$8 sps:$4 sm:$0xff]  }
 0x99e   : > { %9717 = vmatprep.subr.bf16.mxu0 %v16073_v30  ;;  %v16085_v30 = vld [vmem:[%s21268_s3 + $0x254] ss:$8 sps:$4 sm:$0xff]  }
 0x9a1   : > { %9718 = vmatpush1.bf16.msra.mxu0 %v16071_v23  ;;  %v22108_v23 = vpack.c.bf16 %v19868_v8, %v19857_v46  ;;  %v16091_v46 = vld [vmem:[%s21268_s3 + $0x274] ss:$8 sps:$4 sm:$0xff]   ;;  %v16089_v8 = vld [vmem:[%s21268_s3 + $0x270] ss:$8 sps:$4 sm:$0xff]  }
 0x9a2   : > { %9719 = vmatprep.subr.bf16.mxu0 %v16076_v18  ;;  %v16086_v18 = vld [vmem:[%s21268_s3 + $0x260] ss:$8 sps:$4 sm:$0xff]  }
 0x9a4   : > { %9314 = vmatmul.mubr.bf16.gmra.mrb[76].mxu0 %v20071_v33 }
 0x9a5   : > { %13115 = vmatprep.mubr.msk.bf16.mxu0 %vm710_vm1, %v20100_v3  ;;  %9720 = vmatpush1.bf16.msra.mxu0 %v16074_v42  ;;  %v16094_v42 = vld [vmem:[%s21268_s3 + $0x284] ss:$8 sps:$4 sm:$0xff]  }
 0x9a6   : > { %9721 = vmatprep.subr.bf16.mxu0 %v16079_v49  ;;  %v16092_v49 = vld [vmem:[%s21268_s3 + $0x280] ss:$8 sps:$4 sm:$0xff]  }
 0x9a9   : > { %9722 = vmatpush1.bf16.msra.mxu0 %v16077_v27  ;;  %v16097_v27 = vld [vmem:[%s21268_s3 + $0x294] ss:$8 sps:$4 sm:$0xff]  }
 0x9aa   : > { %10022 = vmatprep.subr.bf16.mxu0 %v16082_v22  ;;  %v16095_v22 = vld [vmem:[%s21268_s3 + $0x290] ss:$8 sps:$4 sm:$0xff]  }
 0x9ac   : > { %9324 = vmatmul.mubr.bf16.gmra.mrb[80].mxu0 %v20098_v19 }
 0x9ad   : > { %13116 = vmatprep.mubr.msk.bf16.mxu0 %vm710_vm1, %v20131_v61 }
 0x9b4   : > { %9334 = vmatmul.mubr.bf16.gmra.mrb[84].mxu0 %v20129_v40 }
 0x9b5   : > { %13117 = vmatprep.mubr.msk.bf16.mxu0 %vm710_vm1, %v20158_v31 }
 0x9bc   : > { %9344 = vmatmul.mubr.bf16.gmra.mrb[88].mxu0 %v20156_v52 }
 0x9bd   : > { %13118 = vmatprep.mubr.msk.bf16.mxu0 %vm710_vm1, %v20189_v16 }
 0x9c4   : > { %9354 = vmatmul.mubr.bf16.gmra.mrb[92].mxu0 %v20187_v55 }
 0x9c5   : > { %13167 = vmatprep.mubr.msk.bf16.mxu0 %vm710_vm1, %v22107_v36  ;;  %v16100_v36 = vld [vmem:[%s21268_s3 + $0x2a4] ss:$8 sps:$4 sm:$0xff]  }
 0x9cc   : > { %9732 = vmatmul.mubr.bf16.vlgmr.msra.gmra.mrb[56].mxu0 %v22108_v23  ;;  %v16101_v23 = vld [vmem:[%s21268_s3 + $0x2b0] ss:$8 sps:$4 sm:$0xff]  }
 0x9cd   : > { %13168 = vmatprep.mubr.msk.bf16.mxu0 %vm710_vm1, %v19920_v9  ;;  %10023 = vmatpush1.bf16.msra.mxu0 %v16080_v20  ;;  %v16098_v20 = vld [vmem:[%s21268_s3 + $0x2a0] ss:$8 sps:$4 sm:$0xff]  }
 0x9ce   : > { %10024 = vmatprep.subr.bf16.mxu0 %v16085_v30  ;;  %v16103_v30 = vld [vmem:[%s21268_s3 + $0x2b4] ss:$8 sps:$4 sm:$0xff]  }
 0x9d1   : > { %10025 = vmatpush1.bf16.msra.mxu0 %v16083_v2  ;;  %v16106_v2 = vld [vmem:[%s21268_s3 + $0x2c4] ss:$8 sps:$4 sm:$0xff]  }
 0x9d2   : > { %10026 = vmatprep.subr.bf16.mxu0 %v16088_v11  ;;  %v16104_v11 = vld [vmem:[%s21268_s3 + $0x2c0] ss:$8 sps:$4 sm:$0xff]  }
 0x9d4   : > { %9742 = vmatmul.mubr.bf16.gmra.mrb[60].mxu0 %v19923_v5 }
 0x9d5   : > { %13169 = vmatprep.mubr.msk.bf16.mxu0 %vm710_vm1, %v19970_v26  ;;  %10027 = vmatpush1.bf16.msra.mxu0 %v16086_v18  ;;  %v16109_v18 = vld [vmem:[%s21268_s3 + $0x2d4] ss:$8 sps:$4 sm:$0xff]  }
 0x9d6   : > { %10028 = vmatprep.subr.bf16.mxu0 %v16091_v46  ;;  %v16107_v46 = vld [vmem:[%s21268_s3 + $0x2d0] ss:$8 sps:$4 sm:$0xff]  }
 0x9d9   : > { %10029 = vmatpush1.bf16.msra.mxu0 %v16089_v8  ;;  %v16112_v8 = vld [vmem:[%s21268_s3 + $0x2e4] ss:$8 sps:$4 sm:$0xff]  }
 0x9da   : > { %10030 = vmatprep.subr.bf16.mxu0 %v16094_v42  ;;  %v16110_v42 = vld [vmem:[%s21268_s3 + $0x2e0] ss:$8 sps:$4 sm:$0xff]  }
 0x9dc   : > { %9752 = vmatmul.mubr.bf16.gmra.mrb[64].mxu0 %v19976_v60 }
 0x9dd   : > { %13170 = vmatprep.mubr.msk.bf16.mxu0 %vm710_vm1, %v20014_v17  ;;  %10031 = vmatpush1.bf16.msra.mxu0 %v16092_v49  ;;  %v16115_v49 = vld [vmem:[%s21268_s3 + $0x2f4] ss:$8 sps:$4 sm:$0xff]  }
 0x9de   : > { %10032 = vmatprep.subr.bf16.mxu0 %v16097_v27  ;;  %v22109_v27 = vld [vmem:[#allocation20_spill] sm:$0xff] }
 0x9e1   : > { %10033 = vmatpush1.bf16.msra.mxu0 %v16095_v22  ;;  %v16113_v22 = vld [vmem:[%s21268_s3 + $0x2f0] ss:$8 sps:$4 sm:$0xff]  }
 0x9e2   : > { %10034 = vmatprep.subr.bf16.mxu0 %v16100_v36  ;;  %v16118_v36 = vld [vmem:[%s21268_s3 + $0x304] ss:$8 sps:$4 sm:$0xff]  }
 0x9e4   : > { %9762 = vmatmul.mubr.bf16.gmra.mrb[68].mxu0 %v20017_v41 }
 0x9e5   : > { %13171 = vmatprep.mubr.msk.bf16.mxu0 %vm710_vm1, %v20061_v32  ;;  %10035 = vmatpush1.bf16.msra.mxu0 %v16098_v20  ;;  %v22110_v20 = vld [vmem:[#allocation50_spill] sm:$0xff] }
 0x9e6   : > { %10036 = vmatprep.subr.bf16.mxu0 %v16103_v30  ;;  %v22111_v30 = vld [vmem:[#allocation59_spill] sm:$0xff] }
 0x9e9   : > { %10037 = vmatpush1.bf16.msra.mxu0 %v16101_v23  ;;  %v22112_v23 = vld [vmem:[#allocation60_spill] sm:$0xff] }
 0x9ea   : > { %10038 = vmatprep.subr.bf16.mxu0 %v16106_v2  ;;  %v22113_v2 = vld [vmem:[#allocation25_spill] sm:$0xff] }
 0x9ec   : > { %9772 = vmatmul.mubr.bf16.gmra.mrb[72].mxu0 %v20064_v56 }
 0x9ed   : > { %13172 = vmatprep.mubr.msk.bf16.mxu0 %vm710_vm1, %v20090_v59  ;;  %10039 = vmatpush1.bf16.msra.mxu0 %v16104_v11  ;;  %v22114_v11 = vld [vmem:[#allocation30_spill] sm:$0xff] }
 0x9ee   : > { %10040 = vmatprep.subr.bf16.mxu0 %v16109_v18  ;;  %v16116_v18 = vld [vmem:[%s21268_s3 + $0x300] ss:$8 sps:$4 sm:$0xff]  }
 0x9f1   : > { %10041 = vmatpush1.bf16.msra.mxu0 %v16107_v46  ;;  %v16121_v46 = vld [vmem:[%s21268_s3 + $0x314] ss:$8 sps:$4 sm:$0xff]  }
 0x9f2   : > { %10042 = vmatprep.subr.bf16.mxu0 %v16112_v8  ;;  %v16119_v8 = vld [vmem:[%s21268_s3 + $0x310] ss:$8 sps:$4 sm:$0xff]  }
 0x9f4   : > { %9782 = vmatmul.mubr.bf16.gmra.mrb[76].mxu0 %v20093_v10 }
 0x9f5   : > { %13173 = vmatprep.mubr.msk.bf16.mxu0 %vm710_vm1, %v22109_v27  ;;  %10043 = vmatpush1.bf16.msra.mxu0 %v16110_v42  ;;  %v16122_v42 = vld [vmem:[%s21268_s3 + $0x320] ss:$8 sps:$4 sm:$0xff]  }
 0x9f6   : > { %10044 = vmatprep.subr.bf16.mxu0 %v16115_v49  ;;  %v16125_v49 = vld [vmem:[%s21268_s3 + $0x330] ss:$8 sps:$4 sm:$0xff]  }
 0x9f9   : > { %10045 = vmatpush1.bf16.msra.mxu0 %v16113_v22  ;;  %v16130_v22 = vld [vmem:[%s21268_s3 + $0x344] ss:$8 sps:$4 sm:$0xff]  }
 0x9fa   : > { %10365 = vmatprep.subr.bf16.mxu0 %v16118_v36  ;;  %v16128_v36 = vld [vmem:[%s21268_s3 + $0x340] ss:$8 sps:$4 sm:$0xff]  }
 0x9fc   : > { %9792 = vmatmul.mubr.bf16.gmra.mrb[80].mxu0 %v22110_v20 }
 0x9fd   : > { %13174 = vmatprep.mubr.msk.bf16.mxu0 %vm710_vm1, %v22111_v30 }
 0xa04   : > { %9802 = vmatmul.mubr.bf16.gmra.mrb[84].mxu0 %v22112_v23 }
 0xa05   : > { %13175 = vmatprep.mubr.msk.bf16.mxu0 %vm710_vm1, %v22113_v2 }
 0xa0c   : > { %9812 = vmatmul.mubr.bf16.gmra.mrb[88].mxu0 %v22114_v11 }
 0xa0d   : > { %13176 = vmatprep.mubr.msk.bf16.mxu0 %vm710_vm1, %v20206_v15 }
 0xa14   : > { %9822 = vmatmul.mubr.bf16.gmra.mrb[92].mxu0 %v20209_v44 }
 0xa15   : > { %13225 = vmatprep.mubr.msk.bf16.mxu0 %vm710_vm1, %v19894_v4  ;;  %v16124_v4 = vld [vmem:[%s21268_s3 + $0x324] ss:$8 sps:$4 sm:$0xff]  }
 0xa1c   : > { %10055 = vmatmul.mubr.bf16.vlgmr.msra.gmra.mrb[56].mxu0 %v19892_v48  ;;  %v16127_v48 = vld [vmem:[%s21268_s3 + $0x334] ss:$8 sps:$4 sm:$0xff]  }
 0xa1d   : > { %13226 = vmatprep.mubr.msk.bf16.mxu0 %vm710_vm1, %v19936_v63  ;;  %10366 = vmatpush1.bf16.msra.mxu0 %v16116_v18  ;;  %v16133_v18 = vld [vmem:[%s21268_s3 + $0x354] ss:$8 sps:$4 sm:$0xff]  }
 0xa1e   : > { %10367 = vmatprep.subr.bf16.mxu0 %v16121_v46  ;;  %v16131_v46 = vld [vmem:[%s21268_s3 + $0x350] ss:$8 sps:$4 sm:$0xff]  }
 0xa21   : > { %10368 = vmatpush1.bf16.msra.mxu0 %v16119_v8  ;;  %v16136_v8 = vld [vmem:[%s21268_s3 + $0x364] ss:$8 sps:$4 sm:$0xff]  }
 0xa22   : > { %10369 = vmatprep.subr.bf16.mxu0 %v16124_v4  ;;  %v16134_v4 = vld [vmem:[%s21268_s3 + $0x360] ss:$8 sps:$4 sm:$0xff]  }
 0xa24   : > { %10065 = vmatmul.mubr.bf16.gmra.mrb[60].mxu0 %v19934_v28 }
 0xa25   : > { %13227 = vmatprep.mubr.msk.bf16.mxu0 %vm710_vm1, %v19988_v14  ;;  %10370 = vmatpush1.bf16.msra.mxu0 %v16122_v42  ;;  %v16139_v42 = vld [vmem:[%s21268_s3 + $0x374] ss:$8 sps:$4 sm:$0xff]  }
 0xa26   : > { %10371 = vmatprep.subr.bf16.mxu0 %v16127_v48  ;;  %v16137_v48 = vld [vmem:[%s21268_s3 + $0x370] ss:$8 sps:$4 sm:$0xff]  }
 0xa29   : > { %10372 = vmatpush1.bf16.msra.mxu0 %v16125_v49  ;;  %v16142_v49 = vld [vmem:[%s21268_s3 + $0x384] ss:$8 sps:$4 sm:$0xff]  }
 0xa2a   : > { %10373 = vmatprep.subr.bf16.mxu0 %v16130_v22  ;;  %v16140_v22 = vld [vmem:[%s21268_s3 + $0x380] ss:$8 sps:$4 sm:$0xff]  }
 0xa2c   : > { %10075 = vmatmul.mubr.bf16.gmra.mrb[64].mxu0 %v19986_v6 }
 0xa2d   : > { %13228 = vmatprep.mubr.msk.bf16.mxu0 %vm710_vm1, %v20030_v57  ;;  %10374 = vmatpush1.bf16.msra.mxu0 %v16128_v36  ;;  %v16145_v36 = vld [vmem:[%s21268_s3 + $0x394] ss:$8 sps:$4 sm:$0xff]  }
 0xa2e   : > { %10375 = vmatprep.subr.bf16.mxu0 %v16133_v18  ;;  %v16143_v18 = vld [vmem:[%s21268_s3 + $0x390] ss:$8 sps:$4 sm:$0xff]  }
 0xa31   : > { %10376 = vmatpush1.bf16.msra.mxu0 %v16131_v46  ;;  %v16148_v46 = vld [vmem:[%s21268_s3 + $0x3a4] ss:$8 sps:$4 sm:$0xff]  }
 0xa32   : > { %10377 = vmatprep.subr.bf16.mxu0 %v16136_v8  ;;  %v16146_v8 = vld [vmem:[%s21268_s3 + $0x3a0] ss:$8 sps:$4 sm:$0xff]  }
 0xa34   : > { %10085 = vmatmul.mubr.bf16.gmra.mrb[68].mxu0 %v20028_v38 }
 0xa35   : > { %13229 = vmatprep.mubr.msk.bf16.mxu0 %vm710_vm1, %v20073_v53  ;;  %10378 = vmatpush1.bf16.msra.mxu0 %v16134_v4  ;;  %v16151_v4 = vld [vmem:[%s21268_s3 + $0x3b4] ss:$8 sps:$4 sm:$0xff]  }
 0xa36   : > { %10379 = vmatprep.subr.bf16.mxu0 %v16139_v42  ;;  %v16149_v42 = vld [vmem:[%s21268_s3 + $0x3b0] ss:$8 sps:$4 sm:$0xff]  }
 0xa39   : > { %10380 = vmatpush1.bf16.msra.mxu0 %v16137_v48  ;;  %v16154_v48 = vld [vmem:[%s21268_s3 + $0x3c4] ss:$8 sps:$4 sm:$0xff]  }
 0xa3a   : > { %10381 = vmatprep.subr.bf16.mxu0 %v16142_v49  ;;  %v22115_v49 = vld [vmem:[#allocation23_spill] sm:$0xff] }
 0xa3c   : > { %10095 = vmatmul.mubr.bf16.gmra.mrb[72].mxu0 %v20071_v33 }
 0xa3d   : > { %13230 = vmatprep.mubr.msk.bf16.mxu0 %vm710_vm1, %v20100_v3  ;;  %10382 = vmatpush1.bf16.msra.mxu0 %v16140_v22  ;;  %v16152_v22 = vld [vmem:[%s21268_s3 + $0x3c0] ss:$8 sps:$4 sm:$0xff]  }
 0xa3e   : > { %10383 = vmatprep.subr.bf16.mxu0 %v16145_v36  ;;  %v16157_v36 = vld [vmem:[%s21268_s3 + $0x3d4] ss:$8 sps:$4 sm:$0xff]  }
 0xa41   : > { %10384 = vmatpush1.bf16.msra.mxu0 %v16143_v18  ;;  %v22116_v18 = vld [vmem:[#allocation13_spill] sm:$0xff] }
 0xa42   : > { %10385 = vmatprep.subr.bf16.mxu0 %v16148_v46  ;;  %v22117_v46 = vld [vmem:[#allocation12_spill] sm:$0xff] }
 0xa44   : > { %10105 = vmatmul.mubr.bf16.gmra.mrb[76].mxu0 %v20098_v19 }
 0xa45   : > { %13231 = vmatprep.mubr.msk.bf16.mxu0 %vm710_vm1, %v20131_v61  ;;  %10386 = vmatpush1.bf16.msra.mxu0 %v16146_v8  ;;  %v16155_v8 = vld [vmem:[%s21268_s3 + $0x3d0] ss:$8 sps:$4 sm:$0xff]  }
 0xa46   : > { %10387 = vmatprep.subr.bf16.mxu0 %v16151_v4  ;;  %v16160_v4 = vld [vmem:[%s21268_s3 + $0x3e4] ss:$8 sps:$4 sm:$0xff]  }
 0xa49   : > { %10388 = vmatpush1.bf16.msra.mxu0 %v16149_v42  ;;  %v16158_v42 = vld [vmem:[%s21268_s3 + $0x3e0] ss:$8 sps:$4 sm:$0xff]  }
 0xa4a   : > { %10702 = vmatprep.subr.bf16.mxu0 %v16154_v48  ;;  %v16163_v48 = vld [vmem:[%s21268_s3 + $0x3f4] ss:$8 sps:$4 sm:$0xff]  }
 0xa4c   : > { %10115 = vmatmul.mubr.bf16.gmra.mrb[80].mxu0 %v20129_v40 }
 0xa4d   : > { %13232 = vmatprep.mubr.msk.bf16.mxu0 %vm710_vm1, %v20158_v31 }
 0xa54   : > { %10125 = vmatmul.mubr.bf16.gmra.mrb[84].mxu0 %v20156_v52 }
 0xa55   : > { %13233 = vmatprep.mubr.msk.bf16.mxu0 %vm710_vm1, %v20189_v16 }
 0xa5c   : > { %10135 = vmatmul.mubr.bf16.gmra.mrb[88].mxu0 %v20187_v55 }
 0xa5d   : > { %13234 = vmatprep.mubr.msk.bf16.mxu0 %vm710_vm1, %v20220_v21 }
 0xa64   : > { %10145 = vmatmul.mubr.bf16.gmra.mrb[92].mxu0 %v20218_v62 }
 0xa65   : > { %13283 = vmatprep.mubr.msk.bf16.mxu0 %vm710_vm1, %v22115_v49  ;;  %v22118_v49 = vld [vmem:[#allocation22_spill] sm:$0xff] }
 0xa6c   : > { %10398 = vmatmul.mubr.bf16.vlgmr.msra.gmra.mrb[56].mxu0 %v22116_v18  ;;  %v16166_v18 = vld [vmem:[%s21268_s3 + $0x404] ss:$8 sps:$4 sm:$0xff]  }
 0xa6d   : > { %13284 = vmatprep.mubr.msk.bf16.mxu0 %vm710_vm1, %v22117_v46  ;;  %10703 = vmatpush1.bf16.msra.mxu0 %v16152_v22  ;;  %v22119_v22 = vld [vmem:[#allocation21_spill] sm:$0xff] }
 0xa6e   : > { %10704 = vmatprep.subr.bf16.mxu0 %v16157_v36  ;;  %v16161_v36 = vld [vmem:[%s21268_s3 + $0x3f0] ss:$8 sps:$4 sm:$0xff]  }
 0xa71   : > { %10705 = vmatpush1.bf16.msra.mxu0 %v16155_v8  ;;  %v16164_v8 = vld [vmem:[%s21268_s3 + $0x400] ss:$8 sps:$4 sm:$0xff]  }
 0xa72   : > { %10706 = vmatprep.subr.bf16.mxu0 %v16160_v4  ;;  %v16169_v4 = vld [vmem:[%s21268_s3 + $0x414] ss:$8 sps:$4 sm:$0xff]  }
 0xa74   : > { %10408 = vmatmul.mubr.bf16.gmra.mrb[60].mxu0 %v22118_v49 }
 0xa75   : > { %13285 = vmatprep.mubr.msk.bf16.mxu0 %vm710_vm1, %v22119_v22  ;;  %10707 = vmatpush1.bf16.msra.mxu0 %v16158_v42  ;;  %v22120_v42 = vld [vmem:[#allocation24_spill] sm:$0xff] }
 0xa76   : > { %10708 = vmatprep.subr.bf16.mxu0 %v16163_v48  ;;  %v16167_v48 = vld [vmem:[%s21268_s3 + $0x410] ss:$8 sps:$4 sm:$0xff]  }
 0xa79   : > { %10709 = vmatpush1.bf16.msra.mxu0 %v16161_v36  ;;  %v16172_v36 = vld [vmem:[%s21268_s3 + $0x424] ss:$8 sps:$4 sm:$0xff]  }
 0xa7a   : > { %10710 = vmatprep.subr.bf16.mxu0 %v16166_v18  ;;  %v16170_v18 = vld [vmem:[%s21268_s3 + $0x420] ss:$8 sps:$4 sm:$0xff]  }
 0xa7c   : > { %10418 = vmatmul.mubr.bf16.gmra.mrb[64].mxu0 %v22120_v42 }
 0xa7d   : > { %13286 = vmatprep.mubr.msk.bf16.mxu0 %vm710_vm1, %v22121_v7  ;;  %10711 = vmatpush1.bf16.msra.mxu0 %v16164_v8  ;;  %v22122_v8 = vld [vmem:[#allocation31_spill] sm:$0xff] }
 0xa7e   : > { %10712 = vmatprep.subr.bf16.mxu0 %v16169_v4  ;;  %v16173_v4 = vld [vmem:[%s21268_s3 + $0x430] ss:$8 sps:$4 sm:$0xff]  }
 0xa81   : > { %10713 = vmatpush1.bf16.msra.mxu0 %v16167_v48  ;;  %v16178_v48 = vld [vmem:[%s21268_s3 + $0x444] ss:$8 sps:$4 sm:$0xff]  }
 0xa82   : > { %10714 = vmatprep.subr.bf16.mxu0 %v16172_v36  ;;  %v16176_v36 = vld [vmem:[%s21268_s3 + $0x440] ss:$8 sps:$4 sm:$0xff]  }
 0xa84   : > { %10428 = vmatmul.mubr.bf16.gmra.mrb[68].mxu0 %v22122_v8 }
 0xa85   : > { %13287 = vmatprep.mubr.msk.bf16.mxu0 %vm710_vm1, %v22123_v45  ;;  %10715 = vmatpush1.bf16.msra.mxu0 %v16170_v18  ;;  %v22124_v18 = vld [vmem:[#allocation15_spill] sm:$0xff] }
 0xa86   : > { %10716 = vmatprep.subr.bf16.mxu0 %v16175_v34  ;;  %v16179_v34 = vld [vmem:[%s21268_s3 + $0x450] ss:$8 sps:$4 sm:$0xff]  }
 0xa89   : > { %10717 = vmatpush1.bf16.msra.mxu0 %v16173_v4  ;;  %v16184_v4 = vld [vmem:[%s21268_s3 + $0x464] ss:$8 sps:$4 sm:$0xff]  }
 0xa8a   : > { %10718 = vmatprep.subr.bf16.mxu0 %v16178_v48  ;;  %v16182_v48 = vld [vmem:[%s21268_s3 + $0x460] ss:$8 sps:$4 sm:$0xff]  }
 0xa8c   : > { %10438 = vmatmul.mubr.bf16.gmra.mrb[72].mxu0 %v22124_v18 }
 0xa8d   : > { %13288 = vmatprep.mubr.msk.bf16.mxu0 %vm710_vm1, %v22125_v37  ;;  %10719 = vmatpush1.bf16.msra.mxu0 %v16176_v36  ;;  %v22126_v36 = vld [vmem:[#allocation19_spill] sm:$0xff] }
 0xa8e   : > { %10720 = vmatprep.subr.bf16.mxu0 %v16181_v1  ;;  %v16185_v1 = vld [vmem:[%s21268_s3 + $0x470] ss:$8 sps:$4 sm:$0xff]  }
 0xa91   : > { %10721 = vmatpush1.bf16.msra.mxu0 %v16179_v34  ;;  %v16190_v34 = vld [vmem:[%s21268_s3 + $0x484] ss:$8 sps:$4 sm:$0xff]  }
 0xa92   : > { %10722 = vmatprep.subr.bf16.mxu0 %v16184_v4  ;;  %v22128_v4 = vld [vmem:[#allocation51_spill] sm:$0xff] }
 0xa94   : > { %10448 = vmatmul.mubr.bf16.gmra.mrb[76].mxu0 %v22126_v36 }
 0xa95   : > { %13289 = vmatprep.mubr.msk.bf16.mxu0 %vm710_vm1, %v22127_v39  ;;  %10723 = vmatpush1.bf16.msra.mxu0 %v16182_v48  ;;  %v22132_v48 = vld [vmem:[#allocation40_spill] sm:$0xff] }
 0xa96   : > { %10724 = vmatprep.subr.bf16.mxu0 %v16187_v58  ;;  %v16188_v58 = vld [vmem:[%s21268_s3 + $0x480] ss:$8 sps:$4 sm:$0xff]  }
 0xa99   : > { %10725 = vmatpush1.bf16.msra.mxu0 %v16185_v1  ;;  %v16193_v1 = vld [vmem:[%s21268_s3 + $0x494] ss:$8 sps:$4 sm:$0xff]  }
 0xa9a   : > { %11025 = vmatprep.subr.bf16.mxu0 %v16190_v34  ;;  %v16191_v34 = vld [vmem:[%s21268_s3 + $0x490] ss:$8 sps:$4 sm:$0xff]  }
 0xa9c   : > { %10458 = vmatmul.mubr.bf16.gmra.mrb[80].mxu0 %v22128_v4 }
 0xa9d   : > { %13290 = vmatprep.mubr.msk.bf16.mxu0 %vm710_vm1, %v22129_v35 }
 0xaa4   : > { %10468 = vmatmul.mubr.bf16.gmra.mrb[84].mxu0 %v22130_v54 }
 0xaa5   : > { %13291 = vmatprep.mubr.msk.bf16.mxu0 %vm710_vm1, %v22131_v0 }
 0xaac   : > { %10478 = vmatmul.mubr.bf16.gmra.mrb[88].mxu0 %v22132_v48 }
 0xaad   : > { %13292 = vmatprep.mubr.msk.bf16.mxu0 %vm710_vm1, %v20256_v24 }
 0xab4   : > { %10488 = vmatmul.mubr.bf16.gmra.mrb[92].mxu0 %v20258_v12 }
 0xab5   : > { %13341 = vmatprep.mubr.msk.bf16.mxu0 %vm710_vm1, %v19920_v9  ;;  %v16196_v9 = vld [vmem:[%s21268_s3 + $0x4a4] ss:$8 sps:$4 sm:$0xff]  }
 0xabc   : > { %10735 = vmatmul.mubr.bf16.vlgmr.msra.gmra.mrb[56].mxu0 %v19923_v5  ;;  %v16199_v5 = vld [vmem:[%s21268_s3 + $0x4b4] ss:$8 sps:$4 sm:$0xff]  }
 0xabd   : > { %13342 = vmatprep.mubr.msk.bf16.mxu0 %vm710_vm1, %v19970_v26  ;;  %11026 = vmatpush1.bf16.msra.mxu0 %v16188_v58  ;;  %v16197_v58 = vld [vmem:[%s21268_s3 + $0x4b0] ss:$8 sps:$4 sm:$0xff]  }
 0xabe   : > { %11027 = vmatprep.subr.bf16.mxu0 %v16193_v1  ;;  %v16202_v1 = vld [vmem:[%s21268_s3 + $0x4c4] ss:$8 sps:$4 sm:$0xff]  }
 0xac1   : > { %11028 = vmatpush1.bf16.msra.mxu0 %v16191_v34  ;;  %v16200_v34 = vld [vmem:[%s21268_s3 + $0x4c0] ss:$8 sps:$4 sm:$0xff]  }
 0xac2   : > { %11029 = vmatprep.subr.bf16.mxu0 %v16196_v9  ;;  %v16205_v9 = vld [vmem:[%s21268_s3 + $0x4d4] ss:$8 sps:$4 sm:$0xff]  }
 0xac4   : > { %10745 = vmatmul.mubr.bf16.gmra.mrb[60].mxu0 %v19976_v60 }
 0xac5   : > { %13343 = vmatprep.mubr.msk.bf16.mxu0 %vm710_vm1, %v20014_v17  ;;  %11030 = vmatpush1.bf16.msra.mxu0 %v16194_v13  ;;  %v16203_v13 = vld [vmem:[%s21268_s3 + $0x4d0] ss:$8 sps:$4 sm:$0xff]  }
 0xac6   : > { %11031 = vmatprep.subr.bf16.mxu0 %v16199_v5  ;;  %v16208_v5 = vld [vmem:[%s21268_s3 + $0x4e4] ss:$8 sps:$4 sm:$0xff]  }
 0xac9   : > { %11032 = vmatpush1.bf16.msra.mxu0 %v16197_v58  ;;  %v16206_v58 = vld [vmem:[%s21268_s3 + $0x4e0] ss:$8 sps:$4 sm:$0xff]  }
 0xaca   : > { %11033 = vmatprep.subr.bf16.mxu0 %v16202_v1  ;;  %v16211_v1 = vld [vmem:[%s21268_s3 + $0x4f4] ss:$8 sps:$4 sm:$0xff]  }
 0xacc   : > { %10755 = vmatmul.mubr.bf16.gmra.mrb[64].mxu0 %v20017_v41 }
 0xacd   : > { %13344 = vmatprep.mubr.msk.bf16.mxu0 %vm710_vm1, %v20061_v32  ;;  %11034 = vmatpush1.bf16.msra.mxu0 %v16200_v34  ;;  %v16209_v34 = vld [vmem:[%s21268_s3 + $0x4f0] ss:$8 sps:$4 sm:$0xff]  }
 0xace   : > { %11035 = vmatprep.subr.bf16.mxu0 %v16205_v9  ;;  %v16214_v9 = vld [vmem:[%s21268_s3 + $0x504] ss:$8 sps:$4 sm:$0xff]  }
 0xad1   : > { %11036 = vmatpush1.bf16.msra.mxu0 %v16203_v13  ;;  %v16212_v13 = vld [vmem:[%s21268_s3 + $0x500] ss:$8 sps:$4 sm:$0xff]  }
 0xad2   : > { %11037 = vmatprep.subr.bf16.mxu0 %v16208_v5  ;;  %v16217_v5 = vld [vmem:[%s21268_s3 + $0x514] ss:$8 sps:$4 sm:$0xff]  }
 0xad4   : > { %10765 = vmatmul.mubr.bf16.gmra.mrb[68].mxu0 %v20064_v56 }
 0xad5   : > { %13345 = vmatprep.mubr.msk.bf16.mxu0 %vm710_vm1, %v20090_v59  ;;  %11038 = vmatpush1.bf16.msra.mxu0 %v16206_v58  ;;  %v16215_v58 = vld [vmem:[%s21268_s3 + $0x510] ss:$8 sps:$4 sm:$0xff]  }
 0xad6   : > { %11039 = vmatprep.subr.bf16.mxu0 %v16211_v1  ;;  %v16220_v1 = vld [vmem:[%s21268_s3 + $0x524] ss:$8 sps:$4 sm:$0xff]  }
 0xad9   : > { %11040 = vmatpush1.bf16.msra.mxu0 %v16209_v34  ;;  %v16218_v34 = vld [vmem:[%s21268_s3 + $0x520] ss:$8 sps:$4 sm:$0xff]  }
 0xada   : > { %11041 = vmatprep.subr.bf16.mxu0 %v16214_v9  ;;  %v16223_v9 = vld [vmem:[%s21268_s3 + $0x534] ss:$8 sps:$4 sm:$0xff]  }
 0xadc   : > { %10775 = vmatmul.mubr.bf16.gmra.mrb[72].mxu0 %v20093_v10 }
 0xadd   : > { %13346 = vmatprep.mubr.msk.bf16.mxu0 %vm710_vm1, %v22109_v27  ;;  %11042 = vmatpush1.bf16.msra.mxu0 %v16212_v13  ;;  %v16221_v13 = vld [vmem:[%s21268_s3 + $0x530] ss:$8 sps:$4 sm:$0xff]  }
 0xade   : > { %11043 = vmatprep.subr.bf16.mxu0 %v16217_v5  ;;  %v16226_v5 = vld [vmem:[%s21268_s3 + $0x544] ss:$8 sps:$4 sm:$0xff]  }
 0xae1   : > { %11044 = vmatpush1.bf16.msra.mxu0 %v16215_v58  ;;  %v16224_v58 = vld [vmem:[%s21268_s3 + $0x540] ss:$8 sps:$4 sm:$0xff]  }
 0xae2   : > { %11045 = vmatprep.subr.bf16.mxu0 %v16220_v1  ;;  %v16229_v1 = vld [vmem:[%s21268_s3 + $0x554] ss:$8 sps:$4 sm:$0xff]  }
 0xae4   : > { %10785 = vmatmul.mubr.bf16.gmra.mrb[76].mxu0 %v22110_v20 }
 0xae5   : > { %13347 = vmatprep.mubr.msk.bf16.mxu0 %vm710_vm1, %v22111_v30  ;;  %11046 = vmatpush1.bf16.msra.mxu0 %v16218_v34  ;;  %v16227_v34 = vld [vmem:[%s21268_s3 + $0x550] ss:$8 sps:$4 sm:$0xff]  }
 0xae6   : > { %11047 = vmatprep.subr.bf16.mxu0 %v16223_v9  ;;  %v16230_v9 = vld [vmem:[%s21268_s3 + $0x560] ss:$8 sps:$4 sm:$0xff]  }
 0xae9   : > { %11048 = vmatpush1.bf16.msra.mxu0 %v16221_v13  ;;  %v16238_v13 = vld [vmem:[%s21268_s3 + $0x584] ss:$8 sps:$4 sm:$0xff]  }
 0xaea   : > { %11368 = vmatprep.subr.bf16.mxu0 %v16226_v5  ;;  %v16236_v5 = vld [vmem:[%s21268_s3 + $0x580] ss:$8 sps:$4 sm:$0xff]  }
 0xaec   : > { %10795 = vmatmul.mubr.bf16.gmra.mrb[80].mxu0 %v22112_v23 }
 0xaed   : > { %13348 = vmatprep.mubr.msk.bf16.mxu0 %vm710_vm1, %v22113_v2 }
 0xaf4   : > { %10805 = vmatmul.mubr.bf16.gmra.mrb[84].mxu0 %v22114_v11 }
 0xaf5   : > { %13349 = vmatprep.mubr.msk.bf16.mxu0 %vm710_vm1, %v20206_v15 }
 0xafc   : > { %10815 = vmatmul.mubr.bf16.gmra.mrb[88].mxu0 %v20209_v44 }
 0xafd   : > { %13350 = vmatprep.mubr.msk.bf16.mxu0 %vm710_vm1, %v20260_v51 }
 0xb04   : > { %10825 = vmatmul.mubr.bf16.gmra.mrb[92].mxu0 %v20263_v50 }
 0xb05   : > { %13399 = vmatprep.mubr.msk.bf16.mxu0 %vm710_vm1, %v19936_v63  ;;  %v16232_v63 = vld [vmem:[%s21268_s3 + $0x564] ss:$8 sps:$4 sm:$0xff]  }
 0xb0c   : > { %11058 = vmatmul.mubr.bf16.vlgmr.msra.gmra.mrb[56].mxu0 %v19934_v28  ;;  %v16235_v28 = vld [vmem:[%s21268_s3 + $0x574] ss:$8 sps:$4 sm:$0xff]  }
 0xb0d   : > { %13400 = vmatprep.mubr.msk.bf16.mxu0 %vm710_vm1, %v19988_v14  ;;  %11369 = vmatpush1.bf16.msra.mxu0 %v16224_v58  ;;  %v16233_v14 = vld [vmem:[%s21268_s3 + $0x570] ss:$8 sps:$4 sm:$0xff]   ;;  %v16244_v58 = vld [vmem:[%s21268_s3 + $0x5a4] ss:$8 sps:$4 sm:$0xff]  }
 0xb0e   : > { %11370 = vmatprep.subr.bf16.mxu0 %v16229_v1  ;;  %v16242_v1 = vld [vmem:[%s21268_s3 + $0x5a0] ss:$8 sps:$4 sm:$0xff]  }
 0xb11   : > { %11371 = vmatpush1.bf16.msra.mxu0 %v16227_v34  ;;  %v16250_v34 = vld [vmem:[%s21268_s3 + $0x5c4] ss:$8 sps:$4 sm:$0xff]  }
 0xb12   : > { %11372 = vmatprep.subr.bf16.mxu0 %v16232_v63  ;;  %v16248_v63 = vld [vmem:[%s21268_s3 + $0x5c0] ss:$8 sps:$4 sm:$0xff]  }
 0xb14   : > { %11068 = vmatmul.mubr.bf16.gmra.mrb[60].mxu0 %v19986_v6  ;;  %v16241_v6 = vld [vmem:[%s21268_s3 + $0x594] ss:$8 sps:$4 sm:$0xff]  }
 0xb15   : > { %13401 = vmatprep.mubr.msk.bf16.mxu0 %vm710_vm1, %v20030_v57  ;;  %11373 = vmatpush1.bf16.msra.mxu0 %v16230_v9  ;;  %v16239_v57 = vld [vmem:[%s21268_s3 + $0x590] ss:$8 sps:$4 sm:$0xff]   ;;  %v16256_v9 = vld [vmem:[%s21268_s3 + $0x5e4] ss:$8 sps:$4 sm:$0xff]  }
 0xb16   : > { %11374 = vmatprep.subr.bf16.mxu0 %v16235_v28  ;;  %v16254_v28 = vld [vmem:[%s21268_s3 + $0x5e0] ss:$8 sps:$4 sm:$0xff]  }
 0xb19   : > { %11375 = vmatpush1.bf16.msra.mxu0 %v16233_v14  ;;  %v16262_v14 = vld [vmem:[%s21268_s3 + $0x604] ss:$8 sps:$4 sm:$0xff]  }
 0xb1a   : > { %11376 = vmatprep.subr.bf16.mxu0 %v16238_v13 }
 0xb1c   : > { %11078 = vmatmul.mubr.bf16.gmra.mrb[64].mxu0 %v20028_v38  ;;  %v16247_v38 = vld [vmem:[%s21268_s3 + $0x5b4] ss:$8 sps:$4 sm:$0xff]  }
 0xb1d   : > { %13402 = vmatprep.mubr.msk.bf16.mxu0 %vm710_vm1, %v20073_v53  ;;  %11377 = vmatpush1.bf16.msra.mxu0 %v16236_v5  ;;  %v16245_v53 = vld [vmem:[%s21268_s3 + $0x5b0] ss:$8 sps:$4 sm:$0xff]   ;;  %v16286_v5 = vld [vmem:[%s21268_s3 + $0x684] ss:$8 sps:$4 sm:$0xff]  }
 0xb1e   : > { %11378 = vmatprep.subr.bf16.mxu0 %v16241_v6  ;;  %v16284_v6 = vld [vmem:[%s21268_s3 + $0x680] ss:$8 sps:$4 sm:$0xff]  }
 0xb21   : > { %11379 = vmatpush1.bf16.msra.mxu0 %v16239_v57  ;;  %v16292_v57 = vld [vmem:[%s21268_s3 + $0x6a4] ss:$8 sps:$4 sm:$0xff]  }
 0xb22   : > { %11380 = vmatprep.subr.bf16.mxu0 %v16244_v58  ;;  %v16290_v58 = vld [vmem:[%s21268_s3 + $0x6a0] ss:$8 sps:$4 sm:$0xff]  }
 0xb24   : > { %11088 = vmatmul.mubr.bf16.gmra.mrb[68].mxu0 %v20071_v33  ;;  %v16253_v33 = vld [vmem:[%s21268_s3 + $0x5d4] ss:$8 sps:$4 sm:$0xff]  }
 0xb25   : > { %13403 = vmatprep.mubr.msk.bf16.mxu0 %vm710_vm1, %v20100_v3  ;;  %11381 = vmatpush1.bf16.msra.mxu0 %v16242_v1  ;;  %v16251_v3 = vld [vmem:[%s21268_s3 + $0x5d0] ss:$8 sps:$4 sm:$0xff]   ;;  %v22138_v1 = vld [vmem:[#allocation58_spill] sm:$0xff] }
 0xb26   : > { %11382 = vmatprep.subr.bf16.mxu0 %v16247_v38  ;;  %v22139_v38 = vld [vmem:[#allocation35_spill] sm:$0xff] }
 0xb29   : > { %11383 = vmatpush1.bf16.msra.mxu0 %v16245_v53  ;;  %v22140_v53 = vpack.c.bf16 %v22138_v1, %v22139_v38 }
 0xb2a   : > { %11384 = vmatprep.subr.bf16.mxu0 %v16250_v34 }
 0xb2c   : > { %11098 = vmatmul.mubr.bf16.gmra.mrb[72].mxu0 %v20098_v19  ;;  %v16259_v19 = vld [vmem:[%s21268_s3 + $0x5f4] ss:$8 sps:$4 sm:$0xff]  }
 0xb2d   : > { %13404 = vmatprep.mubr.msk.bf16.mxu0 %vm710_vm1, %v20131_v61  ;;  %11385 = vmatpush1.bf16.msra.mxu0 %v16248_v63  ;;  %v16257_v61 = vld [vmem:[%s21268_s3 + $0x5f0] ss:$8 sps:$4 sm:$0xff]  }
 0xb2e   : > { %11386 = vmatprep.subr.bf16.mxu0 %v16253_v33 }
 0xb31   : > { %11387 = vmatpush1.bf16.msra.mxu0 %v16251_v3 }
 0xb32   : > { %11388 = vmatprep.subr.bf16.mxu0 %v16256_v9 }
 0xb34   : > { %11108 = vmatmul.mubr.bf16.gmra.mrb[76].mxu0 %v20129_v40  ;;  %v22133_v40 = vpack.c.bf16 %v20275_v29, %v20250_v43  ;;  %v16271_v43 = vld [vmem:[%s21268_s3 + $0x634] ss:$8 sps:$4 sm:$0xff]   ;;  %v16274_v29 = vld [vmem:[%s21268_s3 + $0x644] ss:$8 sps:$4 sm:$0xff]  }
 0xb35   : > { %13405 = vmatprep.mubr.msk.bf16.mxu0 %vm710_vm1, %v20158_v31  ;;  %11389 = vmatpush1.bf16.msra.mxu0 %v16254_v28  ;;  %v22134_v31 = vld [vmem:[#allocation18_spill] sm:$0xff] }
 0xb36   : > { %11390 = vmatprep.subr.bf16.mxu0 %v16259_v19  ;;  %v22135_v13 = vpack.c.bf16 %v20267_v47, %v22134_v31  ;;  %v16269_v47 = vld [vmem:[%s21268_s3 + $0x630] ss:$8 sps:$4 sm:$0xff]  }
 0xb39   : > { %11391 = vmatpush1.bf16.msra.mxu0 %v16257_v61 }
 0xb3a   : > { %11705 = vmatprep.subr.bf16.mxu0 %v16262_v14 }
 0xb3c   : > { %11118 = vmatmul.mubr.bf16.gmra.mrb[80].mxu0 %v20156_v52  ;;  %v16260_v52 = vld [vmem:[%s21268_s3 + $0x600] ss:$8 sps:$4 sm:$0xff]  }
 0xb3d   : > { %13406 = vmatprep.mubr.msk.bf16.mxu0 %vm710_vm1, %v20189_v16  ;;  %v16263_v16 = vld [vmem:[%s21268_s3 + $0x610] ss:$8 sps:$4 sm:$0xff]  }
 0xb44   : > { %11128 = vmatmul.mubr.bf16.gmra.mrb[84].mxu0 %v20187_v55  ;;  %v16265_v55 = vld [vmem:[%s21268_s3 + $0x614] ss:$8 sps:$4 sm:$0xff]  }
 0xb45   : > { %13407 = vmatprep.mubr.msk.bf16.mxu0 %vm710_vm1, %v20220_v21  ;;  %v16266_v21 = vld [vmem:[%s21268_s3 + $0x620] ss:$8 sps:$4 sm:$0xff]  }
 0xb4c   : > { %11138 = vmatmul.mubr.bf16.gmra.mrb[88].mxu0 %v20218_v62  ;;  %v16268_v62 = vld [vmem:[%s21268_s3 + $0x624] ss:$8 sps:$4 sm:$0xff]  }
 0xb4d   : > { %13408 = vmatprep.mubr.msk.bf16.mxu0 %vm710_vm1, %v22133_v40 }
 0xb54   : > { %11148 = vmatmul.mubr.bf16.gmra.mrb[92].mxu0 %v22135_v13 }
 0xb55   : > { %13457 = vmatprep.mubr.msk.bf16.mxu0 %vm710_vm1, %v22117_v46  ;;  %v16272_v46 = vld [vmem:[%s21268_s3 + $0x640] ss:$8 sps:$4 sm:$0xff]  }
 0xb5c   : > { %11401 = vmatmul.mubr.bf16.vlgmr.msra.gmra.mrb[56].mxu0 %v22118_v49  ;;  %v16275_v49 = vld [vmem:[%s21268_s3 + $0x650] ss:$8 sps:$4 sm:$0xff]  }
 0xb5d   : > { %13458 = vmatprep.mubr.msk.bf16.mxu0 %vm710_vm1, %v22119_v22  ;;  %11706 = vmatpush1.bf16.msra.mxu0 %v16260_v52  ;;  %v16280_v22 = vld [vmem:[%s21268_s3 + $0x664] ss:$8 sps:$4 sm:$0xff]  }
 0xb5e   : > { %11707 = vmatprep.subr.bf16.mxu0 %v16265_v55 }
 0xb61   : > { %11708 = vmatpush1.bf16.msra.mxu0 %v16263_v16 }
 0xb62   : > { %11709 = vmatprep.subr.bf16.mxu0 %v16268_v62 }
 0xb64   : > { %11411 = vmatmul.mubr.bf16.gmra.mrb[60].mxu0 %v22120_v42  ;;  %v16278_v42 = vld [vmem:[%s21268_s3 + $0x660] ss:$8 sps:$4 sm:$0xff]  }
 0xb65   : > { %13459 = vmatprep.mubr.msk.bf16.mxu0 %vm710_vm1, %v22121_v7  ;;  %11710 = vmatpush1.bf16.msra.mxu0 %v16266_v21  ;;  %v16277_v7 = vld [vmem:[%s21268_s3 + $0x654] ss:$8 sps:$4 sm:$0xff]  }
 0xb66   : > { %11711 = vmatprep.subr.bf16.mxu0 %v16271_v43 }
 0xb69   : > { %11712 = vmatpush1.bf16.msra.mxu0 %v16269_v47 }
 0xb6a   : > { %11713 = vmatprep.subr.bf16.mxu0 %v16274_v29 }
 0xb6c   : > { %11421 = vmatmul.mubr.bf16.gmra.mrb[64].mxu0 %v22122_v8  ;;  %v16281_v8 = vld [vmem:[%s21268_s3 + $0x670] ss:$8 sps:$4 sm:$0xff]  }
 0xb6d   : > { %13460 = vmatprep.mubr.msk.bf16.mxu0 %vm710_vm1, %v22123_v45  ;;  %11714 = vmatpush1.bf16.msra.mxu0 %v16272_v46  ;;  %v16283_v45 = vld [vmem:[%s21268_s3 + $0x674] ss:$8 sps:$4 sm:$0xff]  }
 0xb6e   : > { %11715 = vmatprep.subr.bf16.mxu0 %v16277_v7 }
 0xb71   : > { %11716 = vmatpush1.bf16.msra.mxu0 %v16275_v49 }
 0xb72   : > { %11717 = vmatprep.subr.bf16.mxu0 %v16280_v22 }
 0xb74   : > { %11431 = vmatmul.mubr.bf16.gmra.mrb[68].mxu0 %v22124_v18  ;;  %v16287_v18 = vld [vmem:[%s21268_s3 + $0x690] ss:$8 sps:$4 sm:$0xff]  }
 0xb75   : > { %13461 = vmatprep.mubr.msk.bf16.mxu0 %vm710_vm1, %v22125_v37  ;;  %11718 = vmatpush1.bf16.msra.mxu0 %v16278_v42  ;;  %v16289_v37 = vld [vmem:[%s21268_s3 + $0x694] ss:$8 sps:$4 sm:$0xff]  }
 0xb76   : > { %11719 = vmatprep.subr.bf16.mxu0 %v16283_v45 }
 0xb79   : > { %11720 = vmatpush1.bf16.msra.mxu0 %v16281_v8 }
 0xb7a   : > { %11721 = vmatprep.subr.bf16.mxu0 %v16286_v5 }
 0xb7c   : > { %11441 = vmatmul.mubr.bf16.gmra.mrb[72].mxu0 %v22126_v36  ;;  %v16293_v36 = vld [vmem:[%s21268_s3 + $0x6b0] ss:$8 sps:$4 sm:$0xff]  }
 0xb7d   : > { %13462 = vmatprep.mubr.msk.bf16.mxu0 %vm710_vm1, %v22127_v39  ;;  %11722 = vmatpush1.bf16.msra.mxu0 %v16284_v6  ;;  %v16295_v39 = vld [vmem:[%s21268_s3 + $0x6b4] ss:$8 sps:$4 sm:$0xff]  }
 0xb7e   : > { %11723 = vmatprep.subr.bf16.mxu0 %v16289_v37 }
 0xb81   : > { %11724 = vmatpush1.bf16.msra.mxu0 %v16287_v18 }
 0xb82   : > { %11725 = vmatprep.subr.bf16.mxu0 %v16292_v57 }
 0xb84   : > { %11451 = vmatmul.mubr.bf16.gmra.mrb[76].mxu0 %v22128_v4 }
 0xb85   : > { %13463 = vmatprep.mubr.msk.bf16.mxu0 %vm710_vm1, %v22129_v35  ;;  %11726 = vmatpush1.bf16.msra.mxu0 %v16290_v58  ;;  %v22136_v35 = vld [vmem:[#allocation48_spill] sm:$0xff] }
 0xb86   : > { %11727 = vmatprep.subr.bf16.mxu0 %v16295_v39  ;;  %v22137_v4 = vpack.c.bf16 %v20317_v25, %v22136_v35 }
 0xb89   : > { %11728 = vmatpush1.bf16.msra.mxu0 %v16293_v36 }
 0xb8c   : > { %11461 = vmatmul.mubr.bf16.gmra.mrb[80].mxu0 %v22130_v54 }
 0xb8d   : > { %13464 = vmatprep.mubr.msk.bf16.mxu0 %vm710_vm1, %v22131_v0 }
 0xb94   : > { %11471 = vmatmul.mubr.bf16.gmra.mrb[84].mxu0 %v22132_v48 }
 0xb95   : > { %13465 = vmatprep.mubr.msk.bf16.mxu0 %vm710_vm1, %v20256_v24 }
 0xb9c   : > { %11481 = vmatmul.mubr.bf16.gmra.mrb[88].mxu0 %v20258_v12 }
 0xb9d   : > { %13466 = vmatprep.mubr.msk.bf16.mxu0 %vm710_vm1, %v22137_v4 }
 0xba4   : > { %11491 = vmatmul.mubr.bf16.gmra.mrb[92].mxu0 %v22140_v53 }
 0xba5   : > { %13515 = vmatprep.mubr.msk.bf16.mxu0 %vm710_vm1, %v19970_v26  ;;  %v22142_v26 = vld [vmem:[#allocation62_spill] sm:$0xff] }
 0xbac   : > { %11738 = vmatmul.mubr.bf16.vlgmr.msra.gmra.mrb[56].mxu0 %v19976_v60 }
 0xbad   : > { %13516 = vmatprep.mubr.msk.bf16.mxu0 %vm710_vm1, %v20014_v17  ;;  %v22144_v17 = vld [vmem:[#allocation68_spill] sm:$0xff] }
 0xbb4   : > { %11748 = vmatmul.mubr.bf16.gmra.mrb[60].mxu0 %v20017_v41  ;;  %v22145_v41 = vld [vmem:[#allocation17_spill] sm:$0xff] }
 0xbb5   : > { %13517 = vmatprep.mubr.msk.bf16.mxu0 %vm710_vm1, %v20061_v32  ;;  %v22141_v32 = vld [vmem:[#allocation56_spill] sm:$0xff] }
 0xbb6   : > { %v22143_v60 = vpack.c.bf16 %v22141_v32, %v22142_v26 }
 0xbbc   : > { %11758 = vmatmul.mubr.bf16.gmra.mrb[64].mxu0 %v20064_v56  ;;  %v22146_v56 = vpack.c.bf16 %v22144_v17, %v22145_v41 }
 0xbbd   : > { %13518 = vmatprep.mubr.msk.bf16.mxu0 %vm710_vm1, %v20090_v59 }
 0xbc4   : > { %11768 = vmatmul.mubr.bf16.gmra.mrb[68].mxu0 %v20093_v10  ;;  %v11878_v10 = vld [vmem:[%s21271_s6] sm:$0x3] }
 0xbc5   : > { %13519 = vmatprep.mubr.msk.bf16.mxu0 %vm710_vm1, %v22109_v27 }
 0xbcc   : > { %11778 = vmatmul.mubr.bf16.gmra.mrb[72].mxu0 %v22110_v20 }
 0xbcd   : > { %13520 = vmatprep.mubr.msk.bf16.mxu0 %vm710_vm1, %v22111_v30 }
 0xbd4   : > { %11788 = vmatmul.mubr.bf16.gmra.mrb[76].mxu0 %v22112_v23 }
 0xbd5   : > { %13521 = vmatprep.mubr.msk.bf16.mxu0 %vm710_vm1, %v22113_v2 }
 0xbdc   : > { %11798 = vmatmul.mubr.bf16.gmra.mrb[80].mxu0 %v22114_v11 }
 0xbdd   : > { %13522 = vmatprep.mubr.msk.bf16.mxu0 %vm710_vm1, %v20206_v15 }
 0xbe4   : > { %11808 = vmatmul.mubr.bf16.gmra.mrb[84].mxu0 %v20209_v44  ;;  %v22147_v44 = vld [vmem:[#allocation14_spill] sm:$0xff] }
 0xbe5   : > { %13523 = vmatprep.mubr.msk.bf16.mxu0 %vm710_vm1, %v20260_v51  ;;  %v22148_v0 = vsub.s32 0, %v22147_v44 }
 0xbe7   : > { %v21060_v12 = vrot.slane %v11878_v10, %v22148_v0 }
 0xbec   : > { %11818 = vmatmul.mubr.bf16.gmra.mrb[88].mxu0 %v20263_v50  ;;  %v22149_v50 = vsub.s32 1, %v22147_v44 }
 0xbed   : > { %13524 = vmatprep.mubr.msk.bf16.mxu0 %vm710_vm1, %v22143_v60 }
 0xbee   : > { %v21064_v54 = vrot.slane %v11878_v10, %v22149_v50 }
 0xbf4   : > { %11828 = vmatmul.mubr.bf16.gmra.mrb[92].mxu0 %v22146_v56 }
 0xc7f   : > { %v11739_v59 = vpop.f32.mrb[56].mxu0 }
 0xc80   : > { %v11741_v24 = vpop.f32.mrb[57].mxu0  ;;  %v11890_v25 = vadd.f32 %v21060_v12, %v11739_v59 }
 0xc81   : > { %v11743_v15 = vpop.f32.mrb[58].mxu0  ;;  %v11891_v27 = vadd.f32 %v21064_v54, %v11741_v24 }
 0xc82   : > { %v11745_v51 = vpop.f32.mrb[59].mxu0  ;;  %v11892_v30 = vadd.f32 %v21060_v12, %v11743_v15  ;;  %v11930_v63 = vmax.f32 %v11890_v25, 0.0 }
 0xc83   : > { %v11893_v11 = vadd.f32 %v21064_v54, %v11745_v51  ;;  %v11931_v28 = vmax.f32 %v11891_v27, 0.0 }
 0xc84   : > { %v11932_v14 = vmax.f32 %v11892_v30, 0.0 }
 0xc85   : > { %v11933_v13 = vmax.f32 %v11893_v11, 0.0 }
 0xc87   : > { %v11749_v20 = vpop.f32.mrb[60].mxu0 }
 0xc88   : > { %v11894_v23 = vadd.f32 %v21060_v12, %v11749_v20  ;;  %v11751_v2 = vpop.f32.mrb[61].mxu0 }
 0xc89   : > { %v11895_v48 = vadd.f32 %v21064_v54, %v11751_v2  ;;  %v11753_v34 = vpop.f32.mrb[62].mxu0 }
 0xc8a   : > { %v11934_v33 = vmax.f32 %v11894_v23, 0.0  ;;  %v11896_v3 = vadd.f32 %v21060_v12, %v11753_v34  ;;  %v11755_v9 = vpop.f32.mrb[63].mxu0 }
 0xc8b   : > { %v11935_v19 = vmax.f32 %v11895_v48, 0.0  ;;  %v11897_v61 = vadd.f32 %v21064_v54, %v11755_v9 }
 0xc8c   : > { %v11970_v40 = vmax.f32 %v11930_v63, %v11934_v33  ;;  %v11936_v31 = vmax.f32 %v11896_v3, 0.0 }
 0xc8d   : > { %v11971_v52 = vmax.f32 %v11931_v28, %v11935_v19  ;;  %v11937_v55 = vmax.f32 %v11897_v61, 0.0 }
 0xc8e   : > { %v11972_v16 = vmax.f32 %v11932_v14, %v11936_v31  ;;  %v12010_v43 = vrot.slane %v11970_v40, 1 }
 0xc8f   : > { %v11973_v62 = vmax.f32 %v11933_v13, %v11937_v55  ;;  %v11759_v21 = vpop.f32.mrb[64].mxu0  ;;  %v12013_v49 = vrot.slane %v11971_v52, 1 }
 0xc90   : > { %v11761_v47 = vpop.f32.mrb[65].mxu0  ;;  %v12011_v29 = vrot.slane %v11972_v16, 1  ;;  %v11898_v37 = vadd.f32 %v21060_v12, %v11759_v21 }
 0xc91   : > { %v12014_v46 = vrot.slane %v11973_v62, 1  ;;  %v11763_v7 = vpop.f32.mrb[66].mxu0  ;;  %v11899_v57 = vadd.f32 %v21064_v54, %v11761_v47 }
 0xc92   : > { %v11765_v22 = vpop.f32.mrb[67].mxu0  ;;  %v21074_v42 = vmax.f32 %v11972_v16, %v12011_v29  ;;  %v12012_v45 = vsel %vm466_vm2, %v12010_v43, %v12011_v29  ;;  %v11900_v39 = vadd.f32 %v21060_v12, %v11763_v7  ;;  %v11938_v53 = vmax.f32 %v11898_v37, 0.0 }
 0xc93   : > { %v21077_v8 = vmax.f32 %v11970_v40, %v12012_v45  ;;  %v12015_v5 = vsel %vm466_vm2, %v12013_v49, %v12014_v46  ;;  %v21087_v18 = vmax.f32 %v11973_v62, %v12014_v46  ;;  %v11901_v4 = vadd.f32 %v21064_v54, %v11765_v22 }
 0xc94   : > { %12104 = vrot.lane.b32.xlu1 %v21074_v42, %s16367_s15  ;;  %v21084_v6 = vmax.f32 %v11971_v52, %v12015_v5  ;;  %v11939_v17 = vmax.f32 %v11899_v57, 0.0  ;;  %v11940_v59 = vmax.f32 %v11900_v39, 0.0 }
 0xc95   : > { %12100 = vrot.lane.b32.xlu0 %v21077_v8, %s16367_s15  ;;  %v11941_v15 = vmax.f32 %v11901_v4, 0.0 }
 0xc97   : > { %v11769_v58 = vpop.f32.mrb[68].mxu0 }
 0xc98   : > { %v11902_v36 = vadd.f32 %v21060_v12, %v11769_v58  ;;  %12106 = vrot.lane.b32.xlu1 %v21087_v18, %s16367_s15  ;;  %v11771_v35 = vpop.f32.mrb[69].mxu0 }
 0xc99   : > { %v11903_v1 = vadd.f32 %v21064_v54, %v11771_v35  ;;  %12102 = vrot.lane.b32.xlu0 %v21084_v6, %s16367_s15  ;;  %v11773_v38 = vpop.f32.mrb[70].mxu0 }
 0xc9a   : > { %v11942_v32 = vmax.f32 %v11902_v36, 0.0  ;;  %v11904_v26 = vadd.f32 %v21060_v12, %v11773_v38  ;;  %v11775_v60 = vpop.f32.mrb[71].mxu0 }
 0xc9b   : > { %v11943_v41 = vmax.f32 %v11903_v1, 0.0  ;;  %v11905_v56 = vadd.f32 %v21064_v54, %v11775_v60 }
 0xc9c   : > { %v11974_v10 = vmax.f32 %v11938_v53, %v11942_v32  ;;  %v11944_v24 = vmax.f32 %v11904_v26, 0.0 }
 0xc9d   : > { %v11975_v44 = vmax.f32 %v11939_v17, %v11943_v41  ;;  %v11945_v0 = vmax.f32 %v11905_v56, 0.0 }
 0xc9e   : > { %v11976_v51 = vmax.f32 %v11940_v59, %v11944_v24  ;;  %v12016_v27 = vrot.slane %v11974_v10, 1 }
 0xc9f   : > { %v11977_v50 = vmax.f32 %v11941_v15, %v11945_v0  ;;  %v11779_v25 = vpop.f32.mrb[72].mxu0  ;;  %v12019_v11 = vrot.slane %v11975_v44, 1 }
 0xca0   : > { %v12017_v20 = vrot.slane %v11976_v51, 1  ;;  %v11781_v30 = vpop.f32.mrb[73].mxu0  ;;  %v11906_v19 = vadd.f32 %v21060_v12, %v11779_v25 }
 0xca1   : > { %v12020_v23 = vrot.slane %v11977_v50, 1  ;;  %v11783_v2 = vpop.f32.mrb[74].mxu0  ;;  %v11907_v61 = vadd.f32 %v21064_v54, %v11781_v30 }
 0xca2   : > { %v11785_v48 = vpop.f32.mrb[75].mxu0  ;;  %v21100_v34 = vmax.f32 %v11976_v51, %v12017_v20  ;;  %v12018_v63 = vsel %vm466_vm2, %v12016_v27, %v12017_v20  ;;  %v11908_v40 = vadd.f32 %v21060_v12, %v11783_v2  ;;  %v11946_v62 = vmax.f32 %v11906_v19, 0.0 }
 0xca3   : > { %v21103_v33 = vmax.f32 %v11977_v50, %v12020_v23  ;;  %v21105_v3 = vmax.f32 %v11974_v10, %v12018_v63  ;;  %v12021_v9 = vsel %vm466_vm2, %v12019_v11, %v12020_v23  ;;  %v11909_v52 = vadd.f32 %v21064_v54, %v11785_v48 }
 0xca4   : > { %12112 = vrot.lane.b32.xlu0 %v21100_v34, %s16367_s15  ;;  %v21112_v28 = vmax.f32 %v11975_v44, %v12021_v9  ;;  %v11947_v29 = vmax.f32 %v11907_v61, 0.0  ;;  %v11948_v49 = vmax.f32 %v11908_v40, 0.0 }
 0xca5   : > { %12114 = vrot.lane.b32.xlu1 %v21103_v33, %s16367_s15  ;;  %v11949_v5 = vmax.f32 %v11909_v52, 0.0 }
 0xca7   : > { %v11789_v14 = vpop.f32.mrb[76].mxu0 }
 0xca8   : > { %v11910_v31 = vadd.f32 %v21060_v12, %v11789_v14  ;;  %12108 = vrot.lane.b32.xlu0 %v21105_v3, %s16367_s15  ;;  %v11791_v13 = vpop.f32.mrb[77].mxu0 }
 0xca9   : > { %v11911_v55 = vadd.f32 %v21064_v54, %v11791_v13  ;;  %12110 = vrot.lane.b32.xlu1 %v21112_v28, %s16367_s15  ;;  %v11793_v16 = vpop.f32.mrb[78].mxu0 }
 0xcaa   : > { %v11950_v21 = vmax.f32 %v11910_v31, 0.0  ;;  %v11912_v43 = vadd.f32 %v21060_v12, %v11793_v16  ;;  %v11795_v47 = vpop.f32.mrb[79].mxu0 }
 0xcab   : > { %v11951_v46 = vmax.f32 %v11911_v55, 0.0  ;;  %v11913_v7 = vadd.f32 %v21064_v54, %v11795_v47 }
 0xcac   : > { %v11978_v22 = vmax.f32 %v11946_v62, %v11950_v21  ;;  %v11952_v45 = vmax.f32 %v11912_v43, 0.0 }
 0xcad   : > { %v11979_v37 = vmax.f32 %v11947_v29, %v11951_v46  ;;  %v11953_v57 = vmax.f32 %v11913_v7, 0.0 }
 0xcae   : > { %v11980_v58 = vmax.f32 %v11948_v49, %v11952_v45  ;;  %v12022_v35 = vrot.slane %v11978_v22, 1 }
 0xcaf   : > { %v11981_v39 = vmax.f32 %v11949_v5, %v11953_v57  ;;  %v11799_v36 = vpop.f32.mrb[80].mxu0  ;;  %v12025_v32 = vrot.slane %v11979_v37, 1 }
 0xcb0   : > { %v12023_v4 = vrot.slane %v11980_v58, 1  ;;  %v11801_v1 = vpop.f32.mrb[81].mxu0  ;;  %v11914_v24 = vadd.f32 %v21060_v12, %v11799_v36 }
 0xcb1   : > { %v12026_v38 = vrot.slane %v11981_v39, 1  ;;  %v11803_v53 = vpop.f32.mrb[82].mxu0  ;;  %v11915_v15 = vadd.f32 %v21064_v54, %v11801_v1 }
 0xcb2   : > { %v11805_v26 = vpop.f32.mrb[83].mxu0  ;;  %v21126_v60 = vmax.f32 %v11980_v58, %v12023_v4  ;;  %v12024_v17 = vsel %vm466_vm2, %v12022_v35, %v12023_v4  ;;  %v11916_v0 = vadd.f32 %v21060_v12, %v11803_v53  ;;  %v11954_v30 = vmax.f32 %v11914_v24, 0.0 }
 0xcb3   : > { %v21129_v41 = vmax.f32 %v11981_v39, %v12026_v38  ;;  %v21131_v56 = vmax.f32 %v11978_v22, %v12024_v17  ;;  %v12027_v59 = vsel %vm466_vm2, %v12025_v32, %v12026_v38  ;;  %v11917_v25 = vadd.f32 %v21064_v54, %v11805_v26 }
 0xcb4   : > { %12120 = vrot.lane.b32.xlu0 %v21126_v60, %s16367_s15  ;;  %v21138_v10 = vmax.f32 %v11979_v37, %v12027_v59  ;;  %v11955_v48 = vmax.f32 %v11915_v15, 0.0  ;;  %v11956_v19 = vmax.f32 %v11916_v0, 0.0 }
 0xcb5   : > { %12122 = vrot.lane.b32.xlu1 %v21129_v41, %s16367_s15  ;;  %v11957_v40 = vmax.f32 %v11917_v25, 0.0 }
 0xcb7   : > { %v11809_v44 = vpop.f32.mrb[84].mxu0 }
 0xcb8   : > { %v11918_v51 = vadd.f32 %v21060_v12, %v11809_v44  ;;  %12116 = vrot.lane.b32.xlu0 %v21131_v56, %s16367_s15  ;;  %v11811_v50 = vpop.f32.mrb[85].mxu0 }
 0xcb9   : > { %v11919_v27 = vadd.f32 %v21064_v54, %v11811_v50  ;;  %12118 = vrot.lane.b32.xlu1 %v21138_v10, %s16367_s15  ;;  %v11813_v20 = vpop.f32.mrb[86].mxu0 }
 0xcba   : > { %v11958_v23 = vmax.f32 %v11918_v51, 0.0  ;;  %v11920_v2 = vadd.f32 %v21060_v12, %v11813_v20  ;;  %v11815_v11 = vpop.f32.mrb[87].mxu0 }
 0xcbb   : > { %v11959_v63 = vmax.f32 %v11919_v27, 0.0  ;;  %v11921_v9 = vadd.f32 %v21064_v54, %v11815_v11 }
 0xcbc   : > { %v11982_v61 = vmax.f32 %v11954_v30, %v11958_v23  ;;  %v11960_v14 = vmax.f32 %v11920_v2, 0.0 }
 0xcbd   : > { %v11983_v31 = vmax.f32 %v11955_v48, %v11959_v63  ;;  %v11961_v13 = vmax.f32 %v11921_v9, 0.0 }
 0xcbe   : > { %v11984_v52 = vmax.f32 %v11956_v19, %v11960_v14  ;;  %v12028_v62 = vrot.slane %v11982_v61, 1 }
 0xcbf   : > { %v11985_v55 = vmax.f32 %v11957_v40, %v11961_v13  ;;  %v11819_v16 = vpop.f32.mrb[88].mxu0  ;;  %v12031_v7 = vrot.slane %v11983_v31, 1 }
 0xcc0   : > { %v12029_v21 = vrot.slane %v11984_v52, 1  ;;  %v11922_v43 = vadd.f32 %v21060_v12, %v11819_v16  ;;  %v11821_v47 = vpop.f32.mrb[89].mxu0 }
 0xcc1   : > { %v12032_v29 = vrot.slane %v11985_v55, 1  ;;  %v11823_v46 = vpop.f32.mrb[90].mxu0  ;;  %v11923_v36 = vadd.f32 %v21064_v54, %v11821_v47 }
 0xcc2   : > { %v11924_v49 = vadd.f32 %v21060_v12, %v11823_v46  ;;  %v11825_v22 = vpop.f32.mrb[91].mxu0  ;;  %v21154_v45 = vmax.f32 %v11984_v52, %v12029_v21  ;;  %v12030_v5 = vsel %vm466_vm2, %v12028_v62, %v12029_v21  ;;  %v11962_v26 = vmax.f32 %v11922_v43, 0.0 }
 0xcc3   : > { %v21157_v37 = vmax.f32 %v11985_v55, %v12032_v29  ;;  %v21159_v57 = vmax.f32 %v11982_v61, %v12030_v5  ;;  %v12033_v58 = vsel %vm466_vm2, %v12031_v7, %v12032_v29  ;;  %v11925_v38 = vadd.f32 %v21064_v54, %v11825_v22 }
 0xcc4   : > { %12128 = vrot.lane.b32.xlu0 %v21154_v45, %s16367_s15  ;;  %v21166_v39 = vmax.f32 %v11983_v31, %v12033_v58  ;;  %v11963_v15 = vmax.f32 %v11923_v36, 0.0  ;;  %v11964_v51 = vmax.f32 %v11924_v49, 0.0 }
 0xcc5   : > { %12130 = vrot.lane.b32.xlu1 %v21157_v37, %s16367_s15  ;;  %v11965_v27 = vmax.f32 %v11925_v38, 0.0 }
 0xcc7   : > { %v11829_v35 = vpop.f32.mrb[92].mxu0 }
 0xcc8   : > { %v11926_v4 = vadd.f32 %v21060_v12, %v11829_v35  ;;  %12124 = vrot.lane.b32.xlu0 %v21159_v57, %s16367_s15  ;;  %v11831_v1 = vpop.f32.mrb[93].mxu0 }
 0xcc9   : > { %v11927_v53 = vadd.f32 %v21064_v54, %v11831_v1  ;;  %12126 = vrot.lane.b32.xlu1 %v21166_v39, %s16367_s15  ;;  %v11833_v32 = vpop.f32.mrb[94].mxu0 }
 0xcca   : > { %v11966_v17 = vmax.f32 %v11926_v4, 0.0  ;;  %v11928_v59 = vadd.f32 %v21060_v12, %v11833_v32  ;;  %v11835_v24 = vpop.f32.mrb[95].mxu0 }
 0xccb   : > { %v11967_v44 = vmax.f32 %v11927_v53, 0.0  ;;  %v11929_v0 = vadd.f32 %v21064_v54, %v11835_v24 }
 0xccc   : > { %v11986_v50 = vmax.f32 %v11962_v26, %v11966_v17  ;;  %v11968_v25 = vmax.f32 %v11928_v59, 0.0 }
 0xccd   : > { %v11987_v20 = vmax.f32 %v11963_v15, %v11967_v44  ;;  %v11969_v30 = vmax.f32 %v11929_v0, 0.0 }
 0xcce   : > { %v11988_v23 = vmax.f32 %v11964_v51, %v11968_v25  ;;  %v12034_v11 = vrot.slane %v11986_v50, 1 }
 0xccf   : > { %v11989_v2 = vmax.f32 %v11965_v27, %v11969_v30  ;;  %v12037_v63 = vrot.slane %v11987_v20, 1 }
 0xcd0   : > { %v12035_v48 = vrot.slane %v11988_v23, 1 }
 0xcd1   : > { %v12038_v9 = vrot.slane %v11989_v2, 1 }
 0xcd2   : > { %v12036_v12 = vsel %vm466_vm2, %v12034_v11, %v12035_v48  ;;  %v21188_v14 = vmax.f32 %v11988_v23, %v12035_v48 }
 0xcd3   : > { %v21179_v19 = vmax.f32 %v11986_v50, %v12036_v12  ;;  %v12039_v61 = vsel %vm466_vm2, %v12037_v63, %v12038_v9  ;;  %v21190_v40 = vmax.f32 %v11989_v2, %v12038_v9 }
 0xcd4   : > { %v21182_v54 = vmax.f32 %v11987_v20, %v12039_v61 }
 0xcd5   : > { %12132 = vrot.lane.b32.xlu0 %v21179_v19, %s16367_s15 }
 0xcd6   : > { %12134 = vrot.lane.b32.xlu1 %v21182_v54, %s16367_s15 }
 0xcd9   : > { %12136 = vrot.lane.b32.xlu0 %v21188_v14, %s16367_s15 }
 0xcda   : > { %12138 = vrot.lane.b32.xlu1 %v21190_v40, %s16367_s15 }
 0xd06   : > { %v12105_v31 = vpop.permute.xlu1 %12104 }
 0xd07   : > { %v12101_v13 = vpop.permute.xlu0 %12100 }
 0xd0a   : > { %v12107_v52 = vpop.permute.xlu1 %12106 }
 0xd0b   : > { %v12141_v55 = vsel %vm4666_vm3, %v12105_v31, %v12107_v52  ;;  %v12173_v16 = vmax.f32 %v21087_v18, %v12107_v52  ;;  %v12103_v62 = vpop.permute.xlu0 %12102 }
 0xd0c   : > { %v12172_v21 = vmax.f32 %v21074_v42, %v12141_v55  ;;  %v12140_v43 = vsel %vm4666_vm3, %v12101_v13, %v12103_v62  ;;  %v12171_v47 = vmax.f32 %v21084_v6, %v12103_v62 }
 0xd0d   : > { %12195 = vst.msk [vmem:[%s21200_s19 + $0x18] sm:$0x1] %vm12194_vm4, %v12173_v16  ;;  %v12170_v29 = vmax.f32 %v21077_v8, %v12140_v43 }
 0xd0e   : > { %12193 = vst [vmem:[%s21200_s19 + $0x10] sm:$0x1] %v12172_v21  ;;  %12192 = vst.msk [vmem:[%s21200_s19 + $0x8] sm:$0xff] %vm12191_vm5, %v12171_v47 }
 0xd0f   : > { %12190 = vst [vmem:[%s21200_s19] sm:$0xff] %v12170_v29 }
 0xd16   : > { %v12113_v18 = vpop.permute.xlu0 %12112 }
 0xd17   : > { %v12115_v46 = vpop.permute.xlu1 %12114 }
 0xd18   : > { %v12143_v7 = vsel %vm4666_vm3, %v12113_v18, %v12115_v46  ;;  %v12177_v42 = vmax.f32 %v21103_v33, %v12115_v46 }
 0xd19   : > { %v12176_v49 = vmax.f32 %v21100_v34, %v12143_v7 }
 0xd1a   : > { %12199 = vst.msk [vmem:[%s21200_s19 + $0x38] sm:$0x1] %vm12194_vm4, %v12177_v42  ;;  %v12109_v6 = vpop.permute.xlu0 %12108 }
 0xd1b   : > { %12198 = vst [vmem:[%s21200_s19 + $0x30] sm:$0x1] %v12176_v49  ;;  %v12111_v8 = vpop.permute.xlu1 %12110 }
 0xd1c   : > { %v12142_v22 = vsel %vm4666_vm3, %v12109_v6, %v12111_v8  ;;  %v12175_v5 = vmax.f32 %v21112_v28, %v12111_v8 }
 0xd1d   : > { %v12174_v58 = vmax.f32 %v21105_v3, %v12142_v22 }
 0xd1e   : > { %12197 = vst.msk [vmem:[%s21200_s19 + $0x28] sm:$0xff] %vm12191_vm5, %v12175_v5 }
 0xd1f   : > { %12196 = vst [vmem:[%s21200_s19 + $0x20] sm:$0xff] %v12174_v58 }
 0xd26   : > { %v12121_v33 = vpop.permute.xlu0 %12120 }
 0xd27   : > { %v12123_v36 = vpop.permute.xlu1 %12122 }
 0xd28   : > { %v12145_v34 = vsel %vm4666_vm3, %v12121_v33, %v12123_v36  ;;  %v12181_v35 = vmax.f32 %v21129_v41, %v12123_v36 }
 0xd29   : > { %v12180_v4 = vmax.f32 %v21126_v60, %v12145_v34 }
 0xd2a   : > { %12203 = vst.msk [vmem:[%s21200_s19 + $0x58] sm:$0x1] %vm12194_vm4, %v12181_v35  ;;  %v12117_v28 = vpop.permute.xlu0 %12116 }
 0xd2b   : > { %12202 = vst [vmem:[%s21200_s19 + $0x50] sm:$0x1] %v12180_v4  ;;  %v12119_v1 = vpop.permute.xlu1 %12118 }
 0xd2c   : > { %v12144_v3 = vsel %vm4666_vm3, %v12117_v28, %v12119_v1  ;;  %v12179_v38 = vmax.f32 %v21138_v10, %v12119_v1 }
 0xd2d   : > { %v12178_v53 = vmax.f32 %v21131_v56, %v12144_v3 }
 0xd2e   : > { %12201 = vst.msk [vmem:[%s21200_s19 + $0x48] sm:$0xff] %vm12191_vm5, %v12179_v38 }
 0xd2f   : > { %12200 = vst [vmem:[%s21200_s19 + $0x40] sm:$0xff] %v12178_v53 }
 0xd36   : > { %v12129_v41 = vpop.permute.xlu0 %12128 }
 0xd37   : > { %v12131_v32 = vpop.permute.xlu1 %12130 }
 0xd38   : > { %v12147_v60 = vsel %vm4666_vm3, %v12129_v41, %v12131_v32  ;;  %v12185_v26 = vmax.f32 %v21157_v37, %v12131_v32 }
 0xd39   : > { %v12184_v17 = vmax.f32 %v21154_v45, %v12147_v60 }
 0xd3a   : > { %12207 = vst.msk [vmem:[%s21200_s19 + $0x78] sm:$0x1] %vm12194_vm4, %v12185_v26  ;;  %v12125_v10 = vpop.permute.xlu0 %12124 }
 0xd3b   : > { %12206 = vst [vmem:[%s21200_s19 + $0x70] sm:$0x1] %v12184_v17  ;;  %v12127_v59 = vpop.permute.xlu1 %12126 }
 0xd3c   : > { %v12146_v56 = vsel %vm4666_vm3, %v12125_v10, %v12127_v59  ;;  %v12183_v24 = vmax.f32 %v21166_v39, %v12127_v59 }
 0xd3d   : > { %v12182_v15 = vmax.f32 %v21159_v57, %v12146_v56 }
 0xd3e   : > { %12205 = vst.msk [vmem:[%s21200_s19 + $0x68] sm:$0xff] %vm12191_vm5, %v12183_v24 }
 0xd3f   : > { %12204 = vst [vmem:[%s21200_s19 + $0x60] sm:$0xff] %v12182_v15 }
 0xd47   : > { %v12133_v37 = vpop.permute.xlu0 %12132 }
 0xd48   : > { %v12135_v44 = vpop.permute.xlu1 %12134 }
 0xd49   : > { %v12148_v45 = vsel %vm4666_vm3, %v12133_v37, %v12135_v44  ;;  %v12187_v0 = vmax.f32 %v21182_v54, %v12135_v44 }
 0xd4a   : > { %v12186_v51 = vmax.f32 %v21179_v19, %v12148_v45 }
 0xd4b   : > { %12209 = vst.msk [vmem:[%s21200_s19 + $0x88] sm:$0xff] %vm12191_vm5, %v12187_v0  ;;  %v12137_v50 = vpop.permute.xlu0 %12136 }
 0xd4c   : > { %12208 = vst [vmem:[%s21200_s19 + $0x80] sm:$0xff] %v12186_v51  ;;  %v12139_v39 = vpop.permute.xlu1 %12138 }
 0xd4d   : > { %v12149_v25 = vsel %vm4666_vm3, %v12137_v50, %v12139_v39  ;;  %v12189_v57 = vmax.f32 %v21190_v40, %v12139_v39 }
 0xd4e   : > { %v12188_v27 = vmax.f32 %v21188_v14, %v12149_v25 }
 0xd4f   : > { %12211 = vst.msk [vmem:[%s21200_s19 + $0x98] sm:$0x1] %vm12194_vm4, %v12189_v57 }
 0xd50   : > { %12210 = vst [vmem:[%s21200_s19 + $0x90] sm:$0x1] %v12188_v27 }
 0xd51 PF: > { %s17_s24 = sadd.s32 1, %s16364_s24  }
 0xd52   : > { %p14_p4 = scmp.ge.s32.totalorder %s17_s24, 4  }
 0xd54   :  { %16 = sbr.rel (!%p14_p4) target bundleno = 1 (0x1), region = 102 }

</bundles_post_ra>
